<compile_context>
chip_gen: v5e
topology: v5e:2x2
jax: 0.10.0
libtpu: 0.0.40
codegen_flags: <defaults>
</compile_context>

<pallas_src>
import jax
import jax.numpy as jnp
from jax.experimental import pallas as pl
from jax.experimental.pallas import tpu as pltpu


# ----------------------------------------------------------------------------
# Fused Pallas kernel: conv3x3+BN+ReLU -> conv3x3+BN+ReLU -> conv3x3 * mask
# ----------------------------------------------------------------------------
def _fused_recal_kernel_factory(H, W, C_in, C_mid, C_out, compute_dtype):
    HW = H * W

    def conv3x3(pad_ref, x_flat, w_ref, n_in, shift=None, relu=False,
                mask=None):
        # Write the interior of the zero-halo scratch (border stays zero) and
        # build the (9*n_in, H*W) im2col patch matrix, spatial on lanes.
        pad_ref[0:n_in, 1:H + 1, 1:W + 1] = x_flat.reshape(n_in, H, W)
        xp = pad_ref[0:n_in]                              # (n_in, H+2, W+2)
        patches = jnp.concatenate(
            [xp[:, dy:dy + H, dx:dx + W].reshape(n_in, HW)
             for dy in range(3) for dx in range(3)],
            axis=0)                                        # (9*n_in, HW)
        # Single MXU contraction per layer; BN scale already folded into w.
        y = jnp.dot(w_ref[...], patches.astype(compute_dtype),
                    preferred_element_type=jnp.float32)    # (n_out, HW)
        if shift is not None:
            y = y + shift                                  # (n_out, 1) bcast
        if relu:
            y = jnp.maximum(y, 0.0)
        if mask is not None:
            y = y * mask
        return y

    def kernel(x_ref, mask_ref, w1_ref, w2_ref, w3_ref, s1_ref, s2_ref,
               out_ref, pad_ref):
        # Zero the halo buffer (tiny; keeps the border zero for every layer
        # and is megacore-safe without a program_id==0 gate).
        pad_ref[...] = jnp.zeros_like(pad_ref)

        h1 = conv3x3(pad_ref, x_ref[0], w1_ref, C_in,
                     shift=s1_ref[...], relu=True)         # (C_mid, HW)
        h2 = conv3x3(pad_ref, h1, w2_ref, C_mid,
                     shift=s2_ref[...], relu=True)         # (C_mid, HW)
        y = conv3x3(pad_ref, h2, w3_ref, C_mid,
                    mask=mask_ref[0])                      # (C_out, HW)
        out_ref[0] = y.astype(out_ref.dtype)

    return kernel


# ----------------------------------------------------------------------------
# BN folding helpers (inference-mode BatchNorm)
# ----------------------------------------------------------------------------
def _fold_bn(gamma, beta, mean, var, eps=1e-5):
    scale = gamma / jnp.sqrt(var + eps)
    shift = beta - mean * scale
    return scale, shift


def _fold_weight(w_hwio, scale, compute_dtype):
    # (3,3,Cin,Cout) * per-Cout scale -> (Cout, 9*Cin), K-order (dy, dx, cin)
    # matching the im2col patch order used inside the kernel.
    w = w_hwio * scale[None, None, None, :]
    cout = w_hwio.shape[-1]
    return jnp.transpose(w, (3, 0, 1, 2)).reshape(cout, -1).astype(compute_dtype)


# ----------------------------------------------------------------------------
# Recalibration module forward (single fused pallas_call)
# ----------------------------------------------------------------------------
def recalibration_forward(feat_nchw, mask_nchw, params, *,
                          compute_dtype=jnp.float32, eps=1e-5):
    N, C_in, H, W = feat_nchw.shape
    C_mid = params["w1"].shape[-1]
    C_out = params["w3"].shape[-1]
    HW = H * W

    s1, b1 = _fold_bn(params["bn1_gamma"], params["bn1_beta"],
                      params["bn1_mean"], params["bn1_var"], eps)
    s2, b2 = _fold_bn(params["bn2_gamma"], params["bn2_beta"],
                      params["bn2_mean"], params["bn2_var"], eps)

    w1 = _fold_weight(params["w1"], s1, compute_dtype)            # (C_mid, 9*C_in)
    w2 = _fold_weight(params["w2"], s2, compute_dtype)            # (C_mid, 9*C_mid)
    w3 = _fold_weight(params["w3"], jnp.ones((C_out,), jnp.float32),
                      compute_dtype)                              # (C_out, 9*C_mid)
    shift1 = b1.reshape(C_mid, 1).astype(jnp.float32)
    shift2 = b2.reshape(C_mid, 1).astype(jnp.float32)

    # NCHW -> (N, C, H*W): channels on sublanes, spatial (mult. of 128) on
    # lanes. Pure reshapes, no transposes, no wrapper-side padding.
    x = feat_nchw.reshape(N, C_in, HW).astype(jnp.float32)
    m = mask_nchw.reshape(N, C_out, HW).astype(jnp.float32)

    kernel = _fused_recal_kernel_factory(H, W, C_in, C_mid, C_out,
                                         compute_dtype)
    out = pl.pallas_call(
        kernel,
        grid=(N,),
        in_specs=[
            pl.BlockSpec((1, C_in, HW), lambda n: (n, 0, 0)),     # feat
            pl.BlockSpec((1, C_out, HW), lambda n: (n, 0, 0)),    # mask
            pl.BlockSpec((C_mid, 9 * C_in), lambda n: (0, 0)),    # w1 (folded)
            pl.BlockSpec((C_mid, 9 * C_mid), lambda n: (0, 0)),   # w2 (folded)
            pl.BlockSpec((C_out, 9 * C_mid), lambda n: (0, 0)),   # w3
            pl.BlockSpec((C_mid, 1), lambda n: (0, 0)),           # bn1 shift
            pl.BlockSpec((C_mid, 1), lambda n: (0, 0)),           # bn2 shift
        ],
        out_specs=pl.BlockSpec((1, C_out, HW), lambda n: (n, 0, 0)),
        out_shape=jax.ShapeDtypeStruct((N, C_out, HW), jnp.float32),
        scratch_shapes=[
            pltpu.VMEM((max(C_in, C_mid), H + 2, W + 2), jnp.float32)],
        compiler_params=pltpu.CompilerParams(
            dimension_semantics=("parallel",)),
    )(x, m, w1, w2, w3, shift1, shift2)

    # (N, C_out, H*W) -> NCHW, again just a reshape.
    return out.reshape(N, C_out, H, W)


# ----------------------------------------------------------------------------
# Pure-JAX reference (for correctness check)
# ----------------------------------------------------------------------------
def recalibration_ref(feat_nchw, mask_nchw, params):
    def conv(x, w_hwio):
        w_oihw = jnp.transpose(w_hwio, (3, 2, 0, 1))
        return jax.lax.conv_general_dilated(
            x, w_oihw, (1, 1), ((1, 1), (1, 1)),
            dimension_numbers=("NCHW", "OIHW", "NCHW"))

    def bn(x, g, b, m, v, eps=1e-5):
        s = g / jnp.sqrt(v + eps)
        return x * s[None, :, None, None] + (b - m * s)[None, :, None, None]

    x = conv(feat_nchw, params["w1"])
    x = jnp.maximum(bn(x, params["bn1_gamma"], params["bn1_beta"],
                       params["bn1_mean"], params["bn1_var"]), 0.0)
    x = conv(x, params["w2"])
    x = jnp.maximum(bn(x, params["bn2_gamma"], params["bn2_beta"],
                       params["bn2_mean"], params["bn2_var"]), 0.0)
    x = conv(x, params["w3"])
    return x * mask_nchw


# ----------------------------------------------------------------------------
# Main
# ----------------------------------------------------------------------------
if __name__ == "__main__":
    key = jax.random.PRNGKey(0)
    N, SIZE, H, W = 2, 4, 16, 16     # batch, in/out channels ("size"), spatial
    NC = 8                           # num_channel (small for the demo)

    ks = jax.random.split(key, 12)
    # Conv weights stored HWIO (3,3,Cin,Cout); deterministic init.
    w1 = 0.1 * jax.random.normal(ks[0], (3, 3, SIZE, NC), jnp.float32)
    w2 = 0.1 * jax.random.normal(ks[1], (3, 3, NC, NC), jnp.float32)
    w3 = 0.1 * jax.random.normal(ks[2], (3, 3, NC, SIZE), jnp.float32)

    params = {
        "w1": w1, "w2": w2, "w3": w3,
        "bn1_gamma": 1.0 + 0.1 * jax.random.normal(ks[3], (NC,), jnp.float32),
        "bn1_beta": 0.1 * jax.random.normal(ks[4], (NC,), jnp.float32),
        "bn1_mean": 0.1 * jax.random.normal(ks[5], (NC,), jnp.float32),
        "bn1_var": jnp.abs(jax.random.normal(ks[6], (NC,), jnp.float32)) + 0.5,
        "bn2_gamma": 1.0 + 0.1 * jax.random.normal(ks[7], (NC,), jnp.float32),
        "bn2_beta": 0.1 * jax.random.normal(ks[8], (NC,), jnp.float32),
        "bn2_mean": 0.1 * jax.random.normal(ks[9], (NC,), jnp.float32),
        "bn2_var": jnp.abs(jax.random.normal(ks[10], (NC,), jnp.float32)) + 0.5,
    }

    kf, km = jax.random.split(ks[11])
    feat = jax.random.normal(kf, (N, SIZE, H, W), jnp.float32)   # NCHW
    mask = (jax.random.uniform(km, (N, SIZE, H, W)) > 0.5).astype(jnp.float32)

    out = jax.block_until_ready(jax.jit(recalibration_forward)(feat, mask, params))
    ref = recalibration_ref(feat, mask, params)

    assert out.shape == (N, SIZE, H, W)
    assert jnp.allclose(out, ref, atol=1e-4, rtol=1e-4), (
        float(jnp.max(jnp.abs(out - ref))))
    print("KERNEL_OK")
</pallas_src>

<mosaic_0001>
module attributes {stable_mosaic.version = 11 : i64} {
  func.func @kernel(%arg0: i32, %arg1: memref<1x4x256xf32, #tpu.memory_space<vmem>>, %arg2: memref<1x4x256xf32, #tpu.memory_space<vmem>>, %arg3: memref<8x36xf32, #tpu.memory_space<vmem>>, %arg4: memref<8x72xf32, #tpu.memory_space<vmem>>, %arg5: memref<4x72xf32, #tpu.memory_space<vmem>>, %arg6: memref<8x1xf32, #tpu.memory_space<vmem>>, %arg7: memref<8x1xf32, #tpu.memory_space<vmem>>, %arg8: memref<1x4x256xf32, #tpu.memory_space<vmem>>, %arg9: memref<8x18x18xf32, #tpu.memory_space<vmem>>) attributes {dimension_semantics = [#tpu.dimension_semantics<parallel>], iteration_bounds = array<i64: 2>, scalar_prefetch = 0 : i64, scratch_operands = 1 : i64, tpu.core_type = #tpu.core_type<tc>, window_params = [{transform_indices = @transform_0, window_bounds = array<i64: 1, 4, 256>}, {transform_indices = @transform_1, window_bounds = array<i64: 1, 4, 256>}, {pipeline_mode = #tpu.pipeline_mode<synchronous>, transform_indices = @transform_2, window_bounds = array<i64: 8, 36>}, {pipeline_mode = #tpu.pipeline_mode<synchronous>, transform_indices = @transform_3, window_bounds = array<i64: 8, 72>}, {pipeline_mode = #tpu.pipeline_mode<synchronous>, transform_indices = @transform_4, window_bounds = array<i64: 4, 72>}, {pipeline_mode = #tpu.pipeline_mode<synchronous>, transform_indices = @transform_5, window_bounds = array<i64: 8, 1>}, {pipeline_mode = #tpu.pipeline_mode<synchronous>, transform_indices = @transform_6, window_bounds = array<i64: 8, 1>}, {transform_indices = @transform_7, window_bounds = array<i64: 1, 4, 256>}]} {
    %cst = arith.constant 0.000000e+00 : f32
    %0 = vector.broadcast %cst : f32 to vector<8x18x18xf32>
    %c0 = arith.constant 0 : index
    %c0_0 = arith.constant 0 : index
    %c0_1 = arith.constant 0 : index
    %1 = vector.load %arg9[%c0, %c0_0, %c0_1] : memref<8x18x18xf32, #tpu.memory_space<vmem>>, vector<8x18x18xf32>
    tpu.vector_store %arg9[%c0, %c0_0, %c0_1], %0 {strides = array<i32>} : memref<8x18x18xf32, #tpu.memory_space<vmem>>, vector<8x18x18xf32>,
    %c0_2 = arith.constant 0 : index
    %c0_3 = arith.constant 0 : index
    %c0_4 = arith.constant 0 : index
    %2 = vector.load %arg1[%c0_2, %c0_3, %c0_4] : memref<1x4x256xf32, #tpu.memory_space<vmem>>, vector<1x4x256xf32>
    %3 = vector.shape_cast %2 : vector<1x4x256xf32> to vector<4x256xf32>
    %c0_5 = arith.constant 0 : index
    %c0_6 = arith.constant 0 : index
    %4 = vector.load %arg6[%c0_5, %c0_6] : memref<8x1xf32, #tpu.memory_space<vmem>>, vector<8x1xf32>
    %5 = vector.shape_cast %3 : vector<4x256xf32> to vector<4x16x16xf32>
    %c0_7 = arith.constant 0 : index
    %c1 = arith.constant 1 : index
    %c1_8 = arith.constant 1 : index
    %6 = vector.load %arg9[%c0_7, %c1, %c1_8] : memref<8x18x18xf32, #tpu.memory_space<vmem>>, vector<4x16x16xf32>
    tpu.vector_store %arg9[%c0_7, %c1, %c1_8], %5 {strides = array<i32>} : memref<8x18x18xf32, #tpu.memory_space<vmem>>, vector<4x16x16xf32>,
    %c0_9 = arith.constant 0 : index
    %c0_10 = arith.constant 0 : index
    %c0_11 = arith.constant 0 : index
    %7 = vector.load %arg9[%c0_9, %c0_10, %c0_11] : memref<8x18x18xf32, #tpu.memory_space<vmem>>, vector<4x18x18xf32>
    %8 = vector.extract_strided_slice %7 {offsets = [0, 0, 0], sizes = [4, 16, 16], strides = [1, 1, 1]} : vector<4x18x18xf32> to vector<4x16x16xf32>
    %9 = vector.shape_cast %8 : vector<4x16x16xf32> to vector<4x256xf32>
    %10 = vector.extract_strided_slice %7 {offsets = [0, 0, 1], sizes = [4, 16, 16], strides = [1, 1, 1]} : vector<4x18x18xf32> to vector<4x16x16xf32>
    %11 = vector.shape_cast %10 : vector<4x16x16xf32> to vector<4x256xf32>
    %12 = vector.extract_strided_slice %7 {offsets = [0, 0, 2], sizes = [4, 16, 16], strides = [1, 1, 1]} : vector<4x18x18xf32> to vector<4x16x16xf32>
    %13 = vector.shape_cast %12 : vector<4x16x16xf32> to vector<4x256xf32>
    %14 = vector.extract_strided_slice %7 {offsets = [0, 1, 0], sizes = [4, 16, 16], strides = [1, 1, 1]} : vector<4x18x18xf32> to vector<4x16x16xf32>
    %15 = vector.shape_cast %14 : vector<4x16x16xf32> to vector<4x256xf32>
    %16 = vector.extract_strided_slice %7 {offsets = [0, 1, 1], sizes = [4, 16, 16], strides = [1, 1, 1]} : vector<4x18x18xf32> to vector<4x16x16xf32>
    %17 = vector.shape_cast %16 : vector<4x16x16xf32> to vector<4x256xf32>
    %18 = vector.extract_strided_slice %7 {offsets = [0, 1, 2], sizes = [4, 16, 16], strides = [1, 1, 1]} : vector<4x18x18xf32> to vector<4x16x16xf32>
    %19 = vector.shape_cast %18 : vector<4x16x16xf32> to vector<4x256xf32>
    %20 = vector.extract_strided_slice %7 {offsets = [0, 2, 0], sizes = [4, 16, 16], strides = [1, 1, 1]} : vector<4x18x18xf32> to vector<4x16x16xf32>
    %21 = vector.shape_cast %20 : vector<4x16x16xf32> to vector<4x256xf32>
    %22 = vector.extract_strided_slice %7 {offsets = [0, 2, 1], sizes = [4, 16, 16], strides = [1, 1, 1]} : vector<4x18x18xf32> to vector<4x16x16xf32>
    %23 = vector.shape_cast %22 : vector<4x16x16xf32> to vector<4x256xf32>
    %24 = vector.extract_strided_slice %7 {offsets = [0, 2, 2], sizes = [4, 16, 16], strides = [1, 1, 1]} : vector<4x18x18xf32> to vector<4x16x16xf32>
    %25 = vector.shape_cast %24 : vector<4x16x16xf32> to vector<4x256xf32>
    %26 = tpu.concatenate %9, %11, %13, %15, %17, %19, %21, %23, %25 in 0 : vector<4x256xf32>, vector<4x256xf32>, vector<4x256xf32>, vector<4x256xf32>, vector<4x256xf32>, vector<4x256xf32>, vector<4x256xf32>, vector<4x256xf32>, vector<4x256xf32> -> vector<36x256xf32>
    %c0_12 = arith.constant 0 : index
    %c0_13 = arith.constant 0 : index
    %27 = vector.load %arg3[%c0_12, %c0_13] : memref<8x36xf32, #tpu.memory_space<vmem>>, vector<8x36xf32>
    %cst_14 = arith.constant dense<0.000000e+00> : vector<8x256xf32>
    %28 = tpu.matmul %27, %26, %cst_14 {dimension_numbers = #tpu.dot_dimension_numbers<[1], [0], [0], [1], [0, 0, 1, 1], [], []>} : vector<8x36xf32>, vector<36x256xf32>, vector<8x256xf32> -> vector<8x256xf32>
    %29 = vector.broadcast %4 : vector<8x1xf32> to vector<8x256xf32>
    %30 = arith.addf %28, %29 : vector<8x256xf32>
    %cst_15 = arith.constant 0.000000e+00 : f32
    %31 = vector.broadcast %cst_15 : f32 to vector<8x256xf32>
    %32 = arith.maximumf %30, %31 : vector<8x256xf32>
    %c0_16 = arith.constant 0 : index
    %c0_17 = arith.constant 0 : index
    %33 = vector.load %arg7[%c0_16, %c0_17] : memref<8x1xf32, #tpu.memory_space<vmem>>, vector<8x1xf32>
    %34 = vector.shape_cast %32 : vector<8x256xf32> to vector<8x16x16xf32>
    %c0_18 = arith.constant 0 : index
    %c1_19 = arith.constant 1 : index
    %c1_20 = arith.constant 1 : index
    %35 = vector.load %arg9[%c0_18, %c1_19, %c1_20] : memref<8x18x18xf32, #tpu.memory_space<vmem>>, vector<8x16x16xf32>
    tpu.vector_store %arg9[%c0_18, %c1_19, %c1_20], %34 {strides = array<i32>} : memref<8x18x18xf32, #tpu.memory_space<vmem>>, vector<8x16x16xf32>,
    %c0_21 = arith.constant 0 : index
    %c0_22 = arith.constant 0 : index
    %c0_23 = arith.constant 0 : index
    %36 = vector.load %arg9[%c0_21, %c0_22, %c0_23] : memref<8x18x18xf32, #tpu.memory_space<vmem>>, vector<8x18x18xf32>
    %37 = vector.extract_strided_slice %36 {offsets = [0, 0, 0], sizes = [8, 16, 16], strides = [1, 1, 1]} : vector<8x18x18xf32> to vector<8x16x16xf32>
    %38 = vector.shape_cast %37 : vector<8x16x16xf32> to vector<8x256xf32>
    %39 = vector.extract_strided_slice %36 {offsets = [0, 0, 1], sizes = [8, 16, 16], strides = [1, 1, 1]} : vector<8x18x18xf32> to vector<8x16x16xf32>
    %40 = vector.shape_cast %39 : vector<8x16x16xf32> to vector<8x256xf32>
    %41 = vector.extract_strided_slice %36 {offsets = [0, 0, 2], sizes = [8, 16, 16], strides = [1, 1, 1]} : vector<8x18x18xf32> to vector<8x16x16xf32>
    %42 = vector.shape_cast %41 : vector<8x16x16xf32> to vector<8x256xf32>
    %43 = vector.extract_strided_slice %36 {offsets = [0, 1, 0], sizes = [8, 16, 16], strides = [1, 1, 1]} : vector<8x18x18xf32> to vector<8x16x16xf32>
    %44 = vector.shape_cast %43 : vector<8x16x16xf32> to vector<8x256xf32>
    %45 = vector.extract_strided_slice %36 {offsets = [0, 1, 1], sizes = [8, 16, 16], strides = [1, 1, 1]} : vector<8x18x18xf32> to vector<8x16x16xf32>
    %46 = vector.shape_cast %45 : vector<8x16x16xf32> to vector<8x256xf32>
    %47 = vector.extract_strided_slice %36 {offsets = [0, 1, 2], sizes = [8, 16, 16], strides = [1, 1, 1]} : vector<8x18x18xf32> to vector<8x16x16xf32>
    %48 = vector.shape_cast %47 : vector<8x16x16xf32> to vector<8x256xf32>
    %49 = vector.extract_strided_slice %36 {offsets = [0, 2, 0], sizes = [8, 16, 16], strides = [1, 1, 1]} : vector<8x18x18xf32> to vector<8x16x16xf32>
    %50 = vector.shape_cast %49 : vector<8x16x16xf32> to vector<8x256xf32>
    %51 = vector.extract_strided_slice %36 {offsets = [0, 2, 1], sizes = [8, 16, 16], strides = [1, 1, 1]} : vector<8x18x18xf32> to vector<8x16x16xf32>
    %52 = vector.shape_cast %51 : vector<8x16x16xf32> to vector<8x256xf32>
    %53 = vector.extract_strided_slice %36 {offsets = [0, 2, 2], sizes = [8, 16, 16], strides = [1, 1, 1]} : vector<8x18x18xf32> to vector<8x16x16xf32>
    %54 = vector.shape_cast %53 : vector<8x16x16xf32> to vector<8x256xf32>
    %55 = tpu.concatenate %38, %40, %42, %44, %46, %48, %50, %52, %54 in 0 : vector<8x256xf32>, vector<8x256xf32>, vector<8x256xf32>, vector<8x256xf32>, vector<8x256xf32>, vector<8x256xf32>, vector<8x256xf32>, vector<8x256xf32>, vector<8x256xf32> -> vector<72x256xf32>
    %c0_24 = arith.constant 0 : index
    %c0_25 = arith.constant 0 : index
    %56 = vector.load %arg4[%c0_24, %c0_25] : memref<8x72xf32, #tpu.memory_space<vmem>>, vector<8x72xf32>
    %cst_26 = arith.constant dense<0.000000e+00> : vector<8x256xf32>
    %57 = tpu.matmul %56, %55, %cst_26 {dimension_numbers = #tpu.dot_dimension_numbers<[1], [0], [0], [1], [0, 0, 1, 1], [], []>} : vector<8x72xf32>, vector<72x256xf32>, vector<8x256xf32> -> vector<8x256xf32>
    %58 = vector.broadcast %33 : vector<8x1xf32> to vector<8x256xf32>
    %59 = arith.addf %57, %58 : vector<8x256xf32>
    %cst_27 = arith.constant 0.000000e+00 : f32
    %60 = vector.broadcast %cst_27 : f32 to vector<8x256xf32>
    %61 = arith.maximumf %59, %60 : vector<8x256xf32>
    %c0_28 = arith.constant 0 : index
    %c0_29 = arith.constant 0 : index
    %c0_30 = arith.constant 0 : index
    %62 = vector.load %arg2[%c0_28, %c0_29, %c0_30] : memref<1x4x256xf32, #tpu.memory_space<vmem>>, vector<1x4x256xf32>
    %63 = vector.shape_cast %62 : vector<1x4x256xf32> to vector<4x256xf32>
    %64 = vector.shape_cast %61 : vector<8x256xf32> to vector<8x16x16xf32>
    %c0_31 = arith.constant 0 : index
    %c1_32 = arith.constant 1 : index
    %c1_33 = arith.constant 1 : index
    %65 = vector.load %arg9[%c0_31, %c1_32, %c1_33] : memref<8x18x18xf32, #tpu.memory_space<vmem>>, vector<8x16x16xf32>
    tpu.vector_store %arg9[%c0_31, %c1_32, %c1_33], %64 {strides = array<i32>} : memref<8x18x18xf32, #tpu.memory_space<vmem>>, vector<8x16x16xf32>,
    %c0_34 = arith.constant 0 : index
    %c0_35 = arith.constant 0 : index
    %c0_36 = arith.constant 0 : index
    %66 = vector.load %arg9[%c0_34, %c0_35, %c0_36] : memref<8x18x18xf32, #tpu.memory_space<vmem>>, vector<8x18x18xf32>
    %67 = vector.extract_strided_slice %66 {offsets = [0, 0, 0], sizes = [8, 16, 16], strides = [1, 1, 1]} : vector<8x18x18xf32> to vector<8x16x16xf32>
    %68 = vector.shape_cast %67 : vector<8x16x16xf32> to vector<8x256xf32>
    %69 = vector.extract_strided_slice %66 {offsets = [0, 0, 1], sizes = [8, 16, 16], strides = [1, 1, 1]} : vector<8x18x18xf32> to vector<8x16x16xf32>
    %70 = vector.shape_cast %69 : vector<8x16x16xf32> to vector<8x256xf32>
    %71 = vector.extract_strided_slice %66 {offsets = [0, 0, 2], sizes = [8, 16, 16], strides = [1, 1, 1]} : vector<8x18x18xf32> to vector<8x16x16xf32>
    %72 = vector.shape_cast %71 : vector<8x16x16xf32> to vector<8x256xf32>
    %73 = vector.extract_strided_slice %66 {offsets = [0, 1, 0], sizes = [8, 16, 16], strides = [1, 1, 1]} : vector<8x18x18xf32> to vector<8x16x16xf32>
    %74 = vector.shape_cast %73 : vector<8x16x16xf32> to vector<8x256xf32>
    %75 = vector.extract_strided_slice %66 {offsets = [0, 1, 1], sizes = [8, 16, 16], strides = [1, 1, 1]} : vector<8x18x18xf32> to vector<8x16x16xf32>
    %76 = vector.shape_cast %75 : vector<8x16x16xf32> to vector<8x256xf32>
    %77 = vector.extract_strided_slice %66 {offsets = [0, 1, 2], sizes = [8, 16, 16], strides = [1, 1, 1]} : vector<8x18x18xf32> to vector<8x16x16xf32>
    %78 = vector.shape_cast %77 : vector<8x16x16xf32> to vector<8x256xf32>
    %79 = vector.extract_strided_slice %66 {offsets = [0, 2, 0], sizes = [8, 16, 16], strides = [1, 1, 1]} : vector<8x18x18xf32> to vector<8x16x16xf32>
    %80 = vector.shape_cast %79 : vector<8x16x16xf32> to vector<8x256xf32>
    %81 = vector.extract_strided_slice %66 {offsets = [0, 2, 1], sizes = [8, 16, 16], strides = [1, 1, 1]} : vector<8x18x18xf32> to vector<8x16x16xf32>
    %82 = vector.shape_cast %81 : vector<8x16x16xf32> to vector<8x256xf32>
    %83 = vector.extract_strided_slice %66 {offsets = [0, 2, 2], sizes = [8, 16, 16], strides = [1, 1, 1]} : vector<8x18x18xf32> to vector<8x16x16xf32>
    %84 = vector.shape_cast %83 : vector<8x16x16xf32> to vector<8x256xf32>
    %85 = tpu.concatenate %68, %70, %72, %74, %76, %78, %80, %82, %84 in 0 : vector<8x256xf32>, vector<8x256xf32>, vector<8x256xf32>, vector<8x256xf32>, vector<8x256xf32>, vector<8x256xf32>, vector<8x256xf32>, vector<8x256xf32>, vector<8x256xf32> -> vector<72x256xf32>
    %c0_37 = arith.constant 0 : index
    %c0_38 = arith.constant 0 : index
    %86 = vector.load %arg5[%c0_37, %c0_38] : memref<4x72xf32, #tpu.memory_space<vmem>>, vector<4x72xf32>
    %cst_39 = arith.constant dense<0.000000e+00> : vector<4x256xf32>
    %87 = tpu.matmul %86, %85, %cst_39 {dimension_numbers = #tpu.dot_dimension_numbers<[1], [0], [0], [1], [0, 0, 1, 1], [], []>} : vector<4x72xf32>, vector<72x256xf32>, vector<4x256xf32> -> vector<4x256xf32>
    %88 = arith.mulf %87, %63 : vector<4x256xf32>
    %c0_40 = arith.constant 0 : index
    %c0_41 = arith.constant 0 : index
    %c0_42 = arith.constant 0 : index
    %89 = vector.load %arg8[%c0_40, %c0_41, %c0_42] : memref<1x4x256xf32, #tpu.memory_space<vmem>>, vector<1x4x256xf32>
    %90 = vector.shape_cast %89 : vector<1x4x256xf32> to vector<4x256xf32>
    %91 = vector.shape_cast %88 : vector<4x256xf32> to vector<1x4x256xf32>
    tpu.vector_store %arg8[%c0_40, %c0_41, %c0_42], %91 {strides = array<i32>} : memref<1x4x256xf32, #tpu.memory_space<vmem>>, vector<1x4x256xf32>,
    return
  }
  func.func @transform_0(%arg0: i32) -> (i32, i32, i32) {
    %c0_i32 = arith.constant 0 : i32
    %c0_i32_0 = arith.constant 0 : i32
    %c0_i32_1 = arith.constant 0 : i32
    return %arg0, %c0_i32, %c0_i32_0 : i32, i32, i32
  }
  func.func @transform_1(%arg0: i32) -> (i32, i32, i32) {
    %c0_i32 = arith.constant 0 : i32
    %c0_i32_0 = arith.constant 0 : i32
    %c0_i32_1 = arith.constant 0 : i32
    return %arg0, %c0_i32, %c0_i32_0 : i32, i32, i32
  }
  func.func @transform_2(%arg0: i32) -> (i32, i32) {
    %c0_i32 = arith.constant 0 : i32
    %c0_i32_0 = arith.constant 0 : i32
    %c0_i32_1 = arith.constant 0 : i32
    return %c0_i32, %c0_i32_0 : i32, i32
  }
  func.func @transform_3(%arg0: i32) -> (i32, i32) {
    %c0_i32 = arith.constant 0 : i32
    %c0_i32_0 = arith.constant 0 : i32
    %c0_i32_1 = arith.constant 0 : i32
    return %c0_i32, %c0_i32_0 : i32, i32
  }
  func.func @transform_4(%arg0: i32) -> (i32, i32) {
    %c0_i32 = arith.constant 0 : i32
    %c0_i32_0 = arith.constant 0 : i32
    %c0_i32_1 = arith.constant 0 : i32
    return %c0_i32, %c0_i32_0 : i32, i32
  }
  func.func @transform_5(%arg0: i32) -> (i32, i32) {
    %c0_i32 = arith.constant 0 : i32
    %c0_i32_0 = arith.constant 0 : i32
    %c0_i32_1 = arith.constant 0 : i32
    return %c0_i32, %c0_i32_0 : i32, i32
  }
  func.func @transform_6(%arg0: i32) -> (i32, i32) {
    %c0_i32 = arith.constant 0 : i32
    %c0_i32_0 = arith.constant 0 : i32
    %c0_i32_1 = arith.constant 0 : i32
    return %c0_i32, %c0_i32_0 : i32, i32
  }
  func.func @transform_7(%arg0: i32) -> (i32, i32, i32) {
    %c0_i32 = arith.constant 0 : i32
    %c0_i32_0 = arith.constant 0 : i32
    %c0_i32_1 = arith.constant 0 : i32
    return %arg0, %c0_i32, %c0_i32_0 : i32, i32, i32
  }
}

</mosaic_0001>

<bundles_post_ra>
// kernel: recalibration_forward.1
= control target key start
LH: loop header
LB: loop body
LE: loop exit
PB: predicated region body
PF: predicated region fallthrough
CT: control target
= control target key end

     0   :  { %s11157_s24 = smov 0   ;;  %s20000_s0 = inlined_call_operand.vmem [shape: f32[2,4,256], index: 0, kind: input, shape index: {}]   ;;  %s20001_s1 = inlined_call_operand.vmem [shape: f32[2,4,256], index: 1, kind: input, shape index: {}]   ;;  %s20002_s2 = inlined_call_operand.vmem [shape: f32[8,36], index: 2, kind: input, shape index: {}]   ;;  %s20003_s3 = inlined_call_operand.vmem [shape: f32[8,72], index: 3, kind: input, shape index: {}]   ;;  %s20004_s4 = inlined_call_operand.vmem [shape: f32[4,72], index: 4, kind: input, shape index: {}]   ;;  %s20005_s5 = inlined_call_operand.vmem [shape: f32[8,1], index: 5, kind: input, shape index: {}]   ;;  %s20006_s6 = inlined_call_operand.vmem [shape: f32[8,1], index: 6, kind: input, shape index: {}]   ;;  %s20007_s7 = inlined_call_operand.vmem [shape: f32[2,4,256], index: 7, kind: output, shape index: {}]  }
   0x1 LB: > { %s9583_s25 = sadd.s32 4294967295, %s11101_s24   ;;  %p9587_p0 = scmp.ge.s32.totalorder %s11101_s24, 1  ;;  %s11101_s24 = sphi %s11157_s24, %s17_s24  }
   0x2   : > { %p247_p1 = scmp.lt.s32.totalorder %s11101_s24, 3 }
   0x4   : > { %p248_p2 = pnand %p9587_p0, %p247_p1 }
   0x6   : > { %251 = sbr.rel (%p248_p2) target bundleno = 2828 (0xb0c), region = 48 }
   0xb   : > { %p284_p3 = scmp.lt.s32.totalorder %s9583_s25, 1  ;;  %s11103_s30 = smov 80   ;;  %v326_v1 = vld [vmem:[%s20005_s5] sm:$0xff]  ;;  %v11110_v3 = vmov 0   ;;  %v11111_v4 = vmov 1983009808  }
   0xc   : > { %s11104_s8 = smov 112   ;;  %s11105_s9 = smov 48   ;;  %v2520_v2 = vld [vmem:[%s20006_s6] sm:$0xff]  ;;  %9633 = vset.pattern.permute.xlu2 %v11110_v3  ;;  %9634 = vset.pattern.permute.xlu0 %v11110_v3  ;;  %v369_v5 = vunpack.c.l.s4 %v11111_v4  ;;  %vm366_vm0 = vcmask 1047556   ;;  %v11112_v15 = vmov 1934713408  }
   0xd   : > { %s21433_s25 = smov (!%p284_p3, %s9583_s25), 1  ;;  %s11106_s10 = smov 96   ;;  %v383_v16 = vunpack.c.l.s4 %v11112_v15  ;;  %vm299_vm1 = vcmask 146432   ;;  %vm302_vm2 = vcmask 140288   ;;  %vm549_vm3 = vcmask 138248  }
   0xe   : > { %s11165_s26 = sshll.u32 %s21433_s25, 3  ;;  %s11107_s11 = smov 64   ;;  %v11184_v11 = vunpack.c.0.s8 %v369_v5  ;;  %vm1183_vm4 = vcmask 1046528   ;;  %vm1806_vm5 = vcmask 1045504   ;;  %vm738_vm6 = vcmask 130048  }
   0xf   : > { %s288_s29 = scalar_lea.vmem %s20000_s0, %s11165_s26  ;;  %s11108_s12 = smov 32   ;;  %v11191_v23 = vunpack.c.0.s8 %v383_v16  ;;  %vm740_vm7 = vcmask 261120   ;;  %vm742_vm8 = vcmask 392192   ;;  %vm744_vm9 = vcmask 523264  }
  0x10   : > { %v325_v0 = vld [vmem:[%s288_s29] sm:$0xff]  ;;  %s11109_s13 = smov 16   ;;  %20368 = vst [vmem:[#allocation3_spill] sm:$0xff] %v11184_v11  ;;  %s11113_s18 = smov 1   ;;  %vm746_vm10 = vcmask 654336   ;;  %vm748_vm11 = vcmask 785408  }
  0x11   : > { %338 = vrot.lane.b32.xlu1 %v325_v0, %s11103_s30  ;;  %330 = vrot.lane.b32.xlu0 %v325_v0, %s11104_s8  ;;  %v328_v14 = vrot.slane %v325_v0, 4  ;;  %20369 = vst [vmem:[#allocation4_spill] sm:$0xff] %v11191_v23  ;;  %s293_s21 = scalar_lea.vmem %s20001_s1, %s11165_s26  ;;  %s11115_s22 = smov 126   ;;  %vm750_vm12 = vcmask 916480   ;;  %vm2453_vm13 = vcmask 1043456   ;;  %vm2468_vm14 = vcmask 293888  }
  0x12   : > { %346 = vrot.lane.b32.xlu2 %v325_v0, %s11105_s9  ;;  %s11116_s23 = smov 127   ;;  %vm5969_vm15 = vcmask 588800  }
  0x19   : > { %334 = vrot.lane.b32.xlu0 %v325_v0, %s11106_s10  ;;  %342 = vrot.lane.b32.xlu1 %v325_v0, %s11107_s11 }
  0x1a   : > { %350 = vrot.lane.b32.xlu2 %v325_v0, %s11108_s12 }
  0x21   : > { %354 = vrot.lane.b32.xlu0 %v325_v0, %s11109_s13 }
  0x22   : > { %2465 = vperm.xlu2 %9633, %v326_v1  }
  0x29   : > { %5966 = vperm.xlu0 %9634, %v2520_v2  }
  0x6c   : > { %v347_v6 = vpop.permute.xlu2 %346 }
  0x6d   : > { %v348_v35 = vrot.slane %v347_v6, 4 }
  0x74   : > { %v351_v22 = vpop.permute.xlu2 %350 }
  0x75   : > { %v394_v31 = vrot.slane %v351_v22, 4 }
  0x83   : > { %v339_v7 = vpop.permute.xlu1 %338  ;;  %v331_v8 = vpop.permute.xlu0 %330 }
  0x84   : > { %v372_v9 = vrot.slane %v339_v7, 4  ;;  %v332_v10 = vrot.slane %v331_v8, 4 }
  0x86   : > { %v429_v12 = vsel %vm366_vm0, %v339_v7, %v332_v10  ;;  %v373_v13 = vsel %vm366_vm0, %v372_v9, %v331_v8 }
  0x87   : > { %v433_v17 = vperm.slane %v429_v12, %v11184_v11  ;;  %v377_v18 = vperm.slane %v373_v13, %v11184_v11 }
  0x89   : > { %v434_v24 = vrot.slane %v433_v17, 4  ;;  %v378_v28 = vrot.slane %v377_v18, 4 }
  0x8b   : > { %v335_v19 = vpop.permute.xlu0 %334  ;;  %v343_v26 = vpop.permute.xlu1 %342 }
  0x8c   : > { %v365_v20 = vrot.slane %v335_v19, 4  ;;  %v423_v21 = vsel %vm366_vm0, %v335_v19, %v328_v14  ;;  %v344_v32 = vrot.slane %v343_v26, 4  ;;  %v395_v38 = vsel %vm366_vm0, %v394_v31, %v343_v26 }
  0x8d   : > { %v427_v25 = vperm.slane %v423_v21, %v11184_v11  ;;  %v399_v46 = vperm.slane %v395_v38, %v11184_v11 }
  0x8e   : > { %v367_v27 = vsel %vm366_vm0, %v365_v20, %v325_v0  ;;  %v451_v40 = vsel %vm366_vm0, %v351_v22, %v344_v32  ;;  %v6015_v22 = vld [vmem:[%s293_s21] sm:$0xff] }
  0x8f   : > { %v371_v29 = vperm.slane %v367_v27, %v11184_v11  ;;  %v435_v30 = vsel %vm366_vm0, %v434_v24, %v427_v25  ;;  %v455_v49 = vperm.slane %v451_v40, %v11184_v11  ;;  %v436_v52 = vrot.slane %v427_v25, 4 }
  0x90   : > { %v441_v33 = vperm.slane %v435_v30, %v11191_v23  ;;  %v408_v56 = vrot.slane %v399_v46, 4 }
  0x91   : > { %v379_v34 = vsel %vm366_vm0, %v378_v28, %v371_v29  ;;  %v380_v53 = vrot.slane %v371_v29, 4  ;;  %v464_v58 = vrot.slane %v455_v49, 4  ;;  %v437_v60 = vsel %vm366_vm0, %v433_v17, %v436_v52  ;;  %v11264_v29 = vpop.permute.xlu2 %2465 }
  0x92   : > { %498 = vst [vmem:[#allocation1 + $0x10] ss:$2 sm:$0xff] %v441_v33  ;;  %v385_v36 = vperm.slane %v379_v34, %v11191_v23  ;;  %v446_v37 = vrot.slane %v441_v33, 4  ;;  %v445_v4 = vperm.slane %v437_v60, %v11191_v23  ;;  %v11114_v28 = vmov 0.0  }
  0x93   : > { %v355_v39 = vpop.permute.xlu0 %354  ;;  %v381_v63 = vsel %vm366_vm0, %v377_v18, %v380_v53  ;;  %301 = vst.msk [vmem:[#allocation2 + $0x8] sm:$0xff] %vm299_vm1, %v11114_v28 }
  0x94   : > { %v400_v41 = vrot.slane %v355_v39, 4  ;;  %v457_v42 = vsel %vm366_vm0, %v355_v39, %v348_v35  ;;  %494 = vst [vmem:[#allocation1] ss:$2 sm:$0xff] %v385_v36  ;;  %v390_v43 = vrot.slane %v385_v36, 4  ;;  %v447_v45 = vsel %vm366_vm0, 0.0, %v446_v37 }
  0x95   : > { %v461_v44 = vperm.slane %v457_v42, %v11184_v11  ;;  %508 = vst [vmem:[#allocation1 + $0x30] ss:$2 sm:$0xff] %v447_v45  ;;  %v389_v5 = vperm.slane %v381_v63, %v11191_v23  ;;  %v448_v10 = vrot.slane %v445_v4, 4 }
  0x96   : > { %v401_v47 = vsel %vm366_vm0, %v400_v41, %v347_v6  ;;  %v391_v48 = vsel %vm366_vm0, 0.0, %v390_v43  ;;  %303 = vst.msk [vmem:[#allocation2 + $0x10] sm:$0x3] %vm302_vm2, %v11114_v28 }
  0x97   : > { %v405_v50 = vperm.slane %v401_v47, %v11184_v11  ;;  %v462_v51 = vrot.slane %v461_v44, 4  ;;  %504 = vst [vmem:[#allocation1 + $0x20] ss:$2 sm:$0xff] %v391_v48  ;;  %v465_v3 = vsel %vm366_vm0, %v461_v44, %v464_v58  ;;  %v392_v12 = vrot.slane %v389_v5, 4 }
  0x98   : > { %v473_v8 = vperm.slane %v465_v3, %v11191_v23  ;;  %v449_v17 = vsel %vm366_vm0, 0.0, %v448_v10  ;;  %300 = vst.msk [vmem:[#allocation2] sm:$0xff] %vm299_vm1, %v11114_v28 }
  0x99   : > { %v406_v54 = vrot.slane %v405_v50, 4  ;;  %v463_v55 = vsel %vm366_vm0, %v462_v51, %v455_v49  ;;  %v409_v0 = vsel %vm366_vm0, %v405_v50, %v408_v56  ;;  %v393_v18 = vsel %vm366_vm0, 0.0, %v392_v12  ;;  %304 = vst.msk [vmem:[#allocation2 + $0x18] sm:$0xff] %vm299_vm1, %v11114_v28 }
  0x9a   : > { %v469_v57 = vperm.slane %v463_v55, %v11191_v23  ;;  %v417_v7 = vperm.slane %v409_v0, %v11191_v23  ;;  %v476_v15 = vrot.slane %v473_v8, 4  ;;  %305 = vst.msk [vmem:[#allocation2 + $0x20] sm:$0xff] %vm299_vm1, %v11114_v28 }
  0x9b   : > { %v407_v59 = vsel %vm366_vm0, %v406_v54, %v399_v46  ;;  %306 = vst.msk [vmem:[#allocation2 + $0x28] sm:$0x3] %vm302_vm2, %v11114_v28  ;;  %v11268_v33 = vpop.permute.xlu0 %5966 }
  0x9c   : > { %500 = vst [vmem:[#allocation1 + $0x11] ss:$2 sm:$0xff] %v469_v57  ;;  %v413_v61 = vperm.slane %v407_v59, %v11191_v23  ;;  %v474_v62 = vrot.slane %v469_v57, 4  ;;  %v420_v14 = vrot.slane %v417_v7, 4  ;;  %v477_v21 = vsel %vm366_vm0, 0.0, %v476_v15 }
  0x9d   : > { %307 = vst.msk [vmem:[#allocation2 + $0x30] sm:$0xff] %vm299_vm1, %v11114_v28 }
  0x9e   : > { %496 = vst [vmem:[#allocation1 + $0x1] ss:$2 sm:$0xff] %v413_v61  ;;  %v418_v1 = vrot.slane %v413_v61, 4  ;;  %v475_v2 = vsel %vm366_vm0, 0.0, %v474_v62  ;;  %v421_v20 = vsel %vm366_vm0, 0.0, %v420_v14 }
  0x9f   : > { %510 = vst [vmem:[#allocation1 + $0x31] ss:$2 sm:$0xff] %v475_v2 }
  0xa0   : > { %v419_v6 = vsel %vm366_vm0, 0.0, %v418_v1  ;;  %308 = vst.msk [vmem:[#allocation2 + $0x38] sm:$0xff] %vm299_vm1, %v11114_v28 }
  0xa1   : > { %506 = vst [vmem:[#allocation1 + $0x21] ss:$2 sm:$0xff] %v419_v6 }
  0xa2   : > { %309 = vst.msk [vmem:[#allocation2 + $0x40] sm:$0x3] %vm302_vm2, %v11114_v28 }
  0xa3   : > { %v502_v9 = vld.sshfl [vmem:[#allocation1 + $0x10] sm:$0xff pattern:$0x75316420]  ;;  %310 = vst.msk [vmem:[#allocation2 + $0x48] sm:$0xff] %vm299_vm1, %v11114_v28 }
  0xa4   : > { %527 = vrot.lane.b32.xlu2 %v502_v9, %s11113_s18  ;;  %515 = vst [vmem:[#allocation1 + $0x10] ss:$2 sm:$0xff] %v445_v4 }
  0xa5   : > { %516 = vst [vmem:[#allocation1 + $0x11] ss:$2 sm:$0xff] %v473_v8  ;;  %v501_v13 = vld.sshfl [vmem:[#allocation1] sm:$0xff pattern:$0x75316420] }
  0xa6   : > { %525 = vrot.lane.b32.xlu1 %v501_v13, %s11113_s18  ;;  %513 = vst [vmem:[#allocation1] ss:$2 sm:$0xff] %v389_v5  ;;  %v512_v16 = vld.sshfl [vmem:[#allocation1 + $0x30] sm:$0xff pattern:$0x75316420] }
  0xa7   : > { %514 = vst [vmem:[#allocation1 + $0x1] ss:$2 sm:$0xff] %v417_v7 }
  0xa8   : > { %v511_v19 = vld.sshfl [vmem:[#allocation1 + $0x20] sm:$0xff pattern:$0x75316420]  ;;  %521 = vst [vmem:[#allocation1 + $0x30] ss:$2 sm:$0xff] %v449_v17 }
  0xa9   : > { %529 = vrot.lane.b32.xlu0 %v511_v19, %s11113_s18  ;;  %519 = vst [vmem:[#allocation1 + $0x20] ss:$2 sm:$0xff] %v393_v18 }
  0xaa   : > { %520 = vst [vmem:[#allocation1 + $0x21] ss:$2 sm:$0xff] %v421_v20 }
  0xab   : > { %522 = vst [vmem:[#allocation1 + $0x31] ss:$2 sm:$0xff] %v477_v21 }
  0xac   : > { %v518_v25 = vld.sshfl [vmem:[#allocation1 + $0x10] sm:$0xff pattern:$0x75316420]  ;;  %311 = vst.msk [vmem:[#allocation2 + $0x50] sm:$0xff] %vm299_vm1, %v11114_v28 }
  0xad   : > { %312 = vst.msk [vmem:[#allocation2 + $0x58] sm:$0x3] %vm302_vm2, %v11114_v28 }
  0xae   : > { %v517_v24 = vld.sshfl [vmem:[#allocation1] sm:$0xff pattern:$0x75316420]  ;;  %531 = vrot.lane.b32.xlu1 %v512_v16, %s11113_s18  ;;  %313 = vst.msk [vmem:[#allocation2 + $0x60] sm:$0xff] %vm299_vm1, %v11114_v28 }
  0xaf   : > { %9503 = vst [vmem:[#allocation1] ss:$2 sm:$0xff] %v6015_v22  ;;  %533 = vrot.lane.b32.xlu2 %v517_v24, %s11113_s18 }
  0xb0   : > { %314 = vst.msk [vmem:[#allocation2 + $0x68] sm:$0xff] %vm299_vm1, %v11114_v28 }
  0xb1   : > { %535 = vrot.lane.b32.xlu0 %v518_v25, %s11113_s18  ;;  %v523_v26 = vld.sshfl [vmem:[#allocation1 + $0x20] sm:$0xff pattern:$0x75316420]  ;;  %315 = vst.msk [vmem:[#allocation2 + $0x70] sm:$0x3] %vm302_vm2, %v11114_v28 }
  0xb2   : > { %v524_v27 = vld.sshfl [vmem:[#allocation1 + $0x30] sm:$0xff pattern:$0x75316420]  ;;  %316 = vst.msk [vmem:[#allocation2 + $0x78] sm:$0xff] %vm299_vm1, %v11114_v28 }
  0xb3   : > { %317 = vst.msk [vmem:[#allocation2 + $0x80] sm:$0xff] %vm299_vm1, %v11114_v28 }
  0xb4   : > { %318 = vst.msk [vmem:[#allocation2 + $0x88] sm:$0x3] %vm302_vm2, %v11114_v28 }
  0xb5   : > { %319 = vst.msk [vmem:[#allocation2 + $0x90] sm:$0xff] %vm299_vm1, %v11114_v28 }
  0xb6   : > { %537 = vrot.lane.b32.xlu1 %v523_v26, %s11113_s18  ;;  %320 = vst.msk [vmem:[#allocation2 + $0x98] sm:$0xff] %vm299_vm1, %v11114_v28 }
  0xb7   : > { %539 = vrot.lane.b32.xlu2 %v524_v27, %s11113_s18  ;;  %321 = vst.msk [vmem:[#allocation2 + $0xa0] sm:$0x3] %vm302_vm2, %v11114_v28 }
  0xb8   : > { %322 = vst.msk [vmem:[#allocation2 + $0xa8] sm:$0xff] %vm299_vm1, %v11114_v28 }
  0xb9   : > { %323 = vst.msk [vmem:[#allocation2 + $0xb0] sm:$0xff] %vm299_vm1, %v11114_v28 }
  0xba   : > { %324 = vst.msk [vmem:[#allocation2 + $0xb8] sm:$0x3] %vm302_vm2, %v11114_v28 }
  0xbb   : > { %20370 = vst [vmem:[#allocation5_spill] sm:$0xff] %v11264_v29 }
  0xbc   : > { %20371 = vst [vmem:[#allocation6_spill] sm:$0xff] %v11268_v33 }
  0xfe   : > { %v528_v30 = vpop.permute.xlu2 %527 }
  0xff   : > { %551 = vst.msk [vmem:[#allocation2 + $0x9] sm:$0xff] %vm549_vm3, %v528_v30 }
 0x106   : > { %v560_v40 = vld [vmem:[#allocation2 + $0x10] sm:$0x3] }
 0x107   : > { %v1187_v44 = vrot.slane %v560_v40, 1  ;;  %v1810_v1 = vrot.slane %v560_v40, 2 }
 0x109   : > { %v534_v31 = vpop.permute.xlu2 %533 }
 0x10a   : > { %554 = vst.msk [vmem:[#allocation2 + $0x31] sm:$0xff] %vm549_vm3, %v534_v31 }
 0x111   : > { %v540_v32 = vpop.permute.xlu2 %539  ;;  %v564_v10 = vld [vmem:[#allocation2 + $0x30] sm:$0xff] }
 0x112   : > { %557 = vst.msk [vmem:[#allocation2 + $0x51] sm:$0xff] %vm549_vm3, %v540_v32  ;;  %v1194_v16 = vrot.slane %v564_v10, 1  ;;  %v1817_v28 = vrot.slane %v564_v10, 2 }
 0x118   : > { %v526_v34 = vpop.permute.xlu1 %525 }
 0x119   : > { %550 = vst.msk [vmem:[#allocation2 + $0x1] sm:$0xff] %vm549_vm3, %v526_v34  ;;  %v569_v18 = vld [vmem:[#allocation2 + $0x58] sm:$0x3]  ;;  %v570_v34 = vrot.slane %v564_v10, 4 }
 0x11a   : > { %v1202_v21 = vrot.slane %v569_v18, 1 }
 0x11b   : > { %v530_v35 = vpop.permute.xlu0 %529 }
 0x11c   : > { %552 = vst.msk [vmem:[#allocation2 + $0x19] sm:$0xff] %vm549_vm3, %v530_v35 }
 0x120   : > { %v532_v36 = vpop.permute.xlu1 %531  ;;  %v11273_v37 = vld [vmem:[#allocation2] sm:$0xff]  ;;  %v11275_v38 = vld [vmem:[#allocation2 + $0x8] sm:$0xff] }
 0x121   : > { %553 = vst.msk [vmem:[#allocation2 + $0x21] sm:$0xff] %vm549_vm3, %v532_v36  ;;  %v9640_v39 = vpack.i.bf16 %v11275_v38, %v11273_v37  ;;  %v1184_v41 = vrot.slane %v11273_v37, 1  ;;  %v1185_v42 = vrot.slane %v11275_v38, 1  ;;  %v1807_v56 = vrot.slane %v11273_v37, 2 }
 0x122   : > { %v1808_v57 = vrot.slane %v11275_v38, 2  ;;  %v572_v32 = vrot.slane %v11273_v37, 4 }
 0x123   : > { %9641 = vrot.lane.b32.xlu0 %v9640_v39, %s11115_s22  ;;  %v536_v43 = vpop.permute.xlu0 %535  ;;  %9636 = vrot.lane.b32.xlu1 %v9640_v39, %s11116_s23  ;;  %v11286_v45 = vsel %vm1183_vm4, %v1184_v41, %v1185_v42  ;;  %v11289_v46 = vsel %vm1183_vm4, %v1185_v42, %v1187_v44  ;;  %v11291_v48 = vld [vmem:[#allocation2 + $0x18] sm:$0xff] }
 0x124   : > { %555 = vst.msk [vmem:[#allocation2 + $0x39] sm:$0xff] %vm549_vm3, %v536_v43  ;;  %v9655_v51 = vpack.i.bf16 %v11289_v46, %v11286_v45  ;;  %v1189_v55 = vrot.slane %v11291_v48, 1  ;;  %v11316_v61 = vsel %vm1806_vm5, %v1807_v56, %v1808_v57  ;;  %v1812_v0 = vrot.slane %v11291_v48, 2 }
 0x125   : > { %v11331_v4 = vsel %vm1806_vm5, %v1808_v57, %v1810_v1 }
 0x126   : > { %v9665_v6 = vpack.i.bf16 %v11331_v4, %v11316_v61 }
 0x128   : > { %v538_v47 = vpop.permute.xlu1 %537  ;;  %v11293_v49 = vld [vmem:[#allocation2 + $0x20] sm:$0xff]  ;;  %v563_v50 = vld [vmem:[#allocation2 + $0x28] sm:$0x3] }
 0x129   : > { %556 = vst.msk [vmem:[#allocation2 + $0x49] sm:$0xff] %vm549_vm3, %v538_v47  ;;  %v9650_v52 = vpack.i.bf16 %v11293_v49, %v11291_v48  ;;  %v1190_v53 = vrot.slane %v11293_v49, 1  ;;  %v1192_v54 = vrot.slane %v563_v50, 1  ;;  %v1813_v62 = vrot.slane %v11293_v49, 2 }
 0x12a   : > { %v1815_v63 = vrot.slane %v563_v50, 2  ;;  %v571_v50 = vsel %vm366_vm0, %v570_v34, %v11273_v37 }
 0x12b   : > { %9656 = vrot.lane.b32.xlu0 %v9655_v51, %s11116_s23  ;;  %9651 = vrot.lane.b32.xlu1 %v9650_v52, %s11115_s22  ;;  %v11308_v58 = vsel %vm1183_vm4, %v1189_v55, %v1190_v53  ;;  %v11311_v59 = vsel %vm1183_vm4, %v1190_v53, %v1192_v54  ;;  %v11325_v2 = vsel %vm1806_vm5, %v1812_v0, %v1813_v62  ;;  %v11339_v7 = vld [vmem:[#allocation2 + $0x38] sm:$0xff]  ;;  %v566_v12 = vld [vmem:[#allocation2 + $0x40] sm:$0x3]  ;;  %v628_v0 = vrot.slane %v11275_v38, 4 }
 0x12c   : > { %9646 = vrot.lane.b32.xlu2 %v9650_v52, %s11116_s23  ;;  %v9675_v60 = vpack.i.bf16 %v11311_v59, %v11308_v58  ;;  %v11328_v3 = vsel %vm1806_vm5, %v1813_v62, %v1815_v63  ;;  %v1195_v13 = vrot.slane %v11339_v7, 1  ;;  %v1197_v17 = vrot.slane %v566_v12, 1 }
 0x12d   : > { %v9680_v5 = vpack.i.bf16 %v11328_v3, %v11325_v2  ;;  %v1818_v24 = vrot.slane %v11339_v7, 2  ;;  %v1820_v30 = vrot.slane %v566_v12, 2  ;;  %v9685_v41 = vpack.i.bf16 %v11339_v7, %v564_v10 }
 0x12e   : > { %v11350_v19 = vsel %vm1183_vm4, %v1194_v16, %v1195_v13  ;;  %v11362_v22 = vsel %vm1183_vm4, %v1195_v13, %v1197_v17  ;;  %v573_v53 = vsel %vm366_vm0, %v564_v10, %v572_v32  ;;  %v1825_v63 = vrot.slane %v569_v18, 2 }
 0x12f   : > { %v1212_v25 = vrot.slane %v11350_v19, 4  ;;  %v1268_v31 = vrot.slane %v11362_v22, 4  ;;  %v11373_v35 = vsel %vm1806_vm5, %v1817_v28, %v1818_v24  ;;  %v11386_v47 = vsel %vm1806_vm5, %v1818_v24, %v1820_v30 }
 0x130   : > { %v11341_v8 = vld [vmem:[#allocation2 + $0x48] sm:$0xff]  ;;  %v11343_v9 = vld [vmem:[#allocation2 + $0x50] sm:$0xff]  ;;  %v1835_v52 = vrot.slane %v11373_v35, 4  ;;  %v1891_v62 = vrot.slane %v11386_v47, 4  ;;  %v1270_v13 = vrot.slane %v11289_v46, 4 }
 0x131   : > { %v1199_v14 = vrot.slane %v11341_v8, 1  ;;  %v1200_v15 = vrot.slane %v11343_v9, 1  ;;  %v1822_v36 = vrot.slane %v11341_v8, 2  ;;  %v1823_v39 = vrot.slane %v11343_v9, 2 }
 0x132   : > { %v9695_v42 = vpack.i.bf16 %v11343_v9, %v11341_v8  ;;  %v1213_v43 = vsel %vm366_vm0, %v1212_v25, %v11286_v45  ;;  %v1269_v55 = vsel %vm366_vm0, %v1268_v31, %v11289_v46  ;;  %v1836_v17 = vsel %vm366_vm0, %v1835_v52, %v11316_v61 }
 0x133   : > { %2223 = vrot.lane.b32.xlu1 %v11316_v61, %s11115_s22  ;;  %9676 = vrot.lane.b32.xlu0 %v9675_v60, %s11115_s22  ;;  %v11353_v20 = vsel %vm1183_vm4, %v1199_v14, %v1200_v15  ;;  %v11367_v26 = vsel %vm1183_vm4, %v1200_v15, %v1202_v21  ;;  %v11404_v37 = vsel %vm1806_vm5, %v1822_v36, %v1823_v39  ;;  %v1214_v14 = vrot.slane %v11286_v45, 4 }
 0x134   : > { %9661 = vrot.lane.b32.xlu2 %v9655_v51, %s11115_s22  ;;  %v1224_v27 = vrot.slane %v11353_v20, 4  ;;  %v1280_v40 = vrot.slane %v11367_v26, 4  ;;  %v11391_v51 = vperm.slane %v1213_v43, %v11184_v11  ;;  %v11408_v57 = vperm.slane %v1269_v55, %v11184_v11 }
 0x135   : > { %v1847_v15 = vrot.slane %v11404_v37, 4  ;;  %v11435_v18 = vsel %vm1806_vm5, %v1823_v39, %v1825_v63  ;;  %v584_v21 = vrot.slane %v11291_v48, 4  ;;  %v9710_v25 = vpack.i.bf16 %v11362_v22, %v11350_v19 }
 0x136   : > { %v1225_v44 = vsel %vm366_vm0, %v1224_v27, %v11308_v58  ;;  %v1238_v56 = vrot.slane %v11391_v51, 4  ;;  %v1294_v12 = vrot.slane %v11408_v57, 4  ;;  %v1892_v27 = vsel %vm366_vm0, %v1891_v62, %v11331_v4 }
 0x137   : > { %v11398_v54 = vperm.slane %v1225_v44, %v11184_v11  ;;  %v629_v31 = vsel %vm366_vm0, %v11339_v7, %v628_v0  ;;  %v1842_v34 = vperm.slane %v1836_v17, %v11184_v11  ;;  %v1848_v36 = vsel %vm366_vm0, %v1847_v15, %v11325_v2 }
 0x138   : > { %v1903_v39 = vrot.slane %v11435_v18, 4  ;;  %v1898_v43 = vperm.slane %v1892_v27, %v11184_v11  ;;  %v585_v52 = vsel %vm366_vm0, %v11341_v8, %v584_v21  ;;  %v626_v55 = vrot.slane %v11339_v7, 4 }
 0x139   : > { %v1239_v10 = vsel %vm366_vm0, %v11398_v54, %v1238_v56  ;;  %v1854_v62 = vperm.slane %v1848_v36, %v11184_v11  ;;  %v582_v63 = vrot.slane %v11341_v8, 4  ;;  %v1861_v0 = vrot.slane %v1842_v34, 4 }
 0x13a   : > { %v11430_v16 = vperm.slane %v1239_v10, %v11191_v23  ;;  %v1904_v10 = vsel %vm366_vm0, %v1903_v39, %v11328_v3  ;;  %v593_v7 = vperm.slane %v585_v52, %v11184_v11  ;;  %v1917_v17 = vrot.slane %v1898_v43, 4 }
 0x13b   : > { %9681 = vrot.lane.b32.xlu0 %v9680_v5, %s11116_s23  ;;  %9671 = vrot.lane.b32.xlu1 %v9675_v60, %s11116_s23  ;;  %v1281_v60 = vsel %vm366_vm0, %v1280_v40, %v11311_v59  ;;  %v11418_v5 = vperm.slane %v573_v53, %v11184_v11  ;;  %v637_v53 = vperm.slane %v629_v31, %v11184_v11 }
 0x13c   : > { %9666 = vrot.lane.b32.xlu2 %v9665_v6, %s11116_s23  ;;  %v11415_v1 = vperm.slane %v1281_v60, %v11184_v11  ;;  %v11421_v6 = vperm.slane %v571_v50, %v11184_v11  ;;  %v1262_v44 = vrot.slane %v11430_v16, 4  ;;  %v1226_v50 = vrot.slane %v11308_v58, 4 }
 0x13d   : > { %v608_v30 = vrot.slane %v11418_v5, 4  ;;  %v638_v58 = vrot.slane %v11343_v9, 4  ;;  %v1910_v15 = vperm.slane %v1904_v10, %v11184_v11  ;;  %v9715_v21 = vpack.i.bf16 %v11386_v47, %v11373_v35 }
 0x13e   : > { %v1295_v24 = vsel %vm366_vm0, %v11415_v1, %v1294_v12  ;;  %v596_v32 = vrot.slane %v11421_v6, 4  ;;  %v11472_v56 = vsel %vm366_vm0, 0.0, %v1262_v44  ;;  %v627_v8 = vsel %vm366_vm0, %v626_v55, %v11275_v38 }
 0x13f   : > { %v11445_v28 = vperm.slane %v1295_v24, %v11191_v23  ;;  %v1862_v24 = vsel %vm366_vm0, %v1854_v62, %v1861_v0  ;;  %v1915_v31 = vrot.slane %v1910_v15, 4  ;;  %v1918_v36 = vsel %vm366_vm0, %v1910_v15, %v1917_v17 }
 0x140   : > { %v11494_v27 = vperm.slane %v1862_v24, %v11191_v23  ;;  %v583_v38 = vsel %vm366_vm0, %v582_v63, %v11291_v48  ;;  %v639_v39 = vsel %vm366_vm0, %v638_v58, %v11293_v49  ;;  %v1859_v44 = vrot.slane %v1854_v62, 4 }
 0x141   : > { %v9775_v40 = vpack.i.bf16 %v11445_v28, %v11430_v16  ;;  %v1318_v60 = vrot.slane %v11445_v28, 4  ;;  %v606_v52 = vrot.slane %v593_v7, 4  ;;  %v11510_v55 = vperm.slane %v627_v8, %v11184_v11 }
 0x142   : > { %v1292_v48 = vrot.slane %v11415_v1, 4  ;;  %v11521_v62 = vsel %vm366_vm0, %v1859_v44, %v1842_v34  ;;  %v1271_v58 = vsel %vm366_vm0, %v11362_v22, %v1270_v13  ;;  %v11531_v10 = vperm.slane %v639_v39, %v11184_v11 }
 0x143   : > { %2227 = vrot.lane.b32.xlu0 %v11325_v2, %s11115_s22  ;;  %2229 = vrot.lane.b32.xlu1 %v11328_v3, %s11115_s22  ;;  %v11482_v12 = vsel %vm366_vm0, 0.0, %v1318_v60  ;;  %v1885_v60 = vrot.slane %v11494_v27, 4  ;;  %v9725_v13 = vpack.i.bf16 %v11367_v26, %v11353_v20  ;;  %v664_v34 = vrot.slane %v637_v53, 4 }
 0x144   : > { %2225 = vrot.lane.b32.xlu2 %v11331_v4, %s11115_s22  ;;  %v652_v15 = vrot.slane %v11510_v55, 4  ;;  %v607_v45 = vsel %vm366_vm0, %v606_v52, %v11418_v5  ;;  %v11579_v24 = vperm.slane %v1271_v58, %v11184_v11  ;;  %v1893_v39 = vrot.slane %v11331_v4, 4 }
 0x145   : > { %v11540_v46 = vsel %vm366_vm0, 0.0, %v1885_v60  ;;  %v1849_v52 = vrot.slane %v11325_v2, 4  ;;  %v9730_v58 = vpack.i.bf16 %v11435_v18, %v11404_v37 }
 0x14b   : > { %9686 = vrot.lane.b32.xlu0 %v9685_v41, %s11116_s23  ;;  %9696 = vrot.lane.b32.xlu1 %v9695_v42, %s11116_s23 }
 0x14c   : > { %9691 = vrot.lane.b32.xlu2 %v9685_v41, %s11115_s22  ;;  %v1282_v41 = vrot.slane %v11311_v59, 4 }
 0x14e   : > { %v1283_v1 = vsel %vm366_vm0, %v11367_v26, %v1282_v41 }
 0x153   : > { %9701 = vrot.lane.b32.xlu0 %v9695_v42, %s11115_s22  ;;  %9711 = vrot.lane.b32.xlu1 %v9710_v25, %s11115_s22  ;;  %v640_v42 = vrot.slane %v11293_v49, 4  ;;  %v1236_v49 = vrot.slane %v11398_v54, 4  ;;  %v1215_v54 = vsel %vm366_vm0, %v11350_v19, %v1214_v14  ;;  %v11557_v14 = vsel %vm366_vm0, %v1292_v48, %v11408_v57 }
 0x154   : > { %9706 = vrot.lane.b32.xlu2 %v9710_v25, %s11116_s23  ;;  %v609_v57 = vsel %vm366_vm0, %v593_v7, %v608_v30  ;;  %v1306_v48 = vrot.slane %v11579_v24, 4 }
 0x155   : > { %v641_v59 = vsel %vm366_vm0, %v11343_v9, %v640_v42  ;;  %v9810_v9 = vpack.i.bf16 %v11482_v12, %v11472_v56  ;;  %v11505_v42 = vperm.slane %v1918_v36, %v11191_v23  ;;  %v11553_v19 = vsel %vm366_vm0, %v1236_v49, %v11391_v51 }
 0x156   : > { %v649_v25 = vperm.slane %v641_v59, %v11184_v11  ;;  %v11513_v59 = vsel %vm366_vm0, %v1915_v31, %v1898_v43  ;;  %v11528_v43 = vperm.slane %v583_v38, %v11184_v11  ;;  %v1227_v51 = vsel %vm366_vm0, %v11353_v20, %v1226_v50 }
 0x157   : > { %v9785_v63 = vpack.i.bf16 %v11505_v42, %v11494_v27  ;;  %v1941_v22 = vrot.slane %v11505_v42, 4  ;;  %v11582_v31 = vperm.slane %v1215_v54, %v11184_v11  ;;  %v613_v20 = vperm.slane %v607_v45, %v11191_v23 }
 0x158   : > { %v662_v0 = vrot.slane %v649_v25, 4  ;;  %v597_v26 = vsel %vm366_vm0, %v11528_v43, %v596_v32  ;;  %v665_v32 = vsel %vm366_vm0, %v649_v25, %v664_v34  ;;  %v11596_v25 = vperm.slane %v1227_v51, %v11184_v11 }
 0x159   : > { %v11549_v17 = vsel %vm366_vm0, 0.0, %v1941_v22  ;;  %v11588_v5 = vperm.slane %v597_v26, %v11191_v23  ;;  %v673_v7 = vperm.slane %v665_v32, %v11191_v23  ;;  %v11599_v36 = vperm.slane %v1283_v1, %v11184_v11 }
 0x15a   : > { %v663_v41 = vsel %vm366_vm0, %v662_v0, %v637_v53  ;;  %v9820_v8 = vpack.i.bf16 %v11549_v17, %v11540_v46  ;;  %v1837_v53 = vrot.slane %v11316_v61, 4  ;;  %v617_v61 = vperm.slane %v609_v57, %v11191_v23 }
 0x15b   : > { %2233 = vrot.lane.b32.xlu0 %v11386_v47, %s11115_s22  ;;  %9716 = vrot.lane.b32.xlu1 %v9715_v21, %s11116_s23  ;;  %v653_v21 = vsel %vm366_vm0, %v11531_v10, %v652_v15  ;;  %v669_v50 = vperm.slane %v663_v41, %v11191_v23  ;;  %v1905_v38 = vrot.slane %v11328_v3, 4  ;;  %v1250_v60 = vrot.slane %v11582_v31, 4 }
 0x15c   : > { %2231 = vrot.lane.b32.xlu2 %v11373_v35, %s11115_s22  ;;  %v11591_v30 = vperm.slane %v653_v21, %v11191_v23  ;;  %v1838_v44 = vsel %vm366_vm0, %v11373_v35, %v1837_v53  ;;  %v1894_v49 = vsel %vm366_vm0, %v11386_v47, %v1893_v39  ;;  %v624_v4 = vrot.slane %v617_v61, 4 }
 0x15d   : > { %v9745_v0 = vpack.i.bf16 %v669_v50, %v613_v20  ;;  %v680_v54 = vrot.slane %v673_v7, 4  ;;  %v1251_v35 = vsel %vm366_vm0, %v11596_v25, %v1250_v60  ;;  %v1307_v2 = vsel %vm366_vm0, %v11599_v36, %v1306_v48 }
 0x15e   : > { %v9740_v3 = vpack.i.bf16 %v11591_v30, %v11588_v5  ;;  %v1850_v1 = vsel %vm366_vm0, %v11404_v37, %v1849_v52  ;;  %v1906_v47 = vsel %vm366_vm0, %v11435_v18, %v1905_v38  ;;  %v1846_v22 = vperm.slane %v1838_v44, %v11184_v11 }
 0x15f   : > { %v11628_v34 = vperm.slane %v1251_v35, %v11191_v23  ;;  %v11631_v15 = vperm.slane %v1307_v2, %v11191_v23  ;;  %v625_v45 = vsel %vm366_vm0, 0.0, %v624_v4  ;;  %v681_v41 = vsel %vm366_vm0, 0.0, %v680_v54 }
 0x160   : > { %v1914_v26 = vperm.slane %v1906_v47, %v11184_v11  ;;  %v1873_v21 = vrot.slane %v1846_v22, 4  ;;  %v9750_v57 = vpack.i.bf16 %v681_v41, %v625_v45  ;;  %v622_v39 = vrot.slane %v613_v20, 4 }
 0x161   : > { %v9755_v32 = vpack.i.bf16 %v11631_v15, %v11628_v34  ;;  %v678_v44 = vrot.slane %v669_v50, 4  ;;  %v594_v20 = vrot.slane %v11528_v43, 4  ;;  %v650_v50 = vrot.slane %v11531_v10, 4 }
 0x162   : > { %v9735_v54 = vpack.i.bf16 %v673_v7, %v617_v61  ;;  %v620_v2 = vrot.slane %v11588_v5, 4  ;;  %v11756_v46 = vperm.slane %v11557_v14, %v11191_v23 }
 0x163   : > { %2235 = vrot.lane.b32.xlu1 %v11404_v37, %s11115_s22  ;;  %9721 = vrot.lane.b32.xlu0 %v9725_v13, %s11116_s23  ;;  %v1858_v37 = vperm.slane %v1850_v1, %v11184_v11  ;;  %v676_v1 = vrot.slane %v11591_v30, 4  ;;  %v595_v43 = vsel %vm366_vm0, %v594_v20, %v11421_v6  ;;  %v651_v10 = vsel %vm366_vm0, %v650_v50, %v11510_v55 }
 0x164   : > { %9726 = vrot.lane.b32.xlu2 %v9725_v13, %s11115_s22  ;;  %v1902_v13 = vperm.slane %v1894_v49, %v11184_v11  ;;  %v623_v49 = vsel %vm366_vm0, 0.0, %v622_v39  ;;  %v11669_v47 = vperm.slane %v595_v43, %v11191_v23  ;;  %v11672_v5 = vperm.slane %v651_v10, %v11191_v23  ;;  %20377 = vst [vmem:[#allocation12_spill] sm:$0xff] %v11756_v46 }
 0x165   : > { %v1874_v53 = vsel %vm366_vm0, %v1858_v37, %v1873_v21  ;;  %v1871_v48 = vrot.slane %v1858_v37, 4  ;;  %v621_v30 = vsel %vm366_vm0, 0.0, %v620_v2  ;;  %v677_v6 = vsel %vm366_vm0, 0.0, %v676_v1 }
 0x166   : > { %v1929_v51 = vrot.slane %v1902_v13, 4  ;;  %v1882_v52 = vperm.slane %v1874_v53, %v11191_v23  ;;  %20372 = vst [vmem:[#allocation7_spill] sm:$0xff] %v11669_v47  ;;  %v1248_v55 = vrot.slane %v11596_v25, 4  ;;  %v9765_v41 = vpack.i.bf16 %v677_v6, %v621_v30 }
 0x167   : > { %v1872_v35 = vsel %vm366_vm0, %v1871_v48, %v1846_v22  ;;  %20373 = vst [vmem:[#allocation8_spill] sm:$0xff] %v11672_v5  ;;  %v1304_v22 = vrot.slane %v11599_v36, 4  ;;  %v674_v21 = vrot.slane %v11672_v5, 4  ;;  %v11709_v48 = vperm.slane %v11513_v59, %v11191_v23 }
 0x168   : > { %v1930_v38 = vsel %vm366_vm0, %v1914_v26, %v1929_v51  ;;  %v11663_v61 = vperm.slane %v1872_v35, %v11191_v23  ;;  %v1889_v37 = vrot.slane %v1882_v52, 4  ;;  %v1249_v25 = vsel %vm366_vm0, %v1248_v55, %v11582_v31 }
 0x169   : > { %v1938_v60 = vperm.slane %v1930_v38, %v11191_v23  ;;  %v1305_v36 = vsel %vm366_vm0, %v1304_v22, %v11579_v24  ;;  %v675_v28 = vsel %vm366_vm0, 0.0, %v674_v21  ;;  %20375 = vst [vmem:[#allocation10_spill] sm:$0xff] %v11709_v48  ;;  %v1939_v20 = vrot.slane %v11709_v48, 4 }
 0x16a   : > { %v1890_v51 = vsel %vm366_vm0, 0.0, %v1889_v37  ;;  %v1311_v53 = vperm.slane %v1305_v36, %v11191_v23  ;;  %v1322_v50 = vrot.slane %v11631_v15, 4  ;;  %v1887_v27 = vrot.slane %v11663_v61, 4 }
 0x16b   : > { %9746 = vrot.lane.b32.xlu0 %v9745_v0, %s11107_s11  ;;  %9741 = vrot.lane.b32.xlu1 %v9740_v3, %s11108_s12  ;;  %v1927_v0 = vrot.slane %v1914_v26, 4  ;;  %v9760_v3 = vpack.i.bf16 %v1938_v60, %v1882_v52  ;;  %v1945_v45 = vrot.slane %v1938_v60, 4  ;;  %v618_v26 = vrot.slane %v11669_v47, 4 }
 0x16c   : > { %9731 = vrot.lane.b32.xlu2 %v9730_v58, %s11116_s23  ;;  %v679_v58 = vsel %vm366_vm0, 0.0, %v678_v44  ;;  %v1320_v44 = vrot.slane %v1311_v53, 4  ;;  %v11705_v60 = vperm.slane %v11521_v62, %v11191_v23  ;;  %v1266_v62 = vrot.slane %v11628_v34, 4 }
 0x16d   : > { %v9770_v4 = vpack.i.bf16 %v679_v58, %v623_v49  ;;  %v619_v16 = vsel %vm366_vm0, 0.0, %v618_v26  ;;  %v1940_v56 = vsel %vm366_vm0, 0.0, %v1939_v20  ;;  %v11752_v1 = vperm.slane %v11553_v19, %v11191_v23 }
 0x16e   : > { %v9805_v38 = vpack.i.bf16 %v675_v28, %v619_v16  ;;  %v1321_v52 = vsel %vm366_vm0, 0.0, %v1320_v44  ;;  %20374 = vst [vmem:[#allocation9_spill] sm:$0xff] %v11705_v60  ;;  %v1267_v12 = vsel %vm366_vm0, 0.0, %v1266_v62  ;;  %v1316_v10 = vrot.slane %v11756_v46, 4 }
 0x16f   : > { %20376 = vst [vmem:[#allocation11_spill] sm:$0xff] %v11752_v1  ;;  %v1260_v43 = vrot.slane %v11752_v1, 4 }
 0x170   : > { %v1317_v30 = vsel %vm366_vm0, 0.0, %v1316_v10 }
 0x171   : > { %v1261_v19 = vsel %vm366_vm0, 0.0, %v1260_v43 }
 0x172   : > { %v9830_v6 = vpack.i.bf16 %v1317_v30, %v1261_v19 }
 0x173   : > { %9751 = vrot.lane.b32.xlu0 %v9750_v57, %s11104_s8  ;;  %9756 = vrot.lane.b32.xlu1 %v9755_v32, %s11106_s10  ;;  %v1946_v57 = vsel %vm366_vm0, 0.0, %v1945_v45  ;;  %v1255_v32 = vperm.slane %v1249_v25, %v11191_v23 }
 0x174   : > { %2237 = vrot.lane.b32.xlu2 %v11435_v18, %s11115_s22  ;;  %v1928_v18 = vsel %vm366_vm0, %v1927_v0, %v1902_v13  ;;  %v1883_v0 = vrot.slane %v11705_v60, 4 }
 0x175   : > { %v11666_v7 = vperm.slane %v1928_v18, %v11191_v23  ;;  %v9780_v31 = vpack.i.bf16 %v1311_v53, %v1255_v32  ;;  %v1264_v39 = vrot.slane %v1255_v32, 4  ;;  %v1888_v18 = vsel %vm366_vm0, 0.0, %v1887_v27 }
 0x177   : > { %v9790_v13 = vpack.i.bf16 %v11666_v7, %v11663_v61  ;;  %v1265_v24 = vsel %vm366_vm0, 0.0, %v1264_v39  ;;  %v1943_v42 = vrot.slane %v11666_v7, 4 }
 0x178   : > { %v9815_v58 = vpack.i.bf16 %v1321_v52, %v1265_v24 }
 0x179   : > { %v1944_v2 = vsel %vm366_vm0, 0.0, %v1943_v42 }
 0x17a   : > { %v9825_v17 = vpack.i.bf16 %v1944_v2, %v1888_v18 }
 0x17b   : > { %9761 = vrot.lane.b32.xlu0 %v9760_v3, %s11106_s10  ;;  %9771 = vrot.lane.b32.xlu1 %v9770_v4, %s11103_s30  ;;  %v1884_v4 = vsel %vm366_vm0, 0.0, %v1883_v0 }
 0x17c   : > { %9736 = vrot.lane.b32.xlu2 %v9735_v54, %s11106_s10  ;;  %v9835_v15 = vpack.i.bf16 %v1940_v56, %v1884_v4 }
 0x183   : > { %9776 = vrot.lane.b32.xlu0 %v9775_v40, %s11108_s12  ;;  %9791 = vrot.lane.b32.xlu1 %v9790_v13, %s11107_s11  ;;  %v9800_v40 = vpack.i.bf16 %v1946_v57, %v1890_v51 }
 0x184   : > { %9766 = vrot.lane.b32.xlu2 %v9765_v41, %s11105_s9 }
 0x186   : > { %v11711_v49 = vpop.permute.xlu2 %9646 }
 0x187   : > { %v20014_v41 = vunpack.i.h.bf16 %v11711_v49  ;;  %v20015_v26 = vunpack.i.l.bf16 %v11711_v49 }
 0x18b   : > { %9801 = vrot.lane.b32.xlu1 %v9800_v40, %s11104_s8  ;;  %9806 = vrot.lane.b32.xlu0 %v9805_v38, %s11109_s13  ;;  %v861_v40 = vrot.slane %v20014_v41, 4  ;;  %v805_v38 = vrot.slane %v20015_v26, 4 }
 0x18c   : > { %9781 = vrot.lane.b32.xlu2 %v9780_v31, %s11107_s11 }
 0x18e   : > { %v11734_v34 = vpop.permute.xlu2 %9661 }
 0x18f   : > { %v20012_v21 = vunpack.i.h.bf16 %v11734_v34  ;;  %v20013_v25 = vunpack.i.l.bf16 %v11734_v34 }
 0x191   : > { %v11799_v31 = vrot.slane %v20012_v21, 4  ;;  %v11804_v44 = vrot.slane %v20013_v25, 4 }
 0x193   : > { %9811 = vrot.lane.b32.xlu1 %v9810_v9, %s11105_s9  ;;  %9816 = vrot.lane.b32.xlu0 %v9815_v58, %s11103_s30  ;;  %v1323_v9 = vsel %vm366_vm0, 0.0, %v1322_v50 }
 0x194   : > { %9786 = vrot.lane.b32.xlu2 %v9785_v63, %s11108_s12  ;;  %v9795_v54 = vpack.i.bf16 %v1323_v9, %v1267_v12 }
 0x195   : > { %v11726_v59 = vpop.permute.xlu0 %9641  ;;  %v11728_v3 = vpop.permute.xlu1 %9636 }
 0x196   : > { %v9644_v36 = vunpack.i.h.bf16 %v11726_v59  ;;  %v9643_v51 = vunpack.i.l.bf16 %v11726_v59  ;;  %v20017_v32 = vunpack.i.h.bf16 %v11728_v3  ;;  %v20022_v53 = vunpack.i.l.bf16 %v11728_v3 }
 0x197   : > { %v20383_v33 = vunpack.i.l.bf16 %v11728_v3  ;;  %v20387_v47 = vunpack.i.h.bf16 %v11728_v3 }
 0x198   : > { %v1055_v24 = vrot.slane %v9644_v36, 4  ;;  %v999_v20 = vrot.slane %v9643_v51, 4  ;;  %v849_v4 = vrot.slane %v20017_v32, 4  ;;  %v793_v56 = vrot.slane %v20022_v53, 4 }
 0x19b   : > { %9836 = vrot.lane.b32.xlu1 %v9835_v15, %s11109_s13  ;;  %9821 = vrot.lane.b32.xlu0 %v9820_v8, %s11105_s9  ;;  %v11758_v8 = vpop.permute.xlu2 %9666 }
 0x19c   : > { %9796 = vrot.lane.b32.xlu2 %v9795_v54, %s11104_s8  ;;  %v20008_v16 = vunpack.i.h.bf16 %v11758_v8  ;;  %v20009_v39 = vunpack.i.l.bf16 %v11758_v8 }
 0x19d   : > { %v11744_v63 = vpop.permute.xlu0 %9656  ;;  %v11746_v35 = vpop.permute.xlu1 %9651 }
 0x19e   : > { %v20010_v62 = vunpack.i.h.bf16 %v11744_v63  ;;  %v11817_v12 = vrot.slane %v20008_v16, 4  ;;  %v20011_v9 = vunpack.i.l.bf16 %v11744_v63  ;;  %v11822_v15 = vrot.slane %v20009_v39, 4 }
 0x19f   : > { %v20020_v54 = vunpack.i.h.bf16 %v11746_v35  ;;  %v20019_v18 = vunpack.i.l.bf16 %v11746_v35 }
 0x1a0   : > { %v1476_v10 = vrot.slane %v20010_v62, 4 }
 0x1a3   : > { %v11770_v14 = vpop.permute.xlu2 %2225 }
 0x1a4   : > { %9826 = vrot.lane.b32.xlu2 %v9825_v17, %s11103_s30 }
 0x1a5   : > { %v11763_v61 = vpop.permute.xlu0 %9676  ;;  %v11765_v7 = vpop.permute.xlu1 %2223 }
 0x1a6   : > { %v20016_v16 = vunpack.i.h.bf16 %v11763_v61  ;;  %v20018_v39 = vunpack.i.l.bf16 %v11763_v61 }
 0x1a8   : > { %v11869_v41 = vrot.slane %v20016_v16, 4 }
 0x1ab   : > { %v9692_v37 = vpop.permute.xlu2 %9691 }
 0x1ac   : > { %9831 = vrot.lane.b32.xlu2 %v9830_v6, %s11109_s13  ;;  %v9694_v50 = vunpack.i.h.bf16 %v9692_v37  ;;  %v9693_v59 = vunpack.i.l.bf16 %v9692_v37  ;;  %v1420_v37 = vrot.slane %v20011_v9, 4  ;;  %v1011_v9 = vrot.slane %v20019_v18, 4 }
 0x1ad   : > { %v11772_v55 = vpop.permute.xlu0 %9681  ;;  %v11774_v22 = vpop.permute.xlu1 %9671 }
 0x1ae   : > { %v1053_v19 = vrot.slane %v9694_v50, 4  ;;  %v1056_v30 = vsel %vm366_vm0, %v9694_v50, %v1055_v24  ;;  %v997_v6 = vrot.slane %v9693_v59, 4  ;;  %v1067_v50 = vrot.slane %v20020_v54, 4 }
 0x1b0   : > { %v998_v21 = vsel %vm366_vm0, %v997_v6, %v9643_v51  ;;  %v20026_v51 = vunpack.i.l.bf16 %v11772_v55 }
 0x1b1   : > { %v11884_v32 = vperm.slane %v998_v21, %v11184_v11 }
 0x1b2   : > { %v11899_v16 = vrot.slane %v20026_v51, 4 }
 0x1b3   : > { %v11791_v28 = vpop.permute.xlu2 %9706  ;;  %20379 = vst [vmem:[#allocation14_spill] sm:$0xff] %v11884_v32 }
 0x1b4   : > { %v20024_v25 = vunpack.i.h.bf16 %v11791_v28 }
 0x1b5   : > { %v11776_v13 = vpop.permute.xlu0 %2227  ;;  %v11778_v45 = vpop.permute.xlu1 %2229 }
 0x1bd   : > { %v11786_v57 = vpop.permute.xlu0 %9686  ;;  %v11808_v0 = vpop.permute.xlu1 %9696 }
 0x1be   : > { %v9689_v52 = vunpack.i.h.bf16 %v11786_v57  ;;  %v9688_v58 = vunpack.i.l.bf16 %v11786_v57  ;;  %v20023_v27 = vunpack.i.h.bf16 %v11808_v0  ;;  %v20021_v42 = vunpack.i.l.bf16 %v11808_v0 }
 0x1c0   : > { %v794_v17 = vsel %vm366_vm0, %v9688_v58, %v793_v56  ;;  %v850_v43 = vsel %vm366_vm0, %v9689_v52, %v849_v4  ;;  %v1000_v56 = vsel %vm366_vm0, %v9693_v59, %v999_v20  ;;  %v806_v62 = vsel %vm366_vm0, %v20021_v42, %v805_v38 }
 0x1c1   : > { %v802_v2 = vperm.slane %v794_v17, %v11184_v11  ;;  %v858_v4 = vperm.slane %v850_v43, %v11184_v11  ;;  %v862_v24 = vsel %vm366_vm0, %v20023_v27, %v861_v40  ;;  %v11857_v59 = vperm.slane %v1056_v30, %v11184_v11  ;;  %v11859_v17 = vpop.permute.xlu2 %2231 }
 0x1c2   : > { %v1054_v38 = vsel %vm366_vm0, %v1053_v19, %v9644_v36  ;;  %v11864_v40 = vperm.slane %v1000_v56, %v11184_v11  ;;  %v11873_v30 = vrot.slane %v20018_v39, 4  ;;  %v814_v20 = vperm.slane %v806_v62, %v11184_v11 }
 0x1c3   : > { %v870_v26 = vperm.slane %v862_v24, %v11184_v11  ;;  %v20025_v36 = vunpack.i.h.bf16 %v11772_v55  ;;  %v829_v19 = vrot.slane %v802_v2, 4  ;;  %v885_v6 = vrot.slane %v858_v4, 4 }
 0x1c4   : > { %v11880_v56 = vperm.slane %v1054_v38, %v11184_v11  ;;  %v20027_v39 = vunpack.i.l.bf16 %v11791_v28  ;;  %v1477_v24 = vsel %vm366_vm0, %v20024_v25, %v1476_v10  ;;  %v827_v53 = vrot.slane %v814_v20, 4 }
 0x1c5   : > { %v9702_v43 = vpop.permute.xlu0 %9701  ;;  %v883_v27 = vrot.slane %v870_v26, 4  ;;  %v11895_v21 = vrot.slane %v20025_v36, 4  ;;  %v830_v62 = vsel %vm366_vm0, %v814_v20, %v829_v19  ;;  %v886_v10 = vsel %vm366_vm0, %v870_v26, %v885_v6 }
 0x1c6   : > { %20378 = vst [vmem:[#allocation13_spill] sm:$0xff] %v11880_v56  ;;  %v9704_v18 = vunpack.i.h.bf16 %v9702_v43  ;;  %v9703_v54 = vunpack.i.l.bf16 %v9702_v43  ;;  %v11904_v43 = vperm.slane %v1477_v24, %v11184_v11  ;;  %v1421_v25 = vsel %vm366_vm0, %v20027_v39, %v1420_v37 }
 0x1c7   : > { %v11910_v38 = vperm.slane %v830_v62, %v11191_v23  ;;  %v11913_v36 = vperm.slane %v886_v10, %v11191_v23  ;;  %v791_v51 = vrot.slane %v9688_v58, 4  ;;  %v828_v62 = vsel %vm366_vm0, %v827_v53, %v802_v2 }
 0x1c8   : > { %v1065_v42 = vrot.slane %v9704_v18, 4  ;;  %v1068_v20 = vsel %vm366_vm0, %v9704_v18, %v1067_v50  ;;  %v1012_v26 = vsel %vm366_vm0, %v9703_v54, %v1011_v9  ;;  %v1009_v6 = vrot.slane %v9703_v54, 4  ;;  %v11932_v18 = vpop.permute.xlu1 %9711 }
 0x1c9   : > { %v11919_v19 = vpop.permute.xlu2 %9726  ;;  %v9840_v37 = vpack.i.bf16 %v11913_v36, %v11910_v38  ;;  %v884_v24 = vsel %vm366_vm0, %v883_v27, %v858_v4  ;;  %v11928_v39 = vperm.slane %v1421_v25, %v11184_v11  ;;  %v847_v58 = vrot.slane %v9689_v52, 4 }
 0x1ca   : > { %v11935_v9 = vperm.slane %v828_v62, %v11191_v23  ;;  %v11938_v54 = vperm.slane %v884_v24, %v11191_v23  ;;  %v20380_v53 = vunpack.i.h.bf16 %v11774_v22  ;;  %v20381_v27 = vunpack.i.l.bf16 %v11774_v22 }
 0x1cb   : > { %v1020_v57 = vperm.slane %v1012_v26, %v11184_v11  ;;  %9841 = vrot.lane.b32.xlu1 %v9840_v37, %s11106_s10  ;;  %v20382_v52 = vunpack.i.h.bf16 %v11808_v0  ;;  %v9729_v62 = vunpack.i.h.bf16 %v11919_v19  ;;  %v1076_v24 = vperm.slane %v1068_v20, %v11184_v11 }
 0x1cc   : > { %v11942_v2 = vrot.slane %v20380_v53, 4  ;;  %v11946_v4 = vrot.slane %v20381_v27, 4  ;;  %v9855_v53 = vpack.i.bf16 %v11938_v54, %v11935_v9  ;;  %v792_v27 = vsel %vm366_vm0, %v791_v51, %v20383_v33 }
 0x1cd   : > { %v11925_v10 = vpop.permute.xlu0 %2233  ;;  %v859_v50 = vrot.slane %v20382_v52, 4  ;;  %v20384_v25 = vunpack.i.l.bf16 %v11808_v0  ;;  %v20385_v26 = vunpack.i.h.bf16 %v11746_v35  ;;  %v20386_v52 = vunpack.i.l.bf16 %v11746_v35 }
 0x1ce   : > { %v848_v48 = vsel %vm366_vm0, %v847_v58, %v20387_v47  ;;  %v9728_v5 = vunpack.i.l.bf16 %v11919_v19  ;;  %9856 = vrot.lane.b32.xlu2 %v9855_v53, %s11107_s11  ;;  %v1023_v33 = vrot.slane %v11884_v32, 4  ;;  %v1033_v51 = vrot.slane %v1020_v57, 4 }
 0x1cf   : > { %v803_v29 = vrot.slane %v20384_v25, 4  ;;  %v1066_v37 = vsel %vm366_vm0, %v1065_v42, %v20385_v26  ;;  %v1010_v60 = vsel %vm366_vm0, %v1009_v6, %v20386_v52  ;;  %v9713_v42 = vunpack.i.l.bf16 %v11932_v18 }
 0x1d0   : > { %v1079_v35 = vrot.slane %v11880_v56, 4  ;;  %v11979_v6 = vperm.slane %v792_v27, %v11184_v11  ;;  %v11982_v3 = vperm.slane %v1066_v37, %v11184_v11  ;;  %v1089_v47 = vrot.slane %v1076_v24, 4 }
 0x1d1   : > { %v11985_v19 = vperm.slane %v1010_v60, %v11184_v11  ;;  %v11988_v58 = vperm.slane %v848_v48, %v11184_v11  ;;  %v20390_v25 = vunpack.i.l.bf16 %v11711_v49  ;;  %v20391_v26 = vunpack.i.h.bf16 %v11711_v49 }
 0x1d2   : > { %20388 = vst [vmem:[#allocation15_spill] sm:$0xff] %v11982_v3  ;;  %v1695_v27 = vsel %vm366_vm0, %v9729_v62, %v11869_v41  ;;  %v1639_v37 = vsel %vm366_vm0, %v9728_v5, %v11873_v30  ;;  %v9714_v60 = vunpack.i.h.bf16 %v11932_v18  ;;  %v20392_v0 = vrot.slane %v11864_v40, 4  ;;  %v12015_v18 = vpop.permute.xlu1 %9716 }
 0x1d3   : > { %20389 = vst [vmem:[#allocation16_spill] sm:$0xff] %v11985_v19  ;;  %v804_v53 = vsel %vm366_vm0, %v803_v29, %v20390_v25  ;;  %v860_v52 = vsel %vm366_vm0, %v859_v50, %v20391_v26  ;;  %v20393_v20 = vrot.slane %v11857_v59, 4  ;;  %v1627_v49 = vsel %vm366_vm0, %v9713_v42, %v11804_v44 }
 0x1d4   : > { %v1036_v48 = vsel %vm366_vm0, %v1020_v57, %v20392_v0  ;;  %v1034_v30 = vsel %vm366_vm0, %v1033_v51, %v11864_v40  ;;  %v1024_v44 = vsel %vm366_vm0, %v11985_v19, %v1023_v33  ;;  %v12038_v33 = vperm.slane %v1627_v49, %v11184_v11 }
 0x1d5   : > { %v1092_v29 = vsel %vm366_vm0, %v1076_v24, %v20393_v20  ;;  %v1044_v50 = vperm.slane %v1036_v48, %v11191_v23  ;;  %v12013_v25 = vpop.permute.xlu0 %9721  ;;  %v12018_v57 = vperm.slane %v1034_v30, %v11191_v23  ;;  %v1090_v24 = vsel %vm366_vm0, %v1089_v47, %v11857_v59 }
 0x1d6   : > { %v1100_v41 = vperm.slane %v1092_v29, %v11191_v23  ;;  %v1080_v20 = vsel %vm366_vm0, %v11982_v3, %v1079_v35  ;;  %v12027_v26 = vperm.slane %v1090_v24, %v11191_v23  ;;  %v12030_v40 = vperm.slane %v1024_v44, %v11191_v23  ;;  %v12040_v35 = vpop.permute.xlu2 %9731 }
 0x1d7   : > { %v12033_v51 = vperm.slane %v1080_v20, %v11191_v23  ;;  %v1680_v48 = vrot.slane %v9714_v60, 4  ;;  %v1624_v29 = vrot.slane %v9713_v42, 4  ;;  %v12049_v42 = vperm.slane %v804_v53, %v11184_v11 }
 0x1d8   : > { %v9845_v0 = vpack.i.bf16 %v1100_v41, %v1044_v50  ;;  %v9865_v24 = vpack.i.bf16 %v12027_v26, %v12018_v57  ;;  %v12052_v20 = vperm.slane %v860_v52, %v11184_v11  ;;  %v1683_v49 = vsel %vm366_vm0, %v9714_v60, %v11799_v31 }
 0x1d9   : > { %v9860_v44 = vpack.i.bf16 %v12033_v51, %v12030_v40  ;;  %v20035_v47 = vunpack.i.h.bf16 %v12015_v18  ;;  %v12057_v30 = vrot.slane %v9729_v62, 4  ;;  %v12062_v59 = vrot.slane %v9728_v5, 4 }
 0x1da   : > { %9846 = vrot.lane.b32.xlu0 %v9845_v0, %s11106_s10  ;;  %v12060_v0 = vperm.slane %v1695_v27, %v11184_v11  ;;  %v12065_v1 = vperm.slane %v1639_v37, %v11184_v11  ;;  %9866 = vrot.lane.b32.xlu1 %v9865_v24, %s11107_s11  ;;  %v20394_v53 = vunpack.i.l.bf16 %v11734_v34  ;;  %v20395_v62 = vunpack.i.h.bf16 %v12013_v25 }
 0x1db   : > { %9861 = vrot.lane.b32.xlu2 %v9860_v44, %s11108_s12  ;;  %v20396_v5 = vunpack.i.l.bf16 %v12013_v25  ;;  %v1662_v60 = vrot.slane %v12038_v33, 4  ;;  %v20397_v24 = vunpack.i.h.bf16 %v11734_v34  ;;  %v1051_v34 = vrot.slane %v1044_v50, 4 }
 0x1dc   : > { %v1625_v31 = vsel %vm366_vm0, %v1624_v29, %v20394_v53  ;;  %v1489_v27 = vsel %vm366_vm0, %v20395_v62, %v11942_v2  ;;  %v12086_v29 = vperm.slane %v1683_v49, %v11184_v11  ;;  %v20398_v53 = vunpack.i.l.bf16 %v12015_v18 }
 0x1dd   : > { %v1433_v37 = vsel %vm366_vm0, %v20396_v5, %v11946_v4  ;;  %v1681_v44 = vsel %vm366_vm0, %v1680_v48, %v20397_v24  ;;  %v2100_v2 = vsel %vm366_vm0, %v20035_v47, %v11817_v12  ;;  %v817_v4 = vrot.slane %v11979_v6, 4 }
 0x1de   : > { %v2044_v52 = vsel %vm366_vm0, %v20398_v53, %v11822_v15  ;;  %v873_v62 = vrot.slane %v11988_v58, 4  ;;  %v1497_v48 = vperm.slane %v1489_v27, %v11184_v11  ;;  %v1441_v49 = vperm.slane %v1433_v37, %v11184_v11 }
 0x1df   : > { %v1107_v5 = vrot.slane %v1100_v41, 4  ;;  %v845_v24 = vrot.slane %v11910_v38, 4  ;;  %v818_v15 = vsel %vm366_vm0, %v12049_v42, %v817_v4  ;;  %v1052_v12 = vsel %vm366_vm0, 0.0, %v1051_v34 }
 0x1e0   : > { %v874_v53 = vsel %vm366_vm0, %v12052_v20, %v873_v62  ;;  %v901_v47 = vrot.slane %v11913_v36, 4  ;;  %v826_v46 = vperm.slane %v818_v15, %v11191_v23  ;;  %v1718_v38 = vrot.slane %v12086_v29, 4 }
 0x1e1   : > { %v882_v50 = vperm.slane %v874_v53, %v11191_v23  ;;  %v1108_v27 = vsel %vm366_vm0, 0.0, %v1107_v5  ;;  %v846_v41 = vsel %vm366_vm0, 0.0, %v845_v24  ;;  %v20399_v62 = vunpack.i.h.bf16 %v12040_v35 }
 0x1e2   : > { %v9875_v4 = vpack.i.bf16 %v1108_v27, %v1052_v12  ;;  %v902_v56 = vsel %vm366_vm0, 0.0, %v901_v47  ;;  %v20400_v34 = vrot.slane %v11770_v14, 4  ;;  %v12123_v24 = vperm.slane %v2044_v52, %v11184_v11 }
 0x1e3   : > { %v2112_v36 = vsel %vm366_vm0, %v20399_v62, %v11895_v21  ;;  %v9850_v5 = vpack.i.bf16 %v882_v50, %v826_v46  ;;  %v9870_v53 = vpack.i.bf16 %v902_v56, %v846_v41  ;;  %v12126_v37 = vperm.slane %v2100_v2, %v11184_v11 }
 0x1e4   : > { %v2306_v15 = vsel %vm366_vm0, %v11925_v10, %v20400_v34  ;;  %9876 = vrot.lane.b32.xlu1 %v9875_v4, %s11104_s8  ;;  %v20401_v47 = vrot.slane %v11928_v39, 4  ;;  %v20402_v21 = vrot.slane %v11904_v43, 4  ;;  %v1663_v2 = vsel %vm366_vm0, %v12065_v1, %v1662_v60 }
 0x1e5   : > { %9851 = vrot.lane.b32.xlu0 %v9850_v5, %s11108_s12  ;;  %9871 = vrot.lane.b32.xlu2 %v9870_v53, %s11104_s8  ;;  %v841_v41 = vrot.slane %v826_v46, 4  ;;  %v20403_v4 = vunpack.i.l.bf16 %v12040_v35  ;;  %v1510_v34 = vrot.slane %v1497_v48, 4  ;;  %v1719_v5 = vsel %vm366_vm0, %v12060_v0, %v1718_v38 }
 0x1e6   : > { %v1457_v12 = vsel %vm366_vm0, %v1441_v49, %v20401_v47  ;;  %v1513_v27 = vsel %vm366_vm0, %v1497_v48, %v20402_v21  ;;  %v897_v53 = vrot.slane %v882_v50, 4  ;;  %v12151_v47 = vpop.permute.xlu2 %2237  ;;  %v12154_v21 = vperm.slane %v1663_v2, %v11191_v23 }
 0x1e7   : > { %v12138_v56 = vperm.slane %v1457_v12, %v11191_v23  ;;  %v12141_v52 = vperm.slane %v1513_v27, %v11191_v23  ;;  %v2056_v62 = vsel %vm366_vm0, %v20403_v4, %v11899_v16  ;;  %v1454_v12 = vrot.slane %v1441_v49, 4 }
 0x1e8   : > { %v12157_v27 = vperm.slane %v1719_v5, %v11191_v23  ;;  %v842_v46 = vsel %vm366_vm0, 0.0, %v841_v41  ;;  %v12161_v60 = vperm.slane %v2306_v15, %v11184_v11  ;;  %v2079_v16 = vrot.slane %v12123_v24, 4 }
 0x1e9   : > { %v2135_v48 = vrot.slane %v12126_v37, 4  ;;  %v898_v50 = vsel %vm366_vm0, 0.0, %v897_v53  ;;  %v12167_v38 = vperm.slane %v1625_v31, %v11184_v11  ;;  %v12170_v49 = vperm.slane %v2112_v36, %v11184_v11 }
 0x1ea   : > { %v12173_v2 = vperm.slane %v2056_v62, %v11184_v11  ;;  %v9880_v41 = vpack.i.bf16 %v12141_v52, %v12138_v56  ;;  %v20404_v15 = vunpack.i.h.bf16 %v12015_v18  ;;  %v20405_v5 = vunpack.i.l.bf16 %v12015_v18 }
 0x1eb   : > { %v20406_v53 = vrot.slane %v11778_v45, 4  ;;  %v9895_v19 = vpack.i.bf16 %v898_v50, %v842_v46  ;;  %v12186_v36 = vperm.slane %v1681_v44, %v11184_v11  ;;  %v9885_v62 = vpack.i.bf16 %v12157_v27, %v12154_v21 }
 0x1ec   : > { %v2097_v4 = vrot.slane %v20404_v15, 4  ;;  %v2041_v32 = vrot.slane %v20405_v5, 4  ;;  %v1455_v3 = vsel %vm366_vm0, %v1454_v12, %v11928_v39  ;;  %v1511_v15 = vsel %vm366_vm0, %v1510_v34, %v11904_v43 }
 0x1ed   : > { %v2318_v31 = vsel %vm366_vm0, %v12151_v47, %v20406_v53  ;;  %v20407_v18 = vrot.slane %v11765_v7, 4  ;;  %v2341_v53 = vrot.slane %v12161_v60, 4  ;;  %9896 = vrot.lane.b32.xlu1 %v9895_v19, %s11105_s9  ;;  %v2080_v44 = vsel %vm366_vm0, %v12173_v2, %v2079_v16  ;;  %9881 = vrot.lane.b32.xlu0 %v9880_v41, %s11106_s10 }
 0x1ee   : > { %v2136_v46 = vsel %vm366_vm0, %v12170_v49, %v2135_v48  ;;  %v2261_v39 = vrot.slane %v11776_v13, 4  ;;  %v20408_v12 = vunpack.i.h.bf16 %v11763_v61  ;;  %v20409_v34 = vunpack.i.l.bf16 %v11763_v61  ;;  %9886 = vrot.lane.b32.xlu2 %v9885_v62, %s11106_s10 }
 0x1ef   : > { %v2250_v5 = vsel %vm366_vm0, %v11859_v17, %v20407_v18  ;;  %v12214_v19 = vperm.slane %v2318_v31, %v11184_v11  ;;  %v20410_v16 = vunpack.i.l.bf16 %v11758_v8  ;;  %v20411_v18 = vunpack.i.h.bf16 %v11758_v8 }
 0x1f0   : > { %v1693_v43 = vsel %vm366_vm0, %v12057_v30, %v20408_v12  ;;  %v1637_v50 = vsel %vm366_vm0, %v12062_v59, %v20409_v34  ;;  %v12224_v12 = vpop.permute.xlu1 %2235  ;;  %v12227_v61 = vperm.slane %v1455_v3, %v11191_v23  ;;  %v12230_v59 = vperm.slane %v1511_v15, %v11191_v23 }
 0x1f1   : > { %v2042_v48 = vsel %vm366_vm0, %v2041_v32, %v20410_v16  ;;  %v2098_v30 = vsel %vm366_vm0, %v2097_v4, %v20411_v18  ;;  %v12233_v41 = vperm.slane %v2080_v44, %v11191_v23  ;;  %v12236_v31 = vperm.slane %v2136_v46, %v11191_v23 }
 0x1f2   : > { %20412 = vst [vmem:[#allocation17_spill] sm:$0xff] %v12227_v61  ;;  %v1650_v32 = vrot.slane %v12167_v38, 4  ;;  %v1706_v8 = vrot.slane %v12186_v36, 4  ;;  %v12241_v4 = vperm.slane %v2250_v5, %v11184_v11  ;;  %v12244_v62 = vperm.slane %v1693_v43, %v11184_v11 }
 0x1f3   : > { %20413 = vst [vmem:[#allocation18_spill] sm:$0xff] %v12230_v59  ;;  %v2342_v3 = vsel %vm366_vm0, %v12214_v19, %v2341_v53  ;;  %v12249_v15 = vperm.slane %v1637_v50, %v11184_v11  ;;  %v20416_v44 = vunpack.i.h.bf16 %v12040_v35  ;;  %v20417_v34 = vunpack.i.l.bf16 %v12040_v35 }
 0x1f4   : > { %20414 = vst [vmem:[#allocation19_spill] sm:$0xff] %v12233_v41  ;;  %v2262_v18 = vsel %vm366_vm0, %v12224_v12, %v2261_v39  ;;  %v12258_v5 = vperm.slane %v2042_v48, %v11184_v11  ;;  %v12261_v43 = vperm.slane %v2098_v30, %v11184_v11  ;;  %v9920_v53 = vpack.i.bf16 %v12230_v59, %v12227_v61 }
 0x1f5   : > { %20415 = vst [vmem:[#allocation20_spill] sm:$0xff] %v12236_v31  ;;  %v2109_v46 = vrot.slane %v20416_v44, 4  ;;  %v2053_v16 = vrot.slane %v20417_v34, 4  ;;  %v12266_v50 = vperm.slane %v2342_v3, %v11191_v23  ;;  %v9890_v44 = vpack.i.bf16 %v12236_v31, %v12233_v41 }
 0x1f6   : > { %20418 = vst [vmem:[#allocation21_spill] sm:$0xff] %v12261_v43  ;;  %v1651_v35 = vsel %vm366_vm0, %v12249_v15, %v1650_v32  ;;  %v1707_v39 = vsel %vm366_vm0, %v12244_v62, %v1706_v8  ;;  %v20420_v48 = vunpack.i.h.bf16 %v11791_v28  ;;  %v12277_v30 = vperm.slane %v2262_v18, %v11184_v11  ;;  %9921 = vrot.lane.b32.xlu1 %v9920_v53, %s11107_s11 }
 0x1f7   : > { %20419 = vst [vmem:[#allocation22_spill] sm:$0xff] %v12266_v50  ;;  %v843_v3 = vrot.slane %v11935_v9, 4  ;;  %v899_v59 = vrot.slane %v11938_v54, 4  ;;  %v20421_v31 = vunpack.i.l.bf16 %v11791_v28  ;;  %v2285_v32 = vrot.slane %v12241_v4, 4  ;;  %2408 = vrot.lane.b32.xlu0 %v12266_v50, %s11106_s10  ;;  %9891 = vrot.lane.b32.xlu2 %v9890_v44, %s11106_s10 }
 0x1f8   : > { %v1474_v34 = vrot.slane %v20420_v48, 4  ;;  %v20422_v61 = vunpack.i.h.bf16 %v11772_v55  ;;  %v20423_v48 = vunpack.i.l.bf16 %v11772_v55  ;;  %v20424_v9 = vunpack.i.h.bf16 %v12013_v25 }
 0x1f9   : > { %v1418_v41 = vrot.slane %v20421_v31, 4  ;;  %v20425_v28 = vunpack.i.l.bf16 %v12013_v25  ;;  %v12299_v53 = vperm.slane %v1651_v35, %v11191_v23  ;;  %v2067_v55 = vrot.slane %v12258_v5, 4 }
 0x1fa   : > { %v2110_v8 = vsel %vm366_vm0, %v2109_v46, %v20422_v61  ;;  %v2054_v18 = vsel %vm366_vm0, %v2053_v16, %v20423_v48  ;;  %v1486_v54 = vrot.slane %v20424_v9, 4  ;;  %v12302_v61 = vperm.slane %v1707_v39, %v11191_v23 }
 0x1fb   : > { %v1430_v31 = vrot.slane %v20425_v28, 4  ;;  %v2123_v46 = vrot.slane %v12261_v43, 4  ;;  %v20426_v16 = vunpack.i.h.bf16 %v11744_v63  ;;  %v844_v48 = vsel %vm366_vm0, 0.0, %v843_v3 }
 0x1fc   : > { %v900_v9 = vsel %vm366_vm0, 0.0, %v899_v59  ;;  %v2286_v25 = vsel %vm366_vm0, %v12277_v30, %v2285_v32  ;;  %v20427_v35 = vunpack.i.l.bf16 %v11744_v63  ;;  %v2247_v28 = vrot.slane %v11859_v17, 4 }
 0x1fd   : > { %v1475_v44 = vsel %vm366_vm0, %v1474_v34, %v20426_v16  ;;  %v12318_v50 = vperm.slane %v2110_v8, %v11184_v11  ;;  %v12321_v43 = vperm.slane %v2054_v18, %v11184_v11  ;;  %v2259_v34 = vrot.slane %v12224_v12, 4  ;;  %v12330_v16 = vpop.permute.xlu2 %9736 }
 0x1fe   : > { %v1419_v39 = vsel %vm366_vm0, %v1418_v41, %v20427_v35  ;;  %v20428_v3 = vunpack.i.h.bf16 %v11774_v22  ;;  %v20429_v32 = vunpack.i.l.bf16 %v11774_v22  ;;  %v9925_v17 = vpack.i.bf16 %v12302_v61, %v12299_v53 }
 0x1ff   : > { %v9900_v41 = vpack.i.bf16 %v900_v9, %v844_v48  ;;  %v12335_v8 = vperm.slane %v2286_v25, %v11191_v23  ;;  %v2068_v12 = vsel %vm366_vm0, %v12321_v43, %v2067_v55  ;;  %v2124_v18 = vsel %vm366_vm0, %v12318_v50, %v2123_v46  ;;  %v12371_v9 = vpop.permute.xlu1 %9741 }
 0x200   : > { %v1487_v59 = vsel %vm366_vm0, %v1486_v54, %v20428_v3  ;;  %v1431_v63 = vsel %vm366_vm0, %v1430_v31, %v20429_v32  ;;  %9926 = vrot.lane.b32.xlu1 %v9925_v17, %s11108_s12  ;;  %v1047_v22 = vrot.slane %v12030_v40, 4  ;;  %v1103_v54 = vrot.slane %v12033_v51, 4 }
 0x201   : > { %v1049_v31 = vrot.slane %v12018_v57, 4  ;;  %v1105_v35 = vrot.slane %v12027_v26, 4  ;;  %v12347_v48 = vperm.slane %v1475_v44, %v11184_v11  ;;  %9901 = vrot.lane.b32.xlu0 %v9900_v41, %s11103_s30  ;;  %2380 = vrot.lane.b32.xlu2 %v12335_v8, %s11106_s10  ;;  %v12353_v55 = vperm.slane %v1419_v39, %v11184_v11 }
 0x202   : > { %v2248_v40 = vsel %vm366_vm0, %v2247_v28, %v11765_v7  ;;  %v12358_v51 = vperm.slane %v2068_v12, %v11191_v23  ;;  %v12361_v57 = vperm.slane %v2124_v18, %v11191_v23  ;;  %v2260_v26 = vsel %vm366_vm0, %v2259_v34, %v11776_v13 }
 0x203   : > { %v12366_v46 = vperm.slane %v1487_v59, %v11184_v11  ;;  %v12369_v44 = vperm.slane %v1431_v63, %v11184_v11  ;;  %v1048_v25 = vsel %vm366_vm0, 0.0, %v1047_v22  ;;  %v1104_v7 = vsel %vm366_vm0, 0.0, %v1103_v54 }
 0x204   : > { %v1050_v39 = vsel %vm366_vm0, 0.0, %v1049_v31  ;;  %v1106_v28 = vsel %vm366_vm0, 0.0, %v1105_v35  ;;  %v12378_v3 = vperm.slane %v2248_v40, %v11184_v11  ;;  %v1660_v13 = vrot.slane %v12065_v1, 4 }
 0x205   : > { %v2303_v34 = vrot.slane %v11925_v10, 4  ;;  %v1716_v59 = vrot.slane %v12060_v0, 4  ;;  %v9935_v32 = vpack.i.bf16 %v12361_v57, %v12358_v51  ;;  %v1444_v63 = vrot.slane %v12353_v55, 4  ;;  %v12392_v1 = vpop.permute.xlu2 %9766 }
 0x206   : > { %v1500_v17 = vrot.slane %v12347_v48, 4  ;;  %v12388_v41 = vperm.slane %v2260_v26, %v11184_v11  ;;  %v9905_v12 = vpack.i.bf16 %v1104_v7, %v1048_v25  ;;  %v9910_v18 = vpack.i.bf16 %v1106_v28, %v1050_v39  ;;  %v12426_v28 = vpop.permute.xlu0 %9746 }
 0x207   : > { %v1661_v22 = vsel %vm366_vm0, %v1660_v13, %v12038_v33  ;;  %v1717_v10 = vsel %vm366_vm0, %v1716_v59, %v12086_v29  ;;  %v1445_v0 = vsel %vm366_vm0, %v12369_v44, %v1444_v63  ;;  %v2304_v31 = vsel %vm366_vm0, %v2303_v34, %v11770_v14  ;;  %v12428_v13 = vpop.permute.xlu1 %9756 }
 0x208   : > { %9936 = vrot.lane.b32.xlu1 %v9935_v32, %s11108_s12  ;;  %v1501_v54 = vsel %vm366_vm0, %v12366_v46, %v1500_v17  ;;  %v2273_v33 = vrot.slane %v12378_v3, 4  ;;  %v2315_v35 = vrot.slane %v12151_v47, 4  ;;  %v12408_v40 = vperm.slane %v1661_v22, %v11191_v23 }
 0x209   : > { %9906 = vrot.lane.b32.xlu0 %v9905_v12, %s11105_s9  ;;  %9911 = vrot.lane.b32.xlu2 %v9910_v18, %s11103_s30  ;;  %v12411_v29 = vperm.slane %v1717_v10, %v11191_v23  ;;  %v12414_v26 = vperm.slane %v1445_v0, %v11191_v23  ;;  %v12417_v25 = vperm.slane %v1501_v54, %v11191_v23  ;;  %v815_v47 = vrot.slane %v12049_v42, 4 }
 0x20a   : > { %v2274_v14 = vsel %vm366_vm0, %v12388_v41, %v2273_v33  ;;  %v12422_v7 = vperm.slane %v2304_v31, %v11184_v11  ;;  %v871_v39 = vrot.slane %v12052_v20, 4  ;;  %v2133_v34 = vrot.slane %v12170_v49, 4 }
 0x20b   : > { %v2077_v59 = vrot.slane %v12173_v2, 4  ;;  %v12433_v32 = vperm.slane %v2274_v14, %v11191_v23  ;;  %v2316_v63 = vsel %vm366_vm0, %v2315_v35, %v11778_v45  ;;  %v2339_v17 = vrot.slane %v12214_v19, 4 }
 0x20c   : > { %v9930_v42 = vpack.i.bf16 %v12411_v29, %v12408_v40  ;;  %v9915_v20 = vpack.i.bf16 %v12417_v25, %v12414_v26  ;;  %v2134_v2 = vsel %vm366_vm0, %v2133_v34, %v12126_v37  ;;  %v2329_v12 = vrot.slane %v12422_v7, 4 }
 0x20d   : > { %v2078_v49 = vsel %vm366_vm0, %v2077_v59, %v12123_v24  ;;  %v816_v45 = vsel %vm366_vm0, %v815_v47, %v11979_v6  ;;  %v872_v19 = vsel %vm366_vm0, %v871_v39, %v11988_v58  ;;  %v12456_v18 = vperm.slane %v2316_v63, %v11184_v11  ;;  %v12458_v22 = vpop.permute.xlu2 %9781 }
 0x20e   : > { %v12461_v24 = vperm.slane %v2078_v49, %v11191_v23  ;;  %v12464_v37 = vperm.slane %v2134_v2, %v11191_v23  ;;  %v2340_v10 = vsel %vm366_vm0, %v2339_v17, %v12161_v60  ;;  %v12471_v0 = vperm.slane %v816_v45, %v11191_v23  ;;  %v12480_v33 = vpop.permute.xlu0 %9751  ;;  %v20432_v49 = vld [vmem:[#allocation16_spill] sm:$0xff] }
 0x20f   : > { %v2330_v6 = vsel %vm366_vm0, %v12456_v18, %v2329_v12  ;;  %v12474_v58 = vperm.slane %v872_v19, %v11191_v23  ;;  %v2283_v54 = vrot.slane %v12277_v30, 4  ;;  %v12478_v31 = vperm.slane %v2340_v10, %v11191_v23  ;;  %20430 = vst [vmem:[#allocation23_spill] sm:$0xff] %v12480_v33  ;;  %v12482_v35 = vpop.permute.xlu1 %9771  ;;  %v20467_v33 = vld [vmem:[#allocation7_spill] sm:$0xff] }
 0x210   : > { %2364 = vrot.lane.b32.xlu1 %v12433_v32, %s11108_s12  ;;  %v9940_v60 = vpack.i.bf16 %v12464_v37, %v12461_v24  ;;  %v12487_v14 = vperm.slane %v2330_v6, %v11191_v23  ;;  %v1472_v47 = vrot.slane %v12138_v56, 4  ;;  %v1528_v39 = vrot.slane %v12141_v52, 4 }
 0x211   : > { %9931 = vrot.lane.b32.xlu0 %v9930_v42, %s11107_s11  ;;  %9916 = vrot.lane.b32.xlu2 %v9915_v20, %s11108_s12  ;;  %v839_v30 = vrot.slane %v12471_v0, 4  ;;  %v895_v34 = vrot.slane %v12474_v58, 4  ;;  %v1704_v59 = vrot.slane %v12244_v62, 4  ;;  %v1648_v63 = vrot.slane %v12249_v15, 4  ;;  %v20431_v42 = vld [vmem:[#allocation15_spill] sm:$0xff] }
 0x212   : > { %v2284_v56 = vsel %vm366_vm0, %v2283_v54, %v12241_v4  ;;  %v1473_v52 = vsel %vm366_vm0, 0.0, %v1472_v47  ;;  %v1529_v17 = vsel %vm366_vm0, 0.0, %v1528_v39  ;;  %v1077_v20 = vrot.slane %v20431_v42, 4 }
 0x213   : > { %v1021_v2 = vrot.slane %v20432_v49, 4  ;;  %v840_v45 = vsel %vm366_vm0, 0.0, %v839_v30  ;;  %v896_v19 = vsel %vm366_vm0, 0.0, %v895_v34  ;;  %v2121_v62 = vrot.slane %v12318_v50, 4 }
 0x214   : > { %v2065_v15 = vrot.slane %v12321_v43, 4  ;;  %v12514_v4 = vsel %vm366_vm0, %v1648_v63, %v12167_v38  ;;  %v12518_v10 = vsel %vm366_vm0, %v1704_v59, %v12186_v36  ;;  %v2271_v6 = vrot.slane %v12388_v41, 4  ;;  %v20433_v43 = vld [vmem:[#allocation17_spill] sm:$0xff]  ;;  %v20434_v36 = vld [vmem:[#allocation18_spill] sm:$0xff] }
 0x215   : > { %v12506_v12 = vpop.permute.xlu2 %9786  ;;  %v12522_v54 = vperm.slane %v2284_v56, %v11191_v23  ;;  %v1678_v47 = vrot.slane %v12154_v21, 4  ;;  %v9960_v39 = vpack.i.bf16 %v896_v19, %v840_v45  ;;  %v1734_v50 = vrot.slane %v12157_v27, 4  ;;  %v20435_v41 = vld [vmem:[#allocation14_spill] sm:$0xff]  ;;  %v20436_v63 = vld [vmem:[#allocation13_spill] sm:$0xff] }
 0x216   : > { %v1470_v30 = vrot.slane %v20433_v43, 4  ;;  %v12529_v38 = vsel %vm366_vm0, %v2065_v15, %v12258_v5  ;;  %v1526_v34 = vrot.slane %v20434_v36, 4  ;;  %v1022_v59 = vsel %vm366_vm0, %v1021_v2, %v20435_v41  ;;  %v20437_v21 = vld [vmem:[#allocation21_spill] sm:$0xff]  ;;  %v12541_v27 = vpop.permute.xlu0 %9761  ;;  %v20438_v5 = vld [vmem:[#allocation22_spill] sm:$0xff] }
 0x217   : > { %v1078_v56 = vsel %vm366_vm0, %v1077_v20, %v20436_v63  ;;  %v2357_v42 = vrot.slane %v20438_v5, 4  ;;  %v1679_v49 = vsel %vm366_vm0, 0.0, %v1678_v47  ;;  %v12551_v2 = vperm.slane %v1022_v59, %v11191_v23  ;;  %v20442_v59 = vld [vmem:[#allocation20_spill] sm:$0xff] }
 0x218   : > { %2400 = vrot.lane.b32.xlu1 %v12478_v31, %s11107_s11  ;;  %v12554_v20 = vperm.slane %v1078_v56, %v11191_v23  ;;  %v1735_v45 = vsel %vm366_vm0, 0.0, %v1734_v50  ;;  %v1471_v19 = vsel %vm366_vm0, 0.0, %v1470_v30  ;;  %v12561_v15 = vsel %vm366_vm0, %v2271_v6, %v12378_v3  ;;  %v20441_v50 = vld [vmem:[#allocation19_spill] sm:$0xff] }
 0x219   : > { %9941 = vrot.lane.b32.xlu0 %v9940_v60, %s11107_s11  ;;  %2392 = vrot.lane.b32.xlu2 %v12487_v14, %s11108_s12  ;;  %v9945_v60 = vpack.i.bf16 %v1529_v17, %v1473_v52  ;;  %v12539_v52 = vsel %vm366_vm0, %v2121_v62, %v20437_v21  ;;  %v12543_v17 = vpop.permute.xlu1 %9791  ;;  %20439 = vst [vmem:[#allocation15_spill] sm:$0xff] %v12551_v2  ;;  %v1527_v62 = vsel %vm366_vm0, 0.0, %v1526_v34  ;;  %v2358_v47 = vsel %vm366_vm0, 0.0, %v2357_v42 }
 0x21a   : > { %20440 = vst [vmem:[#allocation16_spill] sm:$0xff] %v12554_v20  ;;  %v9975_v43 = vpack.i.bf16 %v1527_v62, %v1471_v19  ;;  %v1045_v36 = vrot.slane %v12551_v2, 4  ;;  %v1101_v41 = vrot.slane %v12554_v20, 4  ;;  %v2095_v30 = vrot.slane %v20441_v50, 4 }
 0x21b   : > { %v2151_v34 = vrot.slane %v20442_v59, 4  ;;  %v1674_v63 = vrot.slane %v12299_v53, 4  ;;  %v1730_v3 = vrot.slane %v12302_v61, 4  ;;  %v9768_v2 = vunpack.i.l.bf16 %v12392_v1 }
 0x21c   : > { %v1046_v21 = vsel %vm366_vm0, 0.0, %v1045_v36  ;;  %v1102_v5 = vsel %vm366_vm0, 0.0, %v1101_v41  ;;  %v2096_v42 = vsel %vm366_vm0, 0.0, %v2095_v30  ;;  %v2091_v36 = vrot.slane %v12358_v51, 4 }
 0x21d   : > { %v1675_v53 = vsel %vm366_vm0, 0.0, %v1674_v63  ;;  %v1731_v61 = vsel %vm366_vm0, 0.0, %v1730_v3  ;;  %v2147_v41 = vrot.slane %v12361_v57, 4  ;;  %v2093_v3 = vrot.slane %v12461_v24, 4 }
 0x21e   : > { %v12575_v6 = vpop.permute.xlu0 %9776  ;;  %v9980_v62 = vpack.i.bf16 %v1731_v61, %v1675_v53  ;;  %v1498_v53 = vrot.slane %v12366_v46, 4  ;;  %v1442_v61 = vrot.slane %v12369_v44, 4 }
 0x21f   : > { %v2148_v59 = vsel %vm366_vm0, 0.0, %v2147_v41  ;;  %v2094_v24 = vsel %vm366_vm0, 0.0, %v2093_v3  ;;  %v2299_v41 = vrot.slane %v12522_v54, 4 }
 0x220   : > { %9946 = vrot.lane.b32.xlu1 %v9945_v60, %s11104_s8  ;;  %v12563_v60 = vpop.permute.xlu2 %9796  ;;  %v1499_v44 = vsel %vm366_vm0, %v1498_v53, %v12347_v48  ;;  %v12645_v48 = vperm.slane %v12514_v4, %v11191_v23 }
 0x221   : > { %2372 = vrot.lane.b32.xlu0 %v12522_v54, %s11107_s11  ;;  %9961 = vrot.lane.b32.xlu2 %v9960_v39, %s11109_s13  ;;  %v9950_v39 = vpack.i.bf16 %v1735_v45, %v1679_v49  ;;  %v12577_v56 = vpop.permute.xlu1 %9801  ;;  %v2152_v49 = vsel %vm366_vm0, 0.0, %v2151_v34  ;;  %v9965_v45 = vpack.i.bf16 %v1102_v5, %v1046_v21  ;;  %v2149_v21 = vrot.slane %v12464_v37, 4 }
 0x222   : > { %v9955_v19 = vpack.i.bf16 %v2152_v49, %v2096_v42  ;;  %v1524_v42 = vrot.slane %v12417_v25, 4  ;;  %v2297_v25 = vrot.slane %v12433_v32, 4  ;;  %20445 = vst [vmem:[#allocation14_spill] sm:$0xff] %v12645_v48  ;;  %v2327_v54 = vrot.slane %v12456_v18, 4 }
 0x223   : > { %v2150_v37 = vsel %vm366_vm0, 0.0, %v2149_v21  ;;  %v1672_v3 = vrot.slane %v12645_v48, 4  ;;  %v9743_v48 = vunpack.i.l.bf16 %v12371_v9 }
 0x224   : > { %v2298_v46 = vsel %vm366_vm0, 0.0, %v2297_v25 }
 0x225   : > { %v1673_v53 = vsel %vm366_vm0, 0.0, %v1672_v3 }
 0x226   : > { %v12599_v34 = vpop.permute.xlu0 %9806 }
 0x228   : > { %2412 = vrot.lane.b32.xlu1 %v2358_v47, %s11104_s8  ;;  %v1676_v47 = vrot.slane %v12408_v40, 4  ;;  %v2301_v40 = vrot.slane %v12335_v8, 4  ;;  %v1468_v8 = vrot.slane %v12414_v26, 4  ;;  %v1525_v26 = vsel %vm366_vm0, 0.0, %v1524_v42 }
 0x229   : > { %9951 = vrot.lane.b32.xlu0 %v9950_v39, %s11104_s8  ;;  %9976 = vrot.lane.b32.xlu2 %v9975_v43, %s11103_s30  ;;  %v1732_v39 = vrot.slane %v12411_v29, 4  ;;  %v12587_v43 = vpop.permute.xlu2 %9826  ;;  %v2092_v29 = vsel %vm366_vm0, 0.0, %v2091_v36  ;;  %v12601_v63 = vpop.permute.xlu1 %9811  ;;  %v1443_v36 = vsel %vm366_vm0, %v1442_v61, %v12353_v55  ;;  %v2355_v55 = vrot.slane %v12478_v31, 4 }
 0x22a   : > { %v1677_v50 = vsel %vm366_vm0, 0.0, %v1676_v47  ;;  %v9990_v57 = vpack.i.bf16 %v2148_v59, %v2092_v29  ;;  %v2302_v5 = vsel %vm366_vm0, 0.0, %v2301_v40  ;;  %v2353_v40 = vrot.slane %v12487_v14, 4 }
 0x22b   : > { %v1733_v30 = vsel %vm366_vm0, 0.0, %v1732_v39  ;;  %v12649_v29 = vperm.slane %v12518_v10, %v11191_v23  ;;  %v2300_v59 = vsel %vm366_vm0, 0.0, %v2299_v41  ;;  %v2356_v4 = vsel %vm366_vm0, 0.0, %v2355_v55 }
 0x22c   : > { %v9985_v51 = vpack.i.bf16 %v1733_v30, %v1677_v50  ;;  %v12636_v50 = vperm.slane %v1443_v36, %v11191_v23  ;;  %v12639_v30 = vperm.slane %v1499_v44, %v11191_v23  ;;  %v2354_v31 = vsel %vm366_vm0, 0.0, %v2353_v40 }
 0x22d   : > { %20446 = vst [vmem:[#allocation13_spill] sm:$0xff] %v12649_v29  ;;  %v1728_v10 = vrot.slane %v12649_v29, 4  ;;  %v2328_v61 = vsel %vm366_vm0, %v2327_v54, %v12422_v7  ;;  %v12702_v55 = vperm.slane %v12561_v15, %v11191_v23 }
 0x22e   : > { %20443 = vst [vmem:[#allocation17_spill] sm:$0xff] %v12636_v50  ;;  %v1522_v14 = vrot.slane %v12639_v30, 4  ;;  %v12683_v25 = vperm.slane %v2328_v61, %v11191_v23 }
 0x22f   : > { %20444 = vst [vmem:[#allocation18_spill] sm:$0xff] %v12639_v30 }
 0x230   : > { %9966 = vrot.lane.b32.xlu1 %v9965_v45, %s11109_s13  ;;  %v1469_v45 = vsel %vm366_vm0, 0.0, %v1468_v8  ;;  %v12670_v8 = vperm.slane %v12529_v38, %v11191_v23  ;;  %20449 = vst [vmem:[#allocation19_spill] sm:$0xff] %v12683_v25 }
 0x231   : > { %9956 = vrot.lane.b32.xlu0 %v9955_v19, %s11104_s8  ;;  %9981 = vrot.lane.b32.xlu2 %v9980_v62, %s11105_s9  ;;  %v12611_v49 = vpop.permute.xlu2 %9831  ;;  %v9995_v19 = vpack.i.bf16 %v2150_v37, %v2094_v24  ;;  %v12620_v62 = vpop.permute.xlu0 %9816  ;;  %v9970_v39 = vpack.i.bf16 %v1525_v26, %v1469_v45  ;;  %v1729_v24 = vsel %vm366_vm0, 0.0, %v1728_v10  ;;  %v12678_v37 = vperm.slane %v12539_v52, %v11191_v23 }
 0x232   : > { %v12622_v47 = vpop.permute.xlu1 %9836  ;;  %20447 = vst [vmem:[#allocation21_spill] sm:$0xff] %v12670_v8  ;;  %v10005_v26 = vpack.i.bf16 %v1729_v24, %v1673_v53  ;;  %v2089_v38 = vrot.slane %v12670_v8, 4  ;;  %v9749_v8 = vunpack.i.h.bf16 %v12426_v28 }
 0x233   : > { %20448 = vst [vmem:[#allocation22_spill] sm:$0xff] %v12678_v37  ;;  %v9838_v30 = vunpack.i.l.bf16 %v12622_v47 }
 0x234   : > { %v2090_v7 = vsel %vm366_vm0, 0.0, %v2089_v38  ;;  %20450 = vst [vmem:[#allocation20_spill] sm:$0xff] %v12702_v55 }
 0x238   : > { %9986 = vrot.lane.b32.xlu1 %v9985_v51, %s11103_s30 }
 0x239   : > { %2384 = vrot.lane.b32.xlu0 %v2302_v5, %s11104_s8  ;;  %9991 = vrot.lane.b32.xlu2 %v9990_v57, %s11105_s9  ;;  %v12632_v32 = vpop.permute.xlu2 %9856  ;;  %v1466_v57 = vrot.slane %v12636_v50, 4  ;;  %v12662_v21 = vpop.permute.xlu0 %9821  ;;  %v1523_v5 = vsel %vm366_vm0, 0.0, %v1522_v14  ;;  %v9778_v50 = vunpack.i.l.bf16 %v12575_v6 }
 0x23b   : > { %v1467_v18 = vsel %vm366_vm0, 0.0, %v1466_v57  ;;  %v2295_v57 = vrot.slane %v12702_v55, 4  ;;  %v9808_v55 = vunpack.i.l.bf16 %v12599_v34 }
 0x23c   : > { %v10000_v45 = vpack.i.bf16 %v1523_v5, %v1467_v18 }
 0x23d   : > { %v12653_v51 = vpop.permute.xlu1 %9841 }
 0x240   : > { %9996 = vrot.lane.b32.xlu1 %v9995_v19, %s11103_s30  ;;  %v2145_v19 = vrot.slane %v12678_v37, 4  ;;  %v9809_v37 = vunpack.i.h.bf16 %v12599_v34 }
 0x241   : > { %9971 = vrot.lane.b32.xlu0 %v9970_v39, %s11105_s9  ;;  %2368 = vrot.lane.b32.xlu2 %v2298_v46, %s11105_s9  ;;  %v12672_v42 = vpop.permute.xlu2 %9861  ;;  %v2351_v46 = vrot.slane %v12683_v25, 4  ;;  %v9744_v25 = vunpack.i.h.bf16 %v12371_v9  ;;  %v9784_v9 = vunpack.i.h.bf16 %v12458_v22 }
 0x242   : > { %v2146_v36 = vsel %vm366_vm0, 0.0, %v2145_v19 }
 0x243   : > { %v10010_v41 = vpack.i.bf16 %v2146_v36, %v2090_v7  ;;  %v2352_v40 = vsel %vm366_vm0, 0.0, %v2351_v46 }
 0x248   : > { %2376 = vrot.lane.b32.xlu1 %v2300_v59, %s11103_s30 }
 0x249   : > { %2396 = vrot.lane.b32.xlu0 %v2354_v31, %s11105_s9  ;;  %2404 = vrot.lane.b32.xlu2 %v2356_v4, %s11103_s30  ;;  %v12696_v44 = vpop.permute.xlu2 %9871  ;;  %v2296_v31 = vsel %vm366_vm0, 0.0, %v2295_v57 }
 0x24c   : > { %v12689_v39 = vpop.permute.xlu0 %9846  ;;  %v12691_v52 = vpop.permute.xlu1 %9866 }
 0x250   : > { %10001 = vrot.lane.b32.xlu1 %v10000_v45, %s11109_s13 }
 0x251   : > { %10006 = vrot.lane.b32.xlu0 %v10005_v26, %s11109_s13  ;;  %v12710_v14 = vpop.permute.xlu2 %9886 }
 0x256   : > { %v12705_v54 = vpop.permute.xlu1 %9876 }
 0x257   : > { %v12707_v59 = vpop.permute.xlu0 %9851 }
 0x258   : > { %2388 = vrot.lane.b32.xlu1 %v2352_v40, %s11109_s13 }
 0x259   : > { %10011 = vrot.lane.b32.xlu0 %v10010_v41, %s11109_s13  ;;  %v12718_v15 = vpop.permute.xlu2 %9891 }
 0x25f   : > { %v12714_v4 = vpop.permute.xlu1 %9896  ;;  %v12716_v3 = vpop.permute.xlu0 %9881 }
 0x261   : > { %2360 = vrot.lane.b32.xlu0 %v2296_v31, %s11109_s13  ;;  %v12728_v24 = vpop.permute.xlu2 %2380  ;;  %v9834_v31 = vunpack.i.h.bf16 %v12611_v49 }
 0x262   : > { %20452 = vst [vmem:[#allocation25_spill] sm:$0xff] %v12728_v24 }
 0x268   : > { %v12720_v10 = vpop.permute.xlu1 %9921 }
 0x269   : > { %v12722_v18 = vpop.permute.xlu0 %2408  ;;  %v12734_v26 = vpop.permute.xlu2 %9911 }
 0x26a   : > { %20451 = vst [vmem:[#allocation24_spill] sm:$0xff] %v12722_v18  ;;  %v20462_v18 = vld [vmem:[#allocation12_spill] sm:$0xff] }
 0x271   : > { %v12740_v46 = vpop.permute.xlu2 %9916 }
 0x272   : > { %v12724_v5 = vpop.permute.xlu1 %9926 }
 0x273   : > { %v12726_v53 = vpop.permute.xlu0 %9901 }
 0x279   : > { %v12746_v41 = vpop.permute.xlu2 %2392 }
 0x27a   : > { %v12730_v61 = vpop.permute.xlu1 %9936  ;;  %20457 = vst [vmem:[#allocation30_spill] sm:$0xff] %v12746_v41  ;;  %v9814_v41 = vunpack.i.h.bf16 %v12601_v63 }
 0x27b   : > { %v12732_v45 = vpop.permute.xlu0 %9906 }
 0x281   : > { %v12757_v24 = vpop.permute.xlu2 %9961 }
 0x282   : > { %v12736_v38 = vpop.permute.xlu1 %2364 }
 0x283   : > { %20453 = vst [vmem:[#allocation26_spill] sm:$0xff] %v12736_v38  ;;  %v12738_v19 = vpop.permute.xlu0 %9931  ;;  %v9833_v38 = vunpack.i.l.bf16 %v12611_v49  ;;  %v9769_v49 = vunpack.i.h.bf16 %v12392_v1  ;;  %v9759_v1 = vunpack.i.h.bf16 %v12428_v13 }
 0x284   : > { %20454 = vst [vmem:[#allocation27_spill] sm:$0xff] %v12738_v19 }
 0x289   : > { %v12801_v19 = vpop.permute.xlu2 %9976 }
 0x28a   : > { %v12742_v7 = vpop.permute.xlu1 %2400 }
 0x28b   : > { %20455 = vst [vmem:[#allocation28_spill] sm:$0xff] %v12742_v7  ;;  %v12744_v36 = vpop.permute.xlu0 %9941  ;;  %v1387_v7 = vsel %vm738_vm6, %v20462_v18, %v9834_v31  ;;  %v20463_v31 = vld [vmem:[#allocation11_spill] sm:$0xff] }
 0x28c   : > { %20456 = vst [vmem:[#allocation29_spill] sm:$0xff] %v12744_v36  ;;  %v1380_v29 = vsel %vm738_vm6, %v20463_v31, %v9833_v38  ;;  %v9758_v36 = vunpack.i.l.bf16 %v12428_v13 }
 0x292   : > { %v12748_v40 = vpop.permute.xlu1 %9946 }
 0x293   : > { %20458 = vst [vmem:[#allocation31_spill] sm:$0xff] %v12748_v40  ;;  %v12750_v57 = vpop.permute.xlu0 %2372  ;;  %v20464_v40 = vld [vmem:[#allocation8_spill] sm:$0xff] }
 0x294   : > { %20459 = vst [vmem:[#allocation32_spill] sm:$0xff] %v12750_v57  ;;  %v9779_v57 = vunpack.i.h.bf16 %v12575_v6  ;;  %v752_v34 = vsel %vm738_vm6, %v20464_v40, %v9809_v37  ;;  %v9789_v6 = vunpack.i.h.bf16 %v12506_v12  ;;  %v739_v37 = vsel %vm738_vm6, %v20467_v33, %v9808_v55 }
 0x295   : > { %v9813_v40 = vunpack.i.l.bf16 %v12601_v63  ;;  %v9783_v63 = vunpack.i.l.bf16 %v12458_v22  ;;  %v741_v55 = vsel %vm740_vm7, %v739_v37, %v9743_v48  ;;  %v9763_v48 = vunpack.i.l.bf16 %v12541_v27 }
 0x296   : > { %v1388_v18 = vsel %vm740_vm7, %v1387_v7, %v9779_v57  ;;  %v20465_v7 = vld [vmem:[#allocation10_spill] sm:$0xff] }
 0x297   : > { %v1389_v31 = vsel %vm742_vm8, %v1388_v18, %v9814_v41 }
 0x298   : > { %v1390_v33 = vsel %vm744_vm9, %v1389_v31, %v9784_v9  ;;  %v9774_v31 = vunpack.i.h.bf16 %v12482_v35 }
 0x29a   : > { %v12753_v23 = vpop.permute.xlu1 %2412 }
 0x29b   : > { %20460 = vst [vmem:[#allocation33_spill] sm:$0xff] %v12753_v23  ;;  %v12755_v11 = vpop.permute.xlu0 %9951  ;;  %v9839_v23 = vunpack.i.h.bf16 %v12622_v47  ;;  %v1381_v47 = vsel %vm740_vm7, %v1380_v29, %v9778_v50  ;;  %v9788_v50 = vunpack.i.l.bf16 %v12506_v12  ;;  %v9824_v29 = vunpack.i.h.bf16 %v12662_v21 }
 0x29c   : > { %20461 = vst [vmem:[#allocation34_spill] sm:$0xff] %v12755_v11  ;;  %v1382_v13 = vsel %vm742_vm8, %v1381_v47, %v9813_v40  ;;  %v9793_v40 = vunpack.i.l.bf16 %v12543_v17 }
 0x29d   : > { %v2010_v57 = vsel %vm738_vm6, %v20465_v7, %v9839_v23  ;;  %v753_v23 = vsel %vm740_vm7, %v752_v34, %v9744_v25  ;;  %v20468_v7 = vld [vmem:[#allocation9_spill] sm:$0xff]  ;;  %v9764_v25 = vunpack.i.h.bf16 %v12541_v27  ;;  %v9794_v34 = vunpack.i.h.bf16 %v12543_v17 }
 0x29e   : > { %v2011_v20 = vsel %vm740_vm7, %v2010_v57, %v9789_v6  ;;  %v754_v12 = vsel %vm742_vm8, %v753_v23, %v9769_v49  ;;  %v9823_v57 = vunpack.i.l.bf16 %v12662_v21  ;;  %v1383_v6 = vsel %vm744_vm9, %v1382_v13, %v9783_v63 }
 0x29f   : > { %v2012_v18 = vsel %vm742_vm8, %v2011_v20, %v9824_v29  ;;  %v743_v49 = vsel %vm742_vm8, %v741_v55, %v9768_v2  ;;  %v755_v37 = vsel %vm744_vm9, %v754_v12, %v9749_v8  ;;  %v9829_v23 = vunpack.i.h.bf16 %v12587_v43 }
 0x2a0   : > { %v2013_v21 = vsel %vm744_vm9, %v2012_v18, %v9794_v34  ;;  %v9798_v2 = vunpack.i.l.bf16 %v12563_v60  ;;  %v20469_v13 = vunpack.i.l.bf16 %v12426_v28  ;;  %v9828_v63 = vunpack.i.l.bf16 %v12587_v43 }
 0x2a1   : > { %v2014_v8 = vsel %vm746_vm10, %v2013_v21, %v9829_v23  ;;  %v9864_v12 = vunpack.i.h.bf16 %v12672_v42  ;;  %v9898_v21 = vunpack.i.l.bf16 %v12714_v4  ;;  %v9904_v23 = vunpack.i.h.bf16 %v12726_v53 }
 0x2a2   : > { %v12779_v11 = vpop.permute.xlu1 %9966  ;;  %v745_v29 = vsel %vm744_vm9, %v743_v49, %v20469_v13  ;;  %v2015_v43 = vsel %vm748_vm11, %v2014_v8, %v9764_v25  ;;  %v9903_v25 = vunpack.i.l.bf16 %v12726_v53 }
 0x2a3   : > { %v12786_v38 = vpop.permute.xlu0 %9956  ;;  %v20475_v53 = vld [vmem:[#allocation34_spill] sm:$0xff] }
 0x2a4   : > { %20466 = vst [vmem:[#allocation12_spill] sm:$0xff] %v12786_v38  ;;  %v2003_v38 = vsel %vm738_vm6, %v20468_v7, %v9838_v30  ;;  %v9819_v30 = vunpack.i.h.bf16 %v12620_v62 }
 0x2a5   : > { %v2004_v41 = vsel %vm740_vm7, %v2003_v38, %v9788_v50  ;;  %v9818_v38 = vunpack.i.l.bf16 %v12620_v62  ;;  %v9773_v62 = vunpack.i.l.bf16 %v12482_v35  ;;  %v9799_v50 = vunpack.i.h.bf16 %v12563_v60  ;;  %v12844_v35 = vpop.permute.xlu2 %9981 }
 0x2a6   : > { %v1391_v22 = vsel %vm746_vm10, %v1390_v33, %v9819_v30  ;;  %v2005_v47 = vsel %vm742_vm8, %v2004_v41, %v9823_v57  ;;  %v756_v33 = vsel %vm746_vm10, %v755_v37, %v9774_v31  ;;  %v9859_v30 = vunpack.i.h.bf16 %v12632_v32  ;;  %v20480_v37 = vld [vmem:[#allocation13_spill] sm:$0xff] }
 0x2a7   : > { %v1392_v27 = vsel %vm748_vm11, %v1391_v22, %v9759_v1  ;;  %v1384_v7 = vsel %vm746_vm10, %v1383_v6, %v9818_v38  ;;  %v2006_v17 = vsel %vm744_vm9, %v2005_v47, %v9793_v40  ;;  %v9804_v1 = vunpack.i.h.bf16 %v12577_v56 }
 0x2a8   : > { %v12847_v55 = vsel %vm750_vm12, %v1392_v27, %v9799_v50  ;;  %v1385_v28 = vsel %vm748_vm11, %v1384_v7, %v9758_v36  ;;  %v9858_v41 = vunpack.i.l.bf16 %v12632_v32  ;;  %v12854_v18 = vsel %vm746_vm10, %v745_v29, %v9773_v62  ;;  %v20472_v27 = vld [vmem:[#allocation16_spill] sm:$0xff] }
 0x2a9   : > { %v2007_v57 = vsel %vm746_vm10, %v2006_v17, %v9828_v63  ;;  %v20470_v22 = vunpack.i.h.bf16 %v12330_v16  ;;  %v9964_v31 = vunpack.i.h.bf16 %v12757_v24  ;;  %v12872_v47 = vsel %vm750_vm12, %v1385_v28, %v9798_v2  ;;  %v20474_v2 = vld [vmem:[#allocation31_spill] sm:$0xff] }
 0x2aa   : > { %v12816_v9 = vpop.permute.xlu1 %9986  ;;  %v9963_v40 = vunpack.i.l.bf16 %v12757_v24  ;;  %v12881_v7 = vsel %vm750_vm12, %v2015_v43, %v9804_v1  ;;  %v12884_v62 = vsel %vm748_vm11, %v2007_v57, %v9763_v48  ;;  %v9854_v48 = vunpack.i.h.bf16 %v12707_v59  ;;  %v20471_v43 = vld [vmem:[#allocation27_spill] sm:$0xff]  ;;  %v20473_v24 = vld [vmem:[#allocation29_spill] sm:$0xff] }
 0x2ab   : > { %v12823_v20 = vpop.permute.xlu0 %2384  ;;  %v12864_v36 = vsel %vm748_vm11, %v756_v33, %v20470_v22  ;;  %v966_v33 = vsel %vm738_vm6, %v12474_v58, %v9964_v31  ;;  %v9853_v1 = vunpack.i.l.bf16 %v12707_v59  ;;  %v9899_v22 = vunpack.i.h.bf16 %v12714_v4 }
 0x2ac   : > { %v959_v28 = vsel %vm738_vm6, %v12471_v0, %v9963_v40  ;;  %v967_v59 = vsel %vm740_vm7, %v966_v33, %v9854_v48  ;;  %v9919_v0 = vunpack.i.h.bf16 %v12740_v46  ;;  %v9969_v4 = vunpack.i.h.bf16 %v12779_v11 }
 0x2ad   : > { %v12908_v13 = vpop.permute.xlu2 %9991  ;;  %v960_v57 = vsel %vm740_vm7, %v959_v28, %v9853_v1  ;;  %v9918_v58 = vunpack.i.l.bf16 %v12740_v46  ;;  %v9929_v33 = vunpack.i.h.bf16 %v12724_v5  ;;  %v9928_v48 = vunpack.i.l.bf16 %v12724_v5 }
 0x2ae   : > { %v968_v1 = vsel %vm742_vm8, %v967_v59, %v9899_v22  ;;  %v9909_v28 = vunpack.i.h.bf16 %v12732_v45  ;;  %v961_v46 = vsel %vm742_vm8, %v960_v57, %v9898_v21  ;;  %v9934_v8 = vunpack.i.h.bf16 %v20471_v43 }
 0x2af   : > { %v1172_v50 = vsel %vm738_vm6, %v20472_v27, %v9969_v4  ;;  %v9984_v59 = vunpack.i.h.bf16 %v12844_v35  ;;  %v969_v21 = vsel %vm744_vm9, %v968_v1, %v9859_v30  ;;  %v9983_v57 = vunpack.i.l.bf16 %v12844_v35  ;;  %v20478_v35 = vld [vmem:[#allocation17_spill] sm:$0xff] }
 0x2b0   : > { %v962_v27 = vsel %vm744_vm9, %v961_v46, %v9858_v41  ;;  %v1173_v40 = vsel %vm740_vm7, %v1172_v50, %v9864_v12  ;;  %v9968_v30 = vunpack.i.l.bf16 %v12779_v11  ;;  %v970_v32 = vsel %vm746_vm10, %v969_v21, %v9904_v23  ;;  %v20476_v41 = vld [vmem:[#allocation12_spill] sm:$0xff]  ;;  %v20477_v11 = vld [vmem:[#allocation18_spill] sm:$0xff]  ;;  %v20479_v23 = vld [vmem:[#allocation15_spill] sm:$0xff] }
 0x2b1   : > { %v12959_v6 = vsel %vm746_vm10, %v962_v27, %v9903_v25  ;;  %v20482_v27 = vunpack.i.h.bf16 %v12653_v51 }
 0x2b2   : > { %v12857_v34 = vpop.permute.xlu1 %9996  ;;  %v1165_v21 = vsel %vm738_vm6, %v20479_v23, %v9968_v30 }
 0x2b3   : > { %v12868_v38 = vpop.permute.xlu0 %9971  ;;  %v12976_v12 = vsel %vm748_vm11, %v970_v32, %v20482_v27  ;;  %v20484_v32 = vunpack.i.l.bf16 %v12672_v42 }
 0x2b4   : > { %v9973_v30 = vunpack.i.l.bf16 %v12868_v38 }
 0x2b5   : > { %v12955_v49 = vpop.permute.xlu2 %2368 }
 0x2ba   : > { %v12910_v60 = vpop.permute.xlu1 %2376 }
 0x2bb   : > { %v12916_v63 = vpop.permute.xlu0 %2396 }
 0x2c2   : > { %v10002_v1 = vpop.permute.xlu1 %10001 }
 0x2c3   : > { %v10007_v17 = vpop.permute.xlu0 %10006  ;;  %v10004_v31 = vunpack.i.h.bf16 %v10002_v1  ;;  %v10003_v5 = vunpack.i.l.bf16 %v10002_v1  ;;  %v1174_v1 = vsel %vm742_vm8, %v1173_v40, %v9909_v28 }
 0x2c4   : > { %v10009_v4 = vunpack.i.h.bf16 %v10007_v17  ;;  %v10008_v22 = vunpack.i.l.bf16 %v10007_v17  ;;  %v20481_v17 = vld [vmem:[#allocation14_spill] sm:$0xff] }
 0x2c5   : > { %v1593_v50 = vsel %vm738_vm6, %v20477_v11, %v10004_v31  ;;  %v1586_v29 = vsel %vm738_vm6, %v20478_v35, %v10003_v5  ;;  %v9974_v31 = vunpack.i.h.bf16 %v12868_v38  ;;  %v1166_v11 = vsel %vm740_vm7, %v1165_v21, %v20484_v32  ;;  %v20492_v32 = vld [vmem:[#allocation21_spill] sm:$0xff] }
 0x2c6   : > { %v1799_v46 = vsel %vm738_vm6, %v20480_v37, %v10009_v4  ;;  %v1792_v25 = vsel %vm738_vm6, %v20481_v17, %v10008_v22  ;;  %v1594_v40 = vsel %vm740_vm7, %v1593_v50, %v9919_v0  ;;  %v1587_v28 = vsel %vm740_vm7, %v1586_v29, %v9918_v58 }
 0x2c7   : > { %v1800_v5 = vsel %vm740_vm7, %v1799_v46, %v9929_v33  ;;  %v1793_v37 = vsel %vm740_vm7, %v1792_v25, %v9928_v48  ;;  %v20483_v22 = vunpack.i.h.bf16 %v12691_v52  ;;  %v9989_v33 = vunpack.i.h.bf16 %v12816_v9  ;;  %v20487_v25 = vld [vmem:[#allocation30_spill] sm:$0xff] }
 0x2c8   : > { %v1801_v4 = vsel %vm742_vm8, %v1800_v5, %v9984_v59  ;;  %v9988_v29 = vunpack.i.l.bf16 %v12816_v9  ;;  %v9999_v38 = vunpack.i.h.bf16 %v12857_v34  ;;  %v1595_v48 = vsel %vm742_vm8, %v1594_v40, %v9974_v31 }
 0x2c9   : > { %v1175_v35 = vsel %vm744_vm9, %v1174_v1, %v20483_v22  ;;  %v1802_v0 = vsel %vm744_vm9, %v1801_v4, %v9934_v8  ;;  %v1588_v59 = vsel %vm742_vm8, %v1587_v28, %v9973_v30  ;;  %v9998_v46 = vunpack.i.l.bf16 %v12857_v34  ;;  %v20485_v1 = vld [vmem:[#allocation19_spill] sm:$0xff]  ;;  %v2405_v4 = vpop.permute.xlu2 %2404  ;;  %v20491_v22 = vld [vmem:[#allocation22_spill] sm:$0xff] }
 0x2ca   : > { %v2389_v58 = vpop.permute.xlu1 %2388  ;;  %v1794_v42 = vsel %vm742_vm8, %v1793_v37, %v9983_v57  ;;  %v20486_v21 = vunpack.i.h.bf16 %v12734_v26  ;;  %v1803_v31 = vsel %vm746_vm10, %v1802_v0, %v9989_v33  ;;  %v20488_v57 = vunpack.i.h.bf16 %v12720_v10 }
 0x2cb   : > { %v10012_v50 = vpop.permute.xlu0 %10011  ;;  %v2422_v23 = vsel %vm738_vm6, %v20485_v1, %v2389_v58  ;;  %v20489_v40 = vunpack.i.l.bf16 %v12720_v10  ;;  %v20490_v30 = vunpack.i.l.bf16 %v12732_v45  ;;  %v20494_v58 = vunpack.i.l.bf16 %v20471_v43 }
 0x2cc   : > { %v1176_v8 = vsel %vm746_vm10, %v1175_v35, %v20486_v21  ;;  %v10014_v9 = vunpack.i.h.bf16 %v10012_v50  ;;  %v10013_v17 = vunpack.i.l.bf16 %v10012_v50  ;;  %v2423_v27 = vsel %vm740_vm7, %v2422_v23, %v20487_v25 }
 0x2cd   : > { %v2424_v34 = vsel %vm742_vm8, %v2423_v27, %v12916_v63  ;;  %v1596_v5 = vsel %vm744_vm9, %v1595_v48, %v20488_v57  ;;  %v1589_v28 = vsel %vm744_vm9, %v1588_v59, %v20489_v40  ;;  %v1167_v37 = vsel %vm742_vm8, %v1166_v11, %v20490_v30  ;;  %v20493_v63 = vld [vmem:[#allocation28_spill] sm:$0xff] }
 0x2ce   : > { %v2216_v35 = vsel %vm738_vm6, %v20491_v22, %v10014_v9  ;;  %v2209_v33 = vsel %vm738_vm6, %v20492_v32, %v10013_v17  ;;  %v2425_v0 = vsel %vm744_vm9, %v2424_v34, %v20493_v63  ;;  %v1795_v10 = vsel %vm744_vm9, %v1794_v42, %v20494_v58  ;;  %v20500_v17 = vld [vmem:[#allocation24_spill] sm:$0xff]  ;;  %v20502_v34 = vld [vmem:[#allocation33_spill] sm:$0xff] }
 0x2cf   : > { %v20495_v48 = vunpack.i.l.bf16 %v12730_v61  ;;  %v20496_v11 = vunpack.i.h.bf16 %v12730_v61  ;;  %v2426_v50 = vsel %vm746_vm10, %v2425_v0, %v2405_v4  ;;  %v20497_v1 = vunpack.i.h.bf16 %v12710_v14 }
 0x2d0   : > { %v20498_v21 = vunpack.i.l.bf16 %v12908_v13  ;;  %v20499_v42 = vunpack.i.h.bf16 %v12908_v13  ;;  %v2427_v25 = vsel %vm748_vm11, %v2426_v50, %v20500_v17  ;;  %v20501_v61 = vunpack.i.h.bf16 %v12801_v19 }
 0x2d1   : > { %v2210_v45 = vsel %vm740_vm7, %v2209_v33, %v20495_v48  ;;  %v2217_v59 = vsel %vm740_vm7, %v2216_v35, %v20496_v11  ;;  %v1804_v23 = vsel %vm748_vm11, %v1803_v31, %v20497_v1  ;;  %v2428_v57 = vsel %vm750_vm12, %v2427_v25, %v20502_v34 }
 0x2d2   : > { %v2211_v43 = vsel %vm742_vm8, %v2210_v45, %v20498_v21  ;;  %v2218_v9 = vsel %vm742_vm8, %v2217_v59, %v20499_v42  ;;  %v1597_v27 = vsel %vm746_vm10, %v1596_v5, %v20501_v61  ;;  %v20503_v31 = vunpack.i.h.bf16 %v20473_v24  ;;  %9600 = vmatpush.msk.msra.mxu1 %vm2453_vm13, %v2428_v57  ;;  %v20520_v57 = vld [vmem:[#allocation32_spill] sm:$0xff] }
 0x2d3   : > { %v20504_v30 = vunpack.i.l.bf16 %v20473_v24  ;;  %v1796_v4 = vsel %vm746_vm10, %v1795_v10, %v9988_v29  ;;  %v20505_v35 = vunpack.i.h.bf16 %v20475_v53  ;;  %v20506_v32 = vunpack.i.h.bf16 %v12689_v39  ;;  %v2361_v0 = vpop.permute.xlu0 %2360 }
 0x2d4   : > { %v2219_v40 = vsel %vm744_vm9, %v2218_v9, %v20503_v31  ;;  %v20507_v24 = vunpack.i.h.bf16 %v12718_v15  ;;  %v20508_v29 = vunpack.i.h.bf16 %v12716_v3  ;;  %v20510_v45 = vunpack.i.l.bf16 %v12691_v52 }
 0x2d5   : > { %v2212_v13 = vsel %vm744_vm9, %v2211_v43, %v20504_v30  ;;  %v2220_v22 = vsel %vm746_vm10, %v2219_v40, %v9999_v38  ;;  %v1805_v5 = vsel %vm750_vm12, %v1804_v23, %v20505_v35  ;;  %v1177_v33 = vsel %vm748_vm11, %v1176_v8, %v20506_v32  ;;  %v20511_v8 = vld [vmem:[#allocation20_spill] sm:$0xff]  ;;  %v20515_v43 = vld [vmem:[#allocation26_spill] sm:$0xff] }
 0x2d6   : > { %v2213_v63 = vsel %vm746_vm10, %v2212_v13, %v9998_v46  ;;  %v2221_v58 = vsel %vm748_vm11, %v2220_v22, %v20507_v24  ;;  %v1598_v10 = vsel %vm748_vm11, %v1597_v27, %v20508_v29  ;;  %v20509_v38 = vunpack.i.l.bf16 %v12718_v15 }
 0x2d7   : > { %v1168_v11 = vsel %vm744_vm9, %v1167_v37, %v20510_v45  ;;  %v2415_v46 = vsel %vm738_vm6, %v20511_v8, %v2361_v0  ;;  %v20512_v59 = vunpack.i.h.bf16 %v20476_v41  ;;  %v20513_v1 = vunpack.i.l.bf16 %v12801_v19 }
 0x2d8   : > { %v2214_v48 = vsel %vm748_vm11, %v2213_v63, %v20509_v38  ;;  %v20514_v21 = vunpack.i.l.bf16 %v12710_v14  ;;  %v2416_v52 = vsel %vm740_vm7, %v2415_v46, %v20515_v43  ;;  %v2444_v37 = vrot.slane %v1805_v5, 4  ;;  %v20530_v38 = vld [vmem:[#allocation23_spill] sm:$0xff] }
 0x2d9   : > { %v2222_v50 = vsel %vm750_vm12, %v2221_v58, %v20512_v59  ;;  %v1590_v23 = vsel %vm746_vm10, %v1589_v28, %v20513_v1  ;;  %v20516_v9 = vunpack.i.l.bf16 %v20476_v41  ;;  %v2417_v25 = vsel %vm742_vm8, %v2416_v52, %v12955_v49 }
 0x2da   : > { %v1797_v15 = vsel %vm748_vm11, %v1796_v4, %v20514_v21  ;;  %v2450_v42 = vrot.slane %v2222_v50, 4  ;;  %v20517_v19 = vunpack.i.h.bf16 %v20474_v2  ;;  %v20518_v14 = vunpack.i.h.bf16 %v12696_v44 }
 0x2db   : > { %v2215_v17 = vsel %vm750_vm12, %v2214_v48, %v20516_v9  ;;  %v20519_v27 = vunpack.i.l.bf16 %v12653_v51  ;;  %v2418_v49 = vsel %vm744_vm9, %v2417_v25, %v20520_v57  ;;  %v20521_v31 = vunpack.i.l.bf16 %v20475_v53 }
 0x2dc   : > { %v1599_v28 = vsel %vm750_vm12, %v1598_v10, %v20517_v19  ;;  %v972_v61 = vsel %vm750_vm12, %v12976_v12, %v20518_v14  ;;  %v2461_v41 = vsel %vm2453_vm13, %v12881_v7, %v2450_v42  ;;  %v20522_v30 = vunpack.i.l.bf16 %v12734_v26  ;;  %v20525_v26 = vld [vmem:[#allocation25_spill] sm:$0xff] }
 0x2dd   : > { %v964_v34 = vsel %vm748_vm11, %v12959_v6, %v20519_v27  ;;  %v1798_v40 = vsel %vm750_vm12, %v1797_v15, %v20521_v31  ;;  %2510 = vmatpush.msra.mxu1 %v2461_v41  ;;  %v2419_v51 = vsel %vm746_vm10, %v2418_v49, %v12910_v60  ;;  %v20523_v6 = vunpack.i.h.bf16 %v12705_v54 }
 0x2de   : > { %v1169_v13 = vsel %vm746_vm10, %v1168_v11, %v20522_v30  ;;  %v2449_v7 = vrot.slane %v2215_v17, 4  ;;  %v20524_v4 = vunpack.i.l.bf16 %v12716_v3  ;;  %v9948_v53 = vunpack.i.l.bf16 %v20474_v2 }
 0x2df   : > { %v1178_v12 = vsel %vm750_vm12, %v1177_v33, %v20523_v6  ;;  %v2459_v35 = vsel %vm2453_vm13, %v1599_v28, %v2444_v37  ;;  %v2420_v5 = vsel %vm748_vm11, %v2419_v51, %v20525_v26  ;;  %v2432_v32 = vrot.slane %v972_v61, 4  ;;  %v20533_v28 = vld [vmem:[#allocation3_spill] sm:$0xff] }
 0x2e0   : > { %v1591_v22 = vsel %vm748_vm11, %v1590_v23, %v20524_v4  ;;  %2511 = vmatpush.msra.mxu1 %v2459_v35  ;;  %v2421_v60 = vsel %vm750_vm12, %v2420_v5, %v12823_v20  ;;  %v20526_v63 = vunpack.i.l.bf16 %v12577_v56  ;;  %v2443_v3 = vrot.slane %v1798_v40, 4  ;;  %v20532_v23 = vld [vmem:[#allocation5_spill] sm:$0xff] }
 0x2e1   : > { %v20527_v0 = vunpack.i.l.bf16 %v12689_v39  ;;  %v9878_v24 = vunpack.i.l.bf16 %v12705_v54  ;;  %9598 = vmatpush.msk.msra.mxu0 %vm2453_vm13, %v2421_v60  ;;  %v20528_v58 = vrot.slane %v12847_v55, 4  ;;  %v1592_v20 = vsel %vm750_vm12, %v1591_v22, %v9948_v53  ;;  %v2462_v55 = vld [vmem:[%s20002_s2] sm:$0xff]  ;;  %v20534_v60 = vld [vmem:[#allocation4_spill] sm:$0xff] }
 0x2e2   : > { %v2009_v33 = vsel %vm750_vm12, %v12884_v62, %v20526_v63  ;;  %v20529_v56 = vunpack.i.l.bf16 %v12696_v44  ;;  %v9738_v62 = vunpack.i.l.bf16 %v12330_v16  ;;  %v20531_v48 = vunpack.i.h.bf16 %v20530_v38 }
 0x2e3   : > { %v1170_v2 = vsel %vm748_vm11, %v1169_v13, %v20527_v0  ;;  %v2457_v29 = vsel %vm2453_vm13, %v1178_v12, %v20528_v58  ;;  %v2460_v39 = vsel %vm2453_vm13, %v2009_v33, %v2449_v7  ;;  %v2458_v16 = vsel %vm2453_vm13, %v1592_v20, %v2443_v3 }
 0x2e4   : > { %v965_v10 = vsel %vm750_vm12, %v964_v34, %v20529_v56  ;;  %2512 = vmatpush.msra.mxu1 %v2457_v29  ;;  %v758_v54 = vsel %vm750_vm12, %v12864_v36, %v20531_v48  ;;  %2490 = vmatpush.msra.mxu0 %v2460_v39  ;;  %v1171_v45 = vsel %vm750_vm12, %v1170_v2, %v9878_v24  ;;  %v2437_v11 = vrot.slane %v12872_v47, 4 }
 0x2e5   : > { %v2455_v44 = vsel %vm2453_vm13, %v758_v54, %v2432_v32  ;;  %v749_v8 = vsel %vm748_vm11, %v12854_v18, %v9738_v62  ;;  %v2431_v46 = vrot.slane %v965_v10, 4  ;;  %v9753_v36 = vunpack.i.l.bf16 %v20530_v38 }
 0x2e6   : > { %2513 = vmatpush.msra.mxu1 %v2455_v44  ;;  %2491 = vmatpush.msra.mxu0 %v2458_v16  ;;  %v2456_v59 = vsel %vm2453_vm13, %v1171_v45, %v2437_v11 }
 0x2e7   : > { %9601 = vmatmul.msk.f32.vlgmr.msra.gmra.mxu1 %vm2468_vm14, %v2462_v55  ;;  %v751_v50 = vsel %vm750_vm12, %v749_v8, %v9753_v36 }
 0x2e8   : > { %2492 = vmatpush.msra.mxu0 %v2456_v59  ;;  %v2454_v1 = vsel %vm2453_vm13, %v751_v50, %v2431_v46 }
 0x2ea   : > { %2493 = vmatpush.msra.mxu0 %v2454_v1 }
 0x2eb   : > { %9599 = vmatmul.msk.f32.vlgmr.msra.gmra.mxu0 %vm2468_vm14, %v2462_v55 }
 0x364   : > { %v2515_v15 = vpop.f32.mrf.mxu1 }
 0x365   : > { %v2516_v43 = vadd.f32 %v2515_v15, %v20532_v23 }
 0x367   : > { %v13176_v52 = vmax.f32 %v2516_v43, 0.0 }
 0x368   : > { %v2495_v47 = vpop.f32.mrf.mxu0 }
 0x369   : > { %v2496_v21 = vadd.f32 %v2495_v47, %v20532_v23  ;;  %v2679_v10 = vrot.slane %v13176_v52, 4 }
 0x36b   : > { %v2518_v18 = vmax.f32 %v2496_v21, 0.0 }
 0x36d   : > { %2528 = vrot.lane.b32.xlu2 %v2518_v18, %s11103_s30  ;;  %2525 = vrot.lane.b32.xlu1 %v2518_v18, %s11106_s10  ;;  %v2567_v17 = vrot.slane %v2518_v18, 4 }
 0x36e   : > { %2522 = vrot.lane.b32.xlu0 %v2518_v18, %s11104_s8 }
 0x375   : > { %2537 = vrot.lane.b32.xlu2 %v2518_v18, %s11108_s12  ;;  %2534 = vrot.lane.b32.xlu1 %v2518_v18, %s11105_s9 }
 0x376   : > { %2531 = vrot.lane.b32.xlu0 %v2518_v18, %s11107_s11 }
 0x37d   : > { %2547 = vrot.lane.b32.xlu2 %v13176_v52, %s11106_s10  ;;  %2544 = vrot.lane.b32.xlu1 %v13176_v52, %s11104_s8 }
 0x37e   : > { %2540 = vrot.lane.b32.xlu0 %v2518_v18, %s11109_s13 }
 0x385   : > { %2556 = vrot.lane.b32.xlu2 %v13176_v52, %s11105_s9  ;;  %2553 = vrot.lane.b32.xlu1 %v13176_v52, %s11107_s11 }
 0x386   : > { %2550 = vrot.lane.b32.xlu0 %v13176_v52, %s11103_s30 }
 0x38d   : > { %2562 = vrot.lane.b32.xlu1 %v13176_v52, %s11109_s13 }
 0x38e   : > { %2559 = vrot.lane.b32.xlu0 %v13176_v52, %s11108_s12 }
 0x3c7   : > { %v2529_v42 = vpop.permute.xlu2 %2528 }
 0x3c8   : > { %v2577_v57 = vrot.slane %v2529_v42, 4 }
 0x3cf   : > { %v2538_v34 = vpop.permute.xlu2 %2537 }
 0x3d0   : > { %v2589_v26 = vrot.slane %v2538_v34, 4 }
 0x3d7   : > { %v2548_v33 = vpop.permute.xlu2 %2547 }
 0x3d8   : > { %v2680_v55 = vsel %vm366_vm0, %v2548_v33, %v2679_v10  ;;  %v2677_v50 = vrot.slane %v2548_v33, 4 }
 0x3d9   : > { %v13251_v1 = vperm.slane %v2680_v55, %v20533_v28 }
 0x3da   : > { %v2678_v43 = vsel %vm366_vm0, %v2677_v50, %v13176_v52 }
 0x3df   : > { %v2526_v37 = vpop.permute.xlu1 %2525  ;;  %v2557_v23 = vpop.permute.xlu2 %2556 }
 0x3e0   : > { %v2523_v9 = vpop.permute.xlu0 %2522  ;;  %v2568_v25 = vsel %vm366_vm0, %v2526_v37, %v2567_v17  ;;  %v2565_v30 = vrot.slane %v2526_v37, 4  ;;  %v2715_v37 = vrot.slane %v2557_v23, 4 }
 0x3e1   : > { %v2579_v19 = vrot.slane %v2523_v9, 4  ;;  %v13195_v14 = vperm.slane %v2568_v25, %v20533_v28  ;;  %v2578_v13 = vsel %vm366_vm0, %v2577_v57, %v2523_v9 }
 0x3e2   : > { %v13205_v6 = vperm.slane %v2578_v13, %v20533_v28  ;;  %v2566_v4 = vsel %vm366_vm0, %v2565_v30, %v2518_v18 }
 0x3e3   : > { %v2580_v61 = vsel %vm366_vm0, %v2529_v42, %v2579_v19  ;;  %v2627_v31 = vrot.slane %v13195_v14, 4  ;;  %v13218_v3 = vperm.slane %v2566_v4, %v20533_v28  ;;  %v2739_v42 = vrot.slane %v13251_v1, 4 }
 0x3e4   : > { %v13200_v40 = vperm.slane %v2580_v61, %v20533_v28  ;;  %v2613_v0 = vrot.slane %v13205_v6, 4 }
 0x3e6   : > { %v2628_v7 = vsel %vm366_vm0, %v13200_v40, %v2627_v31  ;;  %v2614_v54 = vsel %vm366_vm0, %v2613_v0, %v13218_v3 }
 0x3e7   : > { %v2535_v27 = vpop.permute.xlu1 %2534  ;;  %v13215_v63 = vperm.slane %v2628_v7, %v20534_v60  ;;  %v13248_v59 = vperm.slane %v2614_v54, %v20534_v60 }
 0x3e8   : > { %v2532_v41 = vpop.permute.xlu0 %2531  ;;  %v2603_v22 = vrot.slane %v2535_v27, 4 }
 0x3e9   : > { %v2591_v49 = vrot.slane %v2532_v41, 4  ;;  %v2590_v58 = vsel %vm366_vm0, %v2589_v26, %v2532_v41  ;;  %v2675_v39 = vrot.slane %v13215_v63, 4  ;;  %v2663_v15 = vrot.slane %v13248_v59, 4 }
 0x3ea   : > { %v2596_v38 = vperm.slane %v2590_v58, %v20533_v28  ;;  %v2684_v41 = vperm.slane %v2678_v43, %v20533_v28 }
 0x3eb   : > { %v2592_v51 = vsel %vm366_vm0, %v2538_v34, %v2591_v49 }
 0x3ec   : > { %v13208_v12 = vperm.slane %v2592_v51, %v20533_v28  ;;  %v2727_v26 = vrot.slane %v2684_v41, 4 }
 0x3ee   : > { %v2651_v2 = vrot.slane %v13208_v12, 4 }
 0x3ef   : > { %v2545_v53 = vpop.permute.xlu1 %2544 }
 0x3f0   : > { %v2541_v35 = vpop.permute.xlu0 %2540  ;;  %v2691_v44 = vrot.slane %v2545_v53, 4 }
 0x3f1   : > { %v2601_v5 = vrot.slane %v2541_v35, 4  ;;  %v2604_v32 = vsel %vm366_vm0, %v2541_v35, %v2603_v22 }
 0x3f2   : > { %v13223_v24 = vperm.slane %v2604_v32, %v20533_v28  ;;  %v2639_v32 = vrot.slane %v2596_v38, 4 }
 0x3f3   : > { %v2602_v29 = vsel %vm366_vm0, %v2601_v5, %v2535_v27 }
 0x3f4   : > { %v13228_v20 = vperm.slane %v2602_v29, %v20533_v28  ;;  %v2652_v56 = vsel %vm366_vm0, %v13223_v24, %v2651_v2  ;;  %v2649_v33 = vrot.slane %v13223_v24, 4 }
 0x3f5   : > { %v13234_v62 = vperm.slane %v2652_v56, %v20534_v60 }
 0x3f6   : > { %v2637_v48 = vrot.slane %v13228_v20, 4  ;;  %v2640_v55 = vsel %vm366_vm0, %v13228_v20, %v2639_v32 }
 0x3f7   : > { %v2554_v45 = vpop.permute.xlu1 %2553  ;;  %v2676_v16 = vsel %vm366_vm0, %v13234_v62, %v2675_v39 }
 0x3f8   : > { %v2551_v11 = vpop.permute.xlu0 %2550  ;;  %2833 = vrot.lane.b32.xlu1 %v2676_v16, %s11113_s18  ;;  %v2638_v8 = vsel %vm366_vm0, %v2637_v48, %v2596_v38  ;;  %v2703_v9 = vrot.slane %v2554_v45, 4  ;;  %v2650_v16 = vsel %vm366_vm0, %v2649_v33, %v13208_v12 }
 0x3f9   : > { %v2689_v46 = vrot.slane %v2551_v11, 4  ;;  %v2692_v36 = vsel %vm366_vm0, %v2551_v11, %v2691_v44  ;;  %v13254_v47 = vperm.slane %v2638_v8, %v20534_v60  ;;  %v2615_v11 = vrot.slane %v13218_v3, 4 }
 0x3fa   : > { %v13258_v18 = vperm.slane %v2692_v36, %v20533_v28  ;;  %v2625_v36 = vrot.slane %v13200_v40, 4 }
 0x3fb   : > { %v2690_v21 = vsel %vm366_vm0, %v2689_v46, %v2545_v53  ;;  %v2664_v19 = vsel %vm366_vm0, %v13254_v47, %v2663_v15  ;;  %v2656_v15 = vperm.slane %v2650_v16, %v20534_v60  ;;  %v2616_v12 = vsel %vm366_vm0, %v13205_v6, %v2615_v11 }
 0x3fc   : > { %v2696_v17 = vperm.slane %v2690_v21, %v20533_v28  ;;  %v2740_v61 = vsel %vm366_vm0, %v13258_v18, %v2739_v42  ;;  %v2661_v21 = vrot.slane %v13254_v47, 4  ;;  %v2737_v3 = vrot.slane %v13258_v18, 4 }
 0x3fd   : > { %v13278_v4 = vperm.slane %v2740_v61, %v20534_v60  ;;  %v2626_v43 = vsel %vm366_vm0, %v2625_v36, %v13195_v14  ;;  %v2624_v47 = vperm.slane %v2616_v12, %v20534_v60 }
 0x3fe   : > { %v2725_v13 = vrot.slane %v2696_v17, 4  ;;  %v2728_v48 = vsel %vm366_vm0, %v2696_v17, %v2727_v26  ;;  %v2662_v42 = vsel %vm366_vm0, %v2661_v21, %v13248_v59  ;;  %v2632_v17 = vperm.slane %v2626_v43, %v20534_v60 }
 0x3ff   : > { %v2563_v25 = vpop.permute.xlu1 %2562  ;;  %v2787_v29 = vrot.slane %v13278_v4, 4  ;;  %v2736_v8 = vperm.slane %v2728_v48, %v20534_v60  ;;  %v2738_v6 = vsel %vm366_vm0, %v2737_v3, %v13251_v1 }
 0x400   : > { %v2713_v27 = vrot.slane %v2563_v25, 4  ;;  %v2560_v34 = vpop.permute.xlu0 %2559  ;;  %2809 = vrot.lane.b32.xlu1 %v2664_v19, %s11113_s18  ;;  %v2716_v52 = vsel %vm366_vm0, %v2563_v25, %v2715_v37  ;;  %v2726_v56 = vsel %vm366_vm0, %v2725_v13, %v2684_v41  ;;  %v2669_v37 = vrot.slane %v2656_v15, 4 }
 0x401   : > { %v2701_v57 = vrot.slane %v2560_v34, 4  ;;  %v2704_v49 = vsel %vm366_vm0, %v2560_v34, %v2703_v9  ;;  %v2724_v22 = vperm.slane %v2716_v52, %v20533_v28  ;;  %v2732_v44 = vperm.slane %v2726_v56, %v20534_v60 }
 0x402   : > { %v2714_v31 = vsel %vm366_vm0, %v2713_v27, %v2557_v23  ;;  %v2712_v30 = vperm.slane %v2704_v49, %v20533_v28  ;;  %v2648_v23 = vperm.slane %v2640_v55, %v20534_v60  ;;  %v2670_v14 = vsel %vm366_vm0, %v2669_v37, %v2632_v17 }
 0x403   : > { %v2720_v51 = vperm.slane %v2714_v31, %v20533_v28  ;;  %v2702_v7 = vsel %vm366_vm0, %v2701_v57, %v2554_v45  ;;  %v2761_v9 = vrot.slane %v2724_v22, 4  ;;  %v2775_v18 = vrot.slane %v2732_v44, 4 }
 0x404   : > { %v2708_v53 = vperm.slane %v2702_v7, %v20533_v28  ;;  %v2763_v35 = vrot.slane %v2712_v30, 4  ;;  %v2665_v40 = vrot.slane %v2648_v23, 4  ;;  %v2744_v19 = vperm.slane %v2738_v6, %v20534_v60 }
 0x405   : > { %v2749_v5 = vrot.slane %v2720_v51, 4  ;;  %v2762_v59 = vsel %vm366_vm0, %v2761_v9, %v2712_v30  ;;  %v2779_v34 = vrot.slane %v2736_v8, 4  ;;  %v2667_v57 = vrot.slane %v2624_v47, 4 }
 0x406   : > { %v2751_v0 = vrot.slane %v2708_v53, 4  ;;  %v2764_v2 = vsel %vm366_vm0, %v2724_v22, %v2763_v35  ;;  %v2666_v25 = vsel %vm366_vm0, %v2665_v40, %v2624_v47  ;;  %v2768_v27 = vperm.slane %v2762_v59, %v20534_v60 }
 0x407   : > { %v13285_v58 = vperm.slane %v2764_v2, %v20534_v60  ;;  %v2750_v10 = vsel %vm366_vm0, %v2749_v5, %v2708_v53  ;;  %v2783_v41 = vrot.slane %v2744_v19, 4  ;;  %v2668_v49 = vsel %vm366_vm0, %v2648_v23, %v2667_v57 }
 0x408   : > { %v2756_v39 = vperm.slane %v2750_v10, %v20534_v60  ;;  %v2752_v38 = vsel %vm366_vm0, %v2720_v51, %v2751_v0  ;;  %v2671_v31 = vrot.slane %v2632_v17, 4  ;;  %v2781_v13 = vrot.slane %v2768_v27, 4 }
 0x409   : > { %v2788_v24 = vsel %vm366_vm0, %v13285_v58, %v2787_v29  ;;  %v2760_v54 = vperm.slane %v2752_v38, %v20534_v60  ;;  %v2784_v52 = vsel %vm366_vm0, %v2768_v27, %v2783_v41  ;;  %v2785_v51 = vrot.slane %v13285_v58, 4 }
 0x40a   : > { %2835 = vrot.lane.b32.xlu2 %v2788_v24, %s11113_s18  ;;  %v2773_v45 = vrot.slane %v2756_v39, 4  ;;  %v2776_v61 = vsel %vm366_vm0, %v2756_v39, %v2775_v18  ;;  %v2672_v30 = vsel %vm366_vm0, %v2656_v15, %v2671_v31  ;;  %v2782_v7 = vsel %vm366_vm0, %v2781_v13, %v2744_v19 }
 0x40b   : > { %v2777_v46 = vrot.slane %v2760_v54, 4  ;;  %v2780_v1 = vsel %vm366_vm0, %v2760_v54, %v2779_v34  ;;  %v2786_v22 = vsel %vm366_vm0, %v2785_v51, %v13278_v4  ;;  %v2673_v53 = vrot.slane %v13234_v62, 4 }
 0x40c   : > { %v2774_v50 = vsel %vm366_vm0, %v2773_v45, %v2732_v44 }
 0x40d   : > { %2807 = vrot.lane.b32.xlu0 %v2774_v50, %s11113_s18  ;;  %v2778_v20 = vsel %vm366_vm0, %v2777_v46, %v2736_v8  ;;  %v2674_v35 = vsel %vm366_vm0, %v2673_v53, %v13215_v63 }
 0x40e   : > { %2815 = vrot.lane.b32.xlu1 %v2778_v20, %s11113_s18 }
 0x412   : > { %2805 = vrot.lane.b32.xlu2 %v2662_v42, %s11113_s18 }
 0x415   : > { %2813 = vrot.lane.b32.xlu0 %v2666_v25, %s11113_s18 }
 0x416   : > { %2821 = vrot.lane.b32.xlu1 %v2670_v14, %s11113_s18 }
 0x41a   : > { %2811 = vrot.lane.b32.xlu2 %v2776_v61, %s11113_s18 }
 0x41d   : > { %2819 = vrot.lane.b32.xlu0 %v2780_v1, %s11113_s18 }
 0x41e   : > { %2827 = vrot.lane.b32.xlu1 %v2784_v52, %s11113_s18 }
 0x422   : > { %2817 = vrot.lane.b32.xlu2 %v2668_v49, %s11113_s18 }
 0x425   : > { %2825 = vrot.lane.b32.xlu0 %v2672_v30, %s11113_s18 }
 0x42a   : > { %2823 = vrot.lane.b32.xlu2 %v2782_v7, %s11113_s18 }
 0x42d   : > { %2831 = vrot.lane.b32.xlu0 %v2786_v22, %s11113_s18 }
 0x432   : > { %2829 = vrot.lane.b32.xlu2 %v2674_v35, %s11113_s18 }
 0x464   : > { %v2836_v26 = vpop.permute.xlu2 %2835 }
 0x465   : > { %2868 = vst.msk [vmem:[#allocation2 + $0xb1] sm:$0xff] %vm549_vm3, %v2836_v26 }
 0x46a   : > { %v2834_v5 = vpop.permute.xlu1 %2833 }
 0x46b   : > { %2867 = vst.msk [vmem:[#allocation2 + $0xa9] sm:$0xff] %vm549_vm3, %v2834_v5 }
 0x46c   : > { %v2806_v32 = vpop.permute.xlu2 %2805  ;;  %v2892_v6 = vld [vmem:[#allocation2 + $0xb8] sm:$0x3] }
 0x46d   : > { %2853 = vst.msk [vmem:[#allocation2 + $0x1] sm:$0xff] %vm549_vm3, %v2806_v32  ;;  %v3933_v41 = vrot.slane %v2892_v6, 1  ;;  %v4967_v31 = vrot.slane %v2892_v6, 2 }
 0x472   : > { %v2810_v33 = vpop.permute.xlu1 %2809  ;;  %v13354_v4 = vld [vmem:[#allocation2 + $0xa8] sm:$0xff]  ;;  %v13356_v0 = vld [vmem:[#allocation2 + $0xb0] sm:$0xff] }
 0x473   : > { %2855 = vst.msk [vmem:[#allocation2 + $0x19] sm:$0xff] %vm549_vm3, %v2810_v33  ;;  %v10015_v63 = vpack.i.bf16 %v13356_v0, %v13354_v4  ;;  %v3930_v18 = vrot.slane %v13354_v4, 1  ;;  %v3931_v19 = vrot.slane %v13356_v0, 1  ;;  %v4964_v52 = vrot.slane %v13354_v4, 2 }
 0x474   : > { %v2812_v62 = vpop.permute.xlu2 %2811  ;;  %v13375_v24 = vld [vmem:[#allocation2] sm:$0xff]  ;;  %v4965_v57 = vrot.slane %v13356_v0, 2 }
 0x475   : > { %2856 = vst.msk [vmem:[#allocation2 + $0x21] sm:$0xff] %vm549_vm3, %v2812_v62  ;;  %10016 = vrot.lane.b32.xlu2 %v10015_v63, %s11116_s23  ;;  %v3895_v25 = vrot.slane %v13375_v24, 1  ;;  %v13460_v51 = vsel %vm1183_vm4, %v3930_v18, %v3931_v19  ;;  %v13463_v7 = vsel %vm1183_vm4, %v3931_v19, %v3933_v41 }
 0x476   : > { %v13471_v5 = vsel %vm1806_vm5, %v4964_v52, %v4965_v57  ;;  %v13474_v32 = vsel %vm1806_vm5, %v4965_v57, %v4967_v31  ;;  %v13480_v62 = vpack.i.bf16 %v13463_v7, %v13460_v51 }
 0x47a   : > { %v13369_v10 = vld [vmem:[#allocation2 + $0x18] sm:$0xff] }
 0x47b   : > { %v2907_v33 = vrot.slane %v13369_v10, 4 }
 0x47c   : > { %v2818_v2 = vpop.permute.xlu2 %2817  ;;  %v13366_v56 = vld [vmem:[#allocation2 + $0x20] sm:$0xff]  ;;  %v2874_v35 = vld [vmem:[#allocation2 + $0x28] sm:$0x3] }
 0x47d   : > { %2859 = vst.msk [vmem:[#allocation2 + $0x49] sm:$0xff] %vm549_vm3, %v2818_v2  ;;  %10021 = vrot.lane.b32.xlu2 %v10015_v63, %s11115_s22  ;;  %v10030_v39 = vpack.i.bf16 %v13366_v56, %v13369_v10  ;;  %v4929_v2 = vrot.slane %v13375_v24, 2 }
 0x47f   : > { %v2808_v58 = vpop.permute.xlu0 %2807 }
 0x480   : > { %2854 = vst.msk [vmem:[#allocation2 + $0x9] sm:$0xff] %vm549_vm3, %v2808_v58  ;;  %v2816_v29 = vpop.permute.xlu1 %2815 }
 0x481   : > { %2858 = vst.msk [vmem:[#allocation2 + $0x39] sm:$0xff] %vm549_vm3, %v2816_v29 }
 0x484   : > { %v2824_v48 = vpop.permute.xlu2 %2823  ;;  %v13404_v15 = vld [vmem:[#allocation2 + $0x48] sm:$0xff] }
 0x485   : > { %2862 = vst.msk [vmem:[#allocation2 + $0x69] sm:$0xff] %vm549_vm3, %v2824_v48  ;;  %10031 = vrot.lane.b32.xlu2 %v10030_v39, %s11116_s23  ;;  %v3910_v26 = vrot.slane %v13404_v15, 1  ;;  %v3901_v48 = vrot.slane %v13366_v56, 1 }
 0x487   : > { %v2814_v38 = vpop.permute.xlu0 %2813  ;;  %v13377_v54 = vld [vmem:[#allocation2 + $0x8] sm:$0xff]  ;;  %v13420_v37 = vld [vmem:[#allocation2 + $0x10] sm:$0x3] }
 0x488   : > { %2857 = vst.msk [vmem:[#allocation2 + $0x31] sm:$0xff] %vm549_vm3, %v2814_v38  ;;  %v2822_v55 = vpop.permute.xlu1 %2821  ;;  %v13382_v44 = vpack.i.bf16 %v13377_v54, %v13375_v24  ;;  %v3896_v47 = vrot.slane %v13377_v54, 1  ;;  %v3898_v17 = vrot.slane %v13420_v37, 1  ;;  %v3903_v38 = vrot.slane %v2874_v35, 1 }
 0x489   : > { %2861 = vst.msk [vmem:[#allocation2 + $0x61] sm:$0xff] %vm549_vm3, %v2822_v55 }
 0x48a   : > { %10026 = vrot.lane.b32.xlu1 %v13382_v44, %s11116_s23  ;;  %v13431_v14 = vsel %vm1183_vm4, %v3895_v25, %v3896_v47  ;;  %v13434_v59 = vsel %vm1183_vm4, %v3896_v47, %v3898_v17  ;;  %v4934_v17 = vrot.slane %v13369_v10, 2  ;;  %v2905_v25 = vrot.slane %v13404_v15, 4 }
 0x48b   : > { %v13452_v49 = vpack.i.bf16 %v13434_v59, %v13431_v14  ;;  %v3904_v41 = vsel %vm1183_vm4, %v3901_v48, %v3903_v38 }
 0x48c   : > { %v2830_v45 = vpop.permute.xlu2 %2829  ;;  %v2906_v38 = vsel %vm366_vm0, %v2905_v25, %v13369_v10 }
 0x48d   : > { %2865 = vst.msk [vmem:[#allocation2 + $0x91] sm:$0xff] %vm549_vm3, %v2830_v45 }
 0x48f   : > { %v2820_v16 = vpop.permute.xlu0 %2819  ;;  %v13388_v11 = vld [vmem:[#allocation2 + $0x30] sm:$0xff]  ;;  %v13390_v8 = vld [vmem:[#allocation2 + $0x38] sm:$0xff] }
 0x490   : > { %2860 = vst.msk [vmem:[#allocation2 + $0x51] sm:$0xff] %vm549_vm3, %v2820_v16  ;;  %v2828_v46 = vpop.permute.xlu1 %2827  ;;  %v10035_v36 = vpack.i.bf16 %v13390_v8, %v13388_v11  ;;  %v13395_v50 = vld [vmem:[#allocation2 + $0x60] sm:$0xff]  ;;  %v13397_v23 = vld [vmem:[#allocation2 + $0x68] sm:$0xff]  ;;  %v4932_v16 = vrot.slane %v13420_v37, 2 }
 0x491   : > { %2864 = vst.msk [vmem:[#allocation2 + $0x81] sm:$0xff] %vm549_vm3, %v2828_v46  ;;  %v10045_v20 = vpack.i.bf16 %v13397_v23, %v13395_v50  ;;  %v13493_v46 = vpack.i.bf16 %v13474_v32, %v13471_v5  ;;  %v3915_v37 = vrot.slane %v13395_v50, 1 }
 0x492   : > { %10036 = vrot.lane.b32.xlu0 %v10035_v36, %s11116_s23 }
 0x493   : > { %10046 = vrot.lane.b32.xlu2 %v10045_v20, %s11116_s23 }
 0x494   : > { %v13438_v61 = vld [vmem:[#allocation2 + $0x90] sm:$0xff] }
 0x495   : > { %v3925_v52 = vrot.slane %v13438_v61, 1 }
 0x497   : > { %v2826_v21 = vpop.permute.xlu0 %2825  ;;  %v13406_v12 = vld [vmem:[#allocation2 + $0x50] sm:$0xff]  ;;  %v13442_v34 = vld [vmem:[#allocation2 + $0x58] sm:$0x3] }
 0x498   : > { %2863 = vst.msk [vmem:[#allocation2 + $0x79] sm:$0xff] %vm549_vm3, %v2826_v21  ;;  %v13411_v3 = vpack.i.bf16 %v13406_v12, %v13404_v15  ;;  %v3911_v30 = vrot.slane %v13406_v12, 1  ;;  %v3913_v13 = vrot.slane %v13442_v34, 1  ;;  %v4937_v21 = vrot.slane %v2874_v35, 2 }
 0x49a   : > { %10041 = vrot.lane.b32.xlu1 %v13411_v3, %s11116_s23  ;;  %v3912_v29 = vsel %vm1183_vm4, %v3910_v26, %v3911_v30 }
 0x49b   : > { %10066 = vrot.lane.b32.xlu2 %v10030_v39, %s11115_s22  ;;  %v3914_v39 = vsel %vm1183_vm4, %v3911_v30, %v3913_v13  ;;  %v3963_v30 = vrot.slane %v3912_v29, 4  ;;  %v4077_v13 = vrot.slane %v3904_v41, 4 }
 0x49c   : > { %v4075_v31 = vrot.slane %v3914_v39, 4 }
 0x49f   : > { %v2832_v40 = vpop.permute.xlu0 %2831  ;;  %v13416_v43 = vld [vmem:[#allocation2 + $0x78] sm:$0xff]  ;;  %v13418_v42 = vld [vmem:[#allocation2 + $0x80] sm:$0xff] }
 0x4a0   : > { %2866 = vst.msk [vmem:[#allocation2 + $0x99] sm:$0xff] %vm549_vm3, %v2832_v40  ;;  %v10050_v9 = vpack.i.bf16 %v13418_v42, %v13416_v43  ;;  %v13497_v40 = vpack.i.bf16 %v3914_v39, %v3912_v29 }
 0x4a2   : > { %10051 = vrot.lane.b32.xlu0 %v10050_v9, %s11116_s23 }
 0x4a3   : > { %10081 = vrot.lane.b32.xlu2 %v10045_v20, %s11115_s22  ;;  %v4935_v20 = vrot.slane %v13366_v56, 2 }
 0x4a7   : > { %v13440_v27 = vld [vmem:[#allocation2 + $0x98] sm:$0xff]  ;;  %v13487_v55 = vld [vmem:[#allocation2 + $0xa0] sm:$0x3] }
 0x4a8   : > { %v13446_v1 = vpack.i.bf16 %v13440_v27, %v13438_v61  ;;  %v3926_v6 = vrot.slane %v13440_v27, 1  ;;  %v3928_v18 = vrot.slane %v13487_v55, 1 }
 0x4aa   : > { %10056 = vrot.lane.b32.xlu1 %v13446_v1, %s11116_s23  ;;  %10071 = vrot.lane.b32.xlu0 %v10035_v36, %s11115_s22  ;;  %v3900_v36 = vrot.slane %v13369_v10, 1  ;;  %v13527_v57 = vsel %vm1183_vm4, %v3926_v6, %v3928_v18  ;;  %v4076_v18 = vsel %vm366_vm0, %v4075_v31, %v3904_v41  ;;  %v13551_v10 = vld [vmem:[#allocation2 + $0x70] sm:$0x3]  ;;  %v3916_v31 = vrot.slane %v13397_v23, 1 }
 0x4ab   : > { %10116 = vrot.lane.b32.xlu2 %v13452_v49, %s11116_s23  ;;  %20536 = vst [vmem:[#allocation8_spill] sm:$0xff] %v13527_v57  ;;  %v4087_v47 = vrot.slane %v13527_v57, 4  ;;  %v13566_v58 = vperm.slane %v4076_v18, %v20533_v28  ;;  %v3918_v53 = vrot.slane %v13551_v10, 1 }
 0x4ac   : > { %v3902_v19 = vsel %vm1183_vm4, %v3900_v36, %v3901_v48  ;;  %v2877_v48 = vld [vmem:[#allocation2 + $0x40] sm:$0x3]  ;;  %v13524_v36 = vsel %vm1183_vm4, %v3925_v52, %v3926_v6  ;;  %v13539_v52 = vperm.slane %v2906_v38, %v20533_v28  ;;  %20538 = vst [vmem:[#allocation7_spill] sm:$0xff] %v13551_v10  ;;  %v3921_v10 = vrot.slane %v13418_v42, 1 }
 0x4ad   : > { %v13519_v35 = vpack.i.bf16 %v3904_v41, %v3902_v19  ;;  %v3965_v26 = vrot.slane %v3902_v19, 4  ;;  %20535 = vst [vmem:[#allocation11_spill] sm:$0xff] %v13524_v36  ;;  %v3908_v45 = vrot.slane %v2877_v48, 1  ;;  %v13543_v6 = vpack.i.bf16 %v13527_v57, %v13524_v36 }
 0x4ae   : > { %v4942_v63 = vrot.slane %v2877_v48, 2  ;;  %v3964_v41 = vsel %vm366_vm0, %v3963_v30, %v3902_v19  ;;  %v3906_v48 = vrot.slane %v13390_v8, 1  ;;  %20540 = vst [vmem:[#allocation27_spill] sm:$0xff] %v13566_v58  ;;  %v3975_v25 = vrot.slane %v13524_v36, 4 }
 0x4af   : > { %v4940_v19 = vrot.slane %v13390_v8, 2  ;;  %v13586_v18 = vsel %vm1183_vm4, %v3916_v31, %v3918_v53 }
 0x4b0   : > { %20544 = vst [vmem:[#allocation34_spill] sm:$0xff] %v13586_v18  ;;  %v3909_v22 = vsel %vm1183_vm4, %v3906_v48, %v3908_v45  ;;  %v2886_v45 = vld [vmem:[#allocation2 + $0x88] sm:$0x3] }
 0x4b2   : > { %10061 = vrot.lane.b32.xlu1 %v13382_v44, %s11115_s22  ;;  %10086 = vrot.lane.b32.xlu0 %v10050_v9, %s11115_s22  ;;  %v13514_v44 = vsel %vm1806_vm5, %v4934_v17, %v4935_v20  ;;  %v13517_v9 = vsel %vm1806_vm5, %v4935_v20, %v4937_v21  ;;  %v4930_v17 = vrot.slane %v13377_v54, 2  ;;  %v2908_v21 = vsel %vm366_vm0, %v13404_v15, %v2907_v33 }
 0x4b3   : > { %10131 = vrot.lane.b32.xlu2 %v13497_v40, %s11116_s23  ;;  %v13533_v20 = vpack.i.bf16 %v13517_v9, %v13514_v44  ;;  %v3905_v33 = vrot.slane %v13388_v11, 1 }
 0x4b4   : > { %v13554_v38 = vsel %vm1806_vm5, %v4929_v2, %v4930_v17  ;;  %v3966_v2 = vsel %vm366_vm0, %v3912_v29, %v3965_v26 }
 0x4b5   : > { %20537 = vst [vmem:[#allocation10_spill] sm:$0xff] %v13533_v20  ;;  %v13583_v26 = vperm.slane %v3966_v2, %v20533_v28  ;;  %v13590_v20 = vsel %vm1806_vm5, %v4930_v17, %v4932_v16  ;;  %v3907_v29 = vsel %vm1183_vm4, %v3905_v33, %v3906_v48  ;;  %v13606_v16 = vperm.slane %v2908_v21, %v20533_v28 }
 0x4b6   : > { %20539 = vst [vmem:[#allocation9_spill] sm:$0xff] %v13554_v38  ;;  %v20548_v17 = vrot.slane %v13434_v59, 4  ;;  %v13619_v48 = vpack.i.bf16 %v13590_v20, %v13554_v38  ;;  %v2893_v33 = vrot.slane %v13388_v11, 4 }
 0x4b7   : > { %20543 = vst [vmem:[#allocation31_spill] sm:$0xff] %v13583_v26 }
 0x4b8   : > { %20545 = vst [vmem:[#allocation12_spill] sm:$0xff] %v13590_v20 }
 0x4b9   : > { %20547 = vst [vmem:[#allocation17_spill] sm:$0xff] %v13606_v16  ;;  %v3923_v16 = vrot.slane %v2886_v45, 1 }
 0x4ba   : > { %10076 = vrot.lane.b32.xlu1 %v13411_v3, %s11115_s22  ;;  %10096 = vrot.lane.b32.xlu0 %v13480_v62, %s11116_s23  ;;  %v4078_v3 = vsel %vm366_vm0, %v3914_v39, %v4077_v13  ;;  %v4939_v39 = vrot.slane %v13388_v11, 2  ;;  %v13579_v13 = vperm.slane %v3964_v41, %v20533_v28  ;;  %v4088_v41 = vsel %vm366_vm0, %v4087_v47, %v13586_v18 }
 0x4bb   : > { %10146 = vrot.lane.b32.xlu2 %v13543_v6, %s11116_s23  ;;  %v13576_v30 = vperm.slane %v4078_v3, %v20533_v28  ;;  %v13594_v3 = vsel %vm1183_vm4, %v3915_v37, %v3916_v31  ;;  %20549 = vst [vmem:[#allocation15_spill] sm:$0xff] %v13619_v48  ;;  %v13630_v37 = vsel %vm1806_vm5, %v4940_v19, %v4942_v63  ;;  %v4945_v47 = vrot.slane %v13406_v12, 2 }
 0x4bc   : > { %20542 = vst [vmem:[#allocation29_spill] sm:$0xff] %v13579_v13  ;;  %v3976_v2 = vsel %vm366_vm0, %v3975_v25, %v13594_v3  ;;  %v13602_v53 = vsel %vm1806_vm5, %v4939_v39, %v4940_v19  ;;  %v4066_v25 = vsel %vm366_vm0, %v3909_v22, %v20548_v17  ;;  %v4063_v17 = vrot.slane %v3909_v22, 4 }
 0x4bd   : > { %20541 = vst [vmem:[#allocation16_spill] sm:$0xff] %v13576_v30  ;;  %v13634_v39 = vperm.slane %v3976_v2, %v20533_v28  ;;  %v4985_v57 = vrot.slane %v13602_v53, 4  ;;  %v4947_v31 = vrot.slane %v13442_v34, 2  ;;  %v13645_v63 = vpack.i.bf16 %v13586_v18, %v13594_v3 }
 0x4be   : > { %20546 = vst [vmem:[#allocation18_spill] sm:$0xff] %v13602_v53  ;;  %v5097_v2 = vrot.slane %v13630_v37, 4  ;;  %v13653_v48 = vpack.i.bf16 %v3909_v22, %v3907_v29  ;;  %v4955_v34 = vrot.slane %v13418_v42, 2  ;;  %v13659_v18 = vsel %vm366_vm0, %v4063_v17, %v13434_v59 }
 0x4bf   : > { %20552 = vst [vmem:[#allocation14_spill] sm:$0xff] %v13630_v37  ;;  %v4986_v36 = vsel %vm366_vm0, %v4985_v57, %v13554_v38  ;;  %v4957_v22 = vrot.slane %v2886_v45, 2  ;;  %v13677_v57 = vpack.i.bf16 %v13630_v37, %v13602_v53  ;;  %v3924_v53 = vsel %vm1183_vm4, %v3921_v10, %v3923_v16 }
 0x4c0   : > { %20553 = vst [vmem:[#allocation19_spill] sm:$0xff] %v13634_v39  ;;  %v5098_v17 = vsel %vm366_vm0, %v5097_v2, %v13590_v20  ;;  %v13689_v59 = vperm.slane %v4986_v36, %v20533_v28  ;;  %v2917_v20 = vrot.slane %v13438_v61, 4  ;;  %v20560_v38 = vrot.slane %v13517_v9, 4 }
 0x4c1   : > { %v13693_v2 = vperm.slane %v5098_v17, %v20533_v28  ;;  %v20563_v16 = vrot.slane %v13474_v32, 4 }
 0x4c2   : > { %10091 = vrot.lane.b32.xlu1 %v13446_v1, %s11115_s22  ;;  %10101 = vrot.lane.b32.xlu0 %v13480_v62, %s11115_s22  ;;  %v13624_v1 = vperm.slane %v4088_v41, %v20533_v28  ;;  %v20551_v62 = vrot.slane %v13431_v14, 4  ;;  %v3951_v41 = vrot.slane %v3907_v29, 4  ;;  %20557 = vst [vmem:[#allocation21_spill] sm:$0xff] %v13689_v59  ;;  %v20564_v59 = vrot.slane %v13471_v5, 4 }
 0x4c3   : > { %10151 = vrot.lane.b32.xlu2 %v13452_v49, %s11115_s22  ;;  %v13638_v49 = vperm.slane %v4066_v25, %v20533_v28  ;;  %20558 = vst [vmem:[#allocation28_spill] sm:$0xff] %v13693_v2 }
 0x4c4   : > { %20550 = vst [vmem:[#allocation13_spill] sm:$0xff] %v13624_v1  ;;  %v3954_v21 = vsel %vm366_vm0, %v3907_v29, %v20551_v62  ;;  %v13667_v25 = vsel %vm366_vm0, %v3951_v41, %v13431_v14  ;;  %v4948_v29 = vsel %vm1806_vm5, %v4945_v47, %v4947_v31  ;;  %v20556_v14 = vrot.slane %v13404_v15, 2 }
 0x4c5   : > { %20554 = vst [vmem:[#allocation30_spill] sm:$0xff] %v13638_v49  ;;  %v13648_v19 = vperm.slane %v3954_v21, %v20533_v28  ;;  %v4954_v21 = vrot.slane %v13416_v43, 2  ;;  %v4958_v31 = vsel %vm1806_vm5, %v4955_v34, %v4957_v22  ;;  %v5109_v37 = vrot.slane %v4948_v29, 4 }
 0x4c6   : > { %v4946_v41 = vsel %vm1806_vm5, %v20556_v14, %v4945_v47  ;;  %v4959_v47 = vrot.slane %v13438_v61, 2  ;;  %v5135_v14 = vrot.slane %v4958_v31, 4  ;;  %v2894_v22 = vsel %vm366_vm0, %v2893_v33, %v13375_v24 }
 0x4c7   : > { %20555 = vst [vmem:[#allocation22_spill] sm:$0xff] %v13648_v19  ;;  %v4956_v62 = vsel %vm1806_vm5, %v4954_v21, %v4955_v34  ;;  %v4997_v15 = vrot.slane %v4946_v41, 4  ;;  %v3005_v34 = vrot.slane %v13390_v8, 4  ;;  %v13703_v21 = vpack.i.bf16 %v4948_v29, %v4946_v41 }
 0x4c8   : > { %v5023_v36 = vrot.slane %v4956_v62, 4  ;;  %v5110_v17 = vsel %vm366_vm0, %v5109_v37, %v13517_v9  ;;  %v13710_v1 = vsel %vm366_vm0, %v4948_v29, %v20560_v38  ;;  %v20562_v33 = vrot.slane %v13514_v44, 4 }
 0x4c9   : > { %20559 = vst [vmem:[#allocation24_spill] sm:$0xff] %v13703_v21  ;;  %v5134_v45 = vsel %vm366_vm0, %v20563_v16, %v4958_v31  ;;  %v5022_v21 = vsel %vm366_vm0, %v20564_v59, %v4956_v62  ;;  %v4998_v37 = vsel %vm366_vm0, %v4997_v15, %v13514_v44  ;;  %v13726_v9 = vperm.slane %v2894_v22, %v20533_v28 }
 0x4ca   : > { %10106 = vrot.lane.b32.xlu1 %v13493_v46, %s11116_s23  ;;  %10121 = vrot.lane.b32.xlu0 %v13519_v35, %s11116_s23  ;;  %20561 = vst [vmem:[#allocation33_spill] sm:$0xff] %v13710_v1  ;;  %v13715_v39 = vsel %vm366_vm0, %v4946_v41, %v20562_v33  ;;  %v5136_v38 = vsel %vm366_vm0, %v13474_v32, %v5135_v14  ;;  %v20565_v41 = vrot.slane %v13463_v7, 4  ;;  %v4960_v15 = vrot.slane %v13440_v27, 2 }
 0x4cb   : > { %10166 = vrot.lane.b32.xlu2 %v13497_v40, %s11115_s22  ;;  %v3920_v40 = vrot.slane %v13416_v43, 1  ;;  %v4962_v22 = vrot.slane %v13487_v55, 2  ;;  %v2918_v32 = vsel %vm366_vm0, %v2917_v20, %v13395_v50  ;;  %v13750_v14 = vpack.i.bf16 %v4958_v31, %v4956_v62 }
 0x4cc   : > { %v4100_v59 = vsel %vm366_vm0, %v20565_v41, %v3924_v53  ;;  %v4101_v33 = vrot.slane %v3924_v53, 4  ;;  %v20569_v55 = vrot.slane %v13460_v51, 4  ;;  %v20571_v31 = vrot.slane %v13354_v4, 4 }
 0x4cd   : > { %v3922_v29 = vsel %vm1183_vm4, %v3920_v40, %v3921_v10  ;;  %v13748_v10 = vperm.slane %v5134_v45, %v20533_v28  ;;  %v13753_v40 = vperm.slane %v5022_v21, %v20533_v28  ;;  %v2943_v16 = vrot.slane %v13726_v9, 4 }
 0x4ce   : > { %v3988_v20 = vsel %vm366_vm0, %v20569_v55, %v3922_v29  ;;  %v3989_v62 = vrot.slane %v3922_v29, 4  ;;  %v2930_v21 = vsel %vm366_vm0, %v20571_v31, %v13416_v43  ;;  %v13780_v41 = vperm.slane %v2918_v32, %v20533_v28 }
 0x4cf   : > { %20566 = vst [vmem:[#allocation20_spill] sm:$0xff] %v13748_v10  ;;  %v13787_v55 = vsel %vm1806_vm5, %v4959_v47, %v4960_v15  ;;  %v13790_v31 = vperm.slane %v5110_v17, %v20533_v28  ;;  %v13793_v44 = vperm.slane %v4998_v37, %v20533_v28  ;;  %v13799_v32 = vperm.slane %v2930_v21, %v20533_v28 }
 0x4d0   : > { %20567 = vst [vmem:[#allocation26_spill] sm:$0xff] %v13753_v40  ;;  %v2944_v17 = vsel %vm366_vm0, %v13539_v52, %v2943_v16  ;;  %v2967_v37 = vrot.slane %v13780_v41, 4 }
 0x4d1   : > { %20573 = vst [vmem:[#allocation5_spill] sm:$0xff] %v13790_v31  ;;  %v13830_v21 = vperm.slane %v2944_v17, %v20534_v60  ;;  %v4011_v17 = vrot.slane %v13583_v26, 4  ;;  %v2919_v26 = vrot.slane %v13395_v50, 4 }
 0x4d2   : > { %10111 = vrot.lane.b32.xlu1 %v13493_v46, %s11115_s22  ;;  %10136 = vrot.lane.b32.xlu0 %v13645_v63, %s11116_s23  ;;  %v5024_v46 = vsel %vm366_vm0, %v13471_v5, %v5023_v36  ;;  %v13759_v5 = vperm.slane %v4100_v59, %v20533_v28  ;;  %v13761_v36 = vpack.i.bf16 %v3924_v53, %v3922_v29  ;;  %v3017_v59 = vrot.slane %v13406_v12, 4 }
 0x4d3   : > { %10181 = vrot.lane.b32.xlu2 %v13543_v6, %s11115_s22  ;;  %v13756_v6 = vperm.slane %v5136_v38, %v20533_v28  ;;  %v13767_v45 = vperm.slane %v5024_v46, %v20533_v28  ;;  %v13774_v38 = vpop.permute.xlu2 %10016  ;;  %v13777_v53 = vsel %vm1806_vm5, %v4960_v15, %v4962_v22  ;;  %v3029_v46 = vrot.slane %v13440_v27, 4  ;;  %20574 = vst [vmem:[#allocation35_spill] sm:$0xff] %v13793_v44 }
 0x4d4   : > { %20572 = vst [vmem:[#allocation23_spill] sm:$0xff] %v13774_v38  ;;  %v4102_v29 = vsel %vm366_vm0, %v13463_v7, %v4101_v33  ;;  %v13796_v22 = vperm.slane %v3988_v20, %v20533_v28  ;;  %v3990_v7 = vsel %vm366_vm0, %v13460_v51, %v3989_v62  ;;  %v2968_v16 = vsel %vm366_vm0, %v13799_v32, %v2967_v37 }
 0x4d5   : > { %20568 = vst [vmem:[#allocation32_spill] sm:$0xff] %v13756_v6  ;;  %v3006_v6 = vsel %vm366_vm0, %v3005_v34, %v13377_v54  ;;  %v13816_v34 = vpack.i.bf16 %v13777_v53, %v13787_v55  ;;  %v3030_v51 = vsel %vm366_vm0, %v3029_v46, %v13397_v23  ;;  %v13840_v46 = vperm.slane %v13659_v18, %v20533_v28 }
 0x4d6   : > { %20570 = vst [vmem:[#allocation25_spill] sm:$0xff] %v13767_v45  ;;  %v13827_v62 = vperm.slane %v3006_v6, %v20533_v28  ;;  %v13846_v6 = vperm.slane %v3030_v51, %v20533_v28  ;;  %v4123_v20 = vrot.slane %v13576_v30, 4  ;;  %v20577_v37 = vrot.slane %v13356_v0, 4 }
 0x4d7   : > { %20576 = vst [vmem:[#allocation37_spill] sm:$0xff] %v13840_v46  ;;  %v4949_v15 = vrot.slane %v13395_v50, 2  ;;  %v4012_v45 = vsel %vm366_vm0, %v4011_v17, %v13648_v19  ;;  %v2995_v50 = vrot.slane %v13830_v21, 4  ;;  %v2931_v17 = vrot.slane %v13416_v43, 4 }
 0x4d8   : > { %v3055_v51 = vrot.slane %v13827_v62, 4  ;;  %v4124_v47 = vsel %vm366_vm0, %v4123_v20, %v13638_v49 }
 0x4da   : > { %10126 = vrot.lane.b32.xlu1 %v13653_v48, %s11116_s23  ;;  %10156 = vrot.lane.b32.xlu0 %v13519_v35, %s11115_s22  ;;  %v3018_v35 = vsel %vm366_vm0, %v3017_v59, %v13366_v56  ;;  %v13836_v59 = vperm.slane %v13667_v25, %v20533_v28  ;;  %v3042_v25 = vsel %vm366_vm0, %v20577_v37, %v13418_v42  ;;  %v4113_v37 = vrot.slane %v13840_v46, 4 }
 0x4db   : > { %10196 = vrot.lane.b32.xlu2 %v13677_v57, %s11116_s23  ;;  %v13843_v33 = vperm.slane %v3018_v35, %v20533_v28  ;;  %v13858_v35 = vperm.slane %v2968_v16, %v20534_v60  ;;  %v13862_v1 = vpop.permute.xlu2 %10021  ;;  %v4950_v46 = vrot.slane %v13397_v23, 2  ;;  %v13883_v20 = vperm.slane %v3042_v25, %v20533_v28 }
 0x4dc   : > { %20575 = vst [vmem:[#allocation36_spill] sm:$0xff] %v13836_v59  ;;  %v4001_v18 = vrot.slane %v13836_v59, 4  ;;  %v4114_v49 = vsel %vm366_vm0, %v13566_v58, %v4113_v37  ;;  %v20581_v25 = vrot.slane %v13375_v24, 4  ;;  %v13908_v37 = vperm.slane %v3990_v7, %v20533_v28  ;;  %v20584_v24 = vld [vmem:[#allocation7_spill] sm:$0xff] }
 0x4dd   : > { %20578 = vst [vmem:[#allocation38_spill] sm:$0xff] %v13862_v1  ;;  %v3056_v16 = vsel %vm366_vm0, %v13843_v33, %v3055_v51  ;;  %v20579_v51 = vunpack.i.h.bf16 %v13774_v38  ;;  %v13897_v59 = vsel %vm366_vm0, %v13858_v35, %v2995_v50  ;;  %v3007_v7 = vrot.slane %v13377_v54, 4 }
 0x4de   : > { %v4002_v30 = vsel %vm366_vm0, %v13579_v13, %v4001_v18  ;;  %v3079_v18 = vrot.slane %v13846_v6, 4  ;;  %v13904_v43 = vperm.slane %v3056_v16, %v20534_v60  ;;  %20582 = vst [vmem:[#allocation40_spill] sm:$0xff] %v13908_v37  ;;  %v13916_v13 = vsel %vm1806_vm5, %v4949_v15, %v4950_v46 }
 0x4df   : > { %v13892_v19 = vrot.slane %v20579_v51, 4  ;;  %v13911_v51 = vperm.slane %v4102_v29, %v20533_v28  ;;  %v2932_v29 = vsel %vm366_vm0, %v13354_v4, %v2931_v17  ;;  %v13946_v4 = vperm.slane %v4124_v47, %v20534_v60 }
 0x4e0   : > { %v3080_v50 = vsel %vm366_vm0, %v13883_v20, %v3079_v18  ;;  %v20586_v18 = vrot.slane %v13594_v3, 4  ;;  %v3008_v47 = vsel %vm366_vm0, %v13390_v8, %v3007_v7 }
 0x4e1   : > { %20580 = vst [vmem:[#allocation39_spill] sm:$0xff] %v13892_v19  ;;  %v20585_v19 = vrot.slane %v20584_v24, 2  ;;  %v4147_v17 = vrot.slane %v13911_v51, 4 }
 0x4e2   : > { %10171 = vrot.lane.b32.xlu0 %v13645_v63, %s11115_s22  ;;  %10141 = vrot.lane.b32.xlu1 %v13761_v36, %s11116_s23  ;;  %v2920_v63 = vsel %vm366_vm0, %v13438_v61, %v2919_v26  ;;  %v2896_v61 = vsel %vm366_vm0, %v13388_v11, %v20581_v25  ;;  %v3031_v26 = vrot.slane %v13397_v23, 4  ;;  %20583 = vst [vmem:[#allocation41_spill] sm:$0xff] %v13911_v51  ;;  %v20587_v25 = vld [vmem:[#allocation11_spill] sm:$0xff] }
 0x4e3   : > { %10211 = vrot.lane.b32.xlu2 %v13750_v14, %s11116_s23  ;;  %v13921_v11 = vsel %vm1806_vm5, %v4950_v46, %v20585_v19  ;;  %v13924_v16 = vperm.slane %v2920_v63, %v20533_v28  ;;  %v13927_v23 = vperm.slane %v2896_v61, %v20533_v28  ;;  %v3978_v19 = vsel %vm366_vm0, %v20587_v25, %v20586_v18  ;;  %v20589_v63 = vld [vmem:[#allocation34_spill] sm:$0xff]  ;;  %v20591_v61 = vld [vmem:[#allocation8_spill] sm:$0xff] }
 0x4e4   : > { %v3032_v15 = vsel %vm366_vm0, %v13440_v27, %v3031_v26  ;;  %v13939_v46 = vperm.slane %v4012_v45, %v20534_v60  ;;  %v20590_v24 = vrot.slane %v20589_v63, 4  ;;  %20592 = vst [vmem:[#allocation11_spill] sm:$0xff] %v13946_v4  ;;  %v13949_v54 = vperm.slane %v3978_v19, %v20533_v28  ;;  %v20595_v45 = vld [vmem:[#allocation15_spill] sm:$0xff]  ;;  %v13965_v19 = vpop.permute.xlu2 %10031 }
 0x4e5   : > { %v4035_v27 = vrot.slane %v13908_v37, 4  ;;  %v2979_v26 = vrot.slane %v13924_v16, 4  ;;  %v3019_v18 = vrot.slane %v13366_v56, 4  ;;  %v3043_v25 = vrot.slane %v13418_v42, 4  ;;  %v20596_v56 = vld [vmem:[#allocation19_spill] sm:$0xff] }
 0x4e6   : > { %20588 = vst [vmem:[#allocation7_spill] sm:$0xff] %v13939_v46  ;;  %v4090_v58 = vsel %vm366_vm0, %v20591_v61, %v20590_v24  ;;  %v13973_v63 = vperm.slane %v3032_v15, %v20533_v28  ;;  %v20597_v7 = vrot.slane %v20596_v56, 4  ;;  %v20598_v24 = vld [vmem:[#allocation13_spill] sm:$0xff]  ;;  %v4057_v15 = vrot.slane %v13939_v46, 4 }
 0x4e7   : > { %20593 = vst [vmem:[#allocation34_spill] sm:$0xff] %v13949_v54  ;;  %v13953_v3 = vperm.slane %v4090_v58, %v20533_v28  ;;  %v13970_v58 = vperm.slane %v2932_v29, %v20533_v28  ;;  %v20599_v61 = vrot.slane %v20598_v24, 4  ;;  %v5011_v46 = vrot.slane %v13916_v13, 4 }
 0x4e8   : > { %v4026_v42 = vsel %vm366_vm0, %v13796_v22, %v20597_v7  ;;  %v4169_v7 = vrot.slane %v13946_v4, 4  ;;  %v5123_v4 = vrot.slane %v13921_v11, 4 }
 0x4e9   : > { %20594 = vst [vmem:[#allocation8_spill] sm:$0xff] %v13953_v3  ;;  %v4148_v8 = vsel %vm366_vm0, %v4147_v17, %v13953_v3  ;;  %v3044_v3 = vsel %vm366_vm0, %v13356_v0, %v3043_v25  ;;  %v14021_v0 = vperm.slane %v3080_v50, %v20534_v60 }
 0x4ea   : > { %10186 = vrot.lane.b32.xlu0 %v20595_v45, %s11116_s23  ;;  %10161 = vrot.lane.b32.xlu1 %v13653_v48, %s11115_s22  ;;  %v4036_v48 = vsel %vm366_vm0, %v4035_v27, %v13949_v54  ;;  %v13992_v27 = vperm.slane %v4026_v42, %v20534_v60  ;;  %v13998_v51 = vperm.slane %v4148_v8, %v20534_v60 }
 0x4eb   : > { %10231 = vrot.lane.b32.xlu2 %v13677_v57, %s11115_s22  ;;  %v4138_v57 = vsel %vm366_vm0, %v13759_v5, %v20599_v61  ;;  %v13988_v29 = vperm.slane %v4036_v48, %v20534_v60  ;;  %v14004_v61 = vperm.slane %v4002_v30, %v20534_v60  ;;  %v14007_v48 = vperm.slane %v4114_v49, %v20534_v60 }
 0x4ec   : > { %20601 = vst [vmem:[#allocation19_spill] sm:$0xff] %v13992_v27  ;;  %v13995_v17 = vperm.slane %v4138_v57, %v20534_v60  ;;  %v3091_v57 = vrot.slane %v13973_v63, 4  ;;  %v4051_v8 = vrot.slane %v13992_v27, 4  ;;  %v14018_v54 = vsel %vm366_vm0, %v13998_v51, %v4169_v7  ;;  %v20606_v27 = vld [vmem:[#allocation24_spill] sm:$0xff] }
 0x4ed   : > { %20600 = vst [vmem:[#allocation15_spill] sm:$0xff] %v13988_v29  ;;  %v14011_v42 = vsel %vm366_vm0, %v13988_v29, %v4057_v15  ;;  %v3107_v30 = vrot.slane %v13904_v43, 4  ;;  %v2980_v49 = vsel %vm366_vm0, %v13970_v58, %v2979_v26  ;;  %v3020_v15 = vsel %vm366_vm0, %v13406_v12, %v3019_v18 }
 0x4ee   : > { %20602 = vst [vmem:[#allocation13_spill] sm:$0xff] %v13995_v17  ;;  %v4163_v37 = vrot.slane %v13995_v17, 4  ;;  %v14031_v17 = vperm.slane %v3044_v3, %v20533_v28  ;;  %v14035_v7 = vsel %vm366_vm0, %v4051_v8, %v14004_v61  ;;  %v20607_v12 = vrot.slane %v13777_v53, 4 }
 0x4ef   : > { %20603 = vst [vmem:[#allocation42_spill] sm:$0xff] %v13998_v51  ;;  %v2955_v26 = vrot.slane %v13927_v23, 4  ;;  %v14051_v18 = vperm.slane %v3008_v47, %v20533_v28  ;;  %v20608_v8 = vunpack.i.l.bf16 %v13774_v38  ;;  %v14068_v47 = vperm.slane %v2980_v49, %v20534_v60  ;;  %v20611_v51 = vld [vmem:[#allocation17_spill] sm:$0xff] }
 0x4f0   : > { %20604 = vst [vmem:[#allocation43_spill] sm:$0xff] %v14004_v61  ;;  %v14039_v50 = vsel %vm366_vm0, %v4163_v37, %v14007_v48  ;;  %v5122_v3 = vsel %vm366_vm0, %v20607_v12, %v13921_v11  ;;  %v3092_v37 = vsel %vm366_vm0, %v14031_v17, %v3091_v57  ;;  %v14086_v57 = vpack.i.bf16 %v13921_v11, %v13916_v13 }
 0x4f1   : > { %20605 = vst [vmem:[#allocation44_spill] sm:$0xff] %v14007_v48  ;;  %v14057_v25 = vrot.slane %v20608_v8, 4  ;;  %v14059_v48 = vpop.permute.xlu2 %10046  ;;  %v3108_v8 = vsel %vm366_vm0, %v14021_v0, %v3107_v30  ;;  %v14082_v49 = vperm.slane %v5122_v3, %v20533_v28  ;;  %v5012_v30 = vsel %vm366_vm0, %v13787_v55, %v5011_v46 }
 0x4f2   : > { %10201 = vrot.lane.b32.xlu0 %v20606_v27, %s11116_s23  ;;  %10176 = vrot.lane.b32.xlu1 %v13761_v36, %s11115_s22  ;;  %v20609_v36 = vrot.slane %v13787_v55, 4  ;;  %20610 = vst [vmem:[#allocation24_spill] sm:$0xff] %v14068_v47  ;;  %v2956_v29 = vsel %vm366_vm0, %v20611_v51, %v2955_v26  ;;  %v14094_v38 = vperm.slane %v3092_v37, %v20534_v60  ;;  %v3001_v11 = vrot.slane %v14068_v47, 4  ;;  %v20614_v37 = vld [vmem:[#allocation21_spill] sm:$0xff] }
 0x4f3   : > { %10246 = vrot.lane.b32.xlu2 %v13750_v14, %s11115_s22  ;;  %v14077_v14 = vperm.slane %v3020_v15, %v20533_v28  ;;  %v3067_v15 = vrot.slane %v14051_v18, 4  ;;  %v14099_v3 = vsel %vm366_vm0, %v13777_v53, %v5123_v4  ;;  %v20615_v61 = vrot.slane %v13793_v44, 4 }
 0x4f4   : > { %v5010_v12 = vsel %vm366_vm0, %v20609_v36, %v13916_v13  ;;  %20612 = vst [vmem:[#allocation17_spill] sm:$0xff] %v14094_v38  ;;  %v10265_v36 = vpack.i.bf16 %v3108_v8, %v13897_v59  ;;  %v20616_v53 = vunpack.i.h.bf16 %v13862_v1  ;;  %v14122_v55 = vperm.slane %v2956_v29, %v20534_v60 }
 0x4f5   : > { %v14102_v13 = vperm.slane %v5010_v12, %v20533_v28  ;;  %v3068_v26 = vsel %vm366_vm0, %v14077_v14, %v3067_v15  ;;  %v5034_v59 = vsel %vm366_vm0, %v20615_v61, %v20614_v37  ;;  %v20618_v12 = vunpack.i.l.bf16 %v13862_v1  ;;  %v20620_v15 = vld [vmem:[#allocation10_spill] sm:$0xff] }
 0x4f6   : > { %v14115_v4 = vrot.slane %v20616_v53, 4  ;;  %v3113_v46 = vrot.slane %v14094_v38, 4  ;;  %v20621_v61 = vrot.slane %v13790_v31, 4  ;;  %v14138_v29 = vperm.slane %v5034_v59, %v20534_v60 }
 0x4f7   : > { %20613 = vst [vmem:[#allocation45_spill] sm:$0xff] %v14102_v13  ;;  %v14119_v8 = vrot.slane %v20618_v12, 4  ;;  %v14135_v12 = vperm.slane %v3068_v26, %v20534_v60  ;;  %v5057_v44 = vrot.slane %v13753_v40, 4  ;;  %v5169_v37 = vrot.slane %v13748_v10, 4  ;;  %v20625_v26 = vld [vmem:[#allocation9_spill] sm:$0xff] }
 0x4f8   : > { %20617 = vst [vmem:[#allocation46_spill] sm:$0xff] %v14115_v4  ;;  %v5146_v53 = vsel %vm366_vm0, %v20621_v61, %v13693_v2  ;;  %v20624_v31 = vunpack.i.l.bf16 %v13965_v19  ;;  %v20626_v61 = vrot.slane %v20625_v26, 4  ;;  %v20627_v2 = vld [vmem:[#allocation18_spill] sm:$0xff]  ;;  %v2993_v40 = vrot.slane %v13858_v35, 4 }
 0x4f9   : > { %20619 = vst [vmem:[#allocation47_spill] sm:$0xff] %v14119_v8  ;;  %v20623_v8 = vunpack.i.h.bf16 %v13965_v19  ;;  %v14156_v47 = vpop.permute.xlu2 %10066  ;;  %v5058_v10 = vsel %vm366_vm0, %v5057_v44, %v14102_v13  ;;  %v2941_v26 = vrot.slane %v13539_v52, 4  ;;  %v5083_v44 = vrot.slane %v14138_v29, 4 }
 0x4fa   : > { %10216 = vrot.lane.b32.xlu0 %v13816_v34, %s11116_s23  ;;  %10191 = vrot.lane.b32.xlu1 %v20620_v15, %s11116_s23  ;;  %20622 = vst [vmem:[#allocation10_spill] sm:$0xff] %v14138_v29  ;;  %v14148_v4 = vrot.slane %v20624_v31, 4  ;;  %v4988_v59 = vsel %vm366_vm0, %v20627_v2, %v20626_v61  ;;  %v5170_v31 = vsel %vm366_vm0, %v5169_v37, %v14082_v49  ;;  %v2965_v2 = vrot.slane %v13799_v32, 4  ;;  %v20640_v29 = vld [vmem:[#allocation32_spill] sm:$0xff] }
 0x4fb   : > { %10266 = vrot.lane.b32.xlu2 %v10265_v36, %s11105_s9  ;;  %v14144_v1 = vrot.slane %v20623_v8, 4  ;;  %v3002_v36 = vsel %vm366_vm0, %v3001_v11, %v14122_v55  ;;  %v14161_v8 = vperm.slane %v5146_v53, %v20534_v60  ;;  %v3114_v11 = vsel %vm366_vm0, %v3113_v46, %v14135_v12 }
 0x4fc   : > { %v3053_v61 = vrot.slane %v13843_v33, 4  ;;  %v4996_v53 = vperm.slane %v4988_v59, %v20533_v28  ;;  %v20120_v13 = vunpack.i.l.bf16 %v14059_v48  ;;  %v14176_v37 = vperm.slane %v5058_v10, %v20534_v60 }
 0x4fd   : > { %20628 = vst [vmem:[#allocation9_spill] sm:$0xff] %v14161_v8  ;;  %v14179_v35 = vperm.slane %v5170_v31, %v20534_v60  ;;  %v2942_v52 = vsel %vm366_vm0, %v2941_v26, %v13726_v9  ;;  %v10280_v32 = vpack.i.bf16 %v3114_v11, %v3002_v36  ;;  %v5195_v33 = vrot.slane %v14161_v8, 4  ;;  %v20633_v31 = vld [vmem:[#allocation12_spill] sm:$0xff]  ;;  %v20635_v26 = vld [vmem:[#allocation14_spill] sm:$0xff] }
 0x4fe   : > { %20629 = vst [vmem:[#allocation18_spill] sm:$0xff] %v14176_v37  ;;  %v3105_v46 = vrot.slane %v14021_v0, 4  ;;  %v5008_v38 = vperm.slane %v13715_v39, %v20533_v28  ;;  %v14193_v10 = vsel %vm366_vm0, %v2993_v40, %v13830_v21  ;;  %v2966_v9 = vsel %vm366_vm0, %v2965_v2, %v13780_v41 }
 0x4ff   : > { %20630 = vst [vmem:[#allocation48_spill] sm:$0xff] %v14179_v35  ;;  %v3054_v36 = vsel %vm366_vm0, %v3053_v61, %v13827_v62  ;;  %v3077_v0 = vrot.slane %v13883_v20, 4  ;;  %v20631_v39 = vunpack.i.h.bf16 %v14059_v48  ;;  %v5020_v40 = vperm.slane %v5012_v30, %v20533_v28 }
 0x500   : > { %v5047_v21 = vrot.slane %v4996_v53, 4  ;;  %v14211_v41 = vrot.slane %v20120_v13, 4  ;;  %v14215_v62 = vsel %vm366_vm0, %v14176_v37, %v5083_v44  ;;  %v14219_v20 = vsel %vm366_vm0, %v14179_v35, %v5195_v33  ;;  %v20639_v13 = vld [vmem:[#allocation33_spill] sm:$0xff] }
 0x501   : > { %v14202_v59 = vrot.slane %v20631_v39, 4  ;;  %v20634_v11 = vrot.slane %v20633_v31, 4  ;;  %v14227_v30 = vsel %vm366_vm0, %v3105_v46, %v13904_v43  ;;  %v14230_v61 = vperm.slane %v2966_v9, %v20534_v60  ;;  %v20638_v39 = vld [vmem:[#allocation25_spill] sm:$0xff]  ;;  %v14242_v43 = vpop.permute.xlu2 %10081 }
 0x502   : > { %10221 = vrot.lane.b32.xlu0 %v20595_v45, %s11115_s22  ;;  %10206 = vrot.lane.b32.xlu1 %v14086_v57, %s11116_s23  ;;  %v14206_v45 = vperm.slane %v2942_v52, %v20534_v60  ;;  %v14233_v52 = vperm.slane %v3054_v36, %v20534_v60  ;;  %v5048_v44 = vsel %vm366_vm0, %v5008_v38, %v5047_v21  ;;  %v5069_v31 = vrot.slane %v20638_v39, 4 }
 0x503   : > { %10281 = vrot.lane.b32.xlu2 %v10280_v32, %s11106_s10  ;;  %v5100_v2 = vsel %vm366_vm0, %v20635_v26, %v20634_v11  ;;  %20636 = vst [vmem:[#allocation12_spill] sm:$0xff] %v14230_v61  ;;  %v3078_v33 = vsel %vm366_vm0, %v3077_v0, %v13846_v6  ;;  %v5132_v11 = vperm.slane %v14099_v3, %v20533_v28  ;;  %v5045_v9 = vrot.slane %v5008_v38, 4 }
 0x504   : > { %20632 = vst [vmem:[#allocation49_spill] sm:$0xff] %v14206_v45  ;;  %v2991_v46 = vrot.slane %v14206_v45, 4  ;;  %v5108_v36 = vperm.slane %v5100_v2, %v20533_v28  ;;  %v5071_v26 = vrot.slane %v5020_v40, 4  ;;  %v5070_v21 = vsel %vm366_vm0, %v5069_v31, %v5020_v40 }
 0x505   : > { %20637 = vst [vmem:[#allocation14_spill] sm:$0xff] %v14233_v52  ;;  %v5120_v32 = vperm.slane %v20639_v13, %v20533_v28  ;;  %v5181_v6 = vrot.slane %v20640_v29, 4  ;;  %v14251_v0 = vperm.slane %v5048_v44, %v20534_v60  ;;  %v14259_v2 = vperm.slane %v3078_v33, %v20534_v60 }
 0x506   : > { %v20642_v40 = vunpack.i.h.bf16 %v14156_v47  ;;  %v14271_v13 = vsel %vm366_vm0, %v14230_v61, %v2991_v46  ;;  %v3103_v44 = vrot.slane %v14233_v52, 4  ;;  %v20643_v33 = vpack.i.bf16 %v14039_v50, %v14035_v7  ;;  %v14285_v46 = vpop.permute.xlu1 %10026 }
 0x507   : > { %20641 = vst [vmem:[#allocation25_spill] sm:$0xff] %v14259_v2  ;;  %v5182_v8 = vsel %vm366_vm0, %v5181_v6, %v5132_v11  ;;  %v5159_v38 = vrot.slane %v5108_v36, 4  ;;  %v5157_v3 = vrot.slane %v5120_v32, 4  ;;  %v2977_v52 = vrot.slane %v13970_v58, 4 }
 0x508   : > { %v14263_v31 = vrot.slane %v20642_v40, 4  ;;  %v5046_v40 = vsel %vm366_vm0, %v5045_v9, %v4996_v53  ;;  %v5095_v7 = vrot.slane %v14251_v0, 4  ;;  %v14293_v50 = vperm.slane %v5182_v8, %v20534_v60 }
 0x509   : > { %v5160_v53 = vsel %vm366_vm0, %v5120_v32, %v5159_v38  ;;  %v5183_v9 = vrot.slane %v5132_v11, 4  ;;  %v20647_v45 = vunpack.i.l.bf16 %v14156_v47  ;;  %v3065_v61 = vrot.slane %v14077_v14, 4  ;;  %v14327_v32 = vpop.permute.xlu2 %10116 }
 0x50a   : > { %10236 = vrot.lane.b32.xlu0 %v20606_v27, %s11115_s22  ;;  %10226 = vrot.lane.b32.xlu1 %v20620_v15, %s11115_s22  ;;  %v14281_v27 = vperm.slane %v5070_v21, %v20534_v60  ;;  %v5072_v15 = vsel %vm366_vm0, %v20638_v39, %v5071_v26  ;;  %v20644_v21 = vld [vmem:[#allocation36_spill] sm:$0xff]  ;;  %v14315_v11 = vperm.slane %v5046_v40, %v20534_v60  ;;  %v3089_v14 = vrot.slane %v14031_v17, 4 }
 0x50b   : > { %10296 = vrot.lane.b32.xlu2 %v20643_v33, %s11108_s12  ;;  %v14289_v6 = vperm.slane %v5072_v15, %v20534_v60  ;;  %v20645_v33 = vld [vmem:[#allocation29_spill] sm:$0xff]  ;;  %v14304_v58 = vrot.slane %v20647_v45, 4  ;;  %v3104_v15 = vsel %vm366_vm0, %v14259_v2, %v3103_v44  ;;  %v10037_v45 = vpop.permute.xlu0 %10036  ;;  %v2978_v44 = vsel %vm366_vm0, %v2977_v52, %v13924_v16  ;;  %20648 = vst [vmem:[#allocation33_spill] sm:$0xff] %v14327_v32 }
 0x50c   : > { %v20646_v39 = vrot.slane %v20645_v33, 4  ;;  %v5089_v38 = vrot.slane %v14281_v27, 4  ;;  %v5158_v33 = vsel %vm366_vm0, %v5157_v3, %v5108_v36  ;;  %v5201_v40 = vrot.slane %v14293_v50, 4 }
 0x50d   : > { %v14311_v8 = vsel %vm366_vm0, %v14289_v6, %v5095_v7  ;;  %v14324_v7 = vperm.slane %v5160_v53, %v20534_v60  ;;  %v5184_v36 = vsel %vm366_vm0, %v20640_v29, %v5183_v9  ;;  %v20126_v3 = vunpack.i.h.bf16 %v14242_v43 }
 0x50e   : > { %v14300_v26 = vsel %vm366_vm0, %v20646_v39, %v20644_v21  ;;  %v2953_v21 = vrot.slane %v20611_v51, 4  ;;  %v10028_v39 = vunpack.i.l.bf16 %v14285_v46  ;;  %v20130_v16 = vunpack.i.l.bf16 %v14242_v43 }
 0x50f   : > { %v3066_v17 = vsel %vm366_vm0, %v3065_v61, %v14051_v18  ;;  %v3090_v52 = vsel %vm366_vm0, %v3089_v14, %v13973_v63  ;;  %v20649_v29 = vpack.i.bf16 %v14018_v54, %v14011_v42  ;;  %v14349_v53 = vperm.slane %v5158_v33, %v20534_v60 }
 0x510   : > { %v2954_v51 = vsel %vm366_vm0, %v2953_v21, %v13927_v23  ;;  %v10038_v23 = vunpack.i.l.bf16 %v10037_v45  ;;  %v14353_v9 = vperm.slane %v5184_v36, %v20534_v60  ;;  %v5207_v61 = vrot.slane %v14324_v7, 4 }
 0x511   : > { %v2960_v18 = vperm.slane %v2954_v51, %v20534_v60  ;;  %v4023_v63 = vrot.slane %v13796_v22, 4  ;;  %v14360_v21 = vsel %vm366_vm0, %v5089_v38, %v14315_v11  ;;  %v14364_v54 = vsel %vm366_vm0, %v5201_v40, %v14349_v53 }
 0x512   : > { %10251 = vrot.lane.b32.xlu0 %v13816_v34, %s11115_s22  ;;  %10241 = vrot.lane.b32.xlu1 %v14086_v57, %s11115_s22  ;;  %v2984_v34 = vperm.slane %v2978_v44, %v20534_v60  ;;  %v10039_v57 = vunpack.i.h.bf16 %v10037_v45  ;;  %v3072_v42 = vperm.slane %v3066_v17, %v20534_v60  ;;  %v3096_v33 = vperm.slane %v3090_v52, %v20534_v60  ;;  %v10042_v17 = vpop.permute.xlu1 %10041 }
 0x513   : > { %10311 = vrot.lane.b32.xlu2 %v20649_v29, %s11103_s30  ;;  %v20650_v45 = vunpack.i.h.bf16 %v14285_v46  ;;  %v10255_v14 = vpack.i.bf16 %v3104_v15, %v14271_v13  ;;  %v14373_v22 = vsel %vm366_vm0, %v14353_v9, %v5207_v61  ;;  %v4024_v38 = vsel %vm366_vm0, %v4023_v63, %v20596_v56 }
 0x514   : > { %v14379_v40 = vrot.slane %v20126_v3, 4  ;;  %v3253_v51 = vrot.slane %v10028_v39, 4  ;;  %v3251_v36 = vrot.slane %v10038_v23, 4  ;;  %v2997_v52 = vrot.slane %v2984_v34, 4 }
 0x515   : > { %v3365_v44 = vrot.slane %v20650_v45, 4  ;;  %v14383_v29 = vrot.slane %v20130_v16, 4  ;;  %v3363_v13 = vrot.slane %v10039_v57, 4  ;;  %v10340_v15 = vpack.i.bf16 %v14364_v54, %v14360_v21  ;;  %v14399_v45 = vpop.permute.xlu2 %10131 }
 0x516   : > { %v2999_v61 = vrot.slane %v2960_v18, 4  ;;  %v3111_v56 = vrot.slane %v3072_v42, 4  ;;  %v3109_v63 = vrot.slane %v3096_v33, 4  ;;  %v3254_v2 = vsel %vm366_vm0, %v10038_v23, %v3253_v51  ;;  %v20653_v51 = vld [vmem:[#allocation37_spill] sm:$0xff] }
 0x517   : > { %v3366_v37 = vsel %vm366_vm0, %v10039_v57, %v3365_v44  ;;  %v10044_v35 = vunpack.i.h.bf16 %v10042_v17  ;;  %v20651_v16 = vpack.i.bf16 %v14227_v30, %v14193_v10  ;;  %v3252_v54 = vsel %vm366_vm0, %v3251_v36, %v10028_v39  ;;  %v20654_v10 = vld [vmem:[#allocation27_spill] sm:$0xff] }
 0x518   : > { %v3000_v21 = vsel %vm366_vm0, %v2984_v34, %v2999_v61  ;;  %v20652_v23 = vpack.i.bf16 %v14219_v20, %v14215_v62  ;;  %v3112_v57 = vsel %vm366_vm0, %v3096_v33, %v3111_v56  ;;  %v2998_v44 = vsel %vm366_vm0, %v2997_v52, %v2960_v18  ;;  %v10052_v61 = vpop.permute.xlu0 %10051 }
 0x519   : > { %v20655_v30 = vrot.slane %v20654_v10, 4  ;;  %v20656_v34 = vunpack.i.h.bf16 %v14285_v46  ;;  %v10043_v36 = vunpack.i.l.bf16 %v10042_v17  ;;  %v4135_v62 = vrot.slane %v13759_v5, 4 }
 0x51a   : > { %10261 = vrot.lane.b32.xlu1 %v20651_v16, %s11108_s12  ;;  %10256 = vrot.lane.b32.xlu0 %v10255_v14, %s11109_s13  ;;  %v20131_v14 = vunpack.i.l.bf16 %v14327_v32  ;;  %v14417_v20 = vperm.slane %v3254_v2, %v20533_v28  ;;  %v14420_v18 = vperm.slane %v3366_v37, %v20533_v28  ;;  %v20657_v33 = vunpack.i.h.bf16 %v14327_v32  ;;  %v20695_v32 = vld [vmem:[#allocation44_spill] sm:$0xff] }
 0x51b   : > { %10326 = vrot.lane.b32.xlu2 %v20652_v23, %s11109_s13  ;;  %v4112_v16 = vsel %vm366_vm0, %v20655_v30, %v20653_v51  ;;  %v3364_v39 = vsel %vm366_vm0, %v3363_v13, %v20656_v34  ;;  %v3110_v46 = vsel %vm366_vm0, %v3109_v63, %v3072_v42  ;;  %v14428_v13 = vperm.slane %v3252_v54, %v20533_v28 }
 0x51c   : > { %v14424_v52 = vrot.slane %v20657_v33, 4  ;;  %v3375_v56 = vrot.slane %v10044_v35, 4  ;;  %v10275_v17 = vpack.i.bf16 %v3112_v57, %v3000_v21  ;;  %v4136_v5 = vsel %vm366_vm0, %v4135_v62, %v20598_v24  ;;  %v14468_v34 = vpop.permute.xlu1 %10056 }
 0x51d   : > { %v14433_v2 = vperm.slane %v3364_v39, %v20533_v28  ;;  %v3378_v37 = vsel %vm366_vm0, %v10044_v35, %v14144_v1  ;;  %v14439_v23 = vperm.slane %v14300_v26, %v20534_v60  ;;  %v14442_v42 = vperm.slane %v4112_v16, %v20534_v60 }
 0x51e   : > { %20658 = vst [vmem:[#allocation32_spill] sm:$0xff] %v14424_v52  ;;  %v20132_v63 = vunpack.i.h.bf16 %v14399_v45  ;;  %v3263_v54 = vrot.slane %v10043_v36, 4  ;;  %v3266_v21 = vsel %vm366_vm0, %v10043_v36, %v14148_v4  ;;  %v10270_v24 = vpack.i.bf16 %v3110_v46, %v2998_v44 }
 0x51f   : > { %20659 = vst [vmem:[#allocation36_spill] sm:$0xff] %v14433_v2  ;;  %v3313_v57 = vrot.slane %v14417_v20, 4  ;;  %v14450_v51 = vrot.slane %v20131_v14, 4  ;;  %v14453_v1 = vperm.slane %v4024_v38, %v20534_v60  ;;  %v14456_v35 = vperm.slane %v4136_v5, %v20534_v60 }
 0x520   : > { %20660 = vst [vmem:[#allocation29_spill] sm:$0xff] %v14439_v23  ;;  %v3425_v26 = vrot.slane %v14420_v18, 4  ;;  %v20133_v10 = vunpack.i.l.bf16 %v14399_v45  ;;  %v20665_v30 = vunpack.i.h.bf16 %v13965_v19  ;;  %v3386_v44 = vperm.slane %v3378_v37, %v20533_v28  ;;  %v14484_v37 = vpop.permute.xlu2 %10146  ;;  %v14494_v14 = vpop.permute.xlu0 %10071 }
 0x521   : > { %20661 = vst [vmem:[#allocation37_spill] sm:$0xff] %v14442_v42  ;;  %v3301_v38 = vrot.slane %v14428_v13, 4  ;;  %v3274_v16 = vperm.slane %v3266_v21, %v20533_v28  ;;  %v4049_v39 = vrot.slane %v14439_v23, 4  ;;  %v4161_v36 = vrot.slane %v14442_v42, 4 }
 0x522   : > { %20662 = vst [vmem:[#allocation27_spill] sm:$0xff] %v14450_v51  ;;  %v3376_v4 = vsel %vm366_vm0, %v3375_v56, %v20665_v30  ;;  %10276 = vrot.lane.b32.xlu1 %v10275_v17, %s11103_s30  ;;  %10271 = vrot.lane.b32.xlu0 %v10270_v24, %s11107_s11  ;;  %v3413_v62 = vrot.slane %v14433_v2, 4  ;;  %v14476_v33 = vrot.slane %v20132_v63, 4  ;;  %v20666_v46 = vunpack.i.l.bf16 %v13965_v19  ;;  %v20668_v63 = vld [vmem:[#allocation39_spill] sm:$0xff]  ;;  %v20696_v2 = vld [vmem:[#allocation46_spill] sm:$0xff] }
 0x523   : > { %20663 = vst [vmem:[#allocation50_spill] sm:$0xff] %v14453_v1  ;;  %10341 = vrot.lane.b32.xlu2 %v10340_v15, %s11107_s11  ;;  %v10054_v17 = vunpack.i.h.bf16 %v10052_v61  ;;  %v14482_v5 = vperm.slane %v3376_v4, %v20533_v28  ;;  %v10053_v15 = vunpack.i.l.bf16 %v10052_v61  ;;  %v4050_v21 = vsel %vm366_vm0, %v14453_v1, %v4049_v39 }
 0x524   : > { %20664 = vst [vmem:[#allocation51_spill] sm:$0xff] %v14456_v35  ;;  %v3264_v56 = vsel %vm366_vm0, %v3263_v54, %v20666_v46  ;;  %v4162_v24 = vsel %vm366_vm0, %v14456_v35, %v4161_v36  ;;  %v14492_v30 = vrot.slane %v20133_v10, 4  ;;  %v3423_v19 = vrot.slane %v3386_v44, 4 }
 0x525   : > { %20667 = vst [vmem:[#allocation52_spill] sm:$0xff] %v14482_v5  ;;  %v10059_v54 = vunpack.i.h.bf16 %v14468_v34  ;;  %v10058_v4 = vunpack.i.l.bf16 %v14468_v34  ;;  %v14499_v46 = vperm.slane %v3264_v56, %v20533_v28  ;;  %v3311_v61 = vrot.slane %v3274_v16, 4 }
 0x526   : > { %v14502_v39 = vsel %vm366_vm0, %v3274_v16, %v3313_v57  ;;  %v14505_v36 = vsel %vm366_vm0, %v3386_v44, %v3425_v26  ;;  %v3400_v10 = vsel %vm366_vm0, %v20668_v63, %v10054_v17  ;;  %v3401_v3 = vrot.slane %v10054_v17, 4  ;;  %v20669_v44 = vld [vmem:[#allocation17_spill] sm:$0xff] }
 0x527   : > { %v10290_v42 = vpack.i.bf16 %v4162_v24, %v4050_v21  ;;  %v3115_v23 = vrot.slane %v14135_v12, 4  ;;  %v20139_v34 = vunpack.i.h.bf16 %v14484_v37  ;;  %v3288_v56 = vsel %vm366_vm0, %v14057_v25, %v10053_v15 }
 0x528   : > { %v3289_v1 = vrot.slane %v10053_v15, 4  ;;  %v3387_v57 = vrot.slane %v10059_v54, 4  ;;  %v3275_v16 = vrot.slane %v10058_v4, 4  ;;  %v3003_v26 = vrot.slane %v14122_v55, 4 }
 0x529   : > { %v3116_v63 = vsel %vm366_vm0, %v20669_v44, %v3115_v23  ;;  %v3302_v12 = vsel %vm366_vm0, %v14499_v46, %v3301_v38  ;;  %v20138_v21 = vunpack.i.l.bf16 %v14484_v37  ;;  %v14523_v24 = vperm.slane %v3400_v10, %v20533_v28  ;;  %v20674_v44 = vld [vmem:[#allocation24_spill] sm:$0xff] }
 0x52a   : > { %10291 = vrot.lane.b32.xlu1 %v10290_v42, %s11109_s13  ;;  %v20671_v25 = vpack.i.bf16 %v14373_v22, %v14311_v8  ;;  %v20672_v42 = vld [vmem:[#allocation23_spill] sm:$0xff]  ;;  %v14533_v23 = vperm.slane %v3288_v56, %v20533_v28  ;;  %v3390_v38 = vsel %vm366_vm0, %v10059_v54, %v14202_v59  ;;  %v3004_v35 = vsel %vm366_vm0, %v20674_v44, %v3003_v26 }
 0x52b   : > { %20670 = vst [vmem:[#allocation39_spill] sm:$0xff] %v14523_v24  ;;  %v20673_v55 = vunpack.i.h.bf16 %v20672_v42  ;;  %v14541_v10 = vsel %vm366_vm0, %v3311_v61, %v14417_v20  ;;  %v3414_v8 = vsel %vm366_vm0, %v14482_v5, %v3413_v62  ;;  %v20676_v22 = vunpack.i.l.bf16 %v20672_v42  ;;  %v10087_v42 = vpop.permute.xlu0 %10086  ;;  %v20682_v44 = vld [vmem:[#allocation15_spill] sm:$0xff] }
 0x52c   : > { %10356 = vrot.lane.b32.xlu2 %v20671_v25, %s11104_s8  ;;  %20675 = vst [vmem:[#allocation17_spill] sm:$0xff] %v14541_v10  ;;  %v10285_v25 = vpack.i.bf16 %v3116_v63, %v3004_v35  ;;  %v14550_v56 = vsel %vm366_vm0, %v3423_v19, %v14420_v18  ;;  %v14554_v59 = vrot.slane %v20139_v34, 4  ;;  %v20678_v54 = vunpack.i.h.bf16 %v14059_v48  ;;  %v14568_v19 = vpop.permute.xlu2 %10151  ;;  %v20684_v18 = vld [vmem:[#allocation43_spill] sm:$0xff] }
 0x52d   : > { %v3402_v15 = vsel %vm366_vm0, %v20673_v55, %v3401_v3  ;;  %v3290_v3 = vsel %vm366_vm0, %v20676_v22, %v3289_v1  ;;  %20677 = vst [vmem:[#allocation23_spill] sm:$0xff] %v14550_v56  ;;  %v20679_v61 = vunpack.i.l.bf16 %v14059_v48  ;;  %v14564_v1 = vrot.slane %v20138_v21, 4  ;;  %v20685_v34 = vld [vmem:[#allocation7_spill] sm:$0xff] }
 0x52e   : > { %v3388_v20 = vsel %vm366_vm0, %v3387_v57, %v20678_v54  ;;  %v3410_v35 = vperm.slane %v3402_v15, %v20533_v28  ;;  %20680 = vst [vmem:[#allocation24_spill] sm:$0xff] %v14568_v19  ;;  %v3398_v26 = vperm.slane %v3390_v38, %v20533_v28  ;;  %10286 = vrot.lane.b32.xlu0 %v10285_v25, %s11104_s8  ;;  %v4055_v22 = vrot.slane %v20682_v44, 4  ;;  %v20683_v54 = vld [vmem:[#allocation42_spill] sm:$0xff]  ;;  %v20686_v44 = vld [vmem:[#allocation11_spill] sm:$0xff] }
 0x52f   : > { %v3276_v62 = vsel %vm366_vm0, %v3275_v16, %v20679_v61  ;;  %v14573_v57 = vperm.slane %v3290_v3, %v20533_v28  ;;  %v14579_v55 = vperm.slane %v3388_v20, %v20533_v28  ;;  %v3278_v15 = vsel %vm366_vm0, %v10058_v4, %v14211_v41  ;;  %v20687_v16 = vld [vmem:[#allocation19_spill] sm:$0xff] }
 0x530   : > { %v14584_v38 = vperm.slane %v3276_v62, %v20533_v28  ;;  %v4167_v61 = vrot.slane %v20683_v54, 4  ;;  %v4053_v48 = vrot.slane %v20684_v18, 4  ;;  %v3447_v17 = vrot.slane %v3410_v35, 4  ;;  %v10062_v62 = vpop.permute.xlu1 %10061 }
 0x531   : > { %20681 = vst [vmem:[#allocation53_spill] sm:$0xff] %v14579_v55  ;;  %v3449_v21 = vrot.slane %v3398_v26, 4  ;;  %v10089_v20 = vunpack.i.h.bf16 %v10087_v42  ;;  %v4056_v63 = vsel %vm366_vm0, %v4055_v22, %v20685_v34  ;;  %v3335_v41 = vrot.slane %v14573_v57, 4 }
 0x532   : > { %v3286_v4 = vperm.slane %v3278_v15, %v20533_v28  ;;  %v4168_v3 = vsel %vm366_vm0, %v4167_v61, %v20686_v44  ;;  %v4054_v25 = vsel %vm366_vm0, %v20687_v16, %v4053_v48  ;;  %v20688_v54 = vunpack.i.h.bf16 %v14494_v14 }
 0x533   : > { %v20689_v51 = vunpack.i.l.bf16 %v14494_v14  ;;  %v3437_v56 = vrot.slane %v14579_v55, 4  ;;  %v3325_v34 = vrot.slane %v14584_v38, 4  ;;  %v20690_v22 = vunpack.i.h.bf16 %v14568_v19 }
 0x534   : > { %v3705_v18 = vrot.slane %v20688_v54, 4  ;;  %v20692_v10 = vunpack.i.l.bf16 %v14568_v19  ;;  %v14614_v48 = vsel %vm366_vm0, %v3447_v17, %v3398_v26  ;;  %v10305_v16 = vpack.i.bf16 %v4168_v3, %v4056_v63  ;;  %v20697_v17 = vld [vmem:[#allocation13_spill] sm:$0xff]  ;;  %v14635_v63 = vpop.permute.xlu2 %10166 }
 0x535   : > { %v3593_v52 = vrot.slane %v20689_v51, 4  ;;  %v14607_v15 = vrot.slane %v20690_v22, 4  ;;  %20694 = vst [vmem:[#allocation43_spill] sm:$0xff] %v14614_v48  ;;  %v14617_v44 = vsel %vm366_vm0, %v3410_v35, %v3449_v21  ;;  %v3743_v51 = vrot.slane %v10089_v20, 4 }
 0x536   : > { %v14611_v61 = vrot.slane %v20692_v10, 4  ;;  %v10088_v54 = vunpack.i.l.bf16 %v10087_v42  ;;  %v4165_v55 = vrot.slane %v20695_v32, 4  ;;  %v3337_v5 = vrot.slane %v3286_v4, 4  ;;  %10306 = vrot.lane.b32.xlu1 %v10305_v16, %s11107_s11  ;;  %20699 = vst [vmem:[#allocation11_spill] sm:$0xff] %v14635_v63 }
 0x537   : > { %20691 = vst [vmem:[#allocation15_spill] sm:$0xff] %v14607_v15  ;;  %v3742_v22 = vsel %vm366_vm0, %v20696_v2, %v10089_v20  ;;  %v10064_v15 = vunpack.i.h.bf16 %v10062_v62  ;;  %v14624_v10 = vperm.slane %v3302_v12, %v20534_v60  ;;  %v3326_v21 = vsel %vm366_vm0, %v14533_v23, %v3325_v34 }
 0x538   : > { %20693 = vst [vmem:[#allocation42_spill] sm:$0xff] %v14611_v61  ;;  %v4166_v26 = vsel %vm366_vm0, %v20697_v17, %v4165_v55  ;;  %v14631_v35 = vperm.slane %v3414_v8, %v20534_v60  ;;  %v3438_v32 = vsel %vm366_vm0, %v14523_v24, %v3437_v56  ;;  %v14638_v42 = vperm.slane %v3326_v21, %v20534_v60  ;;  %v20700_v55 = vld [vmem:[#allocation38_spill] sm:$0xff]  ;;  %v20702_v8 = vld [vmem:[#allocation47_spill] sm:$0xff] }
 0x539   : > { %v10300_v2 = vpack.i.bf16 %v4166_v26, %v4054_v25  ;;  %v3353_v12 = vrot.slane %v14624_v10, 4  ;;  %v14642_v3 = vperm.slane %v3438_v32, %v20534_v60  ;;  %v20701_v20 = vunpack.i.h.bf16 %v20700_v55 }
 0x53a   : > { %20698 = vst [vmem:[#allocation7_spill] sm:$0xff] %v14631_v35  ;;  %v3630_v16 = vsel %vm366_vm0, %v20702_v8, %v10088_v54  ;;  %v3631_v17 = vrot.slane %v10088_v54, 4  ;;  %v3465_v56 = vrot.slane %v14631_v35, 4  ;;  %v3706_v25 = vsel %vm366_vm0, %v3705_v18, %v10064_v15 }
 0x53b   : > { %v3744_v34 = vsel %vm366_vm0, %v20701_v20, %v3743_v51  ;;  %v3707_v26 = vrot.slane %v10064_v15, 4  ;;  %v10063_v21 = vunpack.i.l.bf16 %v10062_v62  ;;  %10301 = vrot.lane.b32.xlu0 %v10300_v2, %s11105_s9  ;;  %v3354_v32 = vsel %vm366_vm0, %v14638_v42, %v3353_v12  ;;  %v14670_v15 = vpop.permute.xlu1 %10076 }
 0x53c   : > { %v14657_v51 = vperm.slane %v3742_v22, %v20533_v28  ;;  %v3466_v54 = vsel %vm366_vm0, %v14642_v3, %v3465_v56  ;;  %v14662_v20 = vsel %vm366_vm0, %v3335_v41, %v3286_v4  ;;  %v14665_v62 = vperm.slane %v3744_v34, %v20533_v28  ;;  %v20708_v41 = vld [vmem:[#allocation22_spill] sm:$0xff]  ;;  %v20710_v34 = vld [vmem:[#allocation31_spill] sm:$0xff] }
 0x53d   : > { %20704 = vst [vmem:[#allocation44_spill] sm:$0xff] %v14662_v20  ;;  %v14668_v18 = vperm.slane %v3630_v16, %v20533_v28  ;;  %v10370_v2 = vpack.i.bf16 %v3466_v54, %v3354_v32  ;;  %v3338_v12 = vsel %vm366_vm0, %v14573_v57, %v3337_v5  ;;  %v20706_v22 = vunpack.i.l.bf16 %v20700_v55  ;;  %v20712_v57 = vld [vmem:[#allocation34_spill] sm:$0xff]  ;;  %v20723_v20 = vld [vmem:[#allocation16_spill] sm:$0xff] }
 0x53e   : > { %20703 = vst [vmem:[#allocation19_spill] sm:$0xff] %v14657_v51  ;;  %v14678_v56 = vperm.slane %v3706_v25, %v20533_v28  ;;  %v20709_v4 = vrot.slane %v20708_v41, 4  ;;  %v20711_v16 = vunpack.i.h.bf16 %v14494_v14  ;;  %v3595_v32 = vrot.slane %v10063_v21, 4 }
 0x53f   : > { %20705 = vst [vmem:[#allocation46_spill] sm:$0xff] %v14668_v18  ;;  %v3632_v8 = vsel %vm366_vm0, %v20706_v22, %v3631_v17  ;;  %10371 = vrot.lane.b32.xlu2 %v10370_v2, %s11105_s9  ;;  %v4037_v55 = vrot.slane %v20712_v57, 4  ;;  %v20713_v17 = vunpack.i.h.bf16 %v14635_v63  ;;  %v20715_v54 = vunpack.i.l.bf16 %v14635_v63  ;;  %v14725_v63 = vpop.permute.xlu2 %10181 }
 0x540   : > { %20707 = vst [vmem:[#allocation13_spill] sm:$0xff] %v14678_v56  ;;  %v4014_v19 = vsel %vm366_vm0, %v20710_v34, %v20709_v4  ;;  %v3708_v61 = vsel %vm366_vm0, %v20711_v16, %v3707_v26  ;;  %v3594_v4 = vsel %vm366_vm0, %v3593_v52, %v10063_v21  ;;  %v14702_v2 = vperm.slane %v3632_v8, %v20533_v28  ;;  %v14705_v34 = vpop.permute.xlu0 %10096  ;;  %v20718_v16 = vld [vmem:[#allocation40_spill] sm:$0xff] }
 0x541   : > { %v4022_v5 = vperm.slane %v4014_v19, %v20534_v60  ;;  %v14692_v25 = vrot.slane %v20713_v17, 4  ;;  %v14696_v22 = vrot.slane %v20715_v54, 4  ;;  %20717 = vst [vmem:[#allocation22_spill] sm:$0xff] %v14705_v34  ;;  %v4038_v57 = vsel %vm366_vm0, %v20718_v16, %v4037_v55  ;;  %v20721_v19 = vld [vmem:[#allocation30_spill] sm:$0xff]  ;;  %v20724_v16 = vld [vmem:[#allocation8_spill] sm:$0xff] }
 0x542   : > { %v14710_v17 = vperm.slane %v3708_v61, %v20533_v28  ;;  %v4046_v41 = vperm.slane %v4038_v57, %v20534_v60  ;;  %v20719_v21 = vunpack.i.l.bf16 %v14494_v14  ;;  %v14718_v26 = vperm.slane %v3594_v4, %v20533_v28  ;;  %20725 = vst [vmem:[#allocation34_spill] sm:$0xff] %v14725_v63  ;;  %v20726_v4 = vld [vmem:[#allocation41_spill] sm:$0xff] }
 0x543   : > { %20714 = vst [vmem:[#allocation38_spill] sm:$0xff] %v14692_v25  ;;  %v4061_v52 = vrot.slane %v4022_v5, 4  ;;  %v20722_v48 = vrot.slane %v20721_v19, 4  ;;  %v4149_v61 = vrot.slane %v20724_v16, 4  ;;  %v10079_v54 = vunpack.i.h.bf16 %v14670_v15 }
 0x544   : > { %20716 = vst [vmem:[#allocation47_spill] sm:$0xff] %v14696_v22  ;;  %v3596_v8 = vsel %vm366_vm0, %v20719_v21, %v3595_v32  ;;  %v4059_v22 = vrot.slane %v4046_v41, 4  ;;  %v10078_v32 = vunpack.i.l.bf16 %v14670_v15  ;;  %v14734_v19 = vperm.slane %v3338_v12, %v20534_v60 }
 0x545   : > { %20720 = vst [vmem:[#allocation31_spill] sm:$0xff] %v14718_v26  ;;  %v4126_v55 = vsel %vm366_vm0, %v20723_v20, %v20722_v48  ;;  %v4062_v57 = vsel %vm366_vm0, %v4046_v41, %v4061_v52  ;;  %v4150_v21 = vsel %vm366_vm0, %v20726_v4, %v4149_v61  ;;  %v14738_v48 = vperm.slane %v14617_v44, %v20534_v60 }
 0x546   : > { %v4134_v14 = vperm.slane %v4126_v55, %v20534_v60  ;;  %20727 = vst [vmem:[#allocation40_spill] sm:$0xff] %v14734_v19  ;;  %v14741_v20 = vperm.slane %v3596_v8, %v20533_v28  ;;  %v4158_v52 = vperm.slane %v4150_v21, %v20534_v60  ;;  %v4060_v41 = vsel %vm366_vm0, %v4059_v22, %v4022_v5  ;;  %v14745_v55 = vpop.permute.xlu1 %10091 }
 0x547   : > { %20728 = vst [vmem:[#allocation30_spill] sm:$0xff] %v14738_v48  ;;  %v14749_v15 = vperm.slane %v14502_v39, %v20534_v60  ;;  %v3359_v12 = vrot.slane %v14734_v19, 4  ;;  %v14754_v44 = vperm.slane %v14505_v36, %v20534_v60  ;;  %v3471_v8 = vrot.slane %v14738_v48, 4 }
 0x548   : > { %v4173_v16 = vrot.slane %v4134_v14, 4  ;;  %v3717_v61 = vrot.slane %v10079_v54, 4  ;;  %v3720_v4 = vsel %vm366_vm0, %v10079_v54, %v14263_v31  ;;  %v4171_v22 = vrot.slane %v4158_v52, 4 }
 0x549   : > { %20729 = vst [vmem:[#allocation16_spill] sm:$0xff] %v14749_v15  ;;  %v3605_v21 = vrot.slane %v10078_v32, 4  ;;  %v3360_v39 = vsel %vm366_vm0, %v3359_v12, %v14749_v15  ;;  %v3472_v19 = vsel %vm366_vm0, %v3471_v8, %v14754_v44  ;;  %v10094_v36 = vunpack.i.h.bf16 %v14745_v55 }
 0x54a   : > { %20730 = vst [vmem:[#allocation8_spill] sm:$0xff] %v14754_v44  ;;  %v4174_v5 = vsel %vm366_vm0, %v4158_v52, %v4173_v16  ;;  %v10093_v24 = vunpack.i.l.bf16 %v14745_v55  ;;  %v4172_v48 = vsel %vm366_vm0, %v4171_v22, %v4134_v14  ;;  %v10385_v35 = vpack.i.bf16 %v3472_v19, %v3360_v39  ;;  %v20734_v39 = vld [vmem:[#allocation35_spill] sm:$0xff] }
 0x54b   : > { %v10320_v25 = vpack.i.bf16 %v4174_v5, %v4062_v57  ;;  %v20154_v54 = vunpack.i.h.bf16 %v14725_v63  ;;  %v14770_v57 = vpop.permute.xlu0 %10101  ;;  %v10315_v16 = vpack.i.bf16 %v4172_v48, %v4060_v41  ;;  %v3767_v12 = vrot.slane %v14710_v17, 4  ;;  %v20732_v48 = vld [vmem:[#allocation21_spill] sm:$0xff] }
 0x54c   : > { %v3608_v14 = vsel %vm366_vm0, %v10078_v32, %v14304_v58  ;;  %10386 = vrot.lane.b32.xlu2 %v10385_v35, %s11106_s10  ;;  %v3643_v19 = vrot.slane %v14718_v26, 4  ;;  %v20731_v5 = vunpack.i.h.bf16 %v14156_v47  ;;  %v20733_v41 = vrot.slane %v20732_v48, 4  ;;  %v14793_v32 = vpop.permute.xlu2 %10196 }
 0x54d   : > { %10321 = vrot.lane.b32.xlu1 %v10320_v25, %s11104_s8  ;;  %v3728_v25 = vperm.slane %v3720_v4, %v20533_v28  ;;  %10316 = vrot.lane.b32.xlu0 %v10315_v16, %s11106_s10  ;;  %v3655_v55 = vrot.slane %v14741_v20, 4  ;;  %v20735_v58 = vunpack.i.l.bf16 %v14156_v47  ;;  %v3729_v8 = vrot.slane %v10094_v36, 4 }
 0x54e   : > { %v3718_v22 = vsel %vm366_vm0, %v3717_v61, %v20731_v5  ;;  %v5036_v31 = vsel %vm366_vm0, %v20734_v39, %v20733_v41  ;;  %v3617_v52 = vrot.slane %v10093_v24, 4  ;;  %v14797_v61 = vrot.slane %v20154_v54, 4  ;;  %v20737_v5 = vld [vmem:[#allocation45_spill] sm:$0xff] }
 0x54f   : > { %v3606_v35 = vsel %vm366_vm0, %v3605_v21, %v20735_v58  ;;  %v3616_v4 = vperm.slane %v3608_v14, %v20533_v28  ;;  %v5044_v16 = vperm.slane %v5036_v31, %v20534_v60  ;;  %v5059_v48 = vrot.slane %v20737_v5, 4 }
 0x550   : > { %20736 = vst [vmem:[#allocation41_spill] sm:$0xff] %v14797_v61  ;;  %v20738_v41 = vunpack.i.l.bf16 %v14725_v63  ;;  %v20740_v47 = vunpack.i.h.bf16 %v14705_v34  ;;  %v20741_v58 = vunpack.i.l.bf16 %v14705_v34  ;;  %v14815_v54 = vperm.slane %v3718_v22, %v20533_v28  ;;  %v20748_v34 = vld [vmem:[#allocation5_spill] sm:$0xff] }
 0x551   : > { %v3765_v14 = vrot.slane %v3728_v25, 4  ;;  %v14818_v31 = vperm.slane %v3606_v35, %v20533_v28  ;;  %v14821_v5 = vsel %vm366_vm0, %v3728_v25, %v3767_v12  ;;  %v3653_v61 = vrot.slane %v3616_v4, 4  ;;  %v20746_v12 = vld [vmem:[#allocation28_spill] sm:$0xff] }
 0x552   : > { %v14804_v39 = vrot.slane %v20738_v41, 4  ;;  %v14808_v21 = vrot.slane %v20740_v47, 4  ;;  %v14812_v26 = vrot.slane %v20741_v58, 4  ;;  %20742 = vst [vmem:[#allocation35_spill] sm:$0xff] %v14815_v54  ;;  %v20743_v41 = vld [vmem:[#allocation26_spill] sm:$0xff]  ;;  %v20744_v47 = vunpack.i.h.bf16 %v14242_v43 }
 0x553   : > { %v5060_v63 = vsel %vm366_vm0, %v20743_v41, %v5059_v48  ;;  %v20745_v58 = vunpack.i.l.bf16 %v14242_v43  ;;  %v14833_v35 = vsel %vm366_vm0, %v3616_v4, %v3655_v55  ;;  %v20747_v25 = vrot.slane %v20746_v12, 4 }
 0x554   : > { %20739 = vst [vmem:[#allocation21_spill] sm:$0xff] %v14804_v39  ;;  %v3730_v44 = vsel %vm366_vm0, %v3729_v8, %v20744_v47  ;;  %v5068_v22 = vperm.slane %v5060_v63, %v20534_v60  ;;  %v5087_v39 = vrot.slane %v5044_v16, 4  ;;  %v5171_v41 = vrot.slane %v14082_v49, 4  ;;  %v20752_v49 = vld [vmem:[#allocation20_spill] sm:$0xff] }
 0x555   : > { %v3618_v15 = vsel %vm366_vm0, %v3617_v52, %v20745_v58  ;;  %v5148_v48 = vsel %vm366_vm0, %v20748_v34, %v20747_v25  ;;  %v20749_v63 = vrot.slane %v14678_v56, 4  ;;  %v14848_v4 = vperm.slane %v3730_v44, %v20533_v28  ;;  %v14853_v34 = vpop.permute.xlu0 %10121 }
 0x556   : > { %v5088_v43 = vsel %vm366_vm0, %v5068_v22, %v5087_v39  ;;  %v5156_v52 = vperm.slane %v5148_v48, %v20534_v60  ;;  %v5085_v47 = vrot.slane %v5068_v22, 4  ;;  %v14851_v58 = vperm.slane %v3618_v15, %v20533_v28 }
 0x557   : > { %v3756_v55 = vsel %vm366_vm0, %v14815_v54, %v20749_v63  ;;  %20750 = vst [vmem:[#allocation45_spill] sm:$0xff] %v14848_v4  ;;  %v5172_v12 = vsel %vm366_vm0, %v20752_v49, %v5171_v41  ;;  %v14859_v39 = vsel %vm366_vm0, %v3765_v14, %v14710_v17  ;;  %v3644_v15 = vsel %vm366_vm0, %v14818_v31, %v3643_v19  ;;  %v14872_v14 = vpop.permute.xlu2 %10211 }
 0x558   : > { %20751 = vst [vmem:[#allocation26_spill] sm:$0xff] %v14851_v58  ;;  %v5180_v22 = vperm.slane %v5172_v12, %v20534_v60  ;;  %v5199_v25 = vrot.slane %v5156_v52, 4  ;;  %v5086_v48 = vsel %vm366_vm0, %v5085_v47, %v5044_v16  ;;  %v3732_v63 = vsel %vm366_vm0, %v10094_v36, %v14379_v40  ;;  %v10107_v36 = vpop.permute.xlu1 %10106 }
 0x559   : > { %v3620_v41 = vsel %vm366_vm0, %v10093_v24, %v14383_v29  ;;  %v10124_v49 = vunpack.i.h.bf16 %v14853_v34  ;;  %v14877_v47 = vsel %vm366_vm0, %v3653_v61, %v14741_v20  ;;  %v3779_v19 = vrot.slane %v14848_v4, 4 }
 0x55a   : > { %v5200_v12 = vsel %vm366_vm0, %v5180_v22, %v5199_v25  ;;  %v5197_v16 = vrot.slane %v5180_v22, 4  ;;  %v3667_v40 = vrot.slane %v14851_v58, 4  ;;  %v14886_v22 = vperm.slane %v3732_v63, %v20533_v28 }
 0x55b   : > { %v10335_v8 = vpack.i.bf16 %v5200_v12, %v5088_v43  ;;  %v14889_v20 = vperm.slane %v3620_v41, %v20533_v28  ;;  %v10214_v61 = vunpack.i.h.bf16 %v14872_v14  ;;  %v4419_v43 = vrot.slane %v10124_v49, 4 }
 0x55c   : > { %v5198_v17 = vsel %vm366_vm0, %v5197_v16, %v5156_v52  ;;  %v20753_v12 = vunpack.i.l.bf16 %v14853_v34  ;;  %v10213_v24 = vunpack.i.l.bf16 %v14872_v14  ;;  %v14897_v44 = vperm.slane %v3644_v15, %v20534_v60 }
 0x55d   : > { %10336 = vrot.lane.b32.xlu1 %v10335_v8, %s11105_s9  ;;  %v10330_v25 = vpack.i.bf16 %v5198_v17, %v5086_v48  ;;  %v10109_v52 = vunpack.i.h.bf16 %v10107_v36  ;;  %v3668_v63 = vsel %vm366_vm0, %v14668_v18, %v3667_v40  ;;  %v14903_v41 = vperm.slane %v3756_v55, %v20534_v60 }
 0x55e   : > { %v4307_v29 = vrot.slane %v20753_v12, 4  ;;  %v3780_v8 = vsel %vm366_vm0, %v14657_v51, %v3779_v19  ;;  %v10108_v48 = vunpack.i.l.bf16 %v10107_v36  ;;  %v14908_v17 = vperm.slane %v3668_v63, %v20534_v60  ;;  %v10137_v63 = vpop.permute.xlu0 %10136 }
 0x55f   : > { %10331 = vrot.lane.b32.xlu0 %v10330_v25, %s11108_s12  ;;  %v3695_v14 = vrot.slane %v14897_v44, 4  ;;  %v14912_v15 = vperm.slane %v3780_v8, %v20534_v60  ;;  %v3807_v16 = vrot.slane %v14903_v41, 4  ;;  %v5093_v25 = vrot.slane %v14289_v6, 4 }
 0x560   : > { %v5205_v40 = vrot.slane %v14353_v9, 4  ;;  %v5091_v55 = vrot.slane %v14315_v11, 4  ;;  %v5477_v12 = vrot.slane %v10214_v61, 4  ;;  %v5365_v4 = vrot.slane %v10213_v24, 4 }
 0x561   : > { %v3696_v19 = vsel %vm366_vm0, %v14908_v17, %v3695_v14  ;;  %v5203_v36 = vrot.slane %v14349_v53, 4  ;;  %v3808_v8 = vsel %vm366_vm0, %v14912_v15, %v3807_v16  ;;  %v5094_v51 = vsel %vm366_vm0, %v5093_v25, %v14251_v0  ;;  %v14936_v0 = vpop.permute.xlu1 %10111 }
 0x562   : > { %v5206_v6 = vsel %vm366_vm0, %v5205_v40, %v14324_v7  ;;  %v5092_v11 = vsel %vm366_vm0, %v14281_v27, %v5091_v55  ;;  %v5475_v9 = vrot.slane %v10109_v52, 4  ;;  %v10405_v54 = vpack.i.bf16 %v3808_v8, %v3696_v19 }
 0x563   : > { %v10350_v56 = vpack.i.bf16 %v5206_v6, %v5094_v51  ;;  %v5204_v14 = vsel %vm366_vm0, %v14293_v50, %v5203_v36  ;;  %v20754_v53 = vunpack.i.h.bf16 %v14793_v32  ;;  %v20168_v16 = vunpack.i.l.bf16 %v14770_v57 }
 0x564   : > { %v5363_v58 = vrot.slane %v10108_v48, 4  ;;  %v10345_v25 = vpack.i.bf16 %v5204_v14, %v5092_v11  ;;  %v20755_v7 = vunpack.i.l.bf16 %v14793_v32  ;;  %v20756_v27 = vunpack.i.h.bf16 %v14770_v57  ;;  %10406 = vrot.lane.b32.xlu2 %v10405_v54, %s11105_s9 }
 0x565   : > { %v14933_v18 = vrot.slane %v20754_v53, 4  ;;  %v3791_v50 = vrot.slane %v14886_v22, 4  ;;  %v10139_v55 = vunpack.i.h.bf16 %v10137_v63  ;;  %10351 = vrot.lane.b32.xlu1 %v10350_v56, %s11106_s10  ;;  %v3679_v19 = vrot.slane %v14889_v20, 4 }
 0x566   : > { %v14940_v40 = vrot.slane %v20755_v7, 4  ;;  %v14944_v51 = vrot.slane %v20756_v27, 4  ;;  %v4418_v36 = vsel %vm366_vm0, %v14476_v33, %v10124_v49  ;;  %v20757_v8 = vunpack.i.h.bf16 %v14399_v45 }
 0x567   : > { %v20758_v11 = vunpack.i.l.bf16 %v14853_v34  ;;  %10346 = vrot.lane.b32.xlu0 %v10345_v25, %s11103_s30  ;;  %v20759_v54 = vunpack.i.l.bf16 %v14399_v45  ;;  %v5476_v53 = vsel %vm366_vm0, %v5475_v9, %v10214_v61  ;;  %v5478_v7 = vsel %vm366_vm0, %v10109_v52, %v5477_v12 }
 0x568   : > { %v4420_v6 = vsel %vm366_vm0, %v20757_v8, %v4419_v43  ;;  %v5366_v33 = vsel %vm366_vm0, %v10108_v48, %v5365_v4  ;;  %v14968_v49 = vrot.slane %v20168_v16, 4  ;;  %v20760_v34 = vrot.slane %v14665_v62, 4  ;;  %v14986_v48 = vpop.permute.xlu2 %10231  ;;  %v20777_v16 = vld [vmem:[#allocation36_spill] sm:$0xff] }
 0x569   : > { %v4306_v14 = vsel %vm366_vm0, %v14492_v30, %v20758_v11  ;;  %v4308_v56 = vsel %vm366_vm0, %v20759_v54, %v4307_v29  ;;  %v5364_v45 = vsel %vm366_vm0, %v5363_v58, %v10213_v24  ;;  %v10138_v43 = vunpack.i.l.bf16 %v10137_v63  ;;  %20761 = vst [vmem:[#allocation28_spill] sm:$0xff] %v14986_v48 }
 0x56a   : > { %v14974_v30 = vsel %vm366_vm0, %v20760_v34, %v14886_v22  ;;  %v14978_v29 = vperm.slane %v4418_v36, %v20533_v28  ;;  %v14981_v61 = vperm.slane %v4420_v6, %v20533_v28  ;;  %v14984_v4 = vperm.slane %v4306_v14, %v20533_v28 }
 0x56b   : > { %v4431_v52 = vrot.slane %v10139_v55, 4  ;;  %v14989_v12 = vperm.slane %v4308_v56, %v20533_v28  ;;  %v14992_v22 = vperm.slane %v5476_v53, %v20533_v28  ;;  %v14995_v58 = vperm.slane %v5478_v7, %v20533_v28  ;;  %v10157_v56 = vpop.permute.xlu0 %10156  ;;  %v15028_v53 = vpop.permute.xlu1 %10126 }
 0x56c   : > { %v14998_v24 = vperm.slane %v5366_v33, %v20533_v28  ;;  %v3792_v63 = vsel %vm366_vm0, %v14665_v62, %v3791_v50  ;;  %v20765_v9 = vrot.slane %v14702_v2, 4  ;;  %v3680_v27 = vsel %vm366_vm0, %v14702_v2, %v3679_v19 }
 0x56d   : > { %20762 = vst [vmem:[#allocation5_spill] sm:$0xff] %v14992_v22  ;;  %v15011_v36 = vperm.slane %v5364_v45, %v20533_v28  ;;  %v4430_v8 = vsel %vm366_vm0, %v14554_v59, %v10139_v55  ;;  %v4318_v6 = vsel %vm366_vm0, %v14564_v1, %v10138_v43  ;;  %v4319_v11 = vrot.slane %v10138_v43, 4 }
 0x56e   : > { %20763 = vst [vmem:[#allocation20_spill] sm:$0xff] %v14995_v58  ;;  %v15006_v25 = vsel %vm366_vm0, %v20765_v9, %v14889_v20  ;;  %v20167_v62 = vunpack.i.h.bf16 %v14986_v48  ;;  %v20767_v2 = vunpack.i.h.bf16 %v14484_v37  ;;  %v15032_v33 = vperm.slane %v4430_v8, %v20533_v28 }
 0x56f   : > { %20764 = vst [vmem:[#allocation54_spill] sm:$0xff] %v14998_v24  ;;  %v15035_v34 = vperm.slane %v4318_v6, %v20533_v28  ;;  %v20170_v45 = vunpack.i.l.bf16 %v14986_v48  ;;  %v15049_v55 = vperm.slane %v3680_v27, %v20534_v60  ;;  %v10159_v8 = vunpack.i.h.bf16 %v10157_v56 }
 0x570   : > { %20766 = vst [vmem:[#allocation55_spill] sm:$0xff] %v15011_v36  ;;  %v4432_v19 = vsel %vm366_vm0, %v20767_v2, %v4431_v52  ;;  %v20769_v52 = vunpack.i.l.bf16 %v14484_v37  ;;  %v15046_v2 = vrot.slane %v20167_v62, 4  ;;  %v10158_v1 = vunpack.i.l.bf16 %v10157_v56 }
 0x571   : > { %v15039_v43 = vperm.slane %v4432_v19, %v20533_v28  ;;  %20771 = vst [vmem:[#allocation58_spill] sm:$0xff] %v15049_v55  ;;  %v20178_v6 = vunpack.i.l.bf16 %v15028_v53  ;;  %v15054_v59 = vperm.slane %v14833_v35, %v20534_v60  ;;  %v3701_v19 = vrot.slane %v15049_v55, 4 }
 0x572   : > { %v4320_v9 = vsel %vm366_vm0, %v20769_v52, %v4319_v11  ;;  %20770 = vst [vmem:[#allocation57_spill] sm:$0xff] %v15046_v2  ;;  %v15059_v37 = vperm.slane %v14821_v5, %v20534_v60  ;;  %v15062_v11 = vperm.slane %v3792_v63, %v20534_v60  ;;  %v3351_v27 = vrot.slane %v14638_v42, 4  ;;  %v20778_v5 = vld [vmem:[#allocation52_spill] sm:$0xff] }
 0x573   : > { %20768 = vst [vmem:[#allocation56_spill] sm:$0xff] %v15039_v43  ;;  %v3463_v52 = vrot.slane %v14642_v3, 4  ;;  %v20775_v56 = vrot.slane %v14499_v46, 4  ;;  %v20776_v35 = vrot.slane %v14533_v23, 4  ;;  %v20779_v14 = vrot.slane %v20778_v5, 4 }
 0x574   : > { %20772 = vst [vmem:[#allocation59_spill] sm:$0xff] %v15054_v59  ;;  %v3702_v42 = vsel %vm366_vm0, %v3701_v19, %v15054_v59  ;;  %v3813_v3 = vrot.slane %v15062_v11, 4  ;;  %v3352_v46 = vsel %vm366_vm0, %v3351_v27, %v14624_v10  ;;  %v10113_v54 = vunpack.i.l.bf16 %v14936_v0 }
 0x575   : > { %20773 = vst [vmem:[#allocation60_spill] sm:$0xff] %v15059_v37  ;;  %v3300_v62 = vsel %vm366_vm0, %v20775_v56, %v14428_v13  ;;  %v3324_v7 = vsel %vm366_vm0, %v20776_v35, %v14584_v38  ;;  %v3412_v63 = vsel %vm366_vm0, %v20779_v14, %v20777_v16  ;;  %v20781_v56 = vld [vmem:[#allocation7_spill] sm:$0xff]  ;;  %v20784_v16 = vld [vmem:[#allocation53_spill] sm:$0xff]  ;;  %v20805_v55 = vunpack.i.l.bf16 %v15028_v53 }
 0x576   : > { %20774 = vst [vmem:[#allocation61_spill] sm:$0xff] %v15062_v11  ;;  %v15084_v13 = vperm.slane %v3300_v62, %v20534_v60  ;;  %v3464_v23 = vsel %vm366_vm0, %v3463_v52, %v20781_v56  ;;  %v15089_v38 = vperm.slane %v3324_v7, %v20534_v60  ;;  %v15092_v35 = vperm.slane %v3412_v63, %v20534_v60  ;;  %v20785_v14 = vld [vmem:[#allocation39_spill] sm:$0xff]  ;;  %v20803_v11 = vld [vmem:[#allocation32_spill] sm:$0xff] }
 0x577   : > { %v20786_v19 = vrot.slane %v20785_v14, 4  ;;  %v3814_v10 = vsel %vm366_vm0, %v3813_v3, %v15059_v37  ;;  %v10365_v27 = vpack.i.bf16 %v3464_v23, %v3352_v46  ;;  %v15106_v52 = vperm.slane %v4320_v9, %v20533_v28  ;;  %v15114_v23 = vpop.permute.xlu1 %10141 }
 0x578   : > { %20780 = vst [vmem:[#allocation36_spill] sm:$0xff] %v15084_v13  ;;  %v3349_v62 = vrot.slane %v15084_v13, 4  ;;  %v10420_v63 = vpack.i.bf16 %v3814_v10, %v3702_v42  ;;  %v3461_v56 = vrot.slane %v15092_v35, 4  ;;  %v4367_v14 = vrot.slane %v15035_v34, 4  ;;  %v20790_v13 = vld [vmem:[#allocation47_spill] sm:$0xff] }
 0x579   : > { %20782 = vst [vmem:[#allocation52_spill] sm:$0xff] %v15089_v38  ;;  %v3436_v5 = vsel %vm366_vm0, %v20786_v19, %v20784_v16  ;;  %v4761_v16 = vrot.slane %v10159_v8, 4  ;;  %v10247_v19 = vpop.permute.xlu2 %10246  ;;  %v10129_v3 = vunpack.i.h.bf16 %v15028_v53  ;;  %10366 = vrot.lane.b32.xlu1 %v10365_v27, %s11108_s12  ;;  %v15118_v9 = vrot.slane %v20170_v45, 4  ;;  %v20789_v27 = vld [vmem:[#allocation38_spill] sm:$0xff] }
 0x57a   : > { %20783 = vst [vmem:[#allocation7_spill] sm:$0xff] %v15092_v35  ;;  %v15102_v50 = vperm.slane %v3436_v5, %v20534_v60  ;;  %v3350_v46 = vsel %vm366_vm0, %v15089_v38, %v3349_v62  ;;  %v10114_v42 = vunpack.i.h.bf16 %v14936_v0  ;;  %v4649_v5 = vrot.slane %v10158_v1, 4  ;;  %10421 = vrot.lane.b32.xlu2 %v10420_v63, %s11106_s10 }
 0x57b   : > { %20788 = vst [vmem:[#allocation39_spill] sm:$0xff] %v15118_v9  ;;  %v4760_v20 = vsel %vm366_vm0, %v20789_v27, %v10159_v8  ;;  %v4293_v62 = vrot.slane %v20178_v6, 4  ;;  %v4648_v45 = vsel %vm366_vm0, %v20790_v13, %v10158_v1  ;;  %v10249_v35 = vunpack.i.h.bf16 %v10247_v19  ;;  %v15142_v27 = vpop.permute.xlu0 %10171 }
 0x57c   : > { %20787 = vst [vmem:[#allocation53_spill] sm:$0xff] %v15102_v50  ;;  %v3462_v10 = vsel %vm366_vm0, %v15102_v50, %v3461_v56  ;;  %v10144_v38 = vunpack.i.h.bf16 %v15114_v23  ;;  %v10143_v63 = vunpack.i.l.bf16 %v15114_v23  ;;  %v20791_v56 = vld [vmem:[#allocation11_spill] sm:$0xff]  ;;  %v10248_v58 = vunpack.i.l.bf16 %v10247_v19 }
 0x57d   : > { %v10360_v7 = vpack.i.bf16 %v3462_v10, %v3350_v46  ;;  %v20792_v50 = vunpack.i.h.bf16 %v20791_v56  ;;  %v4405_v8 = vrot.slane %v10129_v3, 4  ;;  %v5817_v10 = vrot.slane %v10114_v42, 4 }
 0x57e   : > { %v20793_v1 = vunpack.i.l.bf16 %v20791_v56  ;;  %v4330_v23 = vsel %vm366_vm0, %v14812_v26, %v10143_v63  ;;  %v5705_v48 = vrot.slane %v10113_v54, 4  ;;  %v15147_v6 = vperm.slane %v4760_v20, %v20533_v28  ;;  %v20796_v26 = vld [vmem:[#allocation17_spill] sm:$0xff] }
 0x57f   : > { %v4762_v0 = vsel %vm366_vm0, %v20792_v50, %v4761_v16  ;;  %10361 = vrot.lane.b32.xlu0 %v10360_v7, %s11109_s13  ;;  %v15150_v50 = vperm.slane %v4648_v45, %v20533_v28  ;;  %v20794_v7 = vld [vmem:[#allocation33_spill] sm:$0xff]  ;;  %v3318_v46 = vperm.slane %v20796_v26, %v20534_v60  ;;  %v20798_v26 = vld [vmem:[#allocation44_spill] sm:$0xff]  ;;  %v4443_v37 = vrot.slane %v10144_v38, 4 }
 0x580   : > { %v4650_v13 = vsel %vm366_vm0, %v20793_v1, %v4649_v5  ;;  %v20795_v16 = vunpack.i.l.bf16 %v20794_v7  ;;  %v15156_v56 = vperm.slane %v4762_v0, %v20533_v28  ;;  %v5819_v5 = vrot.slane %v10249_v35, 4 }
 0x581   : > { %v4442_v1 = vsel %vm366_vm0, %v14808_v21, %v10144_v38  ;;  %v15163_v20 = vperm.slane %v4650_v13, %v20533_v28  ;;  %v5706_v45 = vsel %vm366_vm0, %v5705_v48, %v10248_v58  ;;  %v20797_v24 = vunpack.i.h.bf16 %v20794_v7  ;;  %v20799_v7 = vld [vmem:[#allocation23_spill] sm:$0xff] }
 0x582   : > { %v4294_v19 = vsel %vm366_vm0, %v4293_v62, %v20795_v16  ;;  %v15170_v62 = vperm.slane %v4330_v23, %v20533_v28  ;;  %v5707_v0 = vrot.slane %v10248_v58, 4  ;;  %v5818_v16 = vsel %vm366_vm0, %v5817_v10, %v10249_v35 }
 0x583   : > { %v4406_v2 = vsel %vm366_vm0, %v4405_v8, %v20797_v24  ;;  %v15174_v21 = vperm.slane %v4294_v19, %v20533_v28  ;;  %v3342_v9 = vperm.slane %v20798_v26, %v20534_v60  ;;  %v15179_v13 = vperm.slane %v4442_v1, %v20533_v28  ;;  %v20800_v24 = vld [vmem:[#allocation43_spill] sm:$0xff] }
 0x584   : > { %v3357_v48 = vrot.slane %v3318_v46, 4  ;;  %v3430_v22 = vperm.slane %v20799_v7, %v20534_v60  ;;  %v3454_v8 = vperm.slane %v20800_v24, %v20534_v60  ;;  %v15186_v58 = vperm.slane %v5706_v45, %v20533_v28  ;;  %v20804_v45 = vld [vmem:[#allocation27_spill] sm:$0xff] }
 0x585   : > { %v5820_v35 = vsel %vm366_vm0, %v10114_v42, %v5819_v5  ;;  %v4412_v10 = vperm.slane %v4406_v2, %v20533_v28  ;;  %v3355_v23 = vrot.slane %v3342_v9, 4  ;;  %v4368_v19 = vsel %vm366_vm0, %v15170_v62, %v4367_v14 }
 0x586   : > { %20801 = vst [vmem:[#allocation38_spill] sm:$0xff] %v15186_v58  ;;  %v3358_v1 = vsel %vm366_vm0, %v3342_v9, %v3357_v48  ;;  %v3469_v26 = vrot.slane %v3430_v22, 4  ;;  %v3467_v36 = vrot.slane %v3454_v8, 4  ;;  %v15194_v7 = vperm.slane %v5818_v16, %v20533_v28 }
 0x587   : > { %v4408_v24 = vsel %vm366_vm0, %v10129_v3, %v20803_v11  ;;  %v4296_v42 = vsel %vm366_vm0, %v20805_v55, %v20804_v45  ;;  %v3356_v2 = vsel %vm366_vm0, %v3355_v23, %v3318_v46  ;;  %v4343_v5 = vrot.slane %v15174_v21, 4  ;;  %v15213_v55 = vpop.permute.xlu0 %10186  ;;  %v15215_v46 = vpop.permute.xlu1 %10161 }
 0x588   : > { %20802 = vst [vmem:[#allocation47_spill] sm:$0xff] %v15194_v7  ;;  %v20806_v14 = vrot.slane %v15032_v33, 4  ;;  %v3470_v16 = vsel %vm366_vm0, %v3454_v8, %v3469_v26  ;;  %v3468_v48 = vsel %vm366_vm0, %v3467_v36, %v3430_v22  ;;  %v15211_v11 = vperm.slane %v4368_v19, %v20534_v60  ;;  %v20820_v22 = vld [vmem:[#allocation41_spill] sm:$0xff] }
 0x589   : > { %v10380_v53 = vpack.i.bf16 %v3470_v16, %v3358_v1  ;;  %v10375_v3 = vpack.i.bf16 %v3468_v48, %v3356_v2  ;;  %v5708_v23 = vsel %vm366_vm0, %v10113_v54, %v5707_v0  ;;  %v15219_v45 = vperm.slane %v4408_v24, %v20533_v28  ;;  %v20811_v24 = vld [vmem:[#allocation22_spill] sm:$0xff] }
 0x58a   : > { %v4480_v9 = vsel %vm366_vm0, %v15179_v13, %v20806_v14  ;;  %20807 = vst [vmem:[#allocation11_spill] sm:$0xff] %v15211_v11  ;;  %v4455_v14 = vrot.slane %v4412_v10, 4  ;;  %v4331_v59 = vrot.slane %v10143_v63, 4  ;;  %v15231_v0 = vperm.slane %v5820_v35, %v20533_v28 }
 0x58b   : > { %v15225_v38 = vperm.slane %v4480_v9, %v20534_v60  ;;  %10381 = vrot.lane.b32.xlu1 %v10380_v53, %s11103_s30  ;;  %10376 = vrot.lane.b32.xlu0 %v10375_v3, %s11107_s11  ;;  %v15234_v63 = vperm.slane %v4296_v42, %v20533_v28  ;;  %v4344_v19 = vsel %vm366_vm0, %v14984_v4, %v4343_v5  ;;  %v20812_v2 = vunpack.i.h.bf16 %v20811_v24 }
 0x58c   : > { %20809 = vst [vmem:[#allocation17_spill] sm:$0xff] %v15231_v0  ;;  %v15239_v1 = vperm.slane %v5708_v23, %v20533_v28  ;;  %v4393_v16 = vrot.slane %v15211_v11, 4  ;;  %v20813_v42 = vrot.slane %v14981_v61, 4  ;;  %v20814_v5 = vunpack.i.l.bf16 %v20811_v24  ;;  %v20828_v11 = vld [vmem:[#allocation30_spill] sm:$0xff] }
 0x58d   : > { %20808 = vst [vmem:[#allocation33_spill] sm:$0xff] %v15225_v38  ;;  %v4444_v9 = vsel %vm366_vm0, %v20812_v2, %v4443_v37  ;;  %v4456_v3 = vsel %vm366_vm0, %v14978_v29, %v4455_v14  ;;  %v10174_v23 = vunpack.i.h.bf16 %v15142_v27  ;;  %v10173_v37 = vunpack.i.l.bf16 %v15142_v27 }
 0x58e   : > { %20810 = vst [vmem:[#allocation44_spill] sm:$0xff] %v15239_v1  ;;  %v4466_v48 = vsel %vm366_vm0, %v20813_v42, %v15219_v45  ;;  %v4332_v53 = vsel %vm366_vm0, %v20814_v5, %v4331_v59  ;;  %v15259_v2 = vperm.slane %v4344_v19, %v20534_v60  ;;  %v4505_v35 = vrot.slane %v15225_v38, 4 }
 0x58f   : > { %v20816_v42 = vrot.slane %v14989_v12, 4  ;;  %v15268_v59 = vperm.slane %v4444_v9, %v20533_v28  ;;  %v3693_v14 = vrot.slane %v14908_v17, 4  ;;  %v15272_v5 = vperm.slane %v4332_v53, %v20533_v28  ;;  %v20822_v53 = vld [vmem:[#allocation16_spill] sm:$0xff] }
 0x590   : > { %20815 = vst [vmem:[#allocation23_spill] sm:$0xff] %v15259_v2  ;;  %v4394_v19 = vsel %vm366_vm0, %v4393_v16, %v15259_v2  ;;  %v15278_v26 = vperm.slane %v4456_v3, %v20534_v60  ;;  %v20819_v36 = vrot.slane %v14978_v29, 4  ;;  %v4467_v9 = vrot.slane %v15219_v45, 4  ;;  %v20821_v3 = vld [vmem:[#allocation21_spill] sm:$0xff]  ;;  %v15301_v45 = vpop.permute.xlu1 %10176 }
 0x591   : > { %v4354_v24 = vsel %vm366_vm0, %v20816_v42, %v15234_v63  ;;  %20817 = vst [vmem:[#allocation43_spill] sm:$0xff] %v15268_v59  ;;  %v15287_v17 = vperm.slane %v4466_v48, %v20534_v60  ;;  %v4772_v16 = vsel %vm366_vm0, %v20820_v22, %v10174_v23  ;;  %v4660_v54 = vsel %vm366_vm0, %v20821_v3, %v10173_v37 }
 0x592   : > { %20818 = vst [vmem:[#allocation32_spill] sm:$0xff] %v15278_v26  ;;  %v15283_v42 = vsel %vm366_vm0, %v20819_v36, %v4412_v10  ;;  %v15291_v8 = vperm.slane %v4354_v24, %v20534_v60  ;;  %v4506_v29 = vsel %vm366_vm0, %v4505_v35, %v15278_v26  ;;  %v15299_v10 = vpop.permute.xlu0 %10201  ;;  %v3694_v48 = vsel %vm366_vm0, %v3693_v14, %v14897_v44  ;;  %v20824_v35 = vld [vmem:[#allocation8_spill] sm:$0xff] }
 0x593   : > { %v10435_v36 = vpack.i.bf16 %v4506_v29, %v4394_v19  ;;  %v3805_v24 = vrot.slane %v14912_v15, 4  ;;  %v3361_v27 = vrot.slane %v20822_v53, 4  ;;  %v4489_v22 = vrot.slane %v15268_v59, 4  ;;  %v20826_v15 = vld [vmem:[#allocation40_spill] sm:$0xff] }
 0x594   : > { %v4377_v0 = vrot.slane %v15272_v5, 4  ;;  %v20823_v3 = vunpack.i.h.bf16 %v15215_v46  ;;  %v3473_v7 = vrot.slane %v20824_v35, 4  ;;  %v20825_v58 = vunpack.i.l.bf16 %v15215_v46 }
 0x595   : > { %10436 = vrot.lane.b32.xlu2 %v10435_v36, %s11108_s12  ;;  %v3806_v44 = vsel %vm366_vm0, %v3805_v24, %v14903_v41  ;;  %v3362_v14 = vsel %vm366_vm0, %v20826_v15, %v3361_v27  ;;  %v20199_v19 = vunpack.i.h.bf16 %v15301_v45  ;;  %v4773_v53 = vrot.slane %v10174_v23, 4  ;;  %v20830_v24 = vld [vmem:[#allocation24_spill] sm:$0xff] }
 0x596   : > { %v4747_v1 = vrot.slane %v20823_v3, 4  ;;  %v4635_v38 = vrot.slane %v20825_v58, 4  ;;  %v15321_v29 = vperm.slane %v4772_v16, %v20533_v28  ;;  %v10400_v3 = vpack.i.bf16 %v3806_v44, %v3694_v48  ;;  %v20833_v48 = vld [vmem:[#allocation34_spill] sm:$0xff] }
 0x597   : > { %v3474_v35 = vsel %vm366_vm0, %v20828_v11, %v3473_v7  ;;  %v4661_v26 = vrot.slane %v10173_v37, 4  ;;  %v15326_v58 = vperm.slane %v4660_v54, %v20533_v28  ;;  %v10178_v41 = vunpack.i.l.bf16 %v15301_v45 }
 0x598   : > { %20827 = vst [vmem:[#allocation27_spill] sm:$0xff] %v15321_v29  ;;  %v10390_v36 = vpack.i.bf16 %v3474_v35, %v3362_v14  ;;  %v15331_v27 = vsel %vm366_vm0, %v14981_v61, %v4467_v9  ;;  %v20831_v23 = vunpack.i.h.bf16 %v20830_v24  ;;  %10401 = vrot.lane.b32.xlu1 %v10400_v3, %s11108_s12  ;;  %v4378_v7 = vsel %vm366_vm0, %v4377_v0, %v15106_v52 }
 0x599   : > { %20829 = vst [vmem:[#allocation22_spill] sm:$0xff] %v15326_v58  ;;  %v4490_v11 = vsel %vm366_vm0, %v4489_v22, %v15039_v43  ;;  %v20832_v54 = vunpack.i.l.bf16 %v20830_v24  ;;  %v4784_v61 = vsel %vm366_vm0, %v14944_v51, %v20199_v19  ;;  %v15352_v9 = vperm.slane %v4378_v7, %v20534_v60 }
 0x59a   : > { %v4748_v16 = vsel %vm366_vm0, %v4747_v1, %v20831_v23  ;;  %10391 = vrot.lane.b32.xlu0 %v10390_v36, %s11104_s8  ;;  %v4672_v1 = vsel %vm366_vm0, %v14968_v49, %v10178_v41  ;;  %v4355_v0 = vrot.slane %v15234_v63, 4  ;;  %v20834_v22 = vunpack.i.h.bf16 %v20833_v48  ;;  %v15380_v23 = vpop.permute.xlu0 %10216 }
 0x59b   : > { %v4636_v37 = vsel %vm366_vm0, %v4635_v38, %v20832_v54  ;;  %v4821_v38 = vrot.slane %v15321_v29, 4  ;;  %v15360_v15 = vperm.slane %v4672_v1, %v20533_v28  ;;  %v20835_v14 = vunpack.i.l.bf16 %v20833_v48  ;;  %v15393_v54 = vpop.permute.xlu1 %10191  ;;  %v20836_v48 = vld [vmem:[#allocation31_spill] sm:$0xff] }
 0x59c   : > { %v4774_v44 = vsel %vm366_vm0, %v20834_v22, %v4773_v53  ;;  %v4709_v49 = vrot.slane %v15326_v58, 4  ;;  %v4399_v3 = vrot.slane %v15291_v8, 4  ;;  %v15368_v35 = vperm.slane %v4490_v11, %v20534_v60 }
 0x59d   : > { %v4662_v51 = vsel %vm366_vm0, %v20835_v14, %v4661_v26  ;;  %v10189_v63 = vunpack.i.h.bf16 %v15213_v55  ;;  %v15372_v53 = vperm.slane %v4748_v16, %v20533_v28  ;;  %v15375_v36 = vperm.slane %v4636_v37, %v20533_v28 }
 0x59e   : > { %v15378_v24 = vperm.slane %v4784_v61, %v20533_v28  ;;  %v4400_v26 = vsel %vm366_vm0, %v15352_v9, %v4399_v3  ;;  %v4511_v7 = vrot.slane %v15287_v17, 4  ;;  %v15387_v11 = vperm.slane %v14877_v47, %v20534_v60  ;;  %v20839_v3 = vld [vmem:[#allocation26_spill] sm:$0xff] }
 0x59f   : > { %v15391_v16 = vperm.slane %v15006_v25, %v20534_v60  ;;  %v4710_v37 = vsel %vm366_vm0, %v15360_v15, %v4709_v49  ;;  %v15399_v61 = vperm.slane %v14859_v39, %v20534_v60  ;;  %v15403_v1 = vperm.slane %v14974_v30, %v20534_v60  ;;  %v20840_v39 = vld [vmem:[#allocation46_spill] sm:$0xff] }
 0x5a0   : > { %v20837_v47 = vrot.slane %v14818_v31, 4  ;;  %v4512_v25 = vsel %vm366_vm0, %v15368_v35, %v4511_v7  ;;  %v3699_v14 = vrot.slane %v15387_v11, 4  ;;  %v20841_v19 = vrot.slane %v20840_v39, 4 }
 0x5a1   : > { %v10450_v30 = vpack.i.bf16 %v4512_v25, %v4400_v26  ;;  %v3811_v58 = vrot.slane %v15399_v61, 4  ;;  %v20848_v26 = vld [vmem:[#allocation19_spill] sm:$0xff]  ;;  %v10188_v43 = vunpack.i.l.bf16 %v15213_v55 }
 0x5a2   : > { %v3642_v22 = vsel %vm366_vm0, %v20837_v47, %v20836_v48  ;;  %v3666_v29 = vsel %vm366_vm0, %v20841_v19, %v20839_v3  ;;  %v20843_v48 = vld [vmem:[#allocation13_spill] sm:$0xff]  ;;  %v20844_v47 = vld [vmem:[#allocation35_spill] sm:$0xff]  ;;  %v20849_v25 = vrot.slane %v20848_v26, 4 }
 0x5a3   : > { %v15413_v49 = vperm.slane %v3642_v22, %v20534_v60  ;;  %v15421_v31 = vperm.slane %v3666_v29, %v20534_v60  ;;  %v20845_v2 = vrot.slane %v20844_v47, 4  ;;  %v3700_v22 = vsel %vm366_vm0, %v15391_v16, %v3699_v14  ;;  %v20847_v19 = vld [vmem:[#allocation45_spill] sm:$0xff]  ;;  %10451 = vrot.lane.b32.xlu2 %v10450_v30, %s11103_s30 }
 0x5a4   : > { %v3778_v3 = vsel %vm366_vm0, %v20849_v25, %v20847_v19  ;;  %v5441_v29 = vrot.slane %v10189_v63, 4  ;;  %v20851_v19 = vrot.slane %v14984_v4, 4  ;;  %v15454_v30 = vsel %vm366_vm0, %v14989_v12, %v4355_v0 }
 0x5a5   : > { %20838 = vst [vmem:[#allocation41_spill] sm:$0xff] %v15413_v49  ;;  %v3754_v7 = vsel %vm366_vm0, %v20845_v2, %v20843_v48  ;;  %v3691_v59 = vrot.slane %v15413_v49, 4  ;;  %v3812_v2 = vsel %vm366_vm0, %v15403_v1, %v3811_v58  ;;  %v15442_v14 = vperm.slane %v3778_v3, %v20534_v60 }
 0x5a6   : > { %20842 = vst [vmem:[#allocation21_spill] sm:$0xff] %v15421_v31  ;;  %v15431_v39 = vperm.slane %v3754_v7, %v20534_v60  ;;  %v4685_v48 = vrot.slane %v15375_v36, 4  ;;  %v10415_v47 = vpack.i.bf16 %v3812_v2, %v3700_v22  ;;  %v4342_v55 = vsel %vm366_vm0, %v20851_v19, %v15174_v21  ;;  %v15484_v19 = vpop.permute.xlu1 %10206 }
 0x5a7   : > { %20850 = vst [vmem:[#allocation8_spill] sm:$0xff] %v15442_v14  ;;  %v3692_v7 = vsel %vm366_vm0, %v15421_v31, %v3691_v59  ;;  %v15457_v58 = vperm.slane %v4774_v44, %v20533_v28  ;;  %v15460_v25 = vperm.slane %v4710_v37, %v20534_v60  ;;  %v4797_v22 = vrot.slane %v15372_v53, 4  ;;  %v15473_v37 = vpop.permute.xlu0 %10221 }
 0x5a8   : > { %20846 = vst [vmem:[#allocation16_spill] sm:$0xff] %v15431_v39  ;;  %v3803_v26 = vrot.slane %v15431_v39, 4  ;;  %v4822_v59 = vsel %vm366_vm0, %v15378_v24, %v4821_v38  ;;  %v4673_v3 = vrot.slane %v10178_v41, 4  ;;  %10416 = vrot.lane.b32.xlu1 %v10415_v47, %s11103_s30  ;;  %v15469_v12 = vperm.slane %v4662_v51, %v20533_v28 }
 0x5a9   : > { %v5440_v21 = vsel %vm366_vm0, %v14933_v18, %v10189_v63  ;;  %v5329_v0 = vrot.slane %v10188_v43, 4  ;;  %v20852_v2 = vunpack.i.h.bf16 %v14793_v32  ;;  %v5328_v41 = vsel %vm366_vm0, %v14940_v40, %v10188_v43 }
 0x5aa   : > { %v3804_v4 = vsel %vm366_vm0, %v15442_v14, %v3803_v26  ;;  %v20853_v47 = vunpack.i.h.bf16 %v15301_v45  ;;  %v4686_v51 = vsel %vm366_vm0, %v15150_v50, %v4685_v48  ;;  %v4477_v63 = vrot.slane %v15179_v13, 4 }
 0x5ab   : > { %v10395_v44 = vpack.i.bf16 %v3804_v4, %v3692_v7  ;;  %v5442_v38 = vsel %vm366_vm0, %v20852_v2, %v5441_v29  ;;  %v15489_v7 = vperm.slane %v4822_v59, %v20534_v60  ;;  %v4735_v29 = vrot.slane %v15460_v25, 4 }
 0x5ac   : > { %v4785_v26 = vrot.slane %v20853_v47, 4  ;;  %v4365_v40 = vrot.slane %v15170_v62, 4  ;;  %v15495_v43 = vperm.slane %v5440_v21, %v20533_v28  ;;  %v20854_v45 = vunpack.i.l.bf16 %v14770_v57  ;;  %v20856_v21 = vld [vmem:[#allocation15_spill] sm:$0xff] }
 0x5ad   : > { %10396 = vrot.lane.b32.xlu0 %v10395_v44, %s11109_s13  ;;  %v4798_v4 = vsel %vm366_vm0, %v15147_v6, %v4797_v22  ;;  %v15503_v13 = vperm.slane %v5442_v38, %v20533_v28  ;;  %v20855_v59 = vunpack.i.l.bf16 %v14793_v32  ;;  %v15509_v2 = vperm.slane %v5328_v41, %v20533_v28 }
 0x5ae   : > { %v4674_v48 = vsel %vm366_vm0, %v20854_v45, %v4673_v3  ;;  %v15512_v62 = vperm.slane %v4686_v51, %v20534_v60  ;;  %v20857_v47 = vunpack.i.h.bf16 %v15215_v46  ;;  %v20858_v45 = vld [vmem:[#allocation42_spill] sm:$0xff]  ;;  %v20859_v22 = vunpack.i.l.bf16 %v15215_v46 }
 0x5af   : > { %v5330_v44 = vsel %vm366_vm0, %v20855_v59, %v5329_v0  ;;  %v20205_v32 = vunpack.i.l.bf16 %v15299_v10  ;;  %v20860_v0 = vunpack.i.h.bf16 %v14770_v57  ;;  %v15527_v59 = vperm.slane %v4674_v48, %v20533_v28 }
 0x5b0   : > { %v4750_v3 = vsel %vm366_vm0, %v20857_v47, %v20856_v21  ;;  %v4638_v38 = vsel %vm366_vm0, %v20859_v22, %v20858_v45  ;;  %v4736_v51 = vsel %vm366_vm0, %v4735_v29, %v15512_v62  ;;  %v15532_v18 = vperm.slane %v4798_v4, %v20534_v60 }
 0x5b1   : > { %v4786_v41 = vsel %vm366_vm0, %v20860_v0, %v4785_v26  ;;  %v4847_v21 = vrot.slane %v15489_v7, 4  ;;  %v15536_v46 = vperm.slane %v4342_v55, %v20534_v60  ;;  %v4366_v47 = vsel %vm366_vm0, %v4365_v40, %v15035_v34 }
 0x5b2   : > { %v15542_v57 = vperm.slane %v15283_v42, %v20534_v60  ;;  %v4478_v26 = vsel %vm366_vm0, %v4477_v63, %v15032_v33  ;;  %v15549_v48 = vperm.slane %v4366_v47, %v20534_v60  ;;  %v3697_v55 = vrot.slane %v15391_v16, 4 }
 0x5b3   : > { %20861 = vst [vmem:[#allocation40_spill] sm:$0xff] %v15536_v46  ;;  %v4848_v29 = vsel %vm366_vm0, %v4847_v21, %v15532_v18  ;;  %v15552_v4 = vperm.slane %v4478_v26, %v20534_v60  ;;  %v4391_v34 = vrot.slane %v15536_v46, 4  ;;  %v3809_v40 = vrot.slane %v15403_v1, 4  ;;  %v15565_v21 = vpop.permute.xlu0 %10236 }
 0x5b4   : > { %20862 = vst [vmem:[#allocation30_spill] sm:$0xff] %v15542_v57  ;;  %v10470_v45 = vpack.i.bf16 %v4848_v29, %v4736_v51  ;;  %v4503_v42 = vrot.slane %v15542_v57, 4  ;;  %v15559_v33 = vperm.slane %v5330_v44, %v20533_v28  ;;  %v4646_v63 = vperm.slane %v4638_v38, %v20533_v28  ;;  %v15575_v38 = vpop.permute.xlu1 %10226 }
 0x5b5   : > { %20863 = vst [vmem:[#allocation24_spill] sm:$0xff] %v15549_v48  ;;  %v10204_v22 = vunpack.i.h.bf16 %v15299_v10  ;;  %v3698_v0 = vsel %vm366_vm0, %v3697_v55, %v15387_v11  ;;  %v10193_v16 = vunpack.i.l.bf16 %v15393_v54  ;;  %v4392_v51 = vsel %vm366_vm0, %v15549_v48, %v4391_v34  ;;  %v20875_v48 = vld [vmem:[#allocation60_spill] sm:$0xff] }
 0x5b6   : > { %20864 = vst [vmem:[#allocation34_spill] sm:$0xff] %v15552_v4  ;;  %10471 = vrot.lane.b32.xlu2 %v10470_v45, %s11108_s12  ;;  %v4504_v1 = vsel %vm366_vm0, %v15552_v4, %v4503_v42  ;;  %v3810_v44 = vsel %vm366_vm0, %v3809_v40, %v15399_v61  ;;  %v4758_v47 = vperm.slane %v4750_v3, %v20533_v28  ;;  %v5339_v45 = vrot.slane %v20205_v32, 4 }
 0x5b7   : > { %v15579_v11 = vperm.slane %v4786_v41, %v20533_v28  ;;  %v10430_v26 = vpack.i.bf16 %v4504_v1, %v4392_v51  ;;  %v10410_v29 = vpack.i.bf16 %v3810_v44, %v3698_v0  ;;  %v4719_v34 = vrot.slane %v15527_v59, 4  ;;  %v15594_v0 = vpop.permute.xlu2 %10266 }
 0x5b8   : > { %v10194_v42 = vunpack.i.h.bf16 %v15393_v54  ;;  %v20865_v41 = vrot.slane %v15163_v20, 4  ;;  %20866 = vst [vmem:[#allocation31_spill] sm:$0xff] %v15594_v0  ;;  %v5451_v44 = vrot.slane %v10204_v22, 4  ;;  %v5340_v55 = vsel %vm366_vm0, %v5339_v45, %v10193_v16 }
 0x5b9   : > { %10431 = vrot.lane.b32.xlu1 %v10430_v26, %s11109_s13  ;;  %10411 = vrot.lane.b32.xlu0 %v10410_v29, %s11107_s11  ;;  %v20867_v40 = vrot.slane %v15156_v56, 4  ;;  %v4809_v61 = vrot.slane %v4758_v47, 4  ;;  %v4697_v32 = vrot.slane %v4646_v63, 4  ;;  %v4720_v54 = vsel %vm366_vm0, %v4719_v34, %v15469_v12 }
 0x5ba   : > { %v4696_v51 = vsel %vm366_vm0, %v20865_v41, %v4646_v63  ;;  %v4831_v41 = vrot.slane %v15579_v11, 4  ;;  %v5452_v1 = vsel %vm366_vm0, %v5451_v44, %v10194_v42  ;;  %v5453_v57 = vrot.slane %v10194_v42, 4 }
 0x5bb   : > { %v4808_v3 = vsel %vm366_vm0, %v20867_v40, %v4758_v47  ;;  %v15605_v29 = vperm.slane %v4696_v51, %v20534_v60  ;;  %v5346_v45 = vperm.slane %v5340_v55, %v20533_v28  ;;  %v10209_v46 = vunpack.i.h.bf16 %v15484_v19 }
 0x5bc   : > { %v10208_v47 = vunpack.i.l.bf16 %v15484_v19  ;;  %v20868_v40 = vrot.slane %v15147_v6, 4  ;;  %v15620_v51 = vperm.slane %v4808_v3, %v20534_v60  ;;  %v20869_v44 = vunpack.i.h.bf16 %v15380_v23 }
 0x5bd   : > { %v15625_v34 = vperm.slane %v4720_v54, %v20534_v60  ;;  %v20870_v55 = vunpack.i.l.bf16 %v15380_v23  ;;  %v5458_v19 = vperm.slane %v5452_v1, %v20533_v28  ;;  %v5341_v49 = vrot.slane %v10193_v16, 4  ;;  %v15649_v1 = vpop.permute.xlu1 %10241 }
 0x5be   : > { %v15617_v63 = vsel %vm366_vm0, %v20868_v40, %v15372_v53  ;;  %v5463_v26 = vrot.slane %v20869_v44, 4  ;;  %v4832_v6 = vsel %vm366_vm0, %v4831_v41, %v15457_v58  ;;  %v15632_v53 = vpop.permute.xlu0 %10251  ;;  %v15636_v3 = vsel %vm366_vm0, %v15156_v56, %v4809_v61 }
 0x5bf   : > { %v5351_v42 = vrot.slane %v20870_v55, 4  ;;  %v20871_v40 = vrot.slane %v15150_v50, 4  ;;  %v15646_v44 = vsel %vm366_vm0, %v15163_v20, %v4697_v32  ;;  %v4741_v16 = vrot.slane %v15605_v29, 4 }
 0x5c0   : > { %v5454_v41 = vsel %vm366_vm0, %v10204_v22, %v5453_v57  ;;  %v5375_v55 = vrot.slane %v5346_v45, 4  ;;  %v5464_v56 = vsel %vm366_vm0, %v5463_v26, %v10209_v46  ;;  %v4853_v20 = vrot.slane %v15620_v51, 4  ;;  %v20873_v26 = vld [vmem:[#allocation59_spill] sm:$0xff] }
 0x5c1   : > { %v15642_v54 = vsel %vm366_vm0, %v20871_v40, %v15375_v36  ;;  %v5352_v61 = vsel %vm366_vm0, %v5351_v42, %v10208_v47  ;;  %v4742_v50 = vsel %vm366_vm0, %v15625_v34, %v4741_v16  ;;  %v15657_v36 = vperm.slane %v4832_v6, %v20534_v60  ;;  %v15666_v42 = vpop.permute.xlu2 %10281 }
 0x5c2   : > { %v4397_v32 = vrot.slane %v15352_v9, 4  ;;  %v5487_v40 = vrot.slane %v5458_v19, 4  ;;  %v20872_v39 = vunpack.i.l.bf16 %v15299_v10  ;;  %v4509_v22 = vrot.slane %v15368_v35, 4  ;;  %20874 = vst [vmem:[#allocation26_spill] sm:$0xff] %v15666_v42 }
 0x5c3   : > { %v3703_v4 = vrot.slane %v20873_v26, 4  ;;  %v15669_v16 = vperm.slane %v5352_v61, %v20533_v28  ;;  %v4854_v6 = vsel %vm366_vm0, %v15657_v36, %v4853_v20  ;;  %v3815_v31 = vrot.slane %v20875_v48, 4 }
 0x5c4   : > { %v5342_v57 = vsel %vm366_vm0, %v20872_v39, %v5341_v49  ;;  %v4398_v9 = vsel %vm366_vm0, %v4397_v32, %v15291_v8  ;;  %v15677_v10 = vperm.slane %v5464_v56, %v20533_v28  ;;  %v10485_v49 = vpack.i.bf16 %v4854_v6, %v4742_v50  ;;  %v20877_v39 = vld [vmem:[#allocation58_spill] sm:$0xff]  ;;  %v20878_v8 = vld [vmem:[#allocation61_spill] sm:$0xff] }
 0x5c5   : > { %v4510_v35 = vsel %vm366_vm0, %v4509_v22, %v15287_v17  ;;  %v3704_v26 = vsel %vm366_vm0, %v20877_v39, %v3703_v4  ;;  %v15684_v61 = vperm.slane %v5454_v41, %v20533_v28  ;;  %v5376_v20 = vsel %vm366_vm0, %v5375_v55, %v15509_v2  ;;  %v20879_v55 = vld [vmem:[#allocation55_spill] sm:$0xff] }
 0x5c6   : > { %20876 = vst [vmem:[#allocation46_spill] sm:$0xff] %v15677_v10  ;;  %v10445_v42 = vpack.i.bf16 %v4510_v35, %v4398_v9  ;;  %v3816_v48 = vsel %vm366_vm0, %v20878_v8, %v3815_v31  ;;  %v5488_v50 = vsel %vm366_vm0, %v5487_v40, %v15495_v43  ;;  %v5465_v32 = vrot.slane %v10209_v46, 4  ;;  %10486 = vrot.lane.b32.xlu2 %v10485_v49, %s11103_s30  ;;  %v20881_v40 = vld [vmem:[#allocation5_spill] sm:$0xff] }
 0x5c7   : > { %v10425_v17 = vpack.i.bf16 %v3816_v48, %v3704_v26  ;;  %v15696_v41 = vperm.slane %v5342_v57, %v20533_v28  ;;  %v5353_v22 = vrot.slane %v10208_v47, 4  ;;  %v20880_v6 = vrot.slane %v20879_v55, 4  ;;  %v15713_v57 = vpop.permute.xlu0 %10256 }
 0x5c8   : > { %10446 = vrot.lane.b32.xlu1 %v10445_v42, %s11107_s11  ;;  %v10224_v9 = vunpack.i.h.bf16 %v15473_v37  ;;  %v10223_v46 = vunpack.i.l.bf16 %v15473_v37  ;;  %v20882_v49 = vrot.slane %v20881_v40, 4  ;;  %v15711_v47 = vperm.slane %v5376_v20, %v20534_v60  ;;  %20884 = vst [vmem:[#allocation35_spill] sm:$0xff] %v15713_v57 }
 0x5c9   : > { %v5400_v31 = vsel %vm366_vm0, %v20880_v6, %v15669_v16  ;;  %10426 = vrot.lane.b32.xlu0 %v10425_v17, %s11104_s8  ;;  %v20885_v39 = vrot.slane %v15495_v43, 4  ;;  %v5499_v26 = vrot.slane %v15684_v61, 4  ;;  %v20886_v37 = vrot.slane %v15509_v2, 4  ;;  %v15729_v17 = vpop.permute.xlu1 %10261  ;;  %v15762_v4 = vpop.permute.xlu2 %10296 }
 0x5ca   : > { %v5512_v35 = vsel %vm366_vm0, %v20882_v49, %v15677_v10  ;;  %20883 = vst [vmem:[#allocation13_spill] sm:$0xff] %v15711_v47  ;;  %v15727_v48 = vperm.slane %v5488_v50, %v20534_v60  ;;  %v20890_v20 = vrot.slane %v15503_v13, 4  ;;  %v5387_v50 = vrot.slane %v15696_v41, 4 }
 0x5cb   : > { %v15718_v42 = vsel %vm366_vm0, %v5458_v19, %v20885_v39  ;;  %v15724_v8 = vsel %vm366_vm0, %v5346_v45, %v20886_v37  ;;  %20889 = vst [vmem:[#allocation15_spill] sm:$0xff] %v15729_v17  ;;  %v20891_v19 = vunpack.i.h.bf16 %v15380_v23  ;;  %v15742_v45 = vperm.slane %v5400_v31, %v20534_v60  ;;  %v20903_v17 = vld [vmem:[#allocation23_spill] sm:$0xff] }
 0x5cc   : > { %20887 = vst [vmem:[#allocation45_spill] sm:$0xff] %v15724_v8  ;;  %v15735_v43 = vsel %vm366_vm0, %v15684_v61, %v20890_v20  ;;  %v20893_v49 = vunpack.i.l.bf16 %v15380_v23  ;;  %v15749_v37 = vperm.slane %v5512_v35, %v20534_v60  ;;  %v15753_v61 = vperm.slane %v15454_v30, %v20534_v60  ;;  %v20898_v35 = vld [vmem:[#allocation57_spill] sm:$0xff] }
 0x5cd   : > { %20888 = vst [vmem:[#allocation19_spill] sm:$0xff] %v15727_v48  ;;  %v5466_v6 = vsel %vm366_vm0, %v20891_v19, %v5465_v32  ;;  %v5783_v20 = vrot.slane %v10224_v9, 4  ;;  %v20895_v32 = vld [vmem:[#allocation39_spill] sm:$0xff]  ;;  %v5425_v31 = vrot.slane %v15711_v47, 4  ;;  %v20896_v56 = vrot.slane %v15106_v52, 4 }
 0x5ce   : > { %20892 = vst [vmem:[#allocation42_spill] sm:$0xff] %v15742_v45  ;;  %v5354_v39 = vsel %vm366_vm0, %v20893_v49, %v5353_v22  ;;  %v5670_v19 = vsel %vm366_vm0, %v20895_v32, %v10223_v46  ;;  %v5671_v22 = vrot.slane %v10223_v46, 4  ;;  %v5782_v49 = vsel %vm366_vm0, %v20898_v35, %v10224_v9  ;;  %v20900_v35 = vld [vmem:[#allocation56_spill] sm:$0xff] }
 0x5cf   : > { %20894 = vst [vmem:[#allocation59_spill] sm:$0xff] %v15749_v37  ;;  %v4380_v23 = vsel %vm366_vm0, %v15272_v5, %v20896_v56  ;;  %v15767_v30 = vperm.slane %v5466_v6, %v20533_v28  ;;  %v5537_v2 = vrot.slane %v15727_v48, 4  ;;  %v15771_v32 = vperm.slane %v5354_v39, %v20533_v28  ;;  %v20902_v48 = vld [vmem:[#allocation43_spill] sm:$0xff]  ;;  %v15814_v0 = vpop.permute.xlu0 %10271 }
 0x5d0   : > { %20897 = vst [vmem:[#allocation60_spill] sm:$0xff] %v15762_v4  ;;  %v20899_v47 = vunpack.i.h.bf16 %v15565_v21  ;;  %v5426_v5 = vsel %vm366_vm0, %v15742_v45, %v5425_v31  ;;  %v15781_v9 = vperm.slane %v4380_v23, %v20534_v60  ;;  %v4403_v46 = vrot.slane %v15753_v61, 4  ;;  %v20904_v45 = vld [vmem:[#allocation32_spill] sm:$0xff]  ;;  %v20910_v4 = vld [vmem:[#allocation33_spill] sm:$0xff] }
 0x5d1   : > { %v5538_v56 = vsel %vm366_vm0, %v15749_v37, %v5537_v2  ;;  %v15786_v6 = vperm.slane %v15331_v27, %v20534_v60  ;;  %v4395_v31 = vrot.slane %v20903_v17, 4  ;;  %v4507_v57 = vrot.slane %v20904_v45, 4  ;;  %20911 = vst [vmem:[#allocation58_spill] sm:$0xff] %v15814_v0 }
 0x5d2   : > { %v5793_v52 = vrot.slane %v20899_v47, 4  ;;  %v10500_v39 = vpack.i.bf16 %v5538_v56, %v5426_v5  ;;  %v20901_v47 = vrot.slane %v20900_v35, 4  ;;  %v10229_v2 = vunpack.i.h.bf16 %v15575_v38  ;;  %v20905_v5 = vld [vmem:[#allocation54_spill] sm:$0xff] }
 0x5d3   : > { %v4404_v23 = vsel %vm366_vm0, %v15781_v9, %v4403_v46  ;;  %v4515_v27 = vrot.slane %v15786_v6, 4  ;;  %v20906_v56 = vrot.slane %v20905_v5, 4  ;;  %v20912_v40 = vunpack.i.l.bf16 %v15565_v21 }
 0x5d4   : > { %v4492_v14 = vsel %vm366_vm0, %v20902_v48, %v20901_v47  ;;  %v20907_v48 = vld [vmem:[#allocation20_spill] sm:$0xff]  ;;  %10501 = vrot.lane.b32.xlu2 %v10500_v39, %s11109_s13  ;;  %v20909_v47 = vld [vmem:[#allocation11_spill] sm:$0xff]  ;;  %v20914_v39 = vrot.slane %v15559_v33, 4 }
 0x5d5   : > { %v15798_v37 = vperm.slane %v4492_v14, %v20534_v60  ;;  %v5412_v35 = vsel %vm366_vm0, %v20906_v56, %v15771_v32  ;;  %v20908_v17 = vrot.slane %v20907_v48, 4  ;;  %v4396_v46 = vsel %vm366_vm0, %v20909_v47, %v4395_v31 }
 0x5d6   : > { %v4508_v14 = vsel %vm366_vm0, %v20910_v4, %v4507_v57  ;;  %v5681_v55 = vrot.slane %v20912_v40, 4  ;;  %v5794_v56 = vsel %vm366_vm0, %v5793_v52, %v10229_v2  ;;  %v15827_v31 = vsel %vm366_vm0, %v15696_v41, %v20914_v39  ;;  %v20915_v4 = vld [vmem:[#allocation28_spill] sm:$0xff] }
 0x5d7   : > { %v5524_v45 = vsel %vm366_vm0, %v20908_v17, %v15767_v30  ;;  %v4516_v10 = vsel %vm366_vm0, %v15798_v37, %v4515_v27  ;;  %v10440_v8 = vpack.i.bf16 %v4508_v14, %v4396_v46  ;;  %v15821_v17 = vpop.permute.xlu1 %10276  ;;  %v20916_v57 = vunpack.i.h.bf16 %v20915_v4 }
 0x5d8   : > { %20913 = vst [vmem:[#allocation61_spill] sm:$0xff] %v15821_v17  ;;  %v10228_v40 = vunpack.i.l.bf16 %v15575_v38  ;;  %v10460_v0 = vpack.i.bf16 %v4516_v10, %v4404_v23  ;;  %v5388_v52 = vsel %vm366_vm0, %v5387_v50, %v15559_v33  ;;  %v15837_v27 = vperm.slane %v5412_v35, %v20534_v60 }
 0x5d9   : > { %v5784_v47 = vsel %vm366_vm0, %v20916_v57, %v5783_v20  ;;  %10441 = vrot.lane.b32.xlu0 %v10440_v8, %s11105_s9  ;;  %v5500_v46 = vsel %vm366_vm0, %v5499_v26, %v15503_v13  ;;  %v15842_v41 = vperm.slane %v5524_v45, %v20534_v60  ;;  %v20917_v14 = vunpack.i.l.bf16 %v20915_v4  ;;  %v15857_v8 = vpop.permute.xlu2 %10311 }
 0x5da   : > { %v15848_v38 = vperm.slane %v5670_v19, %v20533_v28  ;;  %v15851_v10 = vperm.slane %v5782_v49, %v20533_v28  ;;  %v15854_v33 = vperm.slane %v5794_v56, %v20533_v28  ;;  %10461 = vrot.lane.b32.xlu1 %v10460_v0, %s11104_s8  ;;  %20918 = vst [vmem:[#allocation39_spill] sm:$0xff] %v15857_v8  ;;  %v10254_v26 = vunpack.i.h.bf16 %v15632_v53 }
 0x5db   : > { %v5672_v20 = vsel %vm366_vm0, %v20917_v14, %v5671_v22  ;;  %v5682_v13 = vsel %vm366_vm0, %v5681_v55, %v10228_v40  ;;  %v10253_v50 = vunpack.i.l.bf16 %v15632_v53  ;;  %v5431_v22 = vrot.slane %v15837_v27, 4 }
 0x5dc   : > { %v15864_v19 = vperm.slane %v5784_v47, %v20533_v28  ;;  %v15867_v49 = vperm.slane %v5388_v52, %v20534_v60  ;;  %v15870_v23 = vperm.slane %v5500_v46, %v20534_v60  ;;  %v5543_v0 = vrot.slane %v15842_v41, 4 }
 0x5dd   : > { %v5525_v35 = vrot.slane %v15767_v30, 4  ;;  %v5413_v55 = vrot.slane %v15771_v32, 4  ;;  %v5795_v45 = vrot.slane %v10229_v2, 4  ;;  %v5683_v56 = vrot.slane %v10228_v40, 4  ;;  %v20919_v40 = vld [vmem:[#allocation22_spill] sm:$0xff] }
 0x5de   : > { %v5829_v53 = vrot.slane %v15854_v33, 4  ;;  %v15877_v39 = vperm.slane %v5682_v13, %v20533_v28  ;;  %v5432_v4 = vsel %vm366_vm0, %v5431_v22, %v15867_v49  ;;  %v5544_v57 = vsel %vm366_vm0, %v5543_v0, %v15870_v23  ;;  %v15897_v0 = vpop.permute.xlu0 %10286 }
 0x5df   : > { %v5805_v47 = vrot.slane %v10254_v26, 4  ;;  %v5693_v52 = vrot.slane %v10253_v50, 4  ;;  %v10244_v46 = vunpack.i.h.bf16 %v15649_v1  ;;  %v10243_v30 = vunpack.i.l.bf16 %v15649_v1  ;;  %20922 = vst [vmem:[#allocation56_spill] sm:$0xff] %v15897_v0  ;;  %v20923_v1 = vld [vmem:[#allocation27_spill] sm:$0xff]  ;;  %v15908_v8 = vpop.permute.xlu1 %10291 }
 0x5e0   : > { %v10515_v32 = vpack.i.bf16 %v5544_v57, %v5432_v4  ;;  %v15887_v2 = vperm.slane %v15642_v54, %v20534_v60  ;;  %v20920_v14 = vrot.slane %v15360_v15, 4  ;;  %v15895_v22 = vperm.slane %v15617_v63, %v20534_v60 }
 0x5e1   : > { %v20924_v4 = vrot.slane %v15378_v24, 4  ;;  %v4401_v57 = vrot.slane %v15781_v9, 4  ;;  %v4513_v15 = vrot.slane %v15798_v37, 4  ;;  %v5806_v24 = vsel %vm366_vm0, %v5805_v47, %v10244_v46  ;;  %v15930_v47 = vpop.permute.xlu2 %10326 }
 0x5e2   : > { %v4708_v13 = vsel %vm366_vm0, %v20920_v14, %v20919_v40  ;;  %20921 = vst [vmem:[#allocation57_spill] sm:$0xff] %v15895_v22  ;;  %v5717_v40 = vrot.slane %v15877_v39, 4  ;;  %10516 = vrot.lane.b32.xlu2 %v10515_v32, %s11107_s11  ;;  %v4733_v63 = vrot.slane %v15887_v2, 4 }
 0x5e3   : > { %v15900_v17 = vperm.slane %v4708_v13, %v20534_v60  ;;  %v4820_v54 = vsel %vm366_vm0, %v20924_v4, %v20923_v1  ;;  %v4845_v13 = vrot.slane %v15895_v22, 4  ;;  %v5807_v1 = vrot.slane %v10244_v46, 4 }
 0x5e4   : > { %v15914_v14 = vperm.slane %v4820_v54, %v20534_v60  ;;  %v4402_v9 = vsel %vm366_vm0, %v4401_v57, %v15753_v61  ;;  %v4514_v37 = vsel %vm366_vm0, %v4513_v15, %v15786_v6  ;;  %v5694_v4 = vsel %vm366_vm0, %v5693_v52, %v10243_v30 }
 0x5e5   : > { %v4734_v32 = vsel %vm366_vm0, %v15900_v17, %v4733_v63  ;;  %v10455_v0 = vpack.i.bf16 %v4514_v37, %v4402_v9  ;;  %v15928_v22 = vperm.slane %v5672_v20, %v20533_v28  ;;  %v20925_v46 = vunpack.i.h.bf16 %v15565_v21 }
 0x5e6   : > { %v4846_v54 = vsel %vm366_vm0, %v15914_v14, %v4845_v13  ;;  %v5695_v57 = vrot.slane %v10243_v30, 4  ;;  %v5830_v52 = vsel %vm366_vm0, %v5829_v53, %v15851_v10  ;;  %v20926_v15 = vunpack.i.l.bf16 %v15565_v21 }
 0x5e7   : > { %v5796_v61 = vsel %vm366_vm0, %v20925_v46, %v5795_v45  ;;  %v10465_v6 = vpack.i.bf16 %v4846_v54, %v4734_v32  ;;  %v15941_v13 = vperm.slane %v5806_v24, %v20533_v28  ;;  %10456 = vrot.lane.b32.xlu0 %v10455_v0, %s11106_s10  ;;  %v15946_v20 = vperm.slane %v15827_v31, %v20534_v60  ;;  %v20929_v32 = vld [vmem:[#allocation47_spill] sm:$0xff] }
 0x5e8   : > { %v5684_v63 = vsel %vm366_vm0, %v20926_v15, %v5683_v56  ;;  %v15949_v45 = vperm.slane %v5694_v4, %v20533_v28  ;;  %v5414_v53 = vsel %vm366_vm0, %v20905_v5, %v5413_v55  ;;  %v15956_v21 = vperm.slane %v15735_v43, %v20534_v60 }
 0x5e9   : > { %10466 = vrot.lane.b32.xlu1 %v10465_v6, %s11109_s13  ;;  %v5526_v56 = vsel %vm366_vm0, %v20907_v48, %v5525_v35  ;;  %v5718_v30 = vsel %vm366_vm0, %v5717_v40, %v15848_v38  ;;  %v5808_v31 = vsel %vm366_vm0, %v10254_v26, %v5807_v1  ;;  %v15964_v0 = vperm.slane %v5414_v53, %v20534_v60  ;;  %v15978_v1 = vpop.permute.xlu0 %10301 }
 0x5ea   : > { %v5437_v24 = vrot.slane %v15946_v20, 4  ;;  %v5696_v9 = vsel %vm366_vm0, %v10253_v50, %v5695_v57  ;;  %v15969_v5 = vperm.slane %v5526_v56, %v20534_v60  ;;  %v5549_v43 = vrot.slane %v15956_v21, 4  ;;  %v20927_v50 = vld [vmem:[#allocation38_spill] sm:$0xff] }
 0x5eb   : > { %v4739_v55 = vrot.slane %v15625_v34, 4  ;;  %v4851_v35 = vrot.slane %v15657_v36, 4  ;;  %v4737_v26 = vrot.slane %v15512_v62, 4  ;;  %v4849_v40 = vrot.slane %v15532_v18, 4  ;;  %v15992_v36 = vpop.permute.xlu1 %10306 }
 0x5ec   : > { %v5438_v48 = vsel %vm366_vm0, %v15964_v0, %v5437_v24  ;;  %v20928_v37 = vrot.slane %v20927_v50, 4  ;;  %v20930_v54 = vrot.slane %v20929_v32, 4  ;;  %v5550_v46 = vsel %vm366_vm0, %v15969_v5, %v5549_v43 }
 0x5ed   : > { %v4740_v62 = vsel %vm366_vm0, %v4739_v55, %v15605_v29  ;;  %v10530_v18 = vpack.i.bf16 %v5550_v46, %v5438_v48  ;;  %v4852_v57 = vsel %vm366_vm0, %v4851_v35, %v15620_v51  ;;  %v4738_v6 = vsel %vm366_vm0, %v15460_v25, %v4737_v26  ;;  %v20931_v51 = vld [vmem:[#allocation44_spill] sm:$0xff] }
 0x5ee   : > { %v5742_v4 = vsel %vm366_vm0, %v20928_v37, %v15949_v45  ;;  %v5854_v34 = vsel %vm366_vm0, %v20930_v54, %v15941_v13  ;;  %v4850_v15 = vsel %vm366_vm0, %v15489_v7, %v4849_v40  ;;  %v16001_v53 = vperm.slane %v5796_v61, %v20533_v28 }
 0x5ef   : > { %v16004_v56 = vperm.slane %v5684_v63, %v20533_v28  ;;  %v10480_v24 = vpack.i.bf16 %v4852_v57, %v4740_v62  ;;  %v10475_v29 = vpack.i.bf16 %v4850_v15, %v4738_v6  ;;  %v16007_v43 = vperm.slane %v5808_v31, %v20533_v28  ;;  %10531 = vrot.lane.b32.xlu2 %v10530_v18, %s11104_s8  ;;  %v16020_v63 = vpop.permute.xlu2 %10341 }
 0x5f0   : > { %v16010_v55 = vperm.slane %v5696_v9, %v20533_v28  ;;  %v16014_v25 = vperm.slane %v5718_v30, %v20534_v60  ;;  %v16017_v7 = vperm.slane %v5742_v4, %v20534_v60  ;;  %v5753_v61 = vrot.slane %v20931_v51, 4 }
 0x5f1   : > { %10481 = vrot.lane.b32.xlu1 %v10480_v24, %s11107_s11  ;;  %10476 = vrot.lane.b32.xlu0 %v10475_v29, %s11105_s9  ;;  %v16025_v31 = vperm.slane %v5830_v52, %v20534_v60  ;;  %v16028_v9 = vperm.slane %v5854_v34, %v20534_v60  ;;  %v4706_v30 = vperm.slane %v15646_v44, %v20534_v60  ;;  %v20932_v35 = vrot.slane %v15469_v12, 4  ;;  %v16057_v24 = vpop.permute.xlu0 %10316  ;;  %v20934_v29 = vld [vmem:[#allocation17_spill] sm:$0xff] }
 0x5f2   : > { %v5767_v48 = vrot.slane %v16014_v25, 4  ;;  %v4818_v40 = vperm.slane %v15636_v3, %v20534_v60  ;;  %v20933_v37 = vrot.slane %v15457_v58, 4  ;;  %v5401_v12 = vrot.slane %v15669_v16, 4 }
 0x5f3   : > { %v4722_v26 = vsel %vm366_vm0, %v15527_v59, %v20932_v35  ;;  %v5879_v4 = vrot.slane %v16025_v31, 4  ;;  %v4745_v44 = vrot.slane %v4706_v30, 4  ;;  %v5729_v46 = vrot.slane %v16004_v56, 4 }
 0x5f4   : > { %v4834_v52 = vsel %vm366_vm0, %v15579_v11, %v20933_v37  ;;  %v4730_v54 = vperm.slane %v4722_v26, %v20534_v60  ;;  %v5768_v59 = vsel %vm366_vm0, %v16017_v7, %v5767_v48  ;;  %v4857_v3 = vrot.slane %v4818_v40, 4 }
 0x5f5   : > { %v4842_v34 = vperm.slane %v4834_v52, %v20534_v60  ;;  %v5880_v58 = vsel %vm366_vm0, %v16028_v9, %v5879_v4  ;;  %v5841_v57 = vrot.slane %v16001_v53, 4  ;;  %v5754_v6 = vsel %vm366_vm0, %v5753_v61, %v16010_v55  ;;  %v16065_v4 = vpop.permute.xlu1 %10321 }
 0x5f6   : > { %v4746_v11 = vsel %vm366_vm0, %v4730_v54, %v4745_v44  ;;  %v4743_v62 = vrot.slane %v4730_v54, 4  ;;  %v10535_v15 = vpack.i.bf16 %v5880_v58, %v5768_v59  ;;  %v20935_v48 = vrot.slane %v20934_v29, 4  ;;  %20936 = vst [vmem:[#allocation43_spill] sm:$0xff] %v16065_v4  ;;  %v20937_v54 = vld [vmem:[#allocation45_spill] sm:$0xff]  ;;  %v20975_v4 = vld [vmem:[#allocation8_spill] sm:$0xff] }
 0x5f7   : > { %v4855_v18 = vrot.slane %v4842_v34, 4  ;;  %v4858_v16 = vsel %vm366_vm0, %v4842_v34, %v4857_v3  ;;  %v5498_v61 = vperm.slane %v15718_v42, %v20534_v60  ;;  %v5386_v44 = vperm.slane %v20937_v54, %v20534_v60  ;;  %v20938_v34 = vld [vmem:[#allocation46_spill] sm:$0xff] }
 0x5f8   : > { %v5866_v35 = vsel %vm366_vm0, %v20935_v48, %v16007_v43  ;;  %v10495_v26 = vpack.i.bf16 %v4858_v16, %v4746_v11  ;;  %v4744_v37 = vsel %vm366_vm0, %v4743_v62, %v4706_v30  ;;  %v5513_v59 = vrot.slane %v20938_v34, 4  ;;  %10536 = vrot.lane.b32.xlu2 %v10535_v15, %s11109_s13 }
 0x5f9   : > { %v4856_v52 = vsel %vm366_vm0, %v4855_v18, %v4818_v40  ;;  %v5719_v58 = vrot.slane %v15848_v38, 4  ;;  %v5831_v11 = vrot.slane %v15851_v10, 4  ;;  %v5730_v30 = vsel %vm366_vm0, %v5729_v46, %v15928_v22  ;;  %v16089_v10 = vpop.permute.xlu2 %10356 }
 0x5fa   : > { %v10490_v3 = vpack.i.bf16 %v4856_v52, %v4744_v37  ;;  %10496 = vrot.lane.b32.xlu1 %v10495_v26, %s11104_s8  ;;  %v16079_v40 = vperm.slane %v5754_v6, %v20534_v60  ;;  %v5731_v42 = vrot.slane %v15928_v22, 4  ;;  %v5843_v62 = vrot.slane %v15864_v19, 4  ;;  %v20939_v22 = vld [vmem:[#allocation55_spill] sm:$0xff] }
 0x5fb   : > { %v5842_v18 = vsel %vm366_vm0, %v5841_v57, %v15864_v19  ;;  %v16087_v38 = vperm.slane %v5866_v35, %v20534_v60  ;;  %v16092_v15 = vperm.slane %v5730_v30, %v20534_v60  ;;  %v5402_v16 = vsel %vm366_vm0, %v20939_v22, %v5401_v12  ;;  %v20940_v35 = vld [vmem:[#allocation5_spill] sm:$0xff] }
 0x5fc   : > { %10491 = vrot.lane.b32.xlu0 %v10490_v3, %s11106_s10  ;;  %v5773_v46 = vrot.slane %v16079_v40, 4  ;;  %v16096_v6 = vperm.slane %v5842_v18, %v20534_v60  ;;  %v5410_v19 = vperm.slane %v5402_v16, %v20534_v60  ;;  %v5429_v57 = vrot.slane %v5386_v44, 4 }
 0x5fd   : > { %v5885_v48 = vrot.slane %v16087_v38, 4  ;;  %v5514_v26 = vsel %vm366_vm0, %v20940_v35, %v5513_v59  ;;  %v5732_v37 = vsel %vm366_vm0, %v16004_v56, %v5731_v42  ;;  %v5541_v34 = vrot.slane %v5498_v61, 4 }
 0x5fe   : > { %v5774_v52 = vsel %vm366_vm0, %v5773_v46, %v16092_v15  ;;  %v5522_v54 = vperm.slane %v5514_v26, %v20534_v60  ;;  %v5755_v3 = vrot.slane %v16010_v55, 4  ;;  %v5430_v30 = vsel %vm366_vm0, %v5410_v19, %v5429_v57  ;;  %v16118_v26 = vpop.permute.xlu0 %10331 }
 0x5ff   : > { %v5886_v12 = vsel %vm366_vm0, %v5885_v48, %v16096_v6  ;;  %v5427_v18 = vrot.slane %v5410_v19, 4  ;;  %v5867_v22 = vrot.slane %v16007_v43, 4  ;;  %v5844_v42 = vsel %vm366_vm0, %v16001_v53, %v5843_v62  ;;  %v16126_v19 = vpop.permute.xlu1 %10336 }
 0x600   : > { %v10550_v59 = vpack.i.bf16 %v5886_v12, %v5774_v52  ;;  %v5542_v16 = vsel %vm366_vm0, %v5522_v54, %v5541_v34  ;;  %v5539_v56 = vrot.slane %v5522_v54, 4  ;;  %v5832_v55 = vsel %vm366_vm0, %v15854_v33, %v5831_v11 }
 0x601   : > { %v10510_v46 = vpack.i.bf16 %v5542_v16, %v5430_v30  ;;  %v5428_v35 = vsel %vm366_vm0, %v5427_v18, %v5386_v44  ;;  %v5720_v48 = vsel %vm366_vm0, %v15877_v39, %v5719_v58  ;;  %v5855_v57 = vrot.slane %v15941_v13, 4  ;;  %v16142_v54 = vpop.permute.xlu2 %10371 }
 0x602   : > { %10551 = vrot.lane.b32.xlu2 %v10550_v59, %s11107_s11  ;;  %v5540_v43 = vsel %vm366_vm0, %v5539_v56, %v5498_v61  ;;  %v5740_v44 = vperm.slane %v5732_v37, %v20534_v60  ;;  %v5756_v62 = vsel %vm366_vm0, %v20931_v51, %v5755_v3  ;;  %v5852_v39 = vperm.slane %v5844_v42, %v20534_v60 }
 0x603   : > { %10511 = vrot.lane.b32.xlu1 %v10510_v46, %s11105_s9  ;;  %v10505_v53 = vpack.i.bf16 %v5540_v43, %v5428_v35  ;;  %v5764_v33 = vperm.slane %v5756_v62, %v20534_v60  ;;  %v5868_v58 = vsel %vm366_vm0, %v20934_v29, %v5867_v22  ;;  %v5435_v61 = vrot.slane %v15964_v0, 4 }
 0x604   : > { %v5743_v11 = vrot.slane %v15949_v45, 4  ;;  %v5779_v13 = vrot.slane %v5740_v44, 4  ;;  %v5876_v52 = vperm.slane %v5868_v58, %v20534_v60  ;;  %v5547_v37 = vrot.slane %v15969_v5, 4 }
 0x605   : > { %10506 = vrot.lane.b32.xlu0 %v10505_v53, %s11108_s12  ;;  %v5891_v51 = vrot.slane %v5852_v39, 4  ;;  %v5436_v34 = vsel %vm366_vm0, %v5435_v61, %v15946_v20  ;;  %v5433_v3 = vrot.slane %v15867_v49, 4  ;;  %v5545_v29 = vrot.slane %v15870_v23, 4 }
 0x606   : > { %v5840_v0 = vperm.slane %v5832_v55, %v20534_v60  ;;  %v5780_v45 = vsel %vm366_vm0, %v5764_v33, %v5779_v13  ;;  %v5548_v12 = vsel %vm366_vm0, %v5547_v37, %v15956_v21  ;;  %v5728_v30 = vperm.slane %v5720_v48, %v20534_v60  ;;  %v16166_v56 = vpop.permute.xlu0 %10346 }
 0x607   : > { %v5892_v5 = vsel %vm366_vm0, %v5876_v52, %v5891_v51  ;;  %v5434_v18 = vsel %vm366_vm0, %v15837_v27, %v5433_v3  ;;  %v5546_v20 = vsel %vm366_vm0, %v15842_v41, %v5545_v29  ;;  %v10525_v22 = vpack.i.bf16 %v5548_v12, %v5436_v34  ;;  %v16168_v35 = vpop.permute.xlu1 %10351 }
 0x608   : > { %v10565_v49 = vpack.i.bf16 %v5892_v5, %v5780_v45  ;;  %v5744_v23 = vsel %vm366_vm0, %v20927_v50, %v5743_v11  ;;  %v5856_v21 = vsel %vm366_vm0, %v20929_v32, %v5855_v57  ;;  %v10520_v16 = vpack.i.bf16 %v5546_v20, %v5434_v18 }
 0x609   : > { %v5752_v59 = vperm.slane %v5744_v23, %v20534_v60  ;;  %v5864_v27 = vperm.slane %v5856_v21, %v20534_v60  ;;  %v5771_v41 = vrot.slane %v5728_v30, 4  ;;  %v5883_v42 = vrot.slane %v5840_v0, 4  ;;  %v16173_v48 = vpop.permute.xlu2 %10386 }
 0x60a   : > { %10566 = vrot.lane.b32.xlu2 %v10565_v49, %s11104_s8  ;;  %20941 = vst [vmem:[#allocation23_spill] sm:$0xff] %v16173_v48  ;;  %v5777_v62 = vrot.slane %v5764_v33, 4  ;;  %v5889_v58 = vrot.slane %v5876_v52, 4  ;;  %v5775_v51 = vrot.slane %v16092_v15, 4  ;;  %v5887_v34 = vrot.slane %v16096_v6, 4  ;;  %v20973_v48 = vld [vmem:[#allocation42_spill] sm:$0xff] }
 0x60b   : > { %10526 = vrot.lane.b32.xlu1 %v10525_v22, %s11106_s10  ;;  %v5769_v46 = vrot.slane %v5752_v59, 4  ;;  %v5881_v50 = vrot.slane %v5864_v27, 4  ;;  %v5772_v55 = vsel %vm366_vm0, %v5752_v59, %v5771_v41  ;;  %v5884_v32 = vsel %vm366_vm0, %v5864_v27, %v5883_v42  ;;  %v20948_v41 = vld [vmem:[#allocation48_spill] sm:$0xff] }
 0x60c   : > { %v10545_v53 = vpack.i.bf16 %v5884_v32, %v5772_v55  ;;  %v5778_v13 = vsel %vm366_vm0, %v5777_v62, %v5740_v44  ;;  %v5890_v37 = vsel %vm366_vm0, %v5889_v58, %v5852_v39  ;;  %v5776_v33 = vsel %vm366_vm0, %v16079_v40, %v5775_v51 }
 0x60d   : > { %10521 = vrot.lane.b32.xlu0 %v10520_v16, %s11103_s30  ;;  %v5770_v43 = vsel %vm366_vm0, %v5769_v46, %v5728_v30  ;;  %v5882_v57 = vsel %vm366_vm0, %v5881_v50, %v5840_v0  ;;  %v5888_v52 = vsel %vm366_vm0, %v16087_v38, %v5887_v34  ;;  %v10560_v0 = vpack.i.bf16 %v5890_v37, %v5778_v13  ;;  %v20949_v50 = vld [vmem:[#allocation18_spill] sm:$0xff]  ;;  %v20952_v13 = vld [vmem:[#allocation25_spill] sm:$0xff]  ;;  %v20953_v34 = vld [vmem:[#allocation60_spill] sm:$0xff] }
 0x60e   : > { %v10540_v61 = vpack.i.bf16 %v5882_v57, %v5770_v43  ;;  %v16179_v11 = vpop.permute.xlu0 %10361  ;;  %v10555_v44 = vpack.i.bf16 %v5888_v52, %v5776_v33  ;;  %v5765_v38 = vrot.slane %v16017_v7, 4  ;;  %v5877_v30 = vrot.slane %v16028_v9, 4  ;;  %v20950_v43 = vld [vmem:[#allocation12_spill] sm:$0xff]  ;;  %v20954_v52 = vld [vmem:[#allocation35_spill] sm:$0xff] }
 0x60f   : > { %v16185_v3 = vpop.permute.xlu1 %10366  ;;  %v5193_v42 = vrot.slane %v20948_v41, 4  ;;  %v5081_v55 = vrot.slane %v20949_v50, 4  ;;  %v10329_v32 = vunpack.i.h.bf16 %v15930_v47  ;;  %v2989_v57 = vrot.slane %v20950_v43, 4  ;;  %v20956_v50 = vld [vmem:[#allocation9_spill] sm:$0xff] }
 0x610   : > { %v16211_v5 = vsel %vm366_vm0, %v5765_v38, %v16014_v25  ;;  %v16215_v18 = vsel %vm366_vm0, %v5877_v30, %v16025_v31  ;;  %v3101_v37 = vrot.slane %v20952_v13, 4  ;;  %v10299_v33 = vunpack.i.h.bf16 %v20953_v34  ;;  %v20957_v13 = vld [vmem:[#allocation10_spill] sm:$0xff]  ;;  %v20962_v30 = vld [vmem:[#allocation51_spill] sm:$0xff] }
 0x611   : > { %v16187_v29 = vpop.permute.xlu2 %10406  ;;  %v10298_v38 = vunpack.i.l.bf16 %v20953_v34  ;;  %v5194_v43 = vsel %vm366_vm0, %v5193_v42, %v20956_v50  ;;  %v10328_v60 = vunpack.i.l.bf16 %v15930_v47  ;;  %v5082_v51 = vsel %vm366_vm0, %v5081_v55, %v20957_v13  ;;  %v20961_v42 = vld [vmem:[#allocation50_spill] sm:$0xff] }
 0x612   : > { %v5272_v28 = vsel %vm738_vm6, %v5194_v43, %v10329_v32  ;;  %v4047_v50 = vrot.slane %v20961_v42, 4  ;;  %v4159_v55 = vrot.slane %v20962_v30, 4  ;;  %v10293_v32 = vunpack.i.l.bf16 %v15908_v8 }
 0x613   : > { %10546 = vrot.lane.b32.xlu1 %v10545_v53, %s11105_s9  ;;  %v5265_v43 = vsel %vm738_vm6, %v5082_v51, %v10328_v60  ;;  %v10303_v13 = vunpack.i.l.bf16 %v15978_v1 }
 0x615   : > { %10541 = vrot.lane.b32.xlu0 %v10540_v61, %s11108_s12 }
 0x616   : > { %v16195_v39 = vpop.permute.xlu0 %10376 }
 0x617   : > { %20942 = vst [vmem:[#allocation32_spill] sm:$0xff] %v16195_v39  ;;  %v16197_v15 = vpop.permute.xlu1 %10381  ;;  %v20991_v39 = vunpack.i.l.bf16 %v16168_v35 }
 0x618   : > { %20943 = vst [vmem:[#allocation54_spill] sm:$0xff] %v16197_v15  ;;  %v20980_v15 = vld [vmem:[#allocation19_spill] sm:$0xff] }
 0x619   : > { %v16199_v6 = vpop.permute.xlu2 %10421 }
 0x61a   : > { %20944 = vst [vmem:[#allocation20_spill] sm:$0xff] %v16199_v6  ;;  %v20974_v6 = vld [vmem:[#allocation59_spill] sm:$0xff] }
 0x61b   : > { %10561 = vrot.lane.b32.xlu1 %v10560_v0, %s11106_s10  ;;  %v10259_v0 = vunpack.i.h.bf16 %v20954_v52 }
 0x61d   : > { %10556 = vrot.lane.b32.xlu0 %v10555_v44, %s11103_s30  ;;  %v10258_v44 = vunpack.i.l.bf16 %v20954_v52  ;;  %v20959_v52 = vld [vmem:[#allocation14_spill] sm:$0xff] }
 0x61e   : > { %v16201_v45 = vpop.permute.xlu0 %10391  ;;  %v3102_v34 = vsel %vm366_vm0, %v3101_v37, %v20959_v52  ;;  %v10294_v37 = vunpack.i.h.bf16 %v15908_v8  ;;  %v3801_v52 = vrot.slane %v20975_v4, 4 }
 0x61f   : > { %20945 = vst [vmem:[#allocation11_spill] sm:$0xff] %v16201_v45  ;;  %v16205_v40 = vpop.permute.xlu1 %10401  ;;  %v20958_v45 = vld [vmem:[#allocation49_spill] sm:$0xff]  ;;  %v3180_v61 = vsel %vm738_vm6, %v3102_v34, %v10259_v0 }
 0x620   : > { %v2990_v58 = vsel %vm366_vm0, %v2989_v57, %v20958_v45  ;;  %v20966_v34 = vld [vmem:[#allocation29_spill] sm:$0xff]  ;;  %v10334_v45 = vunpack.i.h.bf16 %v16118_v26 }
 0x621   : > { %v16203_v12 = vpop.permute.xlu2 %10436  ;;  %v3173_v47 = vsel %vm738_vm6, %v2990_v58, %v10258_v44  ;;  %v4048_v42 = vsel %vm366_vm0, %v4047_v50, %v20966_v34  ;;  %v10338_v34 = vunpack.i.l.bf16 %v16126_v19  ;;  %v5423_v50 = vrot.slane %v20973_v48, 4 }
 0x622   : > { %v4231_v0 = vsel %vm738_vm6, %v4048_v42, %v10293_v32  ;;  %v10438_v42 = vunpack.i.l.bf16 %v16203_v12 }
 0x626   : > { %v16217_v20 = vpop.permute.xlu0 %10396 }
 0x627   : > { %v16221_v22 = vpop.permute.xlu1 %10416 }
 0x629   : > { %v16219_v49 = vpop.permute.xlu2 %10451 }
 0x62e   : > { %v16223_v23 = vpop.permute.xlu0 %10411 }
 0x62f   : > { %v16227_v7 = vpop.permute.xlu1 %10431 }
 0x631   : > { %v16225_v59 = vpop.permute.xlu2 %10471 }
 0x639   : > { %v16231_v25 = vpop.permute.xlu2 %10486 }
 0x63a   : > { %v16233_v21 = vpop.permute.xlu1 %10446 }
 0x63b   : > { %v16229_v9 = vpop.permute.xlu0 %10426 }
 0x63c   : > { %20946 = vst [vmem:[#allocation33_spill] sm:$0xff] %v16229_v9  ;;  %v20960_v9 = vld [vmem:[#allocation15_spill] sm:$0xff] }
 0x63d   : > { %v10264_v41 = vunpack.i.h.bf16 %v20960_v9 }
 0x63f   : > { %v16290_v60 = vsel %vm740_vm7, %v3180_v61, %v10264_v41  ;;  %v10304_v41 = vunpack.i.h.bf16 %v15978_v1  ;;  %v4232_v61 = vsel %vm740_vm7, %v4231_v0, %v10298_v38 }
 0x640   : > { %20963 = vst [vmem:[#allocation22_spill] sm:$0xff] %v16290_v60  ;;  %v16318_v1 = vsel %vm742_vm8, %v4232_v61, %v10303_v13  ;;  %v20970_v13 = vld [vmem:[#allocation52_spill] sm:$0xff] }
 0x641   : > { %v16237_v16 = vpop.permute.xlu2 %10501  ;;  %v3347_v61 = vrot.slane %v20970_v13, 4  ;;  %v10369_v13 = vunpack.i.h.bf16 %v16185_v3  ;;  %v20981_v60 = vld [vmem:[#allocation16_spill] sm:$0xff] }
 0x649   : > { %v16247_v53 = vpop.permute.xlu2 %10516 }
 0x64b   : > { %v16235_v31 = vpop.permute.xlu0 %10441 }
 0x64c   : > { %v16239_v27 = vpop.permute.xlu1 %10461 }
 0x64d   : > { %20947 = vst [vmem:[#allocation28_spill] sm:$0xff] %v16239_v27  ;;  %v10263_v27 = vunpack.i.l.bf16 %v20960_v9  ;;  %v20967_v9 = vld [vmem:[#allocation37_spill] sm:$0xff] }
 0x64e   : > { %v4160_v58 = vsel %vm366_vm0, %v4159_v55, %v20967_v9  ;;  %v10368_v9 = vunpack.i.l.bf16 %v16185_v3  ;;  %v20971_v55 = vld [vmem:[#allocation7_spill] sm:$0xff]  ;;  %v5535_v3 = vrot.slane %v20974_v6, 4 }
 0x64f   : > { %v16293_v51 = vsel %vm740_vm7, %v3173_v47, %v10263_v27  ;;  %v4238_v27 = vsel %vm738_vm6, %v4160_v58, %v10294_v37  ;;  %v10333_v47 = vunpack.i.l.bf16 %v16118_v26  ;;  %v10339_v37 = vunpack.i.h.bf16 %v16126_v19 }
 0x650   : > { %20964 = vst [vmem:[#allocation27_spill] sm:$0xff] %v16293_v51  ;;  %v4239_v26 = vsel %vm740_vm7, %v4238_v27, %v10299_v33  ;;  %v5273_v58 = vsel %vm740_vm7, %v5272_v28, %v10334_v45  ;;  %v10364_v33 = vunpack.i.h.bf16 %v16179_v11  ;;  %v10433_v51 = vunpack.i.l.bf16 %v16227_v7 }
 0x651   : > { %v16303_v57 = vpop.permute.xlu2 %10531  ;;  %v16324_v32 = vsel %vm742_vm8, %v4239_v26, %v10304_v41  ;;  %v5266_v38 = vsel %vm740_vm7, %v5265_v43, %v10333_v47  ;;  %v16338_v27 = vsel %vm742_vm8, %v5273_v58, %v10339_v37  ;;  %v20969_v41 = vld [vmem:[#allocation53_spill] sm:$0xff]  ;;  %v10363_v58 = vunpack.i.l.bf16 %v16179_v11  ;;  %v20972_v37 = vld [vmem:[#allocation36_spill] sm:$0xff] }
 0x652   : > { %v3459_v26 = vrot.slane %v20969_v41, 4  ;;  %v16344_v47 = vsel %vm742_vm8, %v5266_v38, %v10338_v34  ;;  %v3348_v19 = vsel %vm366_vm0, %v3347_v61, %v20972_v37  ;;  %v10404_v34 = vunpack.i.h.bf16 %v16205_v40 }
 0x653   : > { %v3531_v41 = vsel %vm738_vm6, %v3348_v19, %v10363_v58  ;;  %v10398_v19 = vunpack.i.l.bf16 %v16217_v20  ;;  %v20978_v58 = vld [vmem:[#allocation34_spill] sm:$0xff] }
 0x654   : > { %v3460_v45 = vsel %vm366_vm0, %v3459_v26, %v20971_v55  ;;  %v20976_v26 = vld [vmem:[#allocation21_spill] sm:$0xff]  ;;  %v4501_v48 = vrot.slane %v20978_v58, 4  ;;  %v16387_v6 = vsel %vm740_vm7, %v3531_v41, %v10368_v9  ;;  %v3802_v58 = vsel %vm366_vm0, %v3801_v52, %v20981_v60  ;;  %v20984_v52 = vld [vmem:[#allocation30_spill] sm:$0xff] }
 0x655   : > { %v3538_v11 = vsel %vm738_vm6, %v3460_v45, %v10364_v33  ;;  %v3689_v0 = vrot.slane %v20976_v26, 4  ;;  %v10399_v33 = vunpack.i.h.bf16 %v16217_v20  ;;  %v20977_v45 = vld [vmem:[#allocation24_spill] sm:$0xff]  ;;  %v20979_v55 = vld [vmem:[#allocation13_spill] sm:$0xff]  ;;  %v5536_v20 = vsel %vm366_vm0, %v5535_v3, %v20980_v15 }
 0x656   : > { %v4389_v61 = vrot.slane %v20977_v45, 4  ;;  %v16384_v4 = vsel %vm740_vm7, %v3538_v11, %v10369_v13  ;;  %v10403_v45 = vunpack.i.l.bf16 %v16205_v40  ;;  %v5424_v37 = vsel %vm366_vm0, %v5423_v50, %v20979_v55  ;;  %v20982_v11 = vld [vmem:[#allocation41_spill] sm:$0xff]  ;;  %v20983_v26 = vld [vmem:[#allocation40_spill] sm:$0xff] }
 0x657   : > { %v3690_v9 = vsel %vm366_vm0, %v3689_v0, %v20982_v11  ;;  %v3880_v41 = vsel %vm738_vm6, %v3802_v58, %v10399_v33  ;;  %v10434_v50 = vunpack.i.h.bf16 %v16227_v7  ;;  %v10504_v55 = vunpack.i.h.bf16 %v16237_v16 }
 0x658   : > { %v4390_v40 = vsel %vm366_vm0, %v4389_v61, %v20983_v26  ;;  %v10503_v15 = vunpack.i.l.bf16 %v16237_v16  ;;  %v3873_v60 = vsel %vm738_vm6, %v3690_v9, %v10398_v19  ;;  %v4502_v3 = vsel %vm366_vm0, %v4501_v48, %v20984_v52 }
 0x659   : > { %v16242_v46 = vpop.permute.xlu0 %10456  ;;  %v16357_v8 = vpop.permute.xlu2 %10536  ;;  %v10488_v0 = vunpack.i.l.bf16 %v16231_v25  ;;  %v16418_v7 = vsel %vm740_vm7, %v3880_v41, %v10404_v34  ;;  %v4573_v16 = vsel %vm738_vm6, %v4390_v40, %v10433_v51  ;;  %v4731_v19 = vrot.slane %v15900_v17, 4 }
 0x65a   : > { %v4843_v26 = vrot.slane %v15914_v14, 4  ;;  %v16424_v48 = vsel %vm740_vm7, %v3873_v60, %v10403_v45  ;;  %v4580_v11 = vsel %vm738_vm6, %v4502_v3, %v10434_v50  ;;  %v5614_v33 = vsel %vm738_vm6, %v5536_v20, %v10504_v55 }
 0x65b   : > { %v16249_v62 = vpop.permute.xlu1 %10466  ;;  %v5607_v34 = vsel %vm738_vm6, %v5424_v37, %v10503_v15  ;;  %v10444_v41 = vunpack.i.h.bf16 %v16235_v31  ;;  %v10443_v51 = vunpack.i.l.bf16 %v16235_v31  ;;  %v10539_v14 = vunpack.i.h.bf16 %v16357_v8  ;;  %v20986_v31 = vld [vmem:[#allocation57_spill] sm:$0xff] }
 0x65c   : > { %v4574_v45 = vsel %vm740_vm7, %v4573_v16, %v10438_v42  ;;  %v10469_v40 = vunpack.i.h.bf16 %v16249_v62  ;;  %v10468_v50 = vunpack.i.l.bf16 %v16249_v62  ;;  %v10538_v60 = vunpack.i.l.bf16 %v16357_v8 }
 0x65d   : > { %v20985_v20 = vunpack.i.h.bf16 %v16203_v12  ;;  %v4732_v55 = vsel %vm366_vm0, %v4731_v19, %v15887_v2  ;;  %v4844_v15 = vsel %vm366_vm0, %v4843_v26, %v20986_v31  ;;  %v10519_v42 = vunpack.i.h.bf16 %v16247_v53 }
 0x65e   : > { %v10518_v16 = vunpack.i.l.bf16 %v16247_v53  ;;  %v10448_v8 = vunpack.i.l.bf16 %v16233_v21  ;;  %v16459_v2 = vsel %vm742_vm8, %v4574_v45, %v10443_v51  ;;  %v5956_v19 = vsel %vm738_vm6, %v16215_v18, %v10539_v14 }
 0x65f   : > { %v4581_v37 = vsel %vm740_vm7, %v4580_v11, %v20985_v20  ;;  %v4922_v26 = vsel %vm738_vm6, %v4844_v15, %v10469_v40  ;;  %v4915_v31 = vsel %vm738_vm6, %v4732_v55, %v10468_v50  ;;  %v5949_v9 = vsel %vm738_vm6, %v16211_v5, %v10538_v60 }
 0x660   : > { %v16456_v20 = vsel %vm742_vm8, %v4581_v37, %v10444_v41  ;;  %v20987_v5 = vunpack.i.l.bf16 %v16225_v59  ;;  %v20988_v55 = vunpack.i.h.bf16 %v16225_v59  ;;  %v20989_v12 = vunpack.i.l.bf16 %v16020_v63 }
 0x661   : > { %v16415_v61 = vpop.permute.xlu2 %10551  ;;  %v20990_v41 = vunpack.i.l.bf16 %v16166_v56 }
 0x662   : > { %v10554_v51 = vunpack.i.h.bf16 %v16415_v61  ;;  %v10553_v45 = vunpack.i.l.bf16 %v16415_v61  ;;  %v4916_v60 = vsel %vm740_vm7, %v4915_v31, %v20987_v5  ;;  %v4923_v15 = vsel %vm740_vm7, %v4922_v26, %v20988_v55 }
 0x663   : > { %v16285_v44 = vpop.permute.xlu1 %10481  ;;  %v16287_v30 = vpop.permute.xlu0 %10476  ;;  %v5268_v61 = vsel %vm744_vm9, %v16344_v47, %v20989_v12 }
 0x664   : > { %v10478_v58 = vunpack.i.l.bf16 %v16287_v30  ;;  %v10479_v14 = vunpack.i.h.bf16 %v16287_v30  ;;  %v10483_v50 = vunpack.i.l.bf16 %v16285_v44  ;;  %v10484_v30 = vunpack.i.h.bf16 %v16285_v44 }
 0x665   : > { %v5269_v31 = vsel %vm746_vm10, %v5268_v61, %v20990_v41  ;;  %v20992_v61 = vunpack.i.h.bf16 %v16020_v63 }
 0x666   : > { %v4924_v47 = vsel %vm742_vm8, %v4923_v15, %v10479_v14  ;;  %v5270_v41 = vsel %vm748_vm11, %v5269_v31, %v20991_v39  ;;  %v20994_v31 = vunpack.i.l.bf16 %v16089_v10 }
 0x669   : > { %v16473_v18 = vpop.permute.xlu2 %10566 }
 0x66a   : > { %v10569_v59 = vunpack.i.h.bf16 %v16473_v18  ;;  %v10568_v26 = vunpack.i.l.bf16 %v16473_v18 }
 0x66c   : > { %v16333_v28 = vpop.permute.xlu1 %10496 }
 0x66e   : > { %v16341_v43 = vpop.permute.xlu0 %10491 }
 0x675   : > { %v16381_v38 = vpop.permute.xlu1 %10511 }
 0x676   : > { %v10513_v11 = vunpack.i.l.bf16 %v16381_v38  ;;  %v10514_v5 = vunpack.i.h.bf16 %v16381_v38  ;;  %v5275_v38 = vsel %vm744_vm9, %v16338_v27, %v20992_v61  ;;  %v10494_v27 = vunpack.i.h.bf16 %v16341_v43 }
 0x677   : > { %v16398_v13 = vpop.permute.xlu0 %10506 }
 0x678   : > { %v10508_v37 = vunpack.i.l.bf16 %v16398_v13  ;;  %v10509_v40 = vunpack.i.h.bf16 %v16398_v13  ;;  %v4917_v13 = vsel %vm742_vm8, %v4916_v60, %v10478_v58  ;;  %v10499_v60 = vunpack.i.h.bf16 %v16333_v28 }
 0x67a   : > { %v5608_v55 = vsel %vm740_vm7, %v5607_v34, %v10508_v37  ;;  %v5615_v44 = vsel %vm740_vm7, %v5614_v33, %v10509_v40  ;;  %v4918_v34 = vsel %vm744_vm9, %v4917_v13, %v10483_v50  ;;  %v20993_v33 = vunpack.i.h.bf16 %v16166_v56 }
 0x67b   : > { %v5609_v14 = vsel %vm742_vm8, %v5608_v55, %v10513_v11  ;;  %v10498_v40 = vunpack.i.l.bf16 %v16333_v28  ;;  %v5616_v63 = vsel %vm742_vm8, %v5615_v44, %v10514_v5  ;;  %v10493_v50 = vunpack.i.l.bf16 %v16341_v43 }
 0x67c   : > { %v5610_v56 = vsel %vm744_vm9, %v5609_v14, %v10518_v16  ;;  %v5271_v55 = vsel %vm750_vm12, %v5270_v41, %v20994_v31  ;;  %v4919_v5 = vsel %vm746_vm10, %v4918_v34, %v10488_v0  ;;  %v4925_v16 = vsel %vm744_vm9, %v4924_v47, %v10484_v30 }
 0x67d   : > { %v16433_v17 = vpop.permute.xlu1 %10526  ;;  %v21003_v31 = vunpack.i.l.bf16 %v16303_v57  ;;  %v21011_v28 = vunpack.i.h.bf16 %v16187_v29 }
 0x67f   : > { %v16447_v3 = vpop.permute.xlu0 %10521 }
 0x680   : > { %v10523_v11 = vunpack.i.l.bf16 %v16447_v3 }
 0x682   : > { %v5611_v0 = vsel %vm746_vm10, %v5610_v56, %v10523_v11  ;;  %v21000_v11 = vunpack.i.l.bf16 %v16242_v46  ;;  %v21001_v56 = vunpack.i.h.bf16 %v16219_v49 }
 0x685   : > { %v10547_v52 = vpop.permute.xlu1 %10546 }
 0x686   : > { %v10549_v37 = vunpack.i.h.bf16 %v10547_v52  ;;  %v10548_v18 = vunpack.i.l.bf16 %v10547_v52  ;;  %v10524_v52 = vunpack.i.h.bf16 %v16447_v3  ;;  %v5617_v3 = vsel %vm744_vm9, %v5616_v63, %v10519_v42 }
 0x687   : > { %v10542_v62 = vpop.permute.xlu0 %10541  ;;  %v4920_v42 = vsel %vm748_vm11, %v4919_v5, %v10493_v50  ;;  %v20998_v50 = vunpack.i.l.bf16 %v16219_v49  ;;  %v21004_v5 = vunpack.i.h.bf16 %v16303_v57  ;;  %v21006_v49 = vunpack.i.h.bf16 %v16242_v46  ;;  %v21008_v46 = vld [vmem:[#allocation39_spill] sm:$0xff] }
 0x688   : > { %v10544_v58 = vunpack.i.h.bf16 %v10542_v62  ;;  %v10543_v12 = vunpack.i.l.bf16 %v10542_v62  ;;  %v5276_v62 = vsel %vm746_vm10, %v5275_v38, %v20993_v33  ;;  %v5618_v34 = vsel %vm746_vm10, %v5617_v3, %v10524_v52  ;;  %v20999_v52 = vld [vmem:[#allocation28_spill] sm:$0xff] }
 0x68a   : > { %v5957_v15 = vsel %vm740_vm7, %v5956_v19, %v10544_v58  ;;  %v5950_v39 = vsel %vm740_vm7, %v5949_v9, %v10543_v12  ;;  %v20995_v19 = vunpack.i.h.bf16 %v16168_v35  ;;  %v10529_v58 = vunpack.i.h.bf16 %v16433_v17 }
 0x68b   : > { %v5951_v43 = vsel %vm742_vm8, %v5950_v39, %v10548_v18  ;;  %v5958_v44 = vsel %vm742_vm8, %v5957_v15, %v10549_v37  ;;  %v10528_v35 = vunpack.i.l.bf16 %v16433_v17  ;;  %v4576_v17 = vsel %vm744_vm9, %v16459_v2, %v10448_v8 }
 0x68c   : > { %v5277_v9 = vsel %vm748_vm11, %v5276_v62, %v20995_v19  ;;  %v5952_v37 = vsel %vm744_vm9, %v5951_v43, %v10553_v45  ;;  %v5959_v53 = vsel %vm744_vm9, %v5958_v44, %v10554_v51  ;;  %v20996_v18 = vunpack.i.h.bf16 %v16231_v25 }
 0x68d   : > { %v10562_v13 = vpop.permute.xlu1 %10561  ;;  %v20997_v62 = vunpack.i.h.bf16 %v16233_v21  ;;  %v5612_v39 = vsel %vm748_vm11, %v5611_v0, %v10528_v35  ;;  %v5619_v8 = vsel %vm748_vm11, %v5618_v34, %v10529_v58  ;;  %v4577_v21 = vsel %vm746_vm10, %v4576_v17, %v20998_v50  ;;  %v21029_v50 = vld [vmem:[#allocation22_spill] sm:$0xff] }
 0x68e   : > { %v10564_v12 = vunpack.i.h.bf16 %v10562_v13  ;;  %v10563_v41 = vunpack.i.l.bf16 %v10562_v13  ;;  %v4926_v33 = vsel %vm746_vm10, %v4925_v16, %v20996_v18  ;;  %v4578_v13 = vsel %vm748_vm11, %v4577_v21, %v21000_v11 }
 0x68f   : > { %v10557_v61 = vpop.permute.xlu0 %10556  ;;  %v4583_v51 = vsel %vm744_vm9, %v16456_v20, %v20997_v62  ;;  %v4927_v25 = vsel %vm748_vm11, %v4926_v33, %v10494_v27  ;;  %v10463_v20 = vunpack.i.l.bf16 %v20999_v52  ;;  %v5613_v19 = vsel %vm750_vm12, %v5612_v39, %v21003_v31  ;;  %v21020_v33 = vld [vmem:[#allocation32_spill] sm:$0xff] }
 0x690   : > { %v10559_v38 = vunpack.i.h.bf16 %v10557_v61  ;;  %v10558_v14 = vunpack.i.l.bf16 %v10557_v61  ;;  %v5620_v43 = vsel %vm750_vm12, %v5619_v8, %v21004_v5  ;;  %v21005_v44 = vunpack.i.h.bf16 %v16089_v10  ;;  %v21025_v8 = vld [vmem:[#allocation31_spill] sm:$0xff] }
 0x691   : > { %v10464_v58 = vunpack.i.h.bf16 %v20999_v52  ;;  %v4928_v57 = vsel %vm750_vm12, %v4927_v25, %v10499_v60  ;;  %v21007_v35 = vunpack.i.h.bf16 %v15992_v36  ;;  %v21010_v61 = vunpack.i.l.bf16 %v16187_v29  ;;  %v21030_v52 = vld [vmem:[#allocation11_spill] sm:$0xff] }
 0x692   : > { %v5953_v30 = vsel %vm746_vm10, %v5952_v37, %v10558_v14  ;;  %v5960_v47 = vsel %vm746_vm10, %v5959_v53, %v10559_v38  ;;  %v5278_v3 = vsel %vm750_vm12, %v5277_v9, %v21005_v44  ;;  %v4579_v9 = vsel %vm750_vm12, %v4578_v13, %v10463_v20  ;;  %v21031_v13 = vld [vmem:[#allocation58_spill] sm:$0xff] }
 0x693   : > { %v5954_v45 = vsel %vm748_vm11, %v5953_v30, %v10563_v41  ;;  %v5961_v15 = vsel %vm748_vm11, %v5960_v47, %v10564_v12  ;;  %v4241_v10 = vsel %vm744_vm9, %v16324_v32, %v21007_v35  ;;  %v21009_v12 = vunpack.i.l.bf16 %v21008_v46  ;;  %v21037_v44 = vld [vmem:[#allocation54_spill] sm:$0xff] }
 0x694   : > { %v5955_v2 = vsel %vm750_vm12, %v5954_v45, %v10568_v26  ;;  %v5962_v63 = vsel %vm750_vm12, %v5961_v15, %v10569_v59  ;;  %v4584_v26 = vsel %vm746_vm10, %v4583_v51, %v21001_v56  ;;  %v21002_v59 = vunpack.i.l.bf16 %v15992_v36  ;;  %v21012_v36 = vld [vmem:[#allocation33_spill] sm:$0xff] }
 0x695   : > { %5980 = vmatpush.msra.mxu2 %v5955_v2  ;;  %6000 = vmatpush.msra.mxu3 %v5962_v63  ;;  %v4585_v16 = vsel %vm748_vm11, %v4584_v26, %v21006_v49  ;;  %v3882_v60 = vsel %vm742_vm8, %v16418_v7, %v21011_v28  ;;  %v10429_v38 = vunpack.i.h.bf16 %v21012_v36  ;;  %v21013_v14 = vunpack.i.l.bf16 %v16223_v23  ;;  %v21027_v2 = vld [vmem:[#allocation27_spill] sm:$0xff]  ;;  %v21044_v28 = vld [vmem:[#allocation61_spill] sm:$0xff] }
 0x696   : > { %v4234_v27 = vsel %vm744_vm9, %v16318_v1, %v21002_v59  ;;  %v4921_v1 = vsel %vm750_vm12, %v4920_v42, %v10498_v40  ;;  %v3875_v40 = vsel %vm742_vm8, %v16424_v48, %v21010_v61  ;;  %v4586_v32 = vsel %vm750_vm12, %v4585_v16, %v10464_v58 }
 0x697   : > { %5981 = vmatpush.msra.mxu2 %v5613_v19  ;;  %6001 = vmatpush.msra.mxu3 %v5620_v43  ;;  %v4235_v41 = vsel %vm746_vm10, %v4234_v27, %v21009_v12  ;;  %v3876_v0 = vsel %vm744_vm9, %v3875_v40, %v21013_v14  ;;  %v21014_v34 = vunpack.i.h.bf16 %v16223_v23  ;;  %v21015_v48 = vunpack.i.l.bf16 %v16057_v24  ;;  %v21034_v27 = vld [vmem:[#allocation43_spill] sm:$0xff] }
 0x698   : > { %v21016_v7 = vunpack.i.h.bf16 %v21008_v46  ;;  %v21018_v17 = vunpack.i.h.bf16 %v16142_v54  ;;  %v10428_v30 = vunpack.i.l.bf16 %v21012_v36  ;;  %v21019_v47 = vunpack.i.h.bf16 %v16057_v24 }
 0x699   : > { %5982 = vmatpush.msra.mxu2 %v5271_v55  ;;  %6002 = vmatpush.msra.mxu3 %v5278_v3  ;;  %v3883_v37 = vsel %vm744_vm9, %v3882_v60, %v21014_v34  ;;  %v4236_v29 = vsel %vm748_vm11, %v4235_v41, %v21015_v48  ;;  %v21017_v55 = vunpack.i.l.bf16 %v16142_v54  ;;  %v21021_v62 = vunpack.i.l.bf16 %v21020_v33  ;;  %v21048_v48 = vld [vmem:[#allocation23_spill] sm:$0xff] }
 0x69a   : > { %v4242_v53 = vsel %vm746_vm10, %v4241_v10, %v21016_v7  ;;  %v3540_v23 = vsel %vm742_vm8, %v16384_v4, %v21018_v17  ;;  %v21022_v45 = vunpack.i.h.bf16 %v21020_v33  ;;  %v21023_v54 = vunpack.i.l.bf16 %v16221_v22  ;;  %v21041_v10 = vld [vmem:[#allocation20_spill] sm:$0xff] }
 0x69b   : > { %v3533_v42 = vsel %vm742_vm8, %v16387_v6, %v21017_v55  ;;  %5983 = vmatpush.msra.mxu2 %v4921_v1  ;;  %6003 = vmatpush.msra.mxu3 %v4928_v57  ;;  %v4243_v18 = vsel %vm748_vm11, %v4242_v53, %v21019_v47  ;;  %v21024_v15 = vunpack.i.h.bf16 %v16221_v22  ;;  %v21026_v24 = vunpack.i.l.bf16 %v21025_v8  ;;  %v21040_v1 = vld [vmem:[#allocation56_spill] sm:$0xff] }
 0x69c   : > { %v3534_v51 = vsel %vm744_vm9, %v3533_v42, %v21021_v62  ;;  %v3541_v6 = vsel %vm744_vm9, %v3540_v23, %v21022_v45  ;;  %v3877_v4 = vsel %vm746_vm10, %v3876_v0, %v21023_v54  ;;  %v21028_v25 = vunpack.i.h.bf16 %v21025_v8  ;;  %v21047_v0 = vld [vmem:[#allocation26_spill] sm:$0xff] }
 0x69d   : > { %v3884_v39 = vsel %vm746_vm10, %v3883_v37, %v21024_v15  ;;  %v3175_v63 = vsel %vm742_vm8, %v21027_v2, %v21026_v24  ;;  %v10394_v20 = vunpack.i.h.bf16 %v21030_v52  ;;  %v10393_v11 = vunpack.i.l.bf16 %v21030_v52  ;;  %5984 = vmatpush.msra.mxu2 %v4579_v9  ;;  %6004 = vmatpush.msra.mxu3 %v4586_v32  ;;  %v21051_v62 = vld [vmem:[#allocation6_spill] sm:$0xff] }
 0x69e   : > { %v3182_v21 = vsel %vm742_vm8, %v21029_v50, %v21028_v25  ;;  %v21032_v22 = vunpack.i.l.bf16 %v21031_v13  ;;  %v21033_v26 = vunpack.i.h.bf16 %v21031_v13  ;;  %v21035_v31 = vunpack.i.l.bf16 %v21034_v27  ;;  %v21052_v13 = vld [vmem:[#allocation3_spill] sm:$0xff] }
 0x69f   : > { %v21036_v5 = vunpack.i.h.bf16 %v21034_v27  ;;  %v21038_v3 = vunpack.i.l.bf16 %v21037_v44  ;;  %v21039_v16 = vunpack.i.h.bf16 %v21037_v44  ;;  %v10289_v57 = vunpack.i.h.bf16 %v21040_v1 }
 0x6a0   : > { %v3176_v56 = vsel %vm744_vm9, %v3175_v63, %v21032_v22  ;;  %v3183_v59 = vsel %vm744_vm9, %v3182_v21, %v21033_v26  ;;  %v4237_v19 = vsel %vm750_vm12, %v4236_v29, %v21035_v31  ;;  %v10288_v35 = vunpack.i.l.bf16 %v21040_v1 }
 0x6a1   : > { %v4244_v43 = vsel %vm750_vm12, %v4243_v18, %v21036_v5  ;;  %v3535_v49 = vsel %vm746_vm10, %v3534_v51, %v21038_v3  ;;  %v3542_v58 = vsel %vm746_vm10, %v3541_v6, %v21039_v16  ;;  %5985 = vmatpush.msra.mxu2 %v4237_v19  ;;  %v21042_v9 = vunpack.i.l.bf16 %v21041_v10 }
 0x6a2   : > { %6005 = vmatpush.msra.mxu3 %v4244_v43  ;;  %v21043_v12 = vunpack.i.h.bf16 %v21041_v10  ;;  %v21045_v60 = vunpack.i.l.bf16 %v21044_v28  ;;  %v21046_v32 = vunpack.i.h.bf16 %v21044_v28  ;;  %v10284_v34 = vunpack.i.h.bf16 %v21047_v0 }
 0x6a3   : > { %v3878_v46 = vsel %vm748_vm11, %v3877_v4, %v21042_v9  ;;  %v10283_v37 = vunpack.i.l.bf16 %v21047_v0  ;;  %v21049_v29 = vunpack.i.l.bf16 %v21048_v48 }
 0x6a4   : > { %v3885_v41 = vsel %vm748_vm11, %v3884_v39, %v21043_v12  ;;  %v3879_v61 = vsel %vm750_vm12, %v3878_v46, %v10428_v30  ;;  %v3177_v36 = vsel %vm746_vm10, %v3176_v56, %v21045_v60  ;;  %v3184_v14 = vsel %vm746_vm10, %v3183_v59, %v21046_v32  ;;  %v5963_v30 = vld [vmem:[%s20003_s3] sm:$0xff]  ;;  %v21053_v46 = vld [vmem:[#allocation4_spill] sm:$0xff] }
 0x6a5   : > { %v3886_v40 = vsel %vm750_vm12, %v3885_v41, %v10429_v38  ;;  %5986 = vmatpush.msra.mxu2 %v3879_v61  ;;  %v3536_v7 = vsel %vm748_vm11, %v3535_v49, %v21049_v29  ;;  %v21050_v38 = vunpack.i.h.bf16 %v21048_v48  ;;  %v3178_v17 = vsel %vm748_vm11, %v3177_v36, %v10283_v37 }
 0x6a6   : > { %6006 = vmatpush.msra.mxu3 %v3886_v40  ;;  %v3537_v55 = vsel %vm750_vm12, %v3536_v7, %v10393_v11  ;;  %v3185_v23 = vsel %vm748_vm11, %v3184_v14, %v10284_v34  ;;  %v3179_v47 = vsel %vm750_vm12, %v3178_v17, %v10288_v35 }
 0x6a7   : > { %v3543_v53 = vsel %vm748_vm11, %v3542_v58, %v21050_v38  ;;  %5987 = vmatpush.msra.mxu2 %v3537_v55  ;;  %v3186_v18 = vsel %vm750_vm12, %v3185_v23, %v10289_v57 }
 0x6a8   : > { %v3544_v42 = vsel %vm750_vm12, %v3543_v53, %v10394_v20 }
 0x6a9   : > { %6007 = vmatpush.msra.mxu3 %v3544_v42  ;;  %5988 = vmatpush.msra.mxu2 %v3179_v47 }
 0x6aa   : > { %9602 = vmatmul.msk.f32.vlgmr.msra.gmra.mxu2 %vm5969_vm15, %v5963_v30 }
 0x6ab   : > { %6008 = vmatpush.msra.mxu3 %v3186_v18 }
 0x6ac   : > { %9603 = vmatmul.msk.f32.vlgmr.msra.gmra.mxu3 %vm5969_vm15, %v5963_v30 }
 0x72d   : > { %v5990_v33 = vpop.f32.mrf.mxu2 }
 0x72e   : > { %v5991_v51 = vadd.f32 %v5990_v33, %v21051_v62 }
 0x72f   : > { %v6010_v6 = vpop.f32.mrf.mxu3 }
 0x730   : > { %v6013_v45 = vmax.f32 %v5991_v51, 0.0  ;;  %v6011_v54 = vadd.f32 %v6010_v6, %v21051_v62 }
 0x732   : > { %6029 = vrot.lane.b32.xlu0 %v6013_v45, %s11105_s9  ;;  %6020 = vrot.lane.b32.xlu2 %v6013_v45, %s11106_s10  ;;  %v16717_v4 = vmax.f32 %v6011_v54, 0.0  ;;  %v6062_v63 = vrot.slane %v6013_v45, 4 }
 0x733   : > { %6017 = vrot.lane.b32.xlu1 %v6013_v45, %s11104_s8 }
 0x734   : > { %v6174_v37 = vrot.slane %v16717_v4, 4 }
 0x73a   : > { %6039 = vrot.lane.b32.xlu0 %v16717_v4, %s11104_s8  ;;  %6026 = vrot.lane.b32.xlu2 %v6013_v45, %s11107_s11 }
 0x73b   : > { %6023 = vrot.lane.b32.xlu1 %v6013_v45, %s11103_s30 }
 0x742   : > { %6048 = vrot.lane.b32.xlu0 %v16717_v4, %s11107_s11  ;;  %6035 = vrot.lane.b32.xlu2 %v6013_v45, %s11109_s13 }
 0x743   : > { %6032 = vrot.lane.b32.xlu1 %v6013_v45, %s11108_s12 }
 0x74a   : > { %6057 = vrot.lane.b32.xlu0 %v16717_v4, %s11109_s13  ;;  %6045 = vrot.lane.b32.xlu2 %v16717_v4, %s11103_s30 }
 0x74b   : > { %6042 = vrot.lane.b32.xlu1 %v16717_v4, %s11106_s10 }
 0x752   : > { %6054 = vrot.lane.b32.xlu2 %v16717_v4, %s11108_s12 }
 0x753   : > { %6051 = vrot.lane.b32.xlu1 %v16717_v4, %s11105_s9 }
 0x78c   : > { %v6021_v15 = vpop.permute.xlu2 %6020 }
 0x78d   : > { %v6063_v25 = vsel %vm366_vm0, %v6021_v15, %v6062_v63  ;;  %v6060_v19 = vrot.slane %v6021_v15, 4 }
 0x78e   : > { %v16740_v22 = vperm.slane %v6063_v25, %v21052_v13 }
 0x78f   : > { %v6061_v9 = vsel %vm366_vm0, %v6060_v19, %v6013_v45 }
 0x790   : > { %v6122_v31 = vrot.slane %v16740_v22, 4  ;;  %v16770_v36 = vperm.slane %v6061_v9, %v21052_v13 }
 0x794   : > { %v6027_v39 = vpop.permute.xlu2 %6026 }
 0x795   : > { %v6086_v5 = vrot.slane %v6027_v39, 4 }
 0x79c   : > { %v6036_v2 = vpop.permute.xlu2 %6035 }
 0x79d   : > { %v6096_v43 = vrot.slane %v6036_v2, 4 }
 0x7a4   : > { %v6030_v8 = vpop.permute.xlu0 %6029  ;;  %v6046_v56 = vpop.permute.xlu2 %6045 }
 0x7a5   : > { %v6018_v24 = vpop.permute.xlu1 %6017  ;;  %v6098_v59 = vrot.slane %v6030_v8, 4  ;;  %v6097_v16 = vsel %vm366_vm0, %v6096_v43, %v6030_v8  ;;  %v6184_v38 = vrot.slane %v6046_v56, 4 }
 0x7a6   : > { %v6074_v50 = vrot.slane %v6018_v24, 4  ;;  %v16764_v61 = vperm.slane %v6097_v16, %v21052_v13 }
 0x7a7   : > { %v6099_v58 = vsel %vm366_vm0, %v6036_v2, %v6098_v59 }
 0x7a8   : > { %v6107_v40 = vperm.slane %v6099_v58, %v21052_v13  ;;  %v6132_v7 = vrot.slane %v16764_v61, 4 }
 0x7aa   : > { %v6144_v19 = vrot.slane %v6107_v40, 4 }
 0x7ac   : > { %v6040_v21 = vpop.permute.xlu0 %6039  ;;  %v6055_v14 = vpop.permute.xlu2 %6054 }
 0x7ad   : > { %v6024_v52 = vpop.permute.xlu1 %6023  ;;  %v6186_v32 = vrot.slane %v6040_v21, 4  ;;  %v6196_v17 = vrot.slane %v6055_v14, 4  ;;  %v6185_v51 = vsel %vm366_vm0, %v6184_v38, %v6040_v21 }
 0x7ae   : > { %v6072_v20 = vrot.slane %v6024_v52, 4  ;;  %v6075_v11 = vsel %vm366_vm0, %v6024_v52, %v6074_v50  ;;  %v6191_v25 = vperm.slane %v6185_v51, %v21052_v13 }
 0x7af   : > { %v16743_v26 = vperm.slane %v6075_v11, %v21052_v13  ;;  %v6187_v18 = vsel %vm366_vm0, %v6046_v56, %v6186_v32 }
 0x7b0   : > { %v6073_v27 = vsel %vm366_vm0, %v6072_v20, %v6018_v24  ;;  %v6195_v2 = vperm.slane %v6187_v18, %v21052_v13 }
 0x7b1   : > { %v16748_v44 = vperm.slane %v6073_v27, %v21052_v13  ;;  %v6123_v3 = vsel %vm366_vm0, %v16743_v26, %v6122_v31  ;;  %v6120_v38 = vrot.slane %v16743_v26, 4 }
 0x7b2   : > { %v16760_v12 = vperm.slane %v6123_v3, %v21053_v46  ;;  %v6232_v51 = vrot.slane %v6195_v2, 4 }
 0x7b3   : > { %v6108_v28 = vrot.slane %v16748_v44, 4 }
 0x7b4   : > { %v6049_v35 = vpop.permute.xlu0 %6048  ;;  %v6170_v29 = vrot.slane %v16760_v12, 4 }
 0x7b5   : > { %v6033_v49 = vpop.permute.xlu1 %6032  ;;  %v6198_v53 = vrot.slane %v6049_v35, 4  ;;  %v6109_v42 = vsel %vm366_vm0, %v6108_v28, %v16770_v36  ;;  %v6197_v45 = vsel %vm366_vm0, %v6196_v17, %v6049_v35 }
 0x7b6   : > { %v6084_v1 = vrot.slane %v6033_v49, 4  ;;  %v6087_v57 = vsel %vm366_vm0, %v6033_v49, %v6086_v5  ;;  %v16799_v54 = vperm.slane %v6109_v42, %v21053_v46  ;;  %v6203_v50 = vperm.slane %v6197_v45, %v21052_v13 }
 0x7b7   : > { %v16756_v10 = vperm.slane %v6087_v57, %v21052_v13  ;;  %v6199_v15 = vsel %vm366_vm0, %v6055_v14, %v6198_v53  ;;  %v6220_v49 = vrot.slane %v6191_v25, 4 }
 0x7b8   : > { %v6085_v41 = vsel %vm366_vm0, %v6084_v1, %v6027_v39  ;;  %v6158_v20 = vrot.slane %v16799_v54, 4  ;;  %v6246_v5 = vrot.slane %v6203_v50, 4 }
 0x7b9   : > { %v6146_v60 = vrot.slane %v16756_v10, 4  ;;  %v16773_v0 = vperm.slane %v6085_v41, %v21052_v13 }
 0x7bb   : > { %v6147_v34 = vsel %vm366_vm0, %v6107_v40, %v6146_v60  ;;  %v6133_v62 = vsel %vm366_vm0, %v6132_v7, %v16773_v0  ;;  %v6134_v58 = vrot.slane %v16773_v0, 4  ;;  %v6145_v40 = vsel %vm366_vm0, %v6144_v19, %v16756_v10 }
 0x7bc   : > { %v16778_v48 = vperm.slane %v6147_v34, %v21053_v46  ;;  %v6058_v39 = vpop.permute.xlu0 %6057  ;;  %v6139_v63 = vperm.slane %v6133_v62, %v21053_v46  ;;  %v6151_v10 = vperm.slane %v6145_v40, %v21053_v46 }
 0x7bd   : > { %v6043_v55 = vpop.permute.xlu1 %6042  ;;  %v6208_v21 = vrot.slane %v6058_v39, 4  ;;  %v6135_v53 = vsel %vm366_vm0, %v16764_v61, %v6134_v58  ;;  %v6121_v61 = vsel %vm366_vm0, %v6120_v38, %v16740_v22 }
 0x7be   : > { %v6172_v23 = vrot.slane %v6043_v55, 4  ;;  %v6175_v30 = vsel %vm366_vm0, %v6043_v55, %v6174_v37  ;;  %v6171_v47 = vsel %vm366_vm0, %v16778_v48, %v6170_v29  ;;  %v6159_v31 = vsel %vm366_vm0, %v6139_v63, %v6158_v20 }
 0x7bf   : > { %v16789_v33 = vperm.slane %v6175_v30, %v21052_v13  ;;  %6328 = vrot.lane.b32.xlu0 %v6171_v47, %s11113_s18  ;;  %v6143_v26 = vperm.slane %v6135_v53, %v21053_v46  ;;  %v6110_v47 = vrot.slane %v16770_v36, 4  ;;  %v6156_v18 = vrot.slane %v6139_v63, 4 }
 0x7c0   : > { %v6173_v6 = vsel %vm366_vm0, %v6172_v23, %v16717_v4  ;;  %v6207_v4 = vperm.slane %v6199_v15, %v21052_v13  ;;  %v6164_v62 = vrot.slane %v6151_v10, 4  ;;  %v6127_v15 = vperm.slane %v6121_v61, %v21053_v46 }
 0x7c1   : > { %v6179_v8 = vperm.slane %v6173_v6, %v21052_v13  ;;  %v6234_v24 = vrot.slane %v16789_v33, 4  ;;  %v6111_v6 = vsel %vm366_vm0, %v16748_v44, %v6110_v47  ;;  %v6157_v36 = vsel %vm366_vm0, %v6156_v18, %v16799_v54 }
 0x7c2   : > { %v6258_v16 = vrot.slane %v6207_v4, 4  ;;  %v6119_v22 = vperm.slane %v6111_v6, %v21053_v46 }
 0x7c3   : > { %v6235_v52 = vsel %vm366_vm0, %v6195_v2, %v6234_v24  ;;  %v6222_v11 = vrot.slane %v6179_v8, 4  ;;  %v6221_v0 = vsel %vm366_vm0, %v6220_v49, %v6179_v8  ;;  %v6233_v8 = vsel %vm366_vm0, %v6232_v51, %v16789_v33 }
 0x7c4   : > { %v16816_v3 = vperm.slane %v6235_v52, %v21053_v46  ;;  %v6227_v17 = vperm.slane %v6221_v0, %v21053_v46  ;;  %v6165_v24 = vsel %vm366_vm0, %v6164_v62, %v6127_v15  ;;  %v6239_v44 = vperm.slane %v6233_v8, %v21053_v46 }
 0x7c5   : > { %v6052_v56 = vpop.permute.xlu1 %6051  ;;  %v6223_v41 = vsel %vm366_vm0, %v6191_v25, %v6222_v11  ;;  %v6162_v20 = vrot.slane %v6119_v22, 4 }
 0x7c6   : > { %v6209_v59 = vsel %vm366_vm0, %v6208_v21, %v6052_v56  ;;  %v6210_v27 = vrot.slane %v6052_v56, 4  ;;  %v6282_v14 = vrot.slane %v16816_v3, 4  ;;  %v6231_v37 = vperm.slane %v6223_v41, %v21053_v46 }
 0x7c7   : > { %v6215_v43 = vperm.slane %v6209_v59, %v21052_v13  ;;  %6304 = vrot.lane.b32.xlu0 %v6159_v31, %s11113_s18  ;;  %v6270_v25 = vrot.slane %v6227_v17, 4  ;;  %v6278_v54 = vrot.slane %v6239_v44, 4  ;;  %v6163_v11 = vsel %vm366_vm0, %v6143_v26, %v6162_v20 }
 0x7c8   : > { %v6211_v1 = vsel %vm366_vm0, %v6058_v39, %v6210_v27  ;;  %v6160_v39 = vrot.slane %v6143_v26, 4  ;;  %v6274_v52 = vrot.slane %v6231_v37, 4  ;;  %v6166_v56 = vrot.slane %v6127_v15, 4 }
 0x7c9   : > { %v6219_v57 = vperm.slane %v6211_v1, %v21052_v13  ;;  %v6244_v35 = vrot.slane %v6215_v43, 4  ;;  %v6247_v9 = vsel %vm366_vm0, %v6215_v43, %v6246_v5  ;;  %v6168_v43 = vrot.slane %v16778_v48, 4 }
 0x7ca   : > { %v6255_v28 = vperm.slane %v6247_v9, %v21053_v46  ;;  %v6161_v63 = vsel %vm366_vm0, %v6160_v39, %v6119_v22  ;;  %v6167_v59 = vsel %vm366_vm0, %v6151_v10, %v6166_v56 }
 0x7cb   : > { %v6245_v60 = vsel %vm366_vm0, %v6244_v35, %v6203_v50  ;;  %v6259_v32 = vsel %vm366_vm0, %v6219_v57, %v6258_v16  ;;  %v6256_v45 = vrot.slane %v6219_v57, 4  ;;  %v6169_v49 = vsel %vm366_vm0, %v6168_v43, %v16760_v12 }
 0x7cc   : > { %v6267_v34 = vperm.slane %v6259_v32, %v21053_v46  ;;  %v6272_v29 = vrot.slane %v6255_v28, 4  ;;  %v6251_v7 = vperm.slane %v6245_v60, %v21053_v46 }
 0x7cd   : > { %v6257_v2 = vsel %vm366_vm0, %v6256_v45, %v6207_v4  ;;  %v6275_v4 = vsel %vm366_vm0, %v6255_v28, %v6274_v52 }
 0x7ce   : > { %v6283_v55 = vsel %vm366_vm0, %v6267_v34, %v6282_v14  ;;  %v6273_v42 = vsel %vm366_vm0, %v6272_v29, %v6231_v37  ;;  %v6268_v23 = vrot.slane %v6251_v7, 4  ;;  %v6263_v33 = vperm.slane %v6257_v2, %v21053_v46 }
 0x7cf   : > { %6330 = vrot.lane.b32.xlu1 %v6283_v55, %s11113_s18  ;;  %6310 = vrot.lane.b32.xlu0 %v6273_v42, %s11113_s18  ;;  %v6271_v50 = vsel %vm366_vm0, %v6251_v7, %v6270_v25  ;;  %v6280_v31 = vrot.slane %v6267_v34, 4 }
 0x7d0   : > { %v6269_v30 = vsel %vm366_vm0, %v6268_v23, %v6227_v17  ;;  %v6279_v21 = vsel %vm366_vm0, %v6263_v33, %v6278_v54  ;;  %v6276_v27 = vrot.slane %v6263_v33, 4 }
 0x7d1   : > { %6302 = vrot.lane.b32.xlu2 %v6269_v30, %s11113_s18  ;;  %v6281_v5 = vsel %vm366_vm0, %v6280_v31, %v16816_v3 }
 0x7d2   : > { %v6277_v19 = vsel %vm366_vm0, %v6276_v27, %v6239_v44 }
 0x7d7   : > { %6300 = vrot.lane.b32.xlu1 %v6157_v36, %s11113_s18  ;;  %6316 = vrot.lane.b32.xlu0 %v6165_v24, %s11113_s18 }
 0x7d9   : > { %6308 = vrot.lane.b32.xlu2 %v6161_v63, %s11113_s18 }
 0x7df   : > { %6306 = vrot.lane.b32.xlu1 %v6271_v50, %s11113_s18  ;;  %6322 = vrot.lane.b32.xlu0 %v6279_v21, %s11113_s18 }
 0x7e1   : > { %6314 = vrot.lane.b32.xlu2 %v6275_v4, %s11113_s18 }
 0x7e7   : > { %6312 = vrot.lane.b32.xlu1 %v6163_v11, %s11113_s18 }
 0x7e9   : > { %6320 = vrot.lane.b32.xlu2 %v6167_v59, %s11113_s18 }
 0x7ef   : > { %6318 = vrot.lane.b32.xlu1 %v6277_v19, %s11113_s18 }
 0x7f1   : > { %6326 = vrot.lane.b32.xlu2 %v6281_v5, %s11113_s18 }
 0x7f7   : > { %6324 = vrot.lane.b32.xlu1 %v6169_v49, %s11113_s18 }
 0x82b   : > { %v6303_v16 = vpop.permute.xlu2 %6302 }
 0x82c   : > { %6349 = vst.msk [vmem:[#allocation2 + $0x9] sm:$0xff] %vm549_vm3, %v6303_v16 }
 0x831   : > { %v6329_v58 = vpop.permute.xlu0 %6328 }
 0x832   : > { %6362 = vst.msk [vmem:[#allocation2 + $0xa9] sm:$0xff] %vm549_vm3, %v6329_v58 }
 0x833   : > { %v6309_v1 = vpop.permute.xlu2 %6308  ;;  %v16959_v36 = vld [vmem:[#allocation2 + $0x10] sm:$0x3] }
 0x834   : > { %6352 = vst.msk [vmem:[#allocation2 + $0x31] sm:$0xff] %vm549_vm3, %v6309_v1  ;;  %v7393_v21 = vrot.slane %v16959_v36, 1 }
 0x839   : > { %v6305_v57 = vpop.permute.xlu0 %6304  ;;  %v16891_v40 = vld [vmem:[#allocation2 + $0xa8] sm:$0xff] }
 0x83a   : > { %6350 = vst.msk [vmem:[#allocation2 + $0x19] sm:$0xff] %vm549_vm3, %v6305_v57  ;;  %v7425_v54 = vrot.slane %v16891_v40, 1 }
 0x83b   : > { %v6315_v3 = vpop.permute.xlu2 %6314  ;;  %v16898_v32 = vld [vmem:[#allocation2 + $0x30] sm:$0xff] }
 0x83c   : > { %6355 = vst.msk [vmem:[#allocation2 + $0x51] sm:$0xff] %vm549_vm3, %v6315_v3 }
 0x841   : > { %v6331_v48 = vpop.permute.xlu1 %6330  ;;  %v6311_v35 = vpop.permute.xlu0 %6310  ;;  %v16921_v55 = vld [vmem:[#allocation2 + $0x18] sm:$0xff] }
 0x842   : > { %6363 = vst.msk [vmem:[#allocation2 + $0xb1] sm:$0xff] %vm549_vm3, %v6331_v48  ;;  %v7395_v24 = vrot.slane %v16921_v55, 1 }
 0x843   : > { %6353 = vst.msk [vmem:[#allocation2 + $0x39] sm:$0xff] %vm549_vm3, %v6311_v35  ;;  %v6321_v12 = vpop.permute.xlu2 %6320  ;;  %v16989_v11 = vld [vmem:[#allocation2 + $0x58] sm:$0x3] }
 0x844   : > { %6358 = vst.msk [vmem:[#allocation2 + $0x79] sm:$0xff] %vm549_vm3, %v6321_v12  ;;  %v7408_v43 = vrot.slane %v16989_v11, 1 }
 0x849   : > { %v6301_v9 = vpop.permute.xlu1 %6300  ;;  %v6317_v41 = vpop.permute.xlu0 %6316  ;;  %v16893_v28 = vld [vmem:[#allocation2 + $0xb0] sm:$0xff]  ;;  %v16953_v45 = vld [vmem:[#allocation2 + $0xb8] sm:$0x3] }
 0x84a   : > { %6348 = vst.msk [vmem:[#allocation2 + $0x1] sm:$0xff] %vm549_vm3, %v6301_v9  ;;  %v10570_v60 = vpack.i.bf16 %v16893_v28, %v16891_v40  ;;  %v16900_v14 = vld [vmem:[#allocation2 + $0x38] sm:$0xff]  ;;  %v7426_v39 = vrot.slane %v16893_v28, 1  ;;  %v7428_v8 = vrot.slane %v16953_v45, 1  ;;  %v17004_v49 = vld [vmem:[#allocation2 + $0x40] sm:$0x3] }
 0x84b   : > { %6356 = vst.msk [vmem:[#allocation2 + $0x61] sm:$0xff] %vm549_vm3, %v6317_v41  ;;  %v6327_v0 = vpop.permute.xlu2 %6326  ;;  %v10590_v34 = vpack.i.bf16 %v16900_v14, %v16898_v32  ;;  %v16930_v23 = vld [vmem:[#allocation2 + $0x78] sm:$0xff]  ;;  %v7401_v12 = vrot.slane %v16900_v14, 1 }
 0x84c   : > { %6361 = vst.msk [vmem:[#allocation2 + $0x99] sm:$0xff] %vm549_vm3, %v6327_v0  ;;  %10571 = vrot.lane.b32.xlu1 %v10570_v60, %s11116_s23  ;;  %v16984_v4 = vsel %vm1183_vm4, %v7425_v54, %v7426_v39  ;;  %v16987_v20 = vsel %vm1183_vm4, %v7426_v39, %v7428_v8  ;;  %v7403_v0 = vrot.slane %v17004_v49, 1 }
 0x84d   : > { %10591 = vrot.lane.b32.xlu2 %v10590_v34, %s11116_s23 }
 0x851   : > { %v6307_v37 = vpop.permute.xlu1 %6306  ;;  %v6323_v29 = vpop.permute.xlu0 %6322  ;;  %v16908_v7 = vld [vmem:[#allocation2] sm:$0xff]  ;;  %v16910_v38 = vld [vmem:[#allocation2 + $0x8] sm:$0xff] }
 0x852   : > { %6351 = vst.msk [vmem:[#allocation2 + $0x21] sm:$0xff] %vm549_vm3, %v6307_v37  ;;  %v16915_v10 = vpack.i.bf16 %v16910_v38, %v16908_v7  ;;  %v16962_v2 = vld [vmem:[#allocation2 + $0x60] sm:$0xff]  ;;  %v7390_v63 = vrot.slane %v16908_v7, 1  ;;  %v7391_v33 = vrot.slane %v16910_v38, 1 }
 0x853   : > { %6359 = vst.msk [vmem:[#allocation2 + $0x81] sm:$0xff] %vm549_vm3, %v6323_v29  ;;  %v7410_v39 = vrot.slane %v16962_v2, 1  ;;  %v17062_v54 = vld [vmem:[#allocation2 + $0xa0] sm:$0x3] }
 0x854   : > { %10576 = vrot.lane.b32.xlu1 %v10570_v60, %s11115_s22  ;;  %10581 = vrot.lane.b32.xlu0 %v16915_v10, %s11116_s23  ;;  %v16997_v31 = vsel %vm1183_vm4, %v7390_v63, %v7391_v33  ;;  %v17000_v19 = vsel %vm1183_vm4, %v7391_v33, %v7393_v21 }
 0x855   : > { %v7448_v9 = vrot.slane %v16997_v31, 4  ;;  %v7560_v29 = vrot.slane %v17000_v19, 4 }
 0x859   : > { %v6313_v53 = vpop.permute.xlu1 %6312  ;;  %v16923_v42 = vld [vmem:[#allocation2 + $0x20] sm:$0xff]  ;;  %v16950_v51 = vld [vmem:[#allocation2 + $0x28] sm:$0x3] }
 0x85a   : > { %6354 = vst.msk [vmem:[#allocation2 + $0x49] sm:$0xff] %vm549_vm3, %v6313_v53  ;;  %v16928_v17 = vpack.i.bf16 %v16923_v42, %v16921_v55  ;;  %v16932_v30 = vld [vmem:[#allocation2 + $0x80] sm:$0xff]  ;;  %v7396_v6 = vrot.slane %v16923_v42, 1  ;;  %v7398_v15 = vrot.slane %v16950_v51, 1 }
 0x85b   : > { %v10605_v26 = vpack.i.bf16 %v16932_v30, %v16930_v23 }
 0x85c   : > { %10586 = vrot.lane.b32.xlu1 %v16928_v17, %s11116_s23  ;;  %v16975_v50 = vsel %vm1183_vm4, %v7395_v24, %v7396_v6  ;;  %v16979_v52 = vsel %vm1183_vm4, %v7396_v6, %v7398_v15  ;;  %v10650_v15 = vpack.i.bf16 %v16987_v20, %v16984_v4 }
 0x85d   : > { %10606 = vrot.lane.b32.xlu2 %v10605_v26, %s11116_s23  ;;  %v7460_v5 = vrot.slane %v16975_v50, 4  ;;  %v7572_v16 = vrot.slane %v16979_v52, 4 }
 0x861   : > { %v6319_v47 = vpop.permute.xlu1 %6318  ;;  %v16939_v61 = vld [vmem:[#allocation2 + $0x48] sm:$0xff]  ;;  %v16941_v18 = vld [vmem:[#allocation2 + $0x50] sm:$0xff] }
 0x862   : > { %6357 = vst.msk [vmem:[#allocation2 + $0x69] sm:$0xff] %vm549_vm3, %v6319_v47  ;;  %v16946_v62 = vpack.i.bf16 %v16941_v18, %v16939_v61  ;;  %v7405_v56 = vrot.slane %v16939_v61, 1  ;;  %v7406_v59 = vrot.slane %v16941_v18, 1 }
 0x864   : > { %10596 = vrot.lane.b32.xlu0 %v16946_v62, %s11116_s23  ;;  %v17008_v58 = vsel %vm1183_vm4, %v7405_v56, %v7406_v59  ;;  %v17013_v3 = vsel %vm1183_vm4, %v7406_v59, %v7408_v43 }
 0x865   : > { %10626 = vrot.lane.b32.xlu2 %v10590_v34, %s11115_s22  ;;  %v7458_v48 = vrot.slane %v17008_v58, 4  ;;  %v17018_v35 = vsel %vm366_vm0, %v17008_v58, %v7460_v5  ;;  %v7570_v41 = vrot.slane %v17013_v3, 4  ;;  %v17025_v60 = vsel %vm366_vm0, %v17013_v3, %v7572_v16 }
 0x866   : > { %v7423_v16 = vrot.slane %v17062_v54, 1 }
 0x867   : > { %v17035_v53 = vsel %vm366_vm0, %v7458_v48, %v16975_v50  ;;  %v17042_v6 = vsel %vm366_vm0, %v7570_v41, %v16979_v52 }
 0x868   : > { %21054 = vst [vmem:[#allocation38_spill] sm:$0xff] %v17042_v6  ;;  %v10660_v6 = vpack.i.bf16 %v17000_v19, %v16997_v31 }
 0x869   : > { %v6325_v22 = vpop.permute.xlu1 %6324  ;;  %v16964_v44 = vld [vmem:[#allocation2 + $0x68] sm:$0xff]  ;;  %v16993_v27 = vld [vmem:[#allocation2 + $0x70] sm:$0x3] }
 0x86a   : > { %6360 = vst.msk [vmem:[#allocation2 + $0x91] sm:$0xff] %vm549_vm3, %v6325_v22  ;;  %v16971_v25 = vpack.i.bf16 %v16964_v44, %v16962_v2  ;;  %v7411_v1 = vrot.slane %v16964_v44, 1  ;;  %v7413_v57 = vrot.slane %v16993_v27, 1  ;;  %v17055_v22 = vsel %vm1183_vm4, %v7401_v12, %v7403_v0 }
 0x86b   : > { %v7558_v59 = vrot.slane %v17055_v22, 4 }
 0x86c   : > { %10601 = vrot.lane.b32.xlu1 %v16971_v25, %s11116_s23  ;;  %v7414_v8 = vsel %vm1183_vm4, %v7411_v1, %v7413_v57  ;;  %v7412_v56 = vsel %vm1183_vm4, %v7410_v39, %v7411_v1 }
 0x86d   : > { %10641 = vrot.lane.b32.xlu2 %v10605_v26, %s11115_s22  ;;  %v7400_v26 = vrot.slane %v16898_v32, 1  ;;  %v7584_v57 = vrot.slane %v7414_v8, 4  ;;  %v17080_v48 = vsel %vm366_vm0, %v7558_v59, %v17000_v19  ;;  %v7472_v1 = vrot.slane %v7412_v56, 4 }
 0x86e   : > { %v7415_v59 = vrot.slane %v16930_v23, 1  ;;  %v8437_v19 = vrot.slane %v17004_v49, 2  ;;  %v20249_v49 = vrot.slane %v16910_v38, 2 }
 0x86f   : > { %v17049_v24 = vsel %vm1183_vm4, %v7400_v26, %v7401_v12 }
 0x870   : > { %v7446_v63 = vrot.slane %v17049_v24, 4  ;;  %v17060_v33 = vsel %vm366_vm0, %v17049_v24, %v7448_v9 }
 0x871   : > { %v17028_v34 = vld [vmem:[#allocation2 + $0x90] sm:$0xff]  ;;  %v17030_v37 = vld [vmem:[#allocation2 + $0x98] sm:$0xff] }
 0x872   : > { %v10610_v47 = vpack.i.bf16 %v17030_v37, %v17028_v34  ;;  %v7420_v21 = vrot.slane %v17028_v34, 1  ;;  %v17074_v5 = vsel %vm366_vm0, %v7446_v63, %v16997_v31  ;;  %v7421_v43 = vrot.slane %v17030_v37, 1 }
 0x873   : > { %v8435_v31 = vrot.slane %v16900_v14, 2 }
 0x874   : > { %10611 = vrot.lane.b32.xlu0 %v10610_v47, %s11116_s23  ;;  %10621 = vrot.lane.b32.xlu1 %v16928_v17, %s11115_s22  ;;  %v17070_v17 = vsel %vm366_vm0, %v17055_v22, %v7560_v29  ;;  %v7422_v12 = vsel %vm1183_vm4, %v7420_v21, %v7421_v43  ;;  %v7424_v9 = vsel %vm1183_vm4, %v7421_v43, %v7423_v16  ;;  %v17101_v21 = vld [vmem:[#allocation2 + $0x88] sm:$0x3]  ;;  %v7416_v43 = vrot.slane %v16932_v30, 1 }
 0x875   : > { %10651 = vrot.lane.b32.xlu2 %v10650_v15, %s11116_s23  ;;  %v7582_v41 = vrot.slane %v7424_v9, 4  ;;  %v7470_v0 = vrot.slane %v7422_v12, 4  ;;  %v17085_v29 = vsel %vm366_vm0, %v7424_v9, %v7584_v57  ;;  %v17088_v26 = vsel %vm366_vm0, %v7422_v12, %v7472_v1 }
 0x876   : > { %v7482_v16 = vrot.slane %v16984_v4, 4  ;;  %v7418_v57 = vrot.slane %v17101_v21, 1  ;;  %v7594_v1 = vrot.slane %v16987_v20, 4 }
 0x877   : > { %v17091_v39 = vsel %vm366_vm0, %v7582_v41, %v7414_v8  ;;  %v17094_v63 = vsel %vm366_vm0, %v7470_v0, %v7412_v56  ;;  %v7417_v41 = vsel %vm1183_vm4, %v7415_v59, %v7416_v43  ;;  %v10665_v59 = vpack.i.bf16 %v16979_v52, %v16975_v50 }
 0x878   : > { %21055 = vst [vmem:[#allocation47_spill] sm:$0xff] %v17091_v39  ;;  %v10675_v50 = vpack.i.bf16 %v17013_v3, %v17008_v58  ;;  %v8438_v52 = vsel %vm1806_vm5, %v8435_v31, %v8437_v19  ;;  %v8440_v3 = vrot.slane %v16941_v18, 2  ;;  %v10670_v19 = vpack.i.bf16 %v17055_v22, %v17049_v24 }
 0x879   : > { %21056 = vst [vmem:[#allocation44_spill] sm:$0xff] %v17094_v63  ;;  %v8592_v58 = vrot.slane %v8438_v52, 4  ;;  %v20250_v22 = vrot.slane %v16964_v44, 2 }
 0x87c   : > { %10616 = vrot.lane.b32.xlu0 %v16915_v10, %s11115_s22  ;;  %10636 = vrot.lane.b32.xlu1 %v16971_v25, %s11115_s22  ;;  %v7419_v10 = vsel %vm1183_vm4, %v7416_v43, %v7418_v57  ;;  %v17111_v25 = vsel %vm366_vm0, %v7482_v16, %v7417_v41  ;;  %v8432_v16 = vrot.slane %v16950_v51, 2  ;;  %v8427_v51 = vrot.slane %v16959_v36, 2 }
 0x87d   : > { %10656 = vrot.lane.b32.xlu2 %v10650_v15, %s11115_s22  ;;  %v7484_v15 = vrot.slane %v7417_v41, 4  ;;  %v17114_v0 = vsel %vm366_vm0, %v7594_v1, %v7419_v10  ;;  %v7596_v39 = vrot.slane %v7419_v10, 4 }
 0x87f   : > { %v17120_v63 = vsel %vm366_vm0, %v16984_v4, %v7484_v15  ;;  %v17126_v43 = vsel %vm366_vm0, %v16987_v20, %v7596_v39  ;;  %v8430_v4 = vrot.slane %v16923_v42, 2 }
 0x880   : > { %21057 = vst [vmem:[#allocation17_spill] sm:$0xff] %v17126_v43 }
 0x881   : > { %v8433_v20 = vsel %vm1806_vm5, %v8430_v4, %v8432_v16  ;;  %v10690_v16 = vpack.i.bf16 %v7424_v9, %v7422_v12  ;;  %v8447_v12 = vrot.slane %v16993_v27, 2  ;;  %v20248_v9 = vrot.slane %v16932_v30, 2 }
 0x884   : > { %10631 = vrot.lane.b32.xlu0 %v16946_v62, %s11115_s22  ;;  %10661 = vrot.lane.b32.xlu1 %v10660_v6, %s11116_s23  ;;  %v10680_v62 = vpack.i.bf16 %v7414_v8, %v7412_v56  ;;  %v17153_v8 = vsel %vm1806_vm5, %v20249_v49, %v8427_v51  ;;  %v8606_v56 = vrot.slane %v8433_v20, 4 }
 0x885   : > { %10666 = vrot.lane.b32.xlu2 %v10665_v59, %s11116_s23  ;;  %v17158_v39 = vsel %vm366_vm0, %v8592_v58, %v17153_v8  ;;  %v8594_v57 = vrot.slane %v17153_v8, 4  ;;  %v8455_v58 = vrot.slane %v17030_v37, 2 }
 0x887   : > { %v17167_v1 = vsel %vm366_vm0, %v8438_v52, %v8594_v57  ;;  %v10685_v57 = vpack.i.bf16 %v7419_v10, %v7417_v41  ;;  %v8462_v41 = vrot.slane %v16953_v45, 2 }
 0x888   : > { %21058 = vst [vmem:[#allocation45_spill] sm:$0xff] %v17167_v1 }
 0x88c   : > { %10646 = vrot.lane.b32.xlu0 %v10610_v47, %s11115_s22  ;;  %10676 = vrot.lane.b32.xlu1 %v10675_v50, %s11116_s23  ;;  %v8442_v47 = vrot.slane %v16989_v11, 2 }
 0x88d   : > { %10681 = vrot.lane.b32.xlu2 %v10680_v62, %s11116_s23 }
 0x88e   : > { %v17164_v36 = vsel %vm1806_vm5, %v8440_v3, %v8442_v47  ;;  %v8457_v47 = vrot.slane %v17062_v54, 2  ;;  %v8452_v54 = vrot.slane %v17101_v21, 2 }
 0x88f   : > { %v8604_v15 = vrot.slane %v17164_v36, 4  ;;  %v17172_v11 = vsel %vm366_vm0, %v17164_v36, %v8606_v56 }
 0x890   : > { %v17185_v56 = vsel %vm1806_vm5, %v8455_v58, %v8457_v47  ;;  %v17205_v10 = vsel %vm1806_vm5, %v20248_v9, %v8452_v54  ;;  %v17220_v47 = vpack.i.bf16 %v8438_v52, %v8433_v20  ;;  %v17261_v9 = vperm.slane %v17085_v29, %v21052_v13 }
 0x891   : > { %v17177_v51 = vsel %vm366_vm0, %v8604_v15, %v8433_v20  ;;  %v8616_v24 = vrot.slane %v17185_v56, 4  ;;  %v8630_v21 = vrot.slane %v17205_v10, 4  ;;  %v8429_v20 = vrot.slane %v16921_v55, 2 }
 0x892   : > { %21063 = vst [vmem:[#allocation18_spill] sm:$0xff] %v17261_v9  ;;  %v8439_v29 = vrot.slane %v16939_v61, 2 }
 0x894   : > { %10671 = vrot.lane.b32.xlu0 %v10670_v19, %s11116_s23  ;;  %10691 = vrot.lane.b32.xlu1 %v10690_v16, %s11116_s23 }
 0x895   : > { %10701 = vrot.lane.b32.xlu2 %v10665_v59, %s11115_s22  ;;  %v20251_v59 = vrot.slane %v16893_v28, 2 }
 0x897   : > { %v17214_v45 = vsel %vm1806_vm5, %v20251_v59, %v8462_v41  ;;  %v6424_v41 = vrot.slane %v16891_v40, 4  ;;  %v6400_v59 = vrot.slane %v16939_v61, 4 }
 0x898   : > { %v17228_v54 = vsel %vm366_vm0, %v17214_v45, %v8630_v21  ;;  %v6536_v21 = vrot.slane %v16893_v28, 4 }
 0x89c   : > { %10696 = vrot.lane.b32.xlu1 %v10660_v6, %s11115_s22  ;;  %10686 = vrot.lane.b32.xlu0 %v10685_v57, %s11116_s23  ;;  %v17200_v6 = vsel %vm1806_vm5, %v20250_v22, %v8447_v12  ;;  %v8628_v12 = vrot.slane %v17214_v45, 4  ;;  %v17285_v22 = vperm.slane %v17074_v5, %v21052_v13  ;;  %v17305_v5 = vsel %vm1806_vm5, %v8429_v20, %v8430_v4 }
 0x89d   : > { %10716 = vrot.lane.b32.xlu2 %v10680_v62, %s11115_s22  ;;  %v8617_v27 = vsel %vm366_vm0, %v8616_v24, %v17200_v6  ;;  %v8618_v62 = vrot.slane %v17200_v6, 4  ;;  %v8454_v24 = vrot.slane %v17028_v34, 2  ;;  %21068 = vst [vmem:[#allocation9_spill] sm:$0xff] %v17305_v5  ;;  %v17325_v4 = vperm.slane %v17158_v39, %v21052_v13 }
 0x89e   : > { %v17235_v52 = vsel %vm366_vm0, %v8628_v12, %v17205_v10  ;;  %v17265_v12 = vperm.slane %v17088_v26, %v21052_v13  ;;  %v17281_v26 = vperm.slane %v17070_v17, %v21052_v13  ;;  %v17336_v20 = vsel %vm1806_vm5, %v8439_v29, %v8440_v3 }
 0x89f   : > { %v17218_v15 = vsel %vm366_vm0, %v17185_v56, %v8618_v62  ;;  %21059 = vst [vmem:[#allocation46_spill] sm:$0xff] %v17235_v52  ;;  %v17245_v62 = vperm.slane %v17025_v60, %v21052_v13  ;;  %v6512_v60 = vrot.slane %v16941_v18, 4  ;;  %v17341_v49 = vperm.slane %v8617_v27, %v21052_v13 }
 0x8a0   : > { %21064 = vst [vmem:[#allocation12_spill] sm:$0xff] %v17265_v12  ;;  %v17352_v3 = vpack.i.bf16 %v17205_v10, %v17200_v6  ;;  %v6412_v27 = vrot.slane %v17028_v34, 4  ;;  %v6524_v6 = vrot.slane %v17030_v37, 4  ;;  %v17372_v10 = vperm.slane %v17218_v15, %v21052_v13 }
 0x8a1   : > { %21061 = vst [vmem:[#allocation5_spill] sm:$0xff] %v17245_v62  ;;  %v21081_v52 = vrot.slane %v16964_v44, 2 }
 0x8a2   : > { %21066 = vst [vmem:[#allocation60_spill] sm:$0xff] %v17281_v26  ;;  %v6413_v15 = vsel %vm366_vm0, %v6412_v27, %v16962_v2 }
 0x8a3   : > { %21070 = vst [vmem:[#allocation49_spill] sm:$0xff] %v17325_v4  ;;  %v17415_v4 = vperm.slane %v17228_v54, %v21052_v13 }
 0x8a4   : > { %10711 = vrot.lane.b32.xlu1 %v10675_v50, %s11115_s22  ;;  %10706 = vrot.lane.b32.xlu0 %v10670_v19, %s11115_s22  ;;  %v17241_v19 = vperm.slane %v17018_v35, %v21052_v13  ;;  %v17255_v35 = vsel %vm1806_vm5, %v8454_v24, %v8455_v58  ;;  %v17271_v58 = vperm.slane %v17060_v33, %v21052_v13 }
 0x8a5   : > { %10741 = vrot.lane.b32.xlu2 %v17220_v47, %s11115_s22  ;;  %21062 = vst [vmem:[#allocation48_spill] sm:$0xff] %v17255_v35  ;;  %v17275_v24 = vpack.i.bf16 %v17153_v8, %v17255_v35  ;;  %v17291_v33 = vperm.slane %v17172_v11, %v21052_v13  ;;  %v8434_v8 = vrot.slane %v16898_v32, 2  ;;  %v17296_v50 = vperm.slane %v17080_v48, %v21052_v13 }
 0x8a6   : > { %21060 = vst [vmem:[#allocation55_spill] sm:$0xff] %v17241_v19  ;;  %v17309_v11 = vperm.slane %v17114_v0, %v21052_v13  ;;  %v17313_v48 = vperm.slane %v17111_v25, %v21052_v13  ;;  %v17329_v0 = vperm.slane %v17177_v51, %v21052_v13  ;;  %v10735_v25 = vpack.i.bf16 %v17185_v56, %v17164_v36 }
 0x8a7   : > { %21065 = vst [vmem:[#allocation25_spill] sm:$0xff] %v17271_v58  ;;  %v17321_v17 = vpop.permute.xlu2 %10591  ;;  %v6401_v36 = vsel %vm366_vm0, %v6400_v59, %v16921_v55  ;;  %v6425_v51 = vsel %vm366_vm0, %v6424_v41, %v16930_v23  ;;  %v6513_v59 = vsel %vm366_vm0, %v6512_v60, %v16923_v42  ;;  %v8459_v60 = vrot.slane %v16891_v40, 2 }
 0x8a8   : > { %21067 = vst [vmem:[#allocation35_spill] sm:$0xff] %v17291_v33  ;;  %v17356_v29 = vperm.slane %v6401_v36, %v21052_v13  ;;  %v17378_v41 = vperm.slane %v6513_v59, %v21052_v13  ;;  %v17394_v59 = vperm.slane %v6425_v51, %v21052_v13  ;;  %v21076_v33 = vrot.slane %v16900_v14, 4 }
 0x8a9   : > { %21071 = vst [vmem:[#allocation14_spill] sm:$0xff] %v17329_v0 }
 0x8aa   : > { %21072 = vst [vmem:[#allocation15_spill] sm:$0xff] %v17336_v20  ;;  %v6436_v36 = vrot.slane %v17356_v29, 4 }
 0x8ab   : > { %21073 = vst [vmem:[#allocation50_spill] sm:$0xff] %v17341_v49  ;;  %v6548_v49 = vrot.slane %v17378_v41, 4 }
 0x8ac   : > { %10726 = vrot.lane.b32.xlu1 %v10690_v16, %s11115_s22  ;;  %10721 = vrot.lane.b32.xlu0 %v10685_v57, %s11115_s22  ;;  %v8504_v16 = vrot.slane %v17255_v35, 4  ;;  %v17319_v57 = vsel %vm1806_vm5, %v8434_v8, %v8435_v31  ;;  %v8494_v8 = vrot.slane %v17305_v5, 4  ;;  %v17361_v31 = vpack.i.bf16 %v17214_v45, %v17336_v20  ;;  %21074 = vst [vmem:[#allocation51_spill] sm:$0xff] %v17372_v10 }
 0x8ad   : > { %10756 = vrot.lane.b32.xlu2 %v17275_v24, %s11115_s22  ;;  %21069 = vst [vmem:[#allocation10_spill] sm:$0xff] %v17319_v57  ;;  %v17345_v39 = vpack.i.bf16 %v17319_v57, %v17305_v5  ;;  %v6501_v10 = vsel %vm366_vm0, %v21076_v33, %v16910_v38  ;;  %v21079_v33 = vrot.slane %v16893_v28, 2 }
 0x8ae   : > { %v8495_v45 = vsel %vm366_vm0, %v17336_v20, %v8494_v8  ;;  %v6537_v8 = vsel %vm366_vm0, %v6536_v21, %v16932_v30  ;;  %v8444_v21 = vrot.slane %v16962_v2, 2  ;;  %21078 = vst [vmem:[#allocation37_spill] sm:$0xff] %v17415_v4  ;;  %v17435_v54 = vperm.slane %v6501_v10, %v21052_v13 }
 0x8af   : > { %v17406_v27 = vperm.slane %v8495_v45, %v21052_v13  ;;  %v17410_v51 = vperm.slane %v6537_v8, %v21052_v13  ;;  %v17426_v45 = vperm.slane %v6413_v15, %v21052_v13  ;;  %v6460_v15 = vrot.slane %v17394_v59, 4 }
 0x8b0   : > { %v6549_v8 = vsel %vm366_vm0, %v6548_v49, %v17435_v54  ;;  %v8424_v49 = vrot.slane %v16908_v7, 2  ;;  %v21085_v20 = vunpack.i.l.bf16 %v17321_v17 }
 0x8b1   : > { %21077 = vst [vmem:[#allocation29_spill] sm:$0xff] %v17406_v27  ;;  %v17432_v27 = vsel %vm1806_vm5, %v8444_v21, %v21081_v52  ;;  %v6572_v52 = vrot.slane %v17410_v51, 4  ;;  %v21083_v21 = vunpack.i.h.bf16 %v17321_v17  ;;  %v17480_v62 = vperm.slane %v6549_v8, %v21053_v46 }
 0x8b2   : > { %21082 = vst [vmem:[#allocation52_spill] sm:$0xff] %v17432_v27 }
 0x8b3   : > { %21086 = vst [vmem:[#allocation36_spill] sm:$0xff] %v17480_v62 }
 0x8b4   : > { %10736 = vrot.lane.b32.xlu1 %v10735_v25, %s11116_s23  ;;  %10731 = vrot.lane.b32.xlu0 %v10735_v25, %s11115_s22  ;;  %v21075_v25 = vrot.slane %v16898_v32, 4 }
 0x8b5   : > { %10771 = vrot.lane.b32.xlu2 %v17345_v39, %s11115_s22 }
 0x8b6   : > { %v6389_v56 = vsel %vm366_vm0, %v21075_v25, %v16908_v7  ;;  %v6525_v25 = vsel %vm366_vm0, %v6524_v6, %v16964_v44  ;;  %v17420_v6 = vsel %vm1806_vm5, %v8459_v60, %v21079_v33  ;;  %v17463_v60 = vrot.slane %v21083_v21, 4 }
 0x8b7   : > { %v17403_v1 = vpop.permute.xlu2 %10606  ;;  %21080 = vst [vmem:[#allocation53_spill] sm:$0xff] %v17420_v6  ;;  %v17423_v0 = vperm.slane %v6389_v56, %v21052_v13  ;;  %v17438_v4 = vperm.slane %v6525_v25, %v21052_v13  ;;  %v8516_v33 = vrot.slane %v17420_v6, 4  ;;  %v17454_v10 = vpack.i.bf16 %v17432_v27, %v17420_v6 }
 0x8b8   : > { %v6461_v25 = vsel %vm366_vm0, %v6460_v15, %v17426_v45  ;;  %v17475_v15 = vrot.slane %v21085_v20, 4  ;;  %v10609_v5 = vunpack.i.h.bf16 %v17403_v1  ;;  %v10608_v21 = vunpack.i.l.bf16 %v17403_v1 }
 0x8b9   : > { %v6437_v56 = vsel %vm366_vm0, %v6436_v36, %v17423_v0  ;;  %v8505_v36 = vsel %vm366_vm0, %v8504_v16, %v17432_v27  ;;  %v6573_v16 = vsel %vm366_vm0, %v6572_v52, %v17438_v4  ;;  %v17488_v35 = vperm.slane %v6461_v25, %v21053_v46 }
 0x8ba   : > { %v17469_v6 = vperm.slane %v6437_v56, %v21053_v46  ;;  %v17485_v56 = vperm.slane %v8505_v36, %v21052_v13  ;;  %v8449_v52 = vrot.slane %v16930_v23, 2  ;;  %v17492_v27 = vperm.slane %v6573_v16, %v21053_v46 }
 0x8bb   : > { %21088 = vst [vmem:[#allocation59_spill] sm:$0xff] %v17488_v35  ;;  %v21090_v1 = vrot.slane %v16910_v38, 2  ;;  %v21092_v36 = vrot.slane %v16932_v30, 2  ;;  %v6390_v25 = vrot.slane %v16908_v7, 4  ;;  %v6896_v43 = vrot.slane %v10609_v5, 4 }
 0x8bc   : > { %10751 = vrot.lane.b32.xlu1 %v17352_v3, %s11115_s22  ;;  %10746 = vrot.lane.b32.xlu0 %v17361_v31, %s11115_s22  ;;  %21084 = vst [vmem:[#allocation7_spill] sm:$0xff] %v17469_v6  ;;  %v6486_v19 = vrot.slane %v17469_v6, 4  ;;  %v6784_v26 = vrot.slane %v10608_v21, 4  ;;  %v6598_v16 = vrot.slane %v17480_v62, 4 }
 0x8bd   : > { %10786 = vrot.lane.b32.xlu2 %v17275_v24, %s11116_s23  ;;  %21087 = vst [vmem:[#allocation42_spill] sm:$0xff] %v17485_v56  ;;  %v17497_v12 = vsel %vm1806_vm5, %v8424_v49, %v21090_v1  ;;  %v17503_v56 = vsel %vm1806_vm5, %v8449_v52, %v21092_v36  ;;  %v21094_v49 = vrot.slane %v17319_v57, 4  ;;  %v21095_v52 = vrot.slane %v16921_v55, 4 }
 0x8be   : > { %v10572_v9 = vpop.permute.xlu1 %10571  ;;  %21089 = vst [vmem:[#allocation8_spill] sm:$0xff] %v17492_v27  ;;  %v6487_v58 = vsel %vm366_vm0, %v17488_v35, %v6486_v19  ;;  %v6599_v19 = vsel %vm366_vm0, %v17492_v27, %v6598_v16  ;;  %v21096_v1 = vrot.slane %v16930_v23, 4  ;;  %v6391_v16 = vsel %vm366_vm0, %v16898_v32, %v6390_v25 }
 0x8bf   : > { %v17482_v24 = vpop.permute.xlu2 %10626  ;;  %v10573_v20 = vunpack.i.l.bf16 %v10572_v9  ;;  %21091 = vst [vmem:[#allocation21_spill] sm:$0xff] %v17497_v12  ;;  %v10574_v8 = vunpack.i.h.bf16 %v10572_v9  ;;  %v17513_v9 = vsel %vm366_vm0, %v21094_v49, %v17497_v12  ;;  %v6403_v7 = vsel %vm366_vm0, %v16939_v61, %v21095_v52 }
 0x8c0   : > { %21093 = vst [vmem:[#allocation24_spill] sm:$0xff] %v17503_v56  ;;  %v17528_v49 = vpack.i.bf16 %v17497_v12, %v17503_v56  ;;  %v6427_v55 = vsel %vm366_vm0, %v16891_v40, %v21096_v1  ;;  %v20282_v62 = vunpack.i.h.bf16 %v17482_v24  ;;  %v17547_v1 = vperm.slane %v6403_v7, %v21052_v13 }
 0x8c1   : > { %v6782_v36 = vrot.slane %v10573_v20, 4  ;;  %v6894_v61 = vrot.slane %v10574_v8, 4  ;;  %v6785_v52 = vsel %vm366_vm0, %v10573_v20, %v6784_v26  ;;  %v6897_v23 = vsel %vm366_vm0, %v10574_v8, %v6896_v43 }
 0x8c2   : > { %v21097_v57 = vrot.slane %v16962_v2, 4  ;;  %v17554_v32 = vperm.slane %v6427_v55, %v21052_v13  ;;  %v17558_v8 = vperm.slane %v6391_v16, %v21052_v13  ;;  %v17561_v25 = vperm.slane %v6785_v52, %v21052_v13 }
 0x8c3   : > { %v6783_v43 = vsel %vm366_vm0, %v6782_v36, %v10608_v21  ;;  %v17565_v2 = vperm.slane %v6897_v23, %v21052_v13 }
 0x8c4   : > { %10766 = vrot.lane.b32.xlu1 %v17361_v31, %s11116_s23  ;;  %10761 = vrot.lane.b32.xlu0 %v17220_v47, %s11116_s23  ;;  %v17538_v31 = vsel %vm366_vm0, %v8516_v33, %v17503_v56  ;;  %v10810_v33 = vpack.i.bf16 %v6599_v19, %v6487_v58  ;;  %v6415_v47 = vsel %vm366_vm0, %v17028_v34, %v21097_v57  ;;  %v20283_v34 = vunpack.i.l.bf16 %v17482_v24 }
 0x8c5   : > { %10801 = vrot.lane.b32.xlu2 %v17454_v10, %s11116_s23  ;;  %v6895_v58 = vsel %vm366_vm0, %v6894_v61, %v10609_v5  ;;  %v17570_v57 = vrot.slane %v20282_v62, 4  ;;  %v17573_v36 = vperm.slane %v6415_v47, %v21052_v13  ;;  %v17576_v19 = vperm.slane %v6783_v43, %v21052_v13 }
 0x8c6   : > { %v10577_v40 = vpop.permute.xlu1 %10576  ;;  %v10582_v35 = vpop.permute.xlu0 %10581  ;;  %v6448_v5 = vrot.slane %v17547_v1, 4  ;;  %v6472_v61 = vrot.slane %v17554_v32, 4  ;;  %v17581_v16 = vperm.slane %v6895_v58, %v21052_v13  ;;  %v17589_v43 = vrot.slane %v20283_v34, 4 }
 0x8c7   : > { %v10579_v6 = vunpack.i.h.bf16 %v10577_v40  ;;  %v10642_v27 = vpop.permute.xlu2 %10641  ;;  %v10578_v26 = vunpack.i.l.bf16 %v10577_v40  ;;  %v10584_v7 = vunpack.i.h.bf16 %v10582_v35  ;;  %v10583_v40 = vunpack.i.l.bf16 %v10582_v35 }
 0x8c8   : > { %v10644_v20 = vunpack.i.h.bf16 %v10642_v27  ;;  %v10643_v21 = vunpack.i.l.bf16 %v10642_v27  ;;  %v6502_v58 = vrot.slane %v16910_v38, 4  ;;  %v6473_v27 = vsel %vm366_vm0, %v6472_v61, %v17573_v36 }
 0x8c9   : > { %v7236_v55 = vrot.slane %v10579_v6, 4  ;;  %v7124_v52 = vrot.slane %v10578_v26, 4  ;;  %v6859_v35 = vsel %vm366_vm0, %v17463_v60, %v10584_v7  ;;  %v6449_v56 = vsel %vm366_vm0, %v6448_v5, %v17558_v8 }
 0x8ca   : > { %v7238_v23 = vrot.slane %v10644_v20, 4  ;;  %v7126_v62 = vrot.slane %v10643_v21, 4  ;;  %v6748_v12 = vrot.slane %v10583_v40, 4  ;;  %v17611_v61 = vperm.slane %v6859_v35, %v21052_v13 }
 0x8cb   : > { %v7237_v34 = vsel %vm366_vm0, %v7236_v55, %v10644_v20  ;;  %v6747_v20 = vsel %vm366_vm0, %v17475_v15, %v10583_v40  ;;  %v17616_v55 = vperm.slane %v6473_v27, %v21053_v46  ;;  %v21103_v27 = vunpack.i.l.bf16 %v17321_v17 }
 0x8cc   : > { %10781 = vrot.lane.b32.xlu1 %v17352_v3, %s11116_s23  ;;  %10776 = vrot.lane.b32.xlu0 %v17454_v10, %s11115_s22  ;;  %v6860_v3 = vrot.slane %v10584_v7, 4  ;;  %v21098_v10 = vrot.slane %v16923_v42, 4  ;;  %v7239_v60 = vsel %vm366_vm0, %v10579_v6, %v7238_v23  ;;  %v7125_v7 = vsel %vm366_vm0, %v7124_v52, %v10643_v21 }
 0x8cd   : > { %10811 = vrot.lane.b32.xlu2 %v10810_v33, %s11109_s13  ;;  %v6503_v42 = vsel %vm366_vm0, %v16900_v14, %v6502_v58  ;;  %v7127_v6 = vsel %vm366_vm0, %v10578_v26, %v7126_v62  ;;  %v21099_v21 = vunpack.i.h.bf16 %v17321_v17  ;;  %v17631_v15 = vperm.slane %v7239_v60, %v21052_v13 }
 0x8ce   : > { %v6515_v38 = vsel %vm366_vm0, %v16941_v18, %v21098_v10  ;;  %v17621_v18 = vperm.slane %v7237_v34, %v21052_v13  ;;  %v17634_v23 = vperm.slane %v7125_v7, %v21052_v13  ;;  %v21101_v14 = vrot.slane %v16964_v44, 4  ;;  %v17664_v17 = vpop.permute.xlu1 %10586 }
 0x8cf   : > { %v6861_v5 = vsel %vm366_vm0, %v21099_v21, %v6860_v3  ;;  %v17628_v52 = vperm.slane %v6515_v38, %v21052_v13  ;;  %v17636_v40 = vpop.permute.xlu2 %10651  ;;  %v21102_v26 = vrot.slane %v16932_v30, 4  ;;  %v6749_v58 = vsel %vm366_vm0, %v21103_v27, %v6748_v12 }
 0x8d0   : > { %21100 = vst [vmem:[#allocation34_spill] sm:$0xff] %v17636_v40  ;;  %v6527_v62 = vsel %vm366_vm0, %v17030_v37, %v21101_v14  ;;  %v17659_v30 = vperm.slane %v7127_v6, %v21052_v13  ;;  %v17669_v12 = vperm.slane %v6449_v56, %v21053_v46  ;;  %v17675_v38 = vperm.slane %v6503_v42, %v21052_v13 }
 0x8d1   : > { %v6539_v34 = vsel %vm366_vm0, %v16893_v28, %v21102_v26  ;;  %v17652_v35 = vperm.slane %v6527_v62, %v21052_v13  ;;  %v6560_v37 = vrot.slane %v17628_v52, 4  ;;  %v17662_v28 = vperm.slane %v6861_v5, %v21052_v13 }
 0x8d2   : > { %v17655_v44 = vperm.slane %v6539_v34, %v21052_v13  ;;  %v17681_v21 = vperm.slane %v6747_v20, %v21052_v13  ;;  %v17684_v56 = vperm.slane %v6749_v58, %v21052_v13  ;;  %v10589_v5 = vunpack.i.h.bf16 %v17664_v17 }
 0x8d3   : > { %v6561_v14 = vsel %vm366_vm0, %v6560_v37, %v17675_v38  ;;  %v6438_v26 = vrot.slane %v17423_v0, 4  ;;  %v10588_v27 = vunpack.i.l.bf16 %v17664_v17  ;;  %v20286_v20 = vunpack.i.h.bf16 %v17636_v40 }
 0x8d4   : > { %10796 = vrot.lane.b32.xlu1 %v17345_v39, %s11116_s23  ;;  %10791 = vrot.lane.b32.xlu0 %v17528_v49, %s11115_s22  ;;  %v6492_v39 = vrot.slane %v17616_v55, 4  ;;  %v6584_v60 = vrot.slane %v17655_v44, 4  ;;  %v20287_v6 = vunpack.i.l.bf16 %v17636_v40  ;;  %v6462_v3 = vrot.slane %v17426_v45, 4 }
 0x8d5   : > { %v17705_v0 = vperm.slane %v6561_v14, %v21053_v46  ;;  %v6872_v33 = vrot.slane %v10589_v5, 4  ;;  %v6760_v10 = vrot.slane %v10588_v27, 4  ;;  %v6574_v7 = vrot.slane %v17438_v4, 4 }
 0x8d6   : > { %v6585_v42 = vsel %vm366_vm0, %v6584_v60, %v17652_v35  ;;  %v10597_v62 = vpop.permute.xlu0 %10596  ;;  %v6493_v37 = vsel %vm366_vm0, %v6492_v39, %v17669_v12  ;;  %v6439_v60 = vsel %vm366_vm0, %v17356_v29, %v6438_v26  ;;  %v17720_v26 = vrot.slane %v20286_v20, 4 }
 0x8d7   : > { %v17696_v58 = vperm.slane %v6585_v42, %v21053_v46  ;;  %v10599_v34 = vunpack.i.h.bf16 %v10597_v62  ;;  %v17713_v29 = vpop.permute.xlu2 %10656  ;;  %v10598_v45 = vunpack.i.l.bf16 %v10597_v62  ;;  %v6447_v14 = vperm.slane %v6439_v60, %v21053_v46 }
 0x8d8   : > { %21104 = vst [vmem:[#allocation13_spill] sm:$0xff] %v17713_v29  ;;  %v6463_v47 = vsel %vm366_vm0, %v17394_v59, %v6462_v3  ;;  %v6474_v60 = vrot.slane %v17573_v36, 4  ;;  %v6450_v59 = vrot.slane %v17558_v8, 4  ;;  %v6586_v20 = vrot.slane %v17652_v35, 4 }
 0x8d9   : > { %v6604_v17 = vrot.slane %v17696_v58, 4  ;;  %21105 = vst [vmem:[#allocation19_spill] sm:$0xff] %v17720_v26  ;;  %v6873_v62 = vsel %vm366_vm0, %v10599_v34, %v6872_v33  ;;  %v6758_v4 = vrot.slane %v10598_v45, 4  ;;  %v6471_v3 = vperm.slane %v6463_v47, %v21053_v46 }
 0x8da   : > { %v6587_v35 = vsel %vm366_vm0, %v17655_v44, %v6586_v20 }
 0x8db   : > { %v6605_v39 = vsel %vm366_vm0, %v6604_v17, %v17705_v0  ;;  %v17727_v17 = vrot.slane %v20287_v6, 4  ;;  %v6490_v6 = vrot.slane %v6447_v14, 4 }
 0x8dc   : > { %10806 = vrot.lane.b32.xlu0 %v17528_v49, %s11116_s23  ;;  %v10825_v42 = vpack.i.bf16 %v6605_v39, %v6493_v37  ;;  %v6550_v49 = vrot.slane %v17435_v54, 4  ;;  %v6870_v39 = vrot.slane %v10599_v34, 4  ;;  %v17740_v54 = vperm.slane %v6873_v62, %v21052_v13 }
 0x8dd   : > { %21106 = vst [vmem:[#allocation16_spill] sm:$0xff] %v17727_v17  ;;  %v6451_v34 = vsel %vm366_vm0, %v17547_v1, %v6450_v59  ;;  %v6491_v8 = vsel %vm366_vm0, %v6471_v3, %v6490_v6  ;;  %v21109_v1 = vunpack.i.l.bf16 %v17713_v29  ;;  %v21128_v17 = vld [vmem:[#allocation5_spill] sm:$0xff] }
 0x8de   : > { %10826 = vrot.lane.b32.xlu2 %v10825_v42, %s11107_s11  ;;  %v6551_v33 = vsel %vm366_vm0, %v17378_v41, %v6550_v49  ;;  %v6575_v42 = vsel %vm366_vm0, %v17410_v51, %v6574_v7  ;;  %v6459_v47 = vperm.slane %v6451_v34, %v21053_v46  ;;  %v6475_v41 = vsel %vm366_vm0, %v17554_v32, %v6474_v60 }
 0x8df   : > { %v6559_v36 = vperm.slane %v6551_v33, %v21053_v46  ;;  %v6583_v37 = vperm.slane %v6575_v42, %v21053_v46  ;;  %v6483_v62 = vperm.slane %v6475_v41, %v21053_v46  ;;  %v6562_v33 = vrot.slane %v17675_v38, 4 }
 0x8e0   : > { %v21107_v51 = vunpack.i.h.bf16 %v17713_v29  ;;  %v17761_v6 = vrot.slane %v21109_v1, 4  ;;  %v6871_v59 = vsel %vm366_vm0, %v6870_v39, %v10589_v5  ;;  %v6761_v42 = vsel %vm366_vm0, %v10598_v45, %v6760_v10 }
 0x8e1   : > { %v6602_v49 = vrot.slane %v6559_v36, 4  ;;  %v6498_v60 = vrot.slane %v6459_v47, 4  ;;  %v6563_v38 = vsel %vm366_vm0, %v17628_v52, %v6562_v33  ;;  %v6759_v34 = vsel %vm366_vm0, %v6758_v4, %v10588_v27 }
 0x8e2   : > { %v17757_v7 = vrot.slane %v21107_v51, 4  ;;  %21110 = vst [vmem:[#allocation40_spill] sm:$0xff] %v17761_v6  ;;  %v6571_v51 = vperm.slane %v6563_v38, %v21053_v46  ;;  %v6595_v1 = vperm.slane %v6587_v35, %v21053_v46  ;;  %v17774_v5 = vperm.slane %v6871_v59, %v21052_v13  ;;  %v17797_v35 = vpop.permute.xlu1 %10601 }
 0x8e3   : > { %v6603_v32 = vsel %vm366_vm0, %v6583_v37, %v6602_v49  ;;  %v6918_v10 = vrot.slane %v17740_v54, 4  ;;  %v6769_v45 = vperm.slane %v6761_v42, %v21052_v13  ;;  %v6499_v39 = vsel %vm366_vm0, %v6483_v62, %v6498_v60  ;;  %v21111_v49 = vld [vmem:[#allocation44_spill] sm:$0xff] }
 0x8e4   : > { %21108 = vst [vmem:[#allocation41_spill] sm:$0xff] %v17757_v7  ;;  %v10820_v41 = vpack.i.bf16 %v6603_v32, %v6491_v8  ;;  %v6610_v52 = vrot.slane %v6571_v51, 4  ;;  %v6496_v44 = vrot.slane %v6483_v62, 4  ;;  %v6608_v20 = vrot.slane %v6595_v1, 4  ;;  %v21123_v7 = vld [vmem:[#allocation60_spill] sm:$0xff] }
 0x8e5   : > { %v6488_v27 = vrot.slane %v6471_v3, 4  ;;  %v6600_v4 = vrot.slane %v6583_v37, 4  ;;  %v17782_v8 = vperm.slane %v17035_v53, %v21052_v13  ;;  %v17786_v33 = vperm.slane %v21111_v49, %v21052_v13 }
 0x8e6   : > { %10821 = vrot.lane.b32.xlu1 %v10820_v41, %s11105_s9  ;;  %v7496_v59 = vrot.slane %v17285_v22, 4  ;;  %v6765_v42 = vperm.slane %v6759_v34, %v21052_v13  ;;  %v6611_v32 = vsel %vm366_vm0, %v6595_v1, %v6610_v52  ;;  %v6497_v60 = vsel %vm366_vm0, %v6496_v44, %v6459_v47  ;;  %v17799_v41 = vpop.permute.xlu2 %10666  ;;  %v21112_v47 = vld [vmem:[#allocation38_spill] sm:$0xff]  ;;  %v21114_v52 = vld [vmem:[#allocation47_spill] sm:$0xff] }
 0x8e7   : > { %v6489_v62 = vsel %vm366_vm0, %v6488_v27, %v6447_v14  ;;  %v10840_v3 = vpack.i.bf16 %v6611_v32, %v6499_v39  ;;  %v6609_v37 = vsel %vm366_vm0, %v6608_v20, %v6571_v51  ;;  %v6601_v53 = vsel %vm366_vm0, %v6600_v4, %v6559_v36 }
 0x8e8   : > { %v7497_v38 = vsel %vm366_vm0, %v17782_v8, %v7496_v59  ;;  %v10815_v49 = vpack.i.bf16 %v6601_v53, %v6489_v62  ;;  %v7520_v1 = vrot.slane %v17786_v33, 4  ;;  %v17805_v14 = vperm.slane %v21112_v47, %v21052_v13 }
 0x8e9   : > { %v7505_v34 = vperm.slane %v7497_v38, %v21053_v46  ;;  %v6806_v39 = vrot.slane %v6769_v45, 4  ;;  %v21113_v51 = vrot.slane %v17662_v28, 4  ;;  %10841 = vrot.lane.b32.xlu2 %v10840_v3, %s11104_s8  ;;  %v17814_v44 = vperm.slane %v21114_v52, %v21052_v13 }
 0x8ea   : > { %v7608_v20 = vrot.slane %v17296_v50, 4  ;;  %v21115_v27 = vrot.slane %v17681_v21, 4  ;;  %v21116_v59 = vrot.slane %v17684_v56, 4  ;;  %v10835_v62 = vpack.i.bf16 %v6609_v37, %v6497_v60  ;;  %10816 = vrot.lane.b32.xlu0 %v10815_v49, %s11108_s12 }
 0x8eb   : > { %v6921_v36 = vsel %vm366_vm0, %v17740_v54, %v21113_v51  ;;  %v7521_v54 = vsel %vm366_vm0, %v17313_v48, %v7520_v1  ;;  %v7548_v53 = vrot.slane %v7505_v34, 4  ;;  %v7632_v47 = vrot.slane %v17814_v44, 4 }
 0x8ec   : > { %v6797_v4 = vsel %vm366_vm0, %v6765_v42, %v21115_v27  ;;  %v6809_v32 = vsel %vm366_vm0, %v6769_v45, %v21116_v59  ;;  %v7529_v3 = vperm.slane %v7521_v54, %v21053_v46  ;;  %v7609_v38 = vsel %vm366_vm0, %v17805_v14, %v7608_v20  ;;  %v10612_v20 = vpop.permute.xlu0 %10611 }
 0x8ed   : > { %v6906_v51 = vrot.slane %v17774_v5, 4  ;;  %v6794_v52 = vrot.slane %v6765_v42, 4  ;;  %v17832_v27 = vperm.slane %v6921_v36, %v21053_v46  ;;  %v7617_v45 = vperm.slane %v7609_v38, %v21053_v46 }
 0x8ee   : > { %10836 = vrot.lane.b32.xlu1 %v10835_v62, %s11106_s10  ;;  %v17837_v60 = vperm.slane %v6797_v4, %v21053_v46  ;;  %v6807_v37 = vsel %vm366_vm0, %v6806_v39, %v17684_v56  ;;  %v7549_v49 = vsel %vm366_vm0, %v7529_v3, %v7548_v53  ;;  %v7633_v1 = vsel %vm366_vm0, %v17309_v11, %v7632_v47 }
 0x8ef   : > { %21117 = vst [vmem:[#allocation30_spill] sm:$0xff] %v17832_v27  ;;  %v10604_v42 = vunpack.i.h.bf16 %v17797_v35  ;;  %v7641_v36 = vperm.slane %v7633_v1, %v21053_v46  ;;  %v7660_v59 = vrot.slane %v7617_v45, 4  ;;  %v7546_v62 = vrot.slane %v7529_v3, 4 }
 0x8f0   : > { %v17847_v54 = vperm.slane %v6809_v32, %v21053_v46  ;;  %v21119_v4 = vrot.slane %v17611_v61, 4  ;;  %v6919_v39 = vsel %vm366_vm0, %v6918_v10, %v17662_v28  ;;  %v10603_v53 = vunpack.i.l.bf16 %v17797_v35  ;;  %v17871_v35 = vpop.permute.xlu1 %10621 }
 0x8f1   : > { %v20290_v38 = vunpack.i.h.bf16 %v17799_v41  ;;  %v7661_v47 = vsel %vm366_vm0, %v7641_v36, %v7660_v59  ;;  %v10614_v1 = vunpack.i.h.bf16 %v10612_v20  ;;  %v7547_v3 = vsel %vm366_vm0, %v7546_v62, %v7505_v34  ;;  %v17873_v59 = vpop.permute.xlu2 %10681 }
 0x8f2   : > { %21118 = vst [vmem:[#allocation57_spill] sm:$0xff] %v17847_v54  ;;  %v6909_v56 = vsel %vm366_vm0, %v17774_v5, %v21119_v4  ;;  %v17861_v32 = vsel %vm366_vm0, %v6794_v52, %v17681_v21  ;;  %v20291_v29 = vunpack.i.l.bf16 %v17799_v41  ;;  %v10855_v6 = vpack.i.bf16 %v7661_v47, %v7549_v49 }
 0x8f3   : > { %v7658_v5 = vrot.slane %v7641_v36, 4  ;;  %v17865_v4 = vperm.slane %v6807_v37, %v21053_v46  ;;  %v17869_v28 = vsel %vm366_vm0, %v6906_v51, %v17611_v61  ;;  %v6884_v10 = vrot.slane %v10604_v42, 4 }
 0x8f4   : > { %v10613_v34 = vunpack.i.l.bf16 %v10612_v20  ;;  %v17876_v21 = vperm.slane %v6909_v56, %v21053_v46  ;;  %v17879_v52 = vperm.slane %v6919_v39, %v21053_v46  ;;  %v6772_v49 = vrot.slane %v10603_v53, 4  ;;  %10856 = vrot.lane.b32.xlu2 %v10855_v6, %s11105_s9 }
 0x8f5   : > { %21120 = vst [vmem:[#allocation28_spill] sm:$0xff] %v17865_v4  ;;  %v7659_v37 = vsel %vm366_vm0, %v7658_v5, %v7617_v45  ;;  %v17885_v61 = vrot.slane %v20290_v38, 4  ;;  %v6882_v51 = vrot.slane %v10614_v1, 4  ;;  %v6885_v36 = vsel %vm366_vm0, %v10614_v1, %v6884_v10  ;;  %v21122_v10 = vld [vmem:[#allocation25_spill] sm:$0xff] }
 0x8f6   : > { %21121 = vst [vmem:[#allocation39_spill] sm:$0xff] %v17879_v52  ;;  %v6494_v20 = vrot.slane %v17669_v12, 4  ;;  %v17891_v62 = vrot.slane %v20291_v29, 4  ;;  %v6770_v45 = vrot.slane %v10613_v34, 4  ;;  %v10850_v47 = vpack.i.bf16 %v7659_v37, %v7547_v3 }
 0x8f7   : > { %v6606_v38 = vrot.slane %v17705_v0, 4  ;;  %v6893_v1 = vperm.slane %v6885_v36, %v21052_v13  ;;  %v7493_v12 = vperm.slane %v17120_v63, %v21052_v13  ;;  %v7508_v29 = vrot.slane %v21122_v10, 4  ;;  %v21124_v0 = vld [vmem:[#allocation17_spill] sm:$0xff]  ;;  %v21125_v36 = vld [vmem:[#allocation55_spill] sm:$0xff] }
 0x8f8   : > { %v6495_v5 = vsel %vm366_vm0, %v17616_v55, %v6494_v20  ;;  %v7620_v56 = vrot.slane %v21123_v7, 4  ;;  %v6883_v39 = vsel %vm366_vm0, %v6882_v51, %v10604_v42  ;;  %v6773_v6 = vsel %vm366_vm0, %v10613_v34, %v6772_v49  ;;  %10851 = vrot.lane.b32.xlu1 %v10850_v47, %s11108_s12  ;;  %v21126_v20 = vld [vmem:[#allocation12_spill] sm:$0xff]  ;;  %v21130_v51 = vld [vmem:[#allocation18_spill] sm:$0xff] }
 0x8f9   : > { %v6607_v55 = vsel %vm366_vm0, %v17696_v58, %v6606_v38  ;;  %v7605_v3 = vperm.slane %v21124_v0, %v21052_v13  ;;  %v7509_v63 = vsel %vm366_vm0, %v21125_v36, %v7508_v29  ;;  %v21127_v40 = vrot.slane %v21126_v20, 4 }
 0x8fa   : > { %v10830_v37 = vpack.i.bf16 %v6607_v55, %v6495_v5  ;;  %v7621_v42 = vsel %vm366_vm0, %v21128_v17, %v7620_v56  ;;  %v21129_v34 = vunpack.i.h.bf16 %v17871_v35  ;;  %v21131_v47 = vrot.slane %v21130_v51, 4 }
 0x8fb   : > { %v7533_v52 = vsel %vm366_vm0, %v7493_v12, %v21127_v40  ;;  %v6944_v5 = vrot.slane %v6893_v1, 4  ;;  %v6771_v55 = vsel %vm366_vm0, %v6770_v45, %v10603_v53  ;;  %v6781_v40 = vperm.slane %v6773_v6, %v21052_v13 }
 0x8fc   : > { %v17920_v49 = vrot.slane %v21129_v34, 4  ;;  %v17924_v38 = vperm.slane %v7533_v52, %v21053_v46  ;;  %v7645_v29 = vsel %vm366_vm0, %v7605_v3, %v21131_v47  ;;  %10831 = vrot.lane.b32.xlu0 %v10830_v37, %s11103_s30  ;;  %v17936_v0 = vperm.slane %v6883_v39, %v21052_v13 }
 0x8fd   : > { %v17933_v56 = vperm.slane %v7645_v29, %v21053_v46  ;;  %v21132_v52 = vrot.slane %v17565_v2, 4  ;;  %v17942_v58 = vperm.slane %v7509_v63, %v21053_v46  ;;  %v17946_v53 = vperm.slane %v7621_v42, %v21053_v46 }
 0x8fe   : > { %v7554_v47 = vrot.slane %v17924_v38, 4  ;;  %v21133_v45 = vrot.slane %v21125_v36, 4  ;;  %v21134_v37 = vrot.slane %v21128_v17, 4  ;;  %v21135_v63 = vunpack.i.l.bf16 %v17871_v35 }
 0x8ff   : > { %v6943_v34 = vsel %vm366_vm0, %v21132_v52, %v6893_v1  ;;  %v7666_v6 = vrot.slane %v17933_v56, 4  ;;  %v21136_v52 = vunpack.i.h.bf16 %v17873_v59  ;;  %v17966_v4 = vperm.slane %v6771_v55, %v21052_v13 }
 0x900   : > { %v7507_v39 = vsel %vm366_vm0, %v21133_v45, %v21122_v10  ;;  %v7619_v1 = vsel %vm366_vm0, %v21134_v37, %v21123_v7  ;;  %v17959_v29 = vrot.slane %v21135_v63, 4  ;;  %v7555_v36 = vsel %vm366_vm0, %v7554_v47, %v17942_v58 }
 0x901   : > { %v17963_v42 = vrot.slane %v21136_v52, 4  ;;  %v6945_v10 = vsel %vm366_vm0, %v17565_v2, %v6944_v5  ;;  %v6832_v17 = vrot.slane %v6781_v40, 4  ;;  %v7667_v7 = vsel %vm366_vm0, %v7666_v6, %v17946_v53 }
 0x902   : > { %v7530_v45 = vrot.slane %v7493_v12, 4  ;;  %v21137_v37 = vunpack.i.l.bf16 %v17873_v59  ;;  %v17979_v52 = vperm.slane %v6943_v34, %v21053_v46  ;;  %v10870_v55 = vpack.i.bf16 %v7667_v7, %v7555_v36  ;;  %v17996_v34 = vpop.permute.xlu0 %10616 }
 0x903   : > { %v17982_v27 = vperm.slane %v7507_v39, %v21053_v46  ;;  %v21139_v47 = vrot.slane %v17581_v16, 4  ;;  %v21140_v12 = vrot.slane %v17561_v25, 4  ;;  %v18001_v36 = vperm.slane %v6945_v10, %v21053_v46 }
 0x904   : > { %v17976_v63 = vrot.slane %v21137_v37, 4  ;;  %21138 = vst [vmem:[#allocation33_spill] sm:$0xff] %v17979_v52  ;;  %v17994_v37 = vpop.permute.xlu1 %10636  ;;  %v7531_v39 = vsel %vm366_vm0, %v7530_v45, %v21126_v20  ;;  %v21142_v7 = vrot.slane %v17576_v19, 4  ;;  %10871 = vrot.lane.b32.xlu2 %v10870_v55, %s11106_s10  ;;  %v6833_v5 = vsel %vm366_vm0, %v17561_v25, %v6832_v17  ;;  %v21150_v52 = vld [vmem:[#allocation42_spill] sm:$0xff] }
 0x905   : > { %v17988_v2 = vsel %vm366_vm0, %v21139_v47, %v17936_v0  ;;  %v6831_v6 = vsel %vm366_vm0, %v21140_v12, %v6781_v40  ;;  %21141 = vst [vmem:[#allocation32_spill] sm:$0xff] %v18001_v36  ;;  %v18011_v40 = vperm.slane %v7531_v39, %v21053_v46  ;;  %v7552_v12 = vrot.slane %v17982_v27, 4 }
 0x906   : > { %v18007_v47 = vsel %vm366_vm0, %v21142_v7, %v17966_v4  ;;  %v18017_v20 = vperm.slane %v7619_v1, %v21053_v46  ;;  %v7642_v10 = vrot.slane %v7605_v3, 4  ;;  %v7494_v45 = vrot.slane %v17782_v8, 4 }
 0x907   : > { %v7553_v7 = vsel %vm366_vm0, %v18011_v40, %v7552_v12  ;;  %v7518_v55 = vrot.slane %v17313_v48, 4  ;;  %v7606_v39 = vrot.slane %v17805_v14, 4  ;;  %v7630_v3 = vrot.slane %v17309_v11, 4 }
 0x908   : > { %v7643_v54 = vsel %vm366_vm0, %v7642_v10, %v21130_v51  ;;  %v7664_v25 = vrot.slane %v18017_v20, 4  ;;  %v7495_v1 = vsel %vm366_vm0, %v7494_v45, %v17285_v22  ;;  %v8487_v11 = vperm.slane %v17513_v9, %v21052_v13  ;;  %v21148_v45 = vld [vmem:[#allocation15_spill] sm:$0xff] }
 0x909   : > { %v18032_v8 = vperm.slane %v7643_v54, %v21053_v46  ;;  %v18035_v17 = vperm.slane %v7495_v1, %v21053_v46  ;;  %v7519_v48 = vsel %vm366_vm0, %v7518_v55, %v17786_v33  ;;  %v7607_v14 = vsel %vm366_vm0, %v7606_v39, %v17296_v50  ;;  %v21147_v50 = vld [vmem:[#allocation9_spill] sm:$0xff]  ;;  %v18061_v1 = vpop.permute.xlu2 %10701 }
 0x90a   : > { %v18042_v51 = vperm.slane %v7519_v48, %v21053_v46  ;;  %v18045_v12 = vperm.slane %v7607_v14, %v21053_v46  ;;  %v7631_v22 = vsel %vm366_vm0, %v7630_v3, %v17814_v44  ;;  %v21149_v55 = vrot.slane %v21148_v45, 4 }
 0x90b   : > { %21143 = vst [vmem:[#allocation31_spill] sm:$0xff] %v18035_v17  ;;  %v7665_v54 = vsel %vm366_vm0, %v18032_v8, %v7664_v25  ;;  %v7544_v33 = vrot.slane %v18035_v17, 4  ;;  %v18055_v10 = vperm.slane %v7631_v22, %v21053_v46  ;;  %v10619_v44 = vunpack.i.h.bf16 %v17996_v34 }
 0x90c   : > { %21144 = vst [vmem:[#allocation27_spill] sm:$0xff] %v18042_v51  ;;  %v8493_v39 = vsel %vm366_vm0, %v21149_v55, %v21147_v50  ;;  %v10865_v3 = vpack.i.bf16 %v7665_v54, %v7553_v7  ;;  %v7656_v9 = vrot.slane %v18045_v12, 4  ;;  %v8523_v14 = vperm.slane %v17538_v31, %v21052_v13  ;;  %v10632_v54 = vpop.permute.xlu0 %10631 }
 0x90d   : > { %21145 = vst [vmem:[#allocation22_spill] sm:$0xff] %v18045_v12  ;;  %v8499_v48 = vperm.slane %v8493_v39, %v21052_v13  ;;  %v7545_v25 = vsel %vm366_vm0, %v18042_v51, %v7544_v33  ;;  %v8530_v22 = vrot.slane %v8487_v11, 4  ;;  %v8554_v45 = vrot.slane %v21150_v52, 4 }
 0x90e   : > { %21146 = vst [vmem:[#allocation11_spill] sm:$0xff] %v18055_v10  ;;  %v10618_v17 = vunpack.i.l.bf16 %v17996_v34  ;;  %10866 = vrot.lane.b32.xlu1 %v10865_v3, %s11103_s30  ;;  %v7657_v7 = vsel %vm366_vm0, %v18055_v10, %v7656_v9  ;;  %v18078_v33 = vperm.slane %v6831_v6, %v21053_v46  ;;  %v18083_v50 = vperm.slane %v6833_v5, %v21053_v46 }
 0x90f   : > { %v10845_v39 = vpack.i.bf16 %v7657_v7, %v7545_v25  ;;  %v8531_v31 = vsel %vm366_vm0, %v8499_v48, %v8530_v22  ;;  %v8555_v12 = vsel %vm366_vm0, %v8523_v14, %v8554_v45  ;;  %v21153_v55 = vunpack.i.h.bf16 %v17994_v37 }
 0x910   : > { %21151 = vst [vmem:[#allocation58_spill] sm:$0xff] %v18078_v33  ;;  %v18091_v9 = vperm.slane %v8555_v12, %v21053_v46  ;;  %v7202_v10 = vrot.slane %v10619_v44, 4  ;;  %v10634_v6 = vunpack.i.h.bf16 %v10632_v54  ;;  %v10633_v25 = vunpack.i.l.bf16 %v10632_v54  ;;  %v18100_v33 = vpop.permute.xlu1 %10661 }
 0x911   : > { %21152 = vst [vmem:[#allocation43_spill] sm:$0xff] %v18083_v50  ;;  %v18087_v34 = vrot.slane %v21153_v55, 4  ;;  %10846 = vrot.lane.b32.xlu0 %v10845_v39, %s11109_s13  ;;  %v8528_v22 = vrot.slane %v8499_v48, 4  ;;  %v21154_v45 = vunpack.i.l.bf16 %v17994_v37  ;;  %v7090_v5 = vrot.slane %v10618_v17, 4 }
 0x912   : > { %v8539_v51 = vperm.slane %v8531_v31, %v21053_v46  ;;  %v8580_v55 = vrot.slane %v18091_v9, 4  ;;  %v7201_v3 = vsel %vm366_vm0, %v17570_v57, %v10619_v44  ;;  %v7089_v54 = vsel %vm366_vm0, %v17589_v43, %v10618_v17 }
 0x913   : > { %v18096_v7 = vrot.slane %v21154_v45, 4  ;;  %v8552_v48 = vrot.slane %v8523_v14, 4  ;;  %v7100_v45 = vrot.slane %v10633_v25, 4  ;;  %v7103_v26 = vsel %vm366_vm0, %v10633_v25, %v17959_v29 }
 0x914   : > { %v8581_v39 = vsel %vm366_vm0, %v8580_v55, %v8539_v51  ;;  %v8529_v31 = vsel %vm366_vm0, %v8528_v22, %v8487_v11  ;;  %v21155_v36 = vunpack.i.h.bf16 %v17482_v24  ;;  %v7212_v12 = vrot.slane %v10634_v6, 4 }
 0x915   : > { %8709 = vrot.lane.b32.xlu2 %v8581_v39, %s11108_s12  ;;  %v18116_v57 = vperm.slane %v8529_v31, %v21053_v46  ;;  %v8553_v43 = vsel %vm366_vm0, %v8552_v48, %v21150_v52  ;;  %v21157_v17 = vunpack.i.h.bf16 %v18061_v1  ;;  %v18125_v29 = vperm.slane %v7201_v3, %v21052_v13 }
 0x916   : > { %v7203_v50 = vsel %vm366_vm0, %v21155_v36, %v7202_v10  ;;  %v21158_v11 = vunpack.i.l.bf16 %v17482_v24  ;;  %v18130_v10 = vpop.permute.xlu2 %10716  ;;  %v7215_v14 = vsel %vm366_vm0, %v10634_v6, %v17920_v49  ;;  %v21159_v25 = vunpack.i.l.bf16 %v18061_v1 }
 0x917   : > { %21156 = vst [vmem:[#allocation54_spill] sm:$0xff] %v18116_v57  ;;  %v18122_v44 = vrot.slane %v21157_v17, 4  ;;  %v7111_v52 = vperm.slane %v7103_v26, %v21052_v13  ;;  %v18140_v55 = vperm.slane %v8553_v43, %v21053_v46  ;;  %v7550_v3 = vrot.slane %v18011_v40, 4 }
 0x918   : > { %v7091_v36 = vsel %vm366_vm0, %v21158_v11, %v7090_v5  ;;  %v18136_v22 = vrot.slane %v21159_v25, 4  ;;  %v7211_v24 = vperm.slane %v7203_v50, %v21052_v13  ;;  %v7095_v5 = vperm.slane %v7089_v54, %v21052_v13 }
 0x919   : > { %21160 = vst [vmem:[#allocation56_spill] sm:$0xff] %v18140_v55  ;;  %v21161_v48 = vunpack.i.l.bf16 %v17871_v35  ;;  %v7662_v49 = vrot.slane %v18032_v8, 4  ;;  %v7099_v6 = vperm.slane %v7091_v36, %v21052_v13  ;;  %v21162_v31 = vunpack.i.h.bf16 %v17871_v35 }
 0x91a   : > { %v7223_v43 = vperm.slane %v7215_v14, %v21052_v13  ;;  %v8578_v40 = vrot.slane %v18116_v57, 4  ;;  %v7250_v50 = vrot.slane %v18125_v29, 4  ;;  %v7148_v11 = vrot.slane %v7111_v52, 4 }
 0x91b   : > { %v7101_v39 = vsel %vm366_vm0, %v7100_v45, %v21161_v48  ;;  %v7213_v26 = vsel %vm366_vm0, %v7212_v12, %v21162_v31  ;;  %v7551_v12 = vsel %vm366_vm0, %v7550_v3, %v17982_v27  ;;  %v20308_v36 = vunpack.i.l.bf16 %v18130_v10  ;;  %v10677_v31 = vpop.permute.xlu1 %10676 }
 0x91c   : > { %v7107_v8 = vperm.slane %v7101_v39, %v21052_v13  ;;  %v8579_v35 = vsel %vm366_vm0, %v18140_v55, %v8578_v40  ;;  %v7219_v14 = vperm.slane %v7213_v26, %v21052_v13  ;;  %v7663_v25 = vsel %vm366_vm0, %v7662_v49, %v18017_v20 }
 0x91d   : > { %8705 = vrot.lane.b32.xlu1 %v8579_v35, %s11109_s13  ;;  %v8582_v48 = vrot.slane %v8539_v51, 4  ;;  %v7138_v45 = vrot.slane %v7095_v5, 4  ;;  %v7150_v39 = vrot.slane %v7099_v6, 4  ;;  %v7260_v17 = vrot.slane %v7223_v43, 4  ;;  %v10647_v35 = vpop.permute.xlu0 %10646 }
 0x91e   : > { %v10860_v54 = vpack.i.bf16 %v7663_v25, %v7551_v12  ;;  %v7262_v57 = vrot.slane %v7211_v24, 4  ;;  %v21163_v40 = vunpack.i.h.bf16 %v18100_v33  ;;  %v21164_v27 = vunpack.i.l.bf16 %v18100_v33 }
 0x91f   : > { %v8583_v26 = vsel %vm366_vm0, %v18091_v9, %v8582_v48  ;;  %v7139_v20 = vsel %vm366_vm0, %v7107_v8, %v7138_v45  ;;  %v7149_v51 = vsel %vm366_vm0, %v7148_v11, %v7099_v6  ;;  %v7151_v49 = vsel %vm366_vm0, %v7111_v52, %v7150_v39  ;;  %v18192_v45 = vpop.permute.xlu2 %10741 }
 0x920   : > { %v18171_v55 = vrot.slane %v21163_v40, 4  ;;  %v18175_v3 = vrot.slane %v21164_v27, 4  ;;  %10861 = vrot.lane.b32.xlu0 %v10860_v54, %s11107_s11  ;;  %8713 = vrot.lane.b32.xlu2 %v8583_v26, %s11105_s9  ;;  %v10678_v12 = vunpack.i.l.bf16 %v10677_v31  ;;  %v21165_v25 = vunpack.i.h.bf16 %v18130_v10  ;;  %21167 = vst [vmem:[#allocation61_spill] sm:$0xff] %v18192_v45 }
 0x921   : > { %v18190_v27 = vrot.slane %v20308_v36, 4  ;;  %v7248_v9 = vrot.slane %v7219_v14, 4  ;;  %v7136_v48 = vrot.slane %v7107_v8, 4  ;;  %v7251_v6 = vsel %vm366_vm0, %v7219_v14, %v7250_v50 }
 0x922   : > { %v18186_v40 = vrot.slane %v21165_v25, 4  ;;  %v7261_v52 = vsel %vm366_vm0, %v7260_v17, %v7211_v24  ;;  %v10679_v54 = vunpack.i.h.bf16 %v10677_v31  ;;  %v10649_v11 = vunpack.i.h.bf16 %v10647_v35 }
 0x923   : > { %v18197_v39 = vperm.slane %v7139_v20, %v21053_v46  ;;  %v18200_v26 = vperm.slane %v7149_v51, %v21053_v46  ;;  %v18203_v25 = vperm.slane %v7151_v49, %v21053_v46  ;;  %v7263_v36 = vsel %vm366_vm0, %v7223_v43, %v7262_v57  ;;  %v21172_v51 = vld [vmem:[#allocation10_spill] sm:$0xff] }
 0x924   : > { %21166 = vst [vmem:[#allocation20_spill] sm:$0xff] %v18186_v40  ;;  %v7800_v8 = vrot.slane %v10678_v12, 4  ;;  %v7803_v40 = vsel %vm366_vm0, %v10678_v12, %v17891_v62  ;;  %v10648_v24 = vunpack.i.l.bf16 %v10647_v35  ;;  %v18210_v17 = vsel %vm366_vm0, %v7136_v48, %v7095_v5  ;;  %v21170_v35 = vld [vmem:[#allocation21_spill] sm:$0xff]  ;;  %v21173_v48 = vld [vmem:[#allocation52_spill] sm:$0xff] }
 0x925   : > { %21168 = vst [vmem:[#allocation26_spill] sm:$0xff] %v18210_v17  ;;  %v18214_v14 = vsel %vm366_vm0, %v7248_v9, %v18125_v29  ;;  %v18217_v31 = vperm.slane %v7251_v6, %v21053_v46  ;;  %v18220_v20 = vperm.slane %v7261_v52, %v21053_v46  ;;  %v18223_v57 = vperm.slane %v7263_v36, %v21053_v46  ;;  %v21175_v52 = vld [vmem:[#allocation48_spill] sm:$0xff]  ;;  %v21181_v12 = vld [vmem:[#allocation53_spill] sm:$0xff] }
 0x926   : > { %21169 = vst [vmem:[#allocation23_spill] sm:$0xff] %v18214_v14  ;;  %v7912_v62 = vrot.slane %v10679_v54, 4  ;;  %v7227_v43 = vsel %vm366_vm0, %v10649_v11, %v18087_v34  ;;  %v21171_v5 = vrot.slane %v21170_v35, 4  ;;  %v18232_v29 = vperm.slane %v7803_v40, %v21052_v13 }
 0x927   : > { %v7224_v9 = vrot.slane %v10649_v11, 4  ;;  %v21174_v6 = vrot.slane %v21173_v48, 4  ;;  %v21176_v50 = vunpack.i.l.bf16 %v17799_v41  ;;  %v7915_v35 = vsel %vm366_vm0, %v10679_v54, %v17885_v61 }
 0x928   : > { %v8483_v49 = vsel %vm366_vm0, %v21172_v51, %v21171_v5  ;;  %v21177_v5 = vunpack.i.h.bf16 %v18192_v45  ;;  %v7115_v40 = vsel %vm366_vm0, %v10648_v24, %v18096_v7  ;;  %v7235_v11 = vperm.slane %v7227_v43, %v21052_v13 }
 0x929   : > { %v8507_v36 = vsel %vm366_vm0, %v21175_v52, %v21174_v6  ;;  %v7801_v34 = vsel %vm366_vm0, %v7800_v8, %v21176_v50  ;;  %v18252_v48 = vperm.slane %v8483_v49, %v21052_v13  ;;  %v21179_v6 = vld [vmem:[#allocation24_spill] sm:$0xff]  ;;  %v21182_v50 = vld [vmem:[#allocation29_spill] sm:$0xff]  ;;  %v21183_v61 = vunpack.i.h.bf16 %v17799_v41 }
 0x92a   : > { %v18246_v51 = vrot.slane %v21177_v5, 4  ;;  %v21180_v52 = vrot.slane %v21179_v6, 4  ;;  %v8540_v14 = vrot.slane %v21182_v50, 4  ;;  %v7112_v5 = vrot.slane %v10648_v24, 4 }
 0x92b   : > { %21178 = vst [vmem:[#allocation6_spill] sm:$0xff] %v18252_v48  ;;  %v7913_v54 = vsel %vm366_vm0, %v7912_v62, %v21183_v61  ;;  %v18263_v17 = vperm.slane %v8507_v36, %v21052_v13  ;;  %v18269_v43 = vperm.slane %v7915_v35, %v21052_v13  ;;  %v21186_v49 = vunpack.i.h.bf16 %v17994_v37 }
 0x92c   : > { %v8519_v8 = vsel %vm366_vm0, %v21181_v12, %v21180_v52  ;;  %v7123_v6 = vperm.slane %v7115_v40, %v21052_v13  ;;  %v8541_v41 = vsel %vm366_vm0, %v8540_v14, %v18252_v48  ;;  %v7556_v36 = vrot.slane %v17942_v58, 4  ;;  %v10692_v14 = vpop.permute.xlu1 %10691 }
 0x92d   : > { %21184 = vst [vmem:[#allocation3_spill] sm:$0xff] %v18263_v17  ;;  %v18266_v7 = vperm.slane %v8519_v8, %v21052_v13  ;;  %v7225_v12 = vsel %vm366_vm0, %v7224_v9, %v21186_v49  ;;  %v8547_v24 = vperm.slane %v8541_v41, %v21053_v46  ;;  %v7668_v52 = vrot.slane %v17946_v53, 4 }
 0x92e   : > { %v18282_v35 = vperm.slane %v7801_v34, %v21052_v13  ;;  %v18285_v8 = vperm.slane %v7913_v54, %v21052_v13  ;;  %v21189_v9 = vunpack.i.l.bf16 %v18192_v45  ;;  %v7286_v61 = vrot.slane %v7235_v11, 4 }
 0x92f   : > { %21185 = vst [vmem:[#allocation4_spill] sm:$0xff] %v18266_v7  ;;  %v8564_v62 = vrot.slane %v18266_v7, 4  ;;  %v21191_v49 = vunpack.i.l.bf16 %v17994_v37  ;;  %v7557_v53 = vsel %vm366_vm0, %v17924_v38, %v7556_v36  ;;  %v7669_v34 = vsel %vm366_vm0, %v17933_v56, %v7668_v52  ;;  %v18314_v52 = vpop.permute.xlu2 %10756 }
 0x930   : > { %21187 = vst [vmem:[#allocation44_spill] sm:$0xff] %v18282_v35  ;;  %v18289_v40 = vrot.slane %v21189_v9, 4  ;;  %v18301_v54 = vperm.slane %v7225_v12, %v21052_v13  ;;  %v8586_v7 = vrot.slane %v8547_v24, 4  ;;  %v10875_v50 = vpack.i.bf16 %v7669_v34, %v7557_v53 }
 0x931   : > { %21188 = vst [vmem:[#allocation38_spill] sm:$0xff] %v18285_v8  ;;  %v7113_v41 = vsel %vm366_vm0, %v7112_v5, %v21191_v49  ;;  %v8565_v58 = vsel %vm366_vm0, %v8564_v62, %v18263_v17  ;;  %v7174_v49 = vrot.slane %v7123_v6, 4  ;;  %v21192_v62 = vrot.slane %v17631_v15, 4 }
 0x932   : > { %21190 = vst [vmem:[#allocation47_spill] sm:$0xff] %v18289_v40  ;;  %v8571_v9 = vperm.slane %v8565_v58, %v21053_v46  ;;  %v10693_v40 = vunpack.i.l.bf16 %v10692_v14  ;;  %v18310_v36 = vperm.slane %v7113_v41, %v21052_v13  ;;  %10876 = vrot.lane.b32.xlu0 %v10875_v50, %s11104_s8  ;;  %v7287_v53 = vsel %vm366_vm0, %v17631_v15, %v7286_v61  ;;  %v10672_v15 = vpop.permute.xlu0 %10671 }
 0x933   : > { %v7285_v38 = vsel %vm366_vm0, %v21192_v62, %v7235_v11  ;;  %21193 = vst [vmem:[#allocation25_spill] sm:$0xff] %v18314_v52  ;;  %v21194_v34 = vrot.slane %v17659_v30, 4  ;;  %v10694_v11 = vunpack.i.h.bf16 %v10692_v14  ;;  %v21195_v50 = vrot.slane %v17621_v18, 4 }
 0x934   : > { %v8587_v56 = vsel %vm366_vm0, %v8571_v9, %v8586_v7  ;;  %v8584_v12 = vrot.slane %v8571_v9, 4  ;;  %v18333_v61 = vperm.slane %v7285_v38, %v21053_v46  ;;  %v7812_v14 = vrot.slane %v10693_v40, 4 }
 0x935   : > { %v7173_v37 = vsel %vm366_vm0, %v21194_v34, %v7123_v6  ;;  %8721 = vrot.lane.b32.xlu1 %v8587_v56, %s11103_s30  ;;  %v18328_v7 = vsel %vm366_vm0, %v21195_v50, %v18301_v54  ;;  %v7175_v6 = vsel %vm366_vm0, %v17659_v30, %v7174_v49  ;;  %v10759_v56 = vunpack.i.h.bf16 %v18314_v52 }
 0x936   : > { %v8585_v62 = vsel %vm366_vm0, %v8584_v12, %v8547_v24  ;;  %v18340_v34 = vperm.slane %v7287_v53, %v21053_v46  ;;  %v21196_v50 = vrot.slane %v17634_v23, 4  ;;  %v18349_v38 = vperm.slane %v7173_v37, %v21053_v46 }
 0x937   : > { %8717 = vrot.lane.b32.xlu2 %v8585_v62, %s11107_s11  ;;  %v21197_v12 = vrot.slane %v17966_v4, 4  ;;  %v7924_v62 = vrot.slane %v10694_v11, 4  ;;  %v7815_v53 = vsel %vm366_vm0, %v10693_v40, %v17976_v63  ;;  %v10674_v9 = vunpack.i.h.bf16 %v10672_v15 }
 0x938   : > { %v18346_v24 = vsel %vm366_vm0, %v21196_v50, %v18310_v36  ;;  %v18359_v58 = vperm.slane %v7175_v6, %v21053_v46  ;;  %v10673_v41 = vunpack.i.l.bf16 %v10672_v15  ;;  %v21198_v4 = vunpack.i.l.bf16 %v17873_v59 }
 0x939   : > { %v6821_v30 = vsel %vm366_vm0, %v17576_v19, %v21197_v12  ;;  %v7927_v19 = vsel %vm366_vm0, %v10694_v11, %v17963_v42  ;;  %v9278_v12 = vrot.slane %v10759_v56, 4  ;;  %v21199_v49 = vrot.slane %v17936_v0, 4 }
 0x93a   : > { %v6829_v37 = vperm.slane %v6821_v30, %v21053_v46  ;;  %v7813_v5 = vsel %vm366_vm0, %v7812_v14, %v21198_v4  ;;  %v18373_v40 = vperm.slane %v7815_v53, %v21052_v13  ;;  %v6848_v15 = vrot.slane %v17837_v60, 4 }
 0x93b   : > { %v6933_v63 = vsel %vm366_vm0, %v17581_v16, %v21199_v49  ;;  %v6960_v30 = vrot.slane %v17876_v21, 4  ;;  %v21200_v42 = vunpack.i.h.bf16 %v17873_v59  ;;  %v7900_v11 = vrot.slane %v10674_v9, 4 }
 0x93c   : > { %v6941_v6 = vperm.slane %v6933_v63, %v21053_v46  ;;  %v7903_v16 = vsel %vm366_vm0, %v10674_v9, %v18171_v55  ;;  %v7788_v49 = vrot.slane %v10673_v41, 4  ;;  %v6849_v53 = vsel %vm366_vm0, %v6829_v37, %v6848_v15 }
 0x93d   : > { %v7925_v0 = vsel %vm366_vm0, %v7924_v62, %v21200_v42  ;;  %v18388_v63 = vperm.slane %v7813_v5, %v21052_v13  ;;  %v18391_v14 = vperm.slane %v7927_v19, %v21052_v13  ;;  %v21201_v4 = vunpack.i.l.bf16 %v18314_v52 }
 0x93e   : > { %v6961_v50 = vsel %vm366_vm0, %v6941_v6, %v6960_v30  ;;  %v9277_v62 = vsel %vm366_vm0, %v18246_v51, %v10759_v56  ;;  %v18401_v9 = vperm.slane %v7925_v0, %v21052_v13  ;;  %v21203_v15 = vunpack.i.h.bf16 %v18192_v45 }
 0x93f   : > { %v18395_v59 = vrot.slane %v21201_v4, 4  ;;  %v7791_v19 = vsel %vm366_vm0, %v10673_v41, %v18175_v3  ;;  %v21204_v30 = vunpack.i.h.bf16 %v18100_v33  ;;  %v7911_v42 = vperm.slane %v7903_v16, %v21052_v13 }
 0x940   : > { %v9279_v5 = vsel %vm366_vm0, %v21203_v15, %v9278_v12  ;;  %v10890_v17 = vpack.i.bf16 %v6961_v50, %v6849_v53  ;;  %v6846_v51 = vrot.slane %v6829_v37, 4  ;;  %v21205_v56 = vunpack.i.l.bf16 %v18100_v33  ;;  %v18437_v37 = vpop.permute.xlu1 %10696 }
 0x941   : > { %21202 = vst [vmem:[#allocation60_spill] sm:$0xff] %v18395_v59  ;;  %v7901_v4 = vsel %vm366_vm0, %v7900_v11, %v21204_v30  ;;  %v6958_v55 = vrot.slane %v6941_v6, 4  ;;  %v18417_v48 = vperm.slane %v17861_v32, %v21053_v46  ;;  %v18421_v3 = vperm.slane %v18007_v47, %v21053_v46  ;;  %v10687_v6 = vpop.permute.xlu0 %10686  ;;  %v21227_v59 = vld [vmem:[#allocation16_spill] sm:$0xff] }
 0x942   : > { %v7789_v0 = vsel %vm366_vm0, %v7788_v49, %v21205_v56  ;;  %v18424_v41 = vperm.slane %v9277_v62, %v21052_v13  ;;  %10891 = vrot.lane.b32.xlu1 %v10890_v17, %s11105_s9  ;;  %v6847_v50 = vsel %vm366_vm0, %v6846_v51, %v17837_v60  ;;  %v18431_v33 = vperm.slane %v17869_v28, %v21053_v46 }
 0x943   : > { %21206 = vst [vmem:[#allocation17_spill] sm:$0xff] %v18417_v48  ;;  %v18435_v32 = vperm.slane %v17988_v2, %v21053_v46  ;;  %v18440_v47 = vperm.slane %v7901_v4, %v21052_v13  ;;  %v7799_v12 = vperm.slane %v7791_v19, %v21052_v13  ;;  %v6959_v17 = vsel %vm366_vm0, %v6958_v55, %v17876_v21  ;;  %v21214_v4 = vld [vmem:[#allocation43_spill] sm:$0xff] }
 0x944   : > { %21207 = vst [vmem:[#allocation55_spill] sm:$0xff] %v18421_v3  ;;  %v6844_v60 = vrot.slane %v18417_v48, 4  ;;  %v7962_v11 = vrot.slane %v7911_v42, 4  ;;  %v18447_v28 = vperm.slane %v7789_v0, %v21052_v13  ;;  %v10885_v16 = vpack.i.bf16 %v6959_v17, %v6847_v50  ;;  %v21215_v50 = vld [vmem:[#allocation32_spill] sm:$0xff]  ;;  %v21220_v48 = vld [vmem:[#allocation19_spill] sm:$0xff] }
 0x945   : > { %21208 = vst [vmem:[#allocation12_spill] sm:$0xff] %v18424_v41  ;;  %v6956_v2 = vrot.slane %v18431_v33, 4  ;;  %v18453_v62 = vperm.slane %v9279_v5, %v21052_v13  ;;  %v21213_v55 = vrot.slane %v18269_v43, 4  ;;  %v10689_v30 = vunpack.i.h.bf16 %v10687_v6 }
 0x946   : > { %21209 = vst [vmem:[#allocation5_spill] sm:$0xff] %v18431_v33  ;;  %v6845_v21 = vsel %vm366_vm0, %v18421_v3, %v6844_v60  ;;  %10886 = vrot.lane.b32.xlu0 %v10885_v16, %s11108_s12  ;;  %v6854_v51 = vrot.slane %v21214_v4, 4  ;;  %v7974_v56 = vrot.slane %v18401_v9, 4  ;;  %v6966_v17 = vrot.slane %v21215_v50, 4  ;;  %v21221_v33 = vld [vmem:[#allocation57_spill] sm:$0xff]  ;;  %v21222_v3 = vld [vmem:[#allocation30_spill] sm:$0xff] }
 0x947   : > { %21210 = vst [vmem:[#allocation18_spill] sm:$0xff] %v18435_v32  ;;  %v7961_v15 = vsel %vm366_vm0, %v21213_v55, %v7911_v42  ;;  %v6957_v19 = vsel %vm366_vm0, %v18435_v32, %v6956_v2  ;;  %v21216_v60 = vrot.slane %v18285_v8, 4  ;;  %v7963_v16 = vsel %vm366_vm0, %v18269_v43, %v7962_v11  ;;  %v18486_v11 = vpop.permute.xlu2 %10771  ;;  %v21226_v43 = vld [vmem:[#allocation28_spill] sm:$0xff] }
 0x948   : > { %21211 = vst [vmem:[#allocation9_spill] sm:$0xff] %v18440_v47  ;;  %v10880_v0 = vpack.i.bf16 %v6957_v19, %v6845_v21  ;;  %v21217_v2 = vrot.slane %v18282_v35, 4  ;;  %v7850_v53 = vrot.slane %v7799_v12, 4  ;;  %v18479_v21 = vperm.slane %v7961_v15, %v21053_v46 }
 0x949   : > { %21212 = vst [vmem:[#allocation15_spill] sm:$0xff] %v18453_v62  ;;  %v7949_v42 = vsel %vm366_vm0, %v21216_v60, %v18440_v47  ;;  %v21219_v19 = vrot.slane %v18232_v29, 4  ;;  %v10688_v60 = vunpack.i.l.bf16 %v10687_v6  ;;  %v6855_v49 = vsel %vm366_vm0, %v6854_v51, %v21221_v33 }
 0x94a   : > { %v7837_v55 = vsel %vm366_vm0, %v21217_v2, %v18447_v28  ;;  %21218 = vst [vmem:[#allocation42_spill] sm:$0xff] %v18479_v21  ;;  %10881 = vrot.lane.b32.xlu2 %v10880_v0, %s11109_s13  ;;  %v7937_v2 = vsel %vm366_vm0, %v21220_v48, %v10689_v30  ;;  %v6967_v15 = vsel %vm366_vm0, %v6966_v17, %v21222_v3  ;;  %v7938_v0 = vrot.slane %v10689_v30, 4  ;;  %v10712_v17 = vpop.permute.xlu1 %10711  ;;  %v21229_v21 = vld [vmem:[#allocation39_spill] sm:$0xff] }
 0x94b   : > { %v7849_v5 = vsel %vm366_vm0, %v21219_v19, %v7799_v12  ;;  %v18495_v32 = vperm.slane %v7949_v42, %v21053_v46  ;;  %v18498_v12 = vperm.slane %v7963_v16, %v21053_v46  ;;  %v18501_v6 = vperm.slane %v7837_v55, %v21053_v46  ;;  %v21228_v55 = vld [vmem:[#allocation58_spill] sm:$0xff] }
 0x94c   : > { %v7851_v19 = vsel %vm366_vm0, %v18232_v29, %v7850_v53  ;;  %v6852_v52 = vrot.slane %v21226_v43, 4  ;;  %v7943_v42 = vperm.slane %v7937_v2, %v21052_v13  ;;  %v7825_v16 = vsel %vm366_vm0, %v21227_v59, %v10688_v60  ;;  %v21230_v53 = vld [vmem:[#allocation33_spill] sm:$0xff] }
 0x94d   : > { %21223 = vst [vmem:[#allocation21_spill] sm:$0xff] %v18495_v32  ;;  %v10905_v41 = vpack.i.bf16 %v6967_v15, %v6855_v49  ;;  %v6964_v62 = vrot.slane %v21229_v21, 4  ;;  %v6850_v29 = vrot.slane %v21228_v55, 4  ;;  %v6962_v48 = vrot.slane %v21230_v53, 4  ;;  %v21231_v32 = vld [vmem:[#allocation34_spill] sm:$0xff]  ;;  %v18522_v49 = vpop.permute.xlu0 %10706 }
 0x94e   : > { %21224 = vst [vmem:[#allocation10_spill] sm:$0xff] %v18498_v12  ;;  %v7826_v12 = vrot.slane %v10688_v60, 4  ;;  %v6853_v30 = vsel %vm366_vm0, %v21228_v55, %v6852_v52  ;;  %v21232_v2 = vunpack.i.h.bf16 %v21231_v32  ;;  %v10714_v59 = vunpack.i.h.bf16 %v10712_v17 }
 0x94f   : > { %21225 = vst [vmem:[#allocation52_spill] sm:$0xff] %v18501_v6  ;;  %10906 = vrot.lane.b32.xlu1 %v10905_v41, %s11106_s10  ;;  %v18525_v52 = vperm.slane %v7825_v16, %v21052_v13  ;;  %v6965_v60 = vsel %vm366_vm0, %v21230_v53, %v6964_v62  ;;  %v6851_v15 = vsel %vm366_vm0, %v6850_v29, %v21226_v43  ;;  %v7972_v45 = vrot.slane %v7943_v42, 4 }
 0x950   : > { %v7939_v6 = vsel %vm366_vm0, %v21232_v2, %v7938_v0  ;;  %v6963_v55 = vsel %vm366_vm0, %v6962_v48, %v21229_v21  ;;  %v10900_v51 = vpack.i.bf16 %v6965_v60, %v6853_v30  ;;  %v10713_v2 = vunpack.i.l.bf16 %v10712_v17 }
 0x951   : > { %v10895_v0 = vpack.i.bf16 %v6963_v55, %v6851_v15  ;;  %v7975_v41 = vsel %vm366_vm0, %v7943_v42, %v7974_v56  ;;  %v21233_v8 = vunpack.i.l.bf16 %v21231_v32  ;;  %v8254_v47 = vrot.slane %v10714_v59, 4 }
 0x952   : > { %v10709_v35 = vunpack.i.h.bf16 %v18522_v49  ;;  %v18540_v43 = vperm.slane %v7849_v5, %v21053_v46  ;;  %v18543_v21 = vperm.slane %v7851_v19, %v21053_v46  ;;  %v18546_v48 = vperm.slane %v7939_v6, %v21052_v13  ;;  %10901 = vrot.lane.b32.xlu0 %v10900_v51, %s11103_s30  ;;  %v18562_v6 = vpop.permute.xlu2 %10786 }
 0x953   : > { %v7827_v16 = vsel %vm366_vm0, %v21233_v8, %v7826_v12  ;;  %10896 = vrot.lane.b32.xlu2 %v10895_v0, %s11107_s11  ;;  %v21234_v8 = vunpack.i.h.bf16 %v18437_v37  ;;  %v21235_v56 = vunpack.i.l.bf16 %v18437_v37  ;;  %v21236_v17 = vunpack.i.h.bf16 %v18486_v11 }
 0x954   : > { %v21238_v19 = vunpack.i.l.bf16 %v18486_v11  ;;  %v18565_v51 = vperm.slane %v7975_v41, %v21053_v46  ;;  %v18568_v30 = vperm.slane %v7827_v16, %v21052_v13  ;;  %v21239_v29 = vrot.slane %v18388_v63, 4 }
 0x955   : > { %v8244_v32 = vrot.slane %v21234_v8, 4  ;;  %v8132_v12 = vrot.slane %v21235_v56, 4  ;;  %v18556_v5 = vrot.slane %v21236_v17, 4  ;;  %v8142_v60 = vrot.slane %v10713_v2, 4 }
 0x956   : > { %v18560_v42 = vrot.slane %v21238_v19, 4  ;;  %v7863_v53 = vsel %vm366_vm0, %v18525_v52, %v21239_v29  ;;  %v18576_v15 = vsel %vm366_vm0, %v7972_v45, %v18401_v9  ;;  %v7860_v55 = vrot.slane %v18525_v52, 4 }
 0x957   : > { %21237 = vst [vmem:[#allocation48_spill] sm:$0xff] %v18556_v5  ;;  %v21240_v0 = vunpack.i.h.bf16 %v18061_v1  ;;  %v8242_v8 = vrot.slane %v10709_v35, 4  ;;  %v8145_v56 = vsel %vm366_vm0, %v10713_v2, %v18136_v22  ;;  %v8257_v17 = vsel %vm366_vm0, %v10714_v59, %v18122_v44 }
 0x958   : > { %v21241_v19 = vrot.slane %v18310_v36, 4  ;;  %v21242_v9 = vrot.slane %v18391_v14, 4  ;;  %v8245_v22 = vsel %vm366_vm0, %v10709_v35, %v8244_v32  ;;  %v21243_v44 = vunpack.i.l.bf16 %v18061_v1  ;;  %v18618_v32 = vpop.permute.xlu1 %10726 }
 0x959   : > { %v8255_v41 = vsel %vm366_vm0, %v8254_v47, %v21240_v0  ;;  %v18598_v47 = vperm.slane %v7863_v53, %v21053_v46  ;;  %v10708_v2 = vunpack.i.l.bf16 %v18522_v49  ;;  %v18611_v0 = vperm.slane %v8145_v56, %v21052_v13 }
 0x95a   : > { %v7163_v45 = vsel %vm366_vm0, %v17634_v23, %v21241_v19  ;;  %v18595_v52 = vsel %vm366_vm0, %v18546_v48, %v21242_v9  ;;  %v8143_v36 = vsel %vm366_vm0, %v8142_v60, %v21243_v44  ;;  %v18606_v59 = vperm.slane %v8255_v41, %v21052_v13  ;;  %v18641_v23 = vpop.permute.xlu2 %10801 }
 0x95b   : > { %v8265_v53 = vperm.slane %v8257_v17, %v21052_v13  ;;  %v21245_v19 = vunpack.i.h.bf16 %v18437_v37  ;;  %v7171_v1 = vperm.slane %v7163_v45, %v21053_v46  ;;  %v8253_v60 = vperm.slane %v8245_v22, %v21052_v13  ;;  %v18627_v17 = vpop.permute.xlu0 %10721  ;;  %21247 = vst [vmem:[#allocation53_spill] sm:$0xff] %v18641_v23 }
 0x95c   : > { %21244 = vst [vmem:[#allocation24_spill] sm:$0xff] %v18606_v59  ;;  %v7190_v41 = vrot.slane %v18197_v39, 4  ;;  %v21246_v9 = vrot.slane %v18301_v54, 4  ;;  %v6856_v56 = vrot.slane %v21221_v33, 4  ;;  %v8290_v22 = vrot.slane %v18606_v59, 4 }
 0x95d   : > { %v8243_v35 = vsel %vm366_vm0, %v8242_v8, %v21245_v19  ;;  %v7302_v8 = vrot.slane %v18217_v31, 4  ;;  %v7188_v45 = vrot.slane %v7171_v1, 4  ;;  %v6968_v19 = vrot.slane %v21222_v3, 4 }
 0x95e   : > { %v7275_v49 = vsel %vm366_vm0, %v17621_v18, %v21246_v9  ;;  %v8130_v16 = vrot.slane %v10708_v2, 4  ;;  %v7191_v62 = vsel %vm366_vm0, %v7171_v1, %v7190_v41  ;;  %v6857_v54 = vsel %vm366_vm0, %v21214_v4, %v6856_v56 }
 0x95f   : > { %v7283_v44 = vperm.slane %v7275_v49, %v21053_v46  ;;  %v7189_v33 = vsel %vm366_vm0, %v7188_v45, %v18197_v39  ;;  %v6969_v49 = vsel %vm366_vm0, %v21215_v50, %v6968_v19  ;;  %v8302_v3 = vrot.slane %v8265_v53, 4 }
 0x960   : > { %v10910_v59 = vpack.i.bf16 %v6969_v49, %v6857_v54  ;;  %v10728_v5 = vunpack.i.l.bf16 %v18618_v32  ;;  %v18645_v1 = vperm.slane %v8243_v35, %v21052_v13  ;;  %v8304_v4 = vrot.slane %v8253_v60, 4  ;;  %v18688_v54 = vpop.permute.xlu1 %10736 }
 0x961   : > { %v7303_v18 = vsel %vm366_vm0, %v7283_v44, %v7302_v8  ;;  %v7300_v9 = vrot.slane %v7283_v44, 4  ;;  %v8133_v41 = vsel %vm366_vm0, %v10708_v2, %v8132_v12  ;;  %v18651_v56 = vperm.slane %v8143_v36, %v21052_v13 }
 0x962   : > { %v10925_v29 = vpack.i.bf16 %v7303_v18, %v7191_v62  ;;  %21248 = vst [vmem:[#allocation43_spill] sm:$0xff] %v18645_v1  ;;  %v21249_v50 = vunpack.i.l.bf16 %v18437_v37  ;;  %10911 = vrot.lane.b32.xlu2 %v10910_v59, %s11104_s8  ;;  %v10729_v35 = vunpack.i.h.bf16 %v18618_v32  ;;  %v18661_v12 = vsel %vm366_vm0, %v7860_v55, %v18388_v63 }
 0x963   : > { %v7301_v39 = vsel %vm366_vm0, %v7300_v9, %v18217_v31  ;;  %v21250_v36 = vrot.slane %v18373_v40, 4  ;;  %v8303_v2 = vsel %vm366_vm0, %v8302_v3, %v8253_v60  ;;  %v18678_v63 = vperm.slane %v8133_v41, %v21052_v13  ;;  %v18695_v49 = vpop.permute.xlu0 %10731 }
 0x964   : > { %v8131_v44 = vsel %vm366_vm0, %v8130_v16, %v21249_v50  ;;  %10926 = vrot.lane.b32.xlu1 %v10925_v29, %s11105_s9  ;;  %v10920_v62 = vpack.i.bf16 %v7301_v39, %v7189_v33  ;;  %v8291_v16 = vsel %vm366_vm0, %v8290_v22, %v18645_v1  ;;  %v21251_v29 = vunpack.i.h.bf16 %v18562_v6 }
 0x965   : > { %v18668_v37 = vsel %vm366_vm0, %v18568_v30, %v21250_v36  ;;  %v8154_v55 = vrot.slane %v10728_v5, 4  ;;  %v21252_v8 = vunpack.i.l.bf16 %v18562_v6  ;;  %v8305_v19 = vsel %vm366_vm0, %v8265_v53, %v8304_v4 }
 0x966   : > { %v18674_v59 = vrot.slane %v21251_v29, 4  ;;  %10921 = vrot.lane.b32.xlu0 %v10920_v62, %s11108_s12  ;;  %v18686_v22 = vperm.slane %v8131_v44, %v21052_v13  ;;  %v18693_v33 = vperm.slane %v8291_v16, %v21053_v46  ;;  %v8266_v9 = vrot.slane %v10729_v35, 4 }
 0x967   : > { %v8846_v45 = vrot.slane %v21252_v8, 4  ;;  %v18698_v3 = vperm.slane %v8303_v2, %v21053_v46  ;;  %v8157_v53 = vsel %vm366_vm0, %v10728_v5, %v18190_v27  ;;  %v7196_v4 = vrot.slane %v18359_v58, 4  ;;  %v18717_v2 = vpop.permute.xlu2 %10811 }
 0x968   : > { %21253 = vst [vmem:[#allocation32_spill] sm:$0xff] %v18693_v33  ;;  %v7308_v41 = vrot.slane %v18340_v34, 4  ;;  %v18705_v39 = vperm.slane %v8305_v19, %v21053_v46  ;;  %v21256_v44 = vunpack.i.l.bf16 %v18130_v10  ;;  %v10804_v36 = vunpack.i.h.bf16 %v18641_v23 }
 0x969   : > { %21254 = vst [vmem:[#allocation19_spill] sm:$0xff] %v18698_v3  ;;  %v10724_v29 = vunpack.i.h.bf16 %v18627_v17  ;;  %v7197_v27 = vsel %vm366_vm0, %v7196_v4, %v18203_v25  ;;  %v7194_v5 = vrot.slane %v18200_v26, 4  ;;  %v18720_v8 = vperm.slane %v8157_v53, %v21052_v13 }
 0x96a   : > { %21255 = vst [vmem:[#allocation57_spill] sm:$0xff] %v18705_v39  ;;  %v8155_v62 = vsel %vm366_vm0, %v8154_v55, %v21256_v44  ;;  %v21257_v19 = vunpack.i.h.bf16 %v18130_v10  ;;  %v21258_v44 = vld [vmem:[#allocation20_spill] sm:$0xff]  ;;  %v7309_v50 = vsel %vm366_vm0, %v7308_v41, %v18223_v57  ;;  %v7306_v53 = vrot.slane %v18220_v20, 4 }
 0x96b   : > { %v8269_v18 = vsel %vm366_vm0, %v10729_v35, %v21258_v44  ;;  %v18730_v60 = vperm.slane %v8155_v62, %v21052_v13  ;;  %v7195_v32 = vsel %vm366_vm0, %v18349_v38, %v7194_v5  ;;  %v8848_v16 = vrot.slane %v10804_v36, 4  ;;  %v21259_v44 = vld [vmem:[#allocation41_spill] sm:$0xff] }
 0x96c   : > { %v8267_v55 = vsel %vm366_vm0, %v8266_v9, %v21257_v19  ;;  %v8847_v10 = vsel %vm366_vm0, %v8846_v45, %v10804_v36  ;;  %v10723_v9 = vunpack.i.l.bf16 %v18627_v17  ;;  %v10940_v19 = vpack.i.bf16 %v7309_v50, %v7197_v27  ;;  %v21260_v45 = vld [vmem:[#allocation26_spill] sm:$0xff]  ;;  %v21264_v27 = vld [vmem:[#allocation23_spill] sm:$0xff] }
 0x96d   : > { %v8273_v35 = vperm.slane %v8267_v55, %v21052_v13  ;;  %v8279_v41 = vsel %vm366_vm0, %v21259_v44, %v10724_v29  ;;  %v8280_v62 = vrot.slane %v10724_v29, 4  ;;  %v7307_v31 = vsel %vm366_vm0, %v18333_v61, %v7306_v53 }
 0x96e   : > { %v18744_v4 = vperm.slane %v8269_v18, %v21052_v13  ;;  %10941 = vrot.lane.b32.xlu1 %v10940_v19, %s11106_s10  ;;  %v10935_v5 = vpack.i.bf16 %v7307_v31, %v7195_v32  ;;  %v18749_v36 = vperm.slane %v21260_v45, %v21053_v46  ;;  %v18753_v17 = vperm.slane %v18346_v24, %v21053_v46  ;;  %v18767_v32 = vpop.permute.xlu1 %10751  ;;  %v21268_v19 = vld [vmem:[#allocation40_spill] sm:$0xff]  ;;  %v18777_v45 = vpop.permute.xlu0 %10746 }
 0x96f   : > { %v18757_v29 = vperm.slane %v8847_v10, %v21052_v13  ;;  %v18761_v18 = vperm.slane %v21264_v27, %v21053_v46  ;;  %v18765_v31 = vperm.slane %v18328_v7, %v21053_v46  ;;  %v21267_v55 = vunpack.i.l.bf16 %v18562_v6  ;;  %v21269_v7 = vld [vmem:[#allocation13_spill] sm:$0xff] }
 0x970   : > { %21261 = vst [vmem:[#allocation30_spill] sm:$0xff] %v18749_v36  ;;  %v8285_v53 = vperm.slane %v8279_v41, %v21052_v13  ;;  %v8167_v10 = vsel %vm366_vm0, %v21268_v19, %v10723_v9  ;;  %10936 = vrot.lane.b32.xlu0 %v10935_v5, %s11103_s30  ;;  %v7186_v44 = vrot.slane %v18749_v36, 4  ;;  %v8316_v27 = vrot.slane %v8273_v35, 4 }
 0x971   : > { %21262 = vst [vmem:[#allocation28_spill] sm:$0xff] %v18753_v17  ;;  %v8849_v24 = vsel %vm366_vm0, %v21267_v55, %v8848_v16  ;;  %v21270_v50 = vunpack.i.h.bf16 %v21269_v7  ;;  %v8168_v3 = vrot.slane %v10723_v9, 4  ;;  %v7298_v1 = vrot.slane %v18761_v18, 4 }
 0x972   : > { %21263 = vst [vmem:[#allocation16_spill] sm:$0xff] %v18757_v29  ;;  %v8328_v41 = vrot.slane %v18744_v4, 4  ;;  %v21271_v55 = vunpack.i.l.bf16 %v18641_v23  ;;  %v7187_v5 = vsel %vm366_vm0, %v18753_v17, %v7186_v44  ;;  %v18792_v36 = vperm.slane %v8849_v24, %v21052_v13  ;;  %v21275_v44 = vld [vmem:[#allocation44_spill] sm:$0xff] }
 0x973   : > { %21265 = vst [vmem:[#allocation58_spill] sm:$0xff] %v18761_v18  ;;  %v8281_v39 = vsel %vm366_vm0, %v21270_v50, %v8280_v62  ;;  %v18796_v9 = vperm.slane %v8167_v10, %v21052_v13  ;;  %v7299_v62 = vsel %vm366_vm0, %v18765_v31, %v7298_v1  ;;  %v18800_v50 = vpop.permute.xlu2 %10826  ;;  %v21274_v23 = vrot.slane %v18447_v28, 4 }
 0x974   : > { %21266 = vst [vmem:[#allocation39_spill] sm:$0xff] %v18765_v31  ;;  %v18787_v19 = vrot.slane %v21271_v55, 4  ;;  %v8289_v16 = vperm.slane %v8281_v39, %v21052_v13  ;;  %v8314_v55 = vrot.slane %v8285_v53, 4  ;;  %v10915_v18 = vpack.i.bf16 %v7299_v62, %v7187_v5  ;;  %v21277_v5 = vld [vmem:[#allocation9_spill] sm:$0xff]  ;;  %v21279_v62 = vld [vmem:[#allocation38_spill] sm:$0xff] }
 0x975   : > { %21272 = vst [vmem:[#allocation33_spill] sm:$0xff] %v18792_v36  ;;  %v7839_v24 = vsel %vm366_vm0, %v21275_v44, %v21274_v23  ;;  %v8317_v17 = vsel %vm366_vm0, %v8285_v53, %v8316_v27  ;;  %v21276_v33 = vunpack.i.l.bf16 %v21269_v7  ;;  %v7888_v1 = vrot.slane %v18598_v47, 4  ;;  %v21281_v7 = vld [vmem:[#allocation52_spill] sm:$0xff] }
 0x976   : > { %21273 = vst [vmem:[#allocation34_spill] sm:$0xff] %v18800_v50  ;;  %v18812_v29 = vperm.slane %v7839_v24, %v21053_v46  ;;  %10916 = vrot.lane.b32.xlu2 %v10915_v18, %s11109_s13  ;;  %v10733_v39 = vunpack.i.l.bf16 %v18695_v49  ;;  %v21278_v28 = vrot.slane %v21277_v5, 4  ;;  %v8000_v53 = vrot.slane %v18565_v51, 4  ;;  %v18852_v50 = vpop.permute.xlu1 %10766 }
 0x977   : > { %v8169_v10 = vsel %vm366_vm0, %v21276_v33, %v8168_v3  ;;  %v18824_v27 = vperm.slane %v18661_v12, %v21053_v46  ;;  %v7886_v44 = vrot.slane %v21281_v7, 4  ;;  %v18834_v24 = vperm.slane %v8317_v17, %v21053_v46  ;;  %v21284_v17 = vld [vmem:[#allocation21_spill] sm:$0xff]  ;;  %v21286_v7 = vld [vmem:[#allocation47_spill] sm:$0xff] }
 0x978   : > { %v7951_v23 = vsel %vm366_vm0, %v21279_v62, %v21278_v28  ;;  %v7889_v3 = vsel %vm366_vm0, %v7888_v1, %v18812_v29  ;;  %v18837_v5 = vperm.slane %v8169_v10, %v21052_v13  ;;  %v18842_v12 = vperm.slane %v18576_v15, %v21053_v46 }
 0x979   : > { %21280 = vst [vmem:[#allocation20_spill] sm:$0xff] %v18824_v27  ;;  %v18830_v18 = vperm.slane %v7951_v23, %v21053_v46  ;;  %v18845_v62 = vsel %vm366_vm0, %v8314_v55, %v8273_v35  ;;  %v7887_v23 = vsel %vm366_vm0, %v18824_v27, %v7886_v44  ;;  %v7998_v33 = vrot.slane %v21284_v17, 4  ;;  %v18859_v35 = vpop.permute.xlu0 %10761 }
 0x97a   : > { %21282 = vst [vmem:[#allocation41_spill] sm:$0xff] %v18834_v24  ;;  %v8326_v10 = vrot.slane %v8289_v16, 4  ;;  %v18855_v28 = vsel %vm366_vm0, %v8289_v16, %v8328_v41  ;;  %v9291_v15 = vsel %vm366_vm0, %v10733_v39, %v21286_v7  ;;  %v9288_v55 = vrot.slane %v10733_v39, 4 }
 0x97b   : > { %21283 = vst [vmem:[#allocation26_spill] sm:$0xff] %v18842_v12  ;;  %v8001_v1 = vsel %vm366_vm0, %v8000_v53, %v18830_v18  ;;  %v7999_v53 = vsel %vm366_vm0, %v18842_v12, %v7998_v33  ;;  %v7192_v44 = vrot.slane %v18349_v38, 4  ;;  %v7304_v17 = vrot.slane %v18333_v61, 4  ;;  %v18875_v61 = vpop.permute.xlu2 %10841 }
 0x97c   : > { %21285 = vst [vmem:[#allocation23_spill] sm:$0xff] %v18855_v28  ;;  %v10955_v31 = vpack.i.bf16 %v8001_v1, %v7889_v3  ;;  %v20345_v36 = vunpack.i.h.bf16 %v18688_v54  ;;  %v20346_v16 = vunpack.i.l.bf16 %v18688_v54  ;;  %v10950_v41 = vpack.i.bf16 %v7999_v53, %v7887_v23  ;;  %v21287_v3 = vld [vmem:[#allocation59_spill] sm:$0xff]  ;;  %v21290_v53 = vld [vmem:[#allocation8_spill] sm:$0xff] }
 0x97d   : > { %v6484_v7 = vrot.slane %v21287_v3, 4  ;;  %v9299_v39 = vperm.slane %v9291_v15, %v21052_v13  ;;  %v7193_v33 = vsel %vm366_vm0, %v7192_v44, %v18200_v26  ;;  %v7305_v38 = vsel %vm366_vm0, %v7304_v17, %v18220_v20  ;;  %21288 = vst [vmem:[#allocation40_spill] sm:$0xff] %v18875_v61  ;;  %v21291_v44 = vld [vmem:[#allocation61_spill] sm:$0xff]  ;;  %v21301_v28 = vld [vmem:[#allocation12_spill] sm:$0xff] }
 0x97e   : > { %10956 = vrot.lane.b32.xlu1 %v10955_v31, %s11108_s12  ;;  %v18879_v1 = vsel %vm366_vm0, %v8326_v10, %v18744_v4  ;;  %v10734_v27 = vunpack.i.h.bf16 %v18695_v49  ;;  %10951 = vrot.lane.b32.xlu0 %v10950_v41, %s11109_s13  ;;  %v10930_v31 = vpack.i.bf16 %v7305_v38, %v7193_v33  ;;  %v10753_v23 = vunpack.i.l.bf16 %v18767_v32  ;;  %v21295_v38 = vld [vmem:[#allocation7_spill] sm:$0xff] }
 0x97f   : > { %21289 = vst [vmem:[#allocation13_spill] sm:$0xff] %v18879_v1  ;;  %v10813_v15 = vunpack.i.l.bf16 %v18717_v2  ;;  %v6596_v26 = vrot.slane %v21290_v53, 4  ;;  %v21292_v3 = vunpack.i.l.bf16 %v21291_v44  ;;  %v21293_v17 = vrot.slane %v18568_v30, 4  ;;  %v21296_v53 = vld [vmem:[#allocation15_spill] sm:$0xff] }
 0x980   : > { %v18895_v49 = vrot.slane %v20345_v36, 4  ;;  %v10814_v10 = vunpack.i.h.bf16 %v18717_v2  ;;  %10931 = vrot.lane.b32.xlu2 %v10930_v31, %s11107_s11  ;;  %v10754_v41 = vunpack.i.h.bf16 %v18767_v32  ;;  %v21294_v33 = vrot.slane %v18546_v48, 4  ;;  %v21298_v48 = vld [vmem:[#allocation36_spill] sm:$0xff] }
 0x981   : > { %v9289_v20 = vsel %vm366_vm0, %v9288_v55, %v21292_v3  ;;  %v7873_v4 = vsel %vm366_vm0, %v21293_v17, %v18373_v40  ;;  %v8946_v30 = vrot.slane %v20346_v16, 4  ;;  %v6485_v40 = vsel %vm366_vm0, %v6484_v7, %v21295_v38  ;;  %v18920_v38 = vpop.permute.xlu1 %10781  ;;  %v18929_v61 = vpop.permute.xlu0 %10776 }
 0x982   : > { %v7985_v55 = vsel %vm366_vm0, %v21294_v33, %v18391_v14  ;;  %v21297_v44 = vrot.slane %v21296_v53, 4  ;;  %v7879_v2 = vperm.slane %v7873_v4, %v21053_v46  ;;  %v9300_v31 = vrot.slane %v10734_v27, 4 }
 0x983   : > { %v9295_v32 = vperm.slane %v9289_v20, %v21052_v13  ;;  %v9336_v17 = vrot.slane %v9299_v39, 4  ;;  %v9302_v36 = vrot.slane %v10753_v23, 4  ;;  %v6597_v14 = vsel %vm366_vm0, %v6596_v26, %v21298_v48 }
 0x984   : > { %v9339_v3 = vsel %vm366_vm0, %v9299_v39, %v21297_v44  ;;  %v18916_v33 = vsel %vm738_vm6, %v6485_v40, %v10813_v15  ;;  %v7894_v16 = vrot.slane %v18540_v43, 4  ;;  %v7991_v7 = vperm.slane %v7985_v55, %v21053_v46  ;;  %v21300_v40 = vld [vmem:[#allocation42_spill] sm:$0xff] }
 0x985   : > { %v18923_v44 = vsel %vm738_vm6, %v6597_v14, %v10814_v10  ;;  %v18926_v4 = vperm.slane %v9339_v3, %v21053_v46  ;;  %v9314_v39 = vrot.slane %v10754_v41, 4  ;;  %v9301_v20 = vsel %vm366_vm0, %v9300_v31, %v10753_v23 }
 0x986   : > { %v10749_v15 = vunpack.i.h.bf16 %v18777_v45  ;;  %v7895_v26 = vsel %vm366_vm0, %v7879_v2, %v7894_v16  ;;  %v8006_v48 = vrot.slane %v21300_v40, 4  ;;  %v7892_v55 = vrot.slane %v7879_v2, 4 }
 0x987   : > { %21299 = vst [vmem:[#allocation44_spill] sm:$0xff] %v18926_v4  ;;  %v9324_v12 = vrot.slane %v9295_v32, 4  ;;  %v21302_v1 = vrot.slane %v21301_v28, 4  ;;  %v18939_v3 = vsel %vm366_vm0, %v9336_v17, %v21296_v53  ;;  %v9303_v23 = vsel %vm366_vm0, %v10734_v27, %v9302_v36  ;;  %v18949_v4 = vpop.permute.xlu2 %10856 }
 0x988   : > { %v18943_v31 = vperm.slane %v9301_v20, %v21052_v13  ;;  %v10748_v14 = vunpack.i.l.bf16 %v18777_v45  ;;  %v8007_v16 = vsel %vm366_vm0, %v7991_v7, %v8006_v48  ;;  %v7893_v2 = vsel %vm366_vm0, %v7892_v55, %v18540_v43 }
 0x989   : > { %v9327_v10 = vsel %vm366_vm0, %v9295_v32, %v21302_v1  ;;  %v10970_v24 = vpack.i.bf16 %v8007_v16, %v7895_v26  ;;  %v8004_v1 = vrot.slane %v7991_v7, 4  ;;  %v7198_v32 = vrot.slane %v18203_v25, 4 }
 0x98a   : > { %v7310_v53 = vrot.slane %v18223_v57, 4  ;;  %v18954_v36 = vperm.slane %v9327_v10, %v21053_v46  ;;  %v18957_v27 = vperm.slane %v9303_v23, %v21052_v13  ;;  %v9312_v45 = vrot.slane %v10749_v15, 4  ;;  %v18988_v23 = vpop.permute.xlu1 %10796 }
 0x98b   : > { %v9315_v17 = vsel %vm366_vm0, %v10749_v15, %v9314_v39  ;;  %10971 = vrot.lane.b32.xlu1 %v10970_v24, %s11103_s30  ;;  %v8005_v43 = vsel %vm366_vm0, %v8004_v1, %v21300_v40  ;;  %v7199_v7 = vsel %vm366_vm0, %v18359_v58, %v7198_v32  ;;  %v10764_v57 = vunpack.i.h.bf16 %v18859_v35  ;;  %v18995_v1 = vpop.permute.xlu0 %10791 }
 0x98c   : > { %v7311_v25 = vsel %vm366_vm0, %v18340_v34, %v7310_v53  ;;  %v18970_v20 = vsel %vm366_vm0, %v9324_v12, %v21301_v28  ;;  %v10965_v39 = vpack.i.bf16 %v8005_v43, %v7893_v2  ;;  %v9323_v24 = vperm.slane %v9315_v17, %v21052_v13 }
 0x98d   : > { %v10945_v15 = vpack.i.bf16 %v7311_v25, %v7199_v7  ;;  %v9179_v40 = vsel %vm366_vm0, %v10748_v14, %v18560_v42  ;;  %v8934_v48 = vrot.slane %v10764_v57, 4  ;;  %v10763_v58 = vunpack.i.l.bf16 %v18859_v35  ;;  %v21306_v25 = vld [vmem:[#allocation10_spill] sm:$0xff] }
 0x98e   : > { %v9362_v34 = vrot.slane %v18957_v27, 4  ;;  %v9176_v55 = vrot.slane %v10748_v14, 4  ;;  %10966 = vrot.lane.b32.xlu0 %v10965_v39, %s11107_s11  ;;  %v21303_v28 = vrot.slane %v18686_v22, 4  ;;  %v21304_v10 = vrot.slane %v18730_v60, 4 }
 0x98f   : > { %10946 = vrot.lane.b32.xlu2 %v10945_v15, %s11104_s8  ;;  %v9313_v35 = vsel %vm366_vm0, %v9312_v45, %v10754_v41  ;;  %v8947_v14 = vsel %vm366_vm0, %v8946_v30, %v10763_v58  ;;  %v8948_v16 = vrot.slane %v10763_v58, 4  ;;  %v18998_v32 = vperm.slane %v9179_v40, %v21052_v13  ;;  %v19025_v58 = vpop.permute.xlu2 %10871 }
 0x990   : > { %v8181_v12 = vsel %vm366_vm0, %v18651_v56, %v21303_v28  ;;  %v8205_v42 = vsel %vm366_vm0, %v18796_v9, %v21304_v10  ;;  %v21305_v53 = vunpack.i.h.bf16 %v18562_v6  ;;  %v19005_v43 = vperm.slane %v18668_v37, %v21053_v46  ;;  %21308 = vst [vmem:[#allocation9_spill] sm:$0xff] %v19025_v58 }
 0x991   : > { %v18993_v2 = vperm.slane %v8205_v42, %v21053_v46  ;;  %v7898_v41 = vrot.slane %v18543_v21, 4  ;;  %v19009_v30 = vperm.slane %v8181_v12, %v21053_v46  ;;  %v19014_v7 = vperm.slane %v18595_v52, %v21053_v46 }
 0x992   : > { %v8935_v17 = vsel %vm366_vm0, %v8934_v48, %v21305_v53  ;;  %v8010_v39 = vrot.slane %v21306_v25, 4  ;;  %v8937_v6 = vsel %vm366_vm0, %v10764_v57, %v18674_v59  ;;  %v21307_v15 = vunpack.i.l.bf16 %v18688_v54 }
 0x993   : > { %v8230_v45 = vrot.slane %v18993_v2, 4  ;;  %v8953_v40 = vperm.slane %v8947_v14, %v21052_v13  ;;  %v7899_v48 = vsel %vm366_vm0, %v19005_v43, %v7898_v41  ;;  %v10769_v28 = vunpack.i.h.bf16 %v18852_v50 }
 0x994   : > { %v8949_v37 = vsel %vm366_vm0, %v21307_v15, %v8948_v16  ;;  %v8941_v52 = vperm.slane %v8935_v17, %v21052_v13  ;;  %v8011_v59 = vsel %vm366_vm0, %v19014_v7, %v8010_v39  ;;  %v19034_v57 = vperm.slane %v9313_v35, %v21052_v13 }
 0x995   : > { %v8231_v12 = vsel %vm366_vm0, %v8230_v45, %v19009_v30  ;;  %v9360_v10 = vrot.slane %v9323_v24, 4  ;;  %v7890_v42 = vrot.slane %v18812_v29, 4  ;;  %v8002_v14 = vrot.slane %v18830_v18, 4 }
 0x996   : > { %8359 = vrot.lane.b32.xlu1 %v8231_v12, %s11108_s12  ;;  %v21309_v16 = vunpack.i.l.bf16 %v18486_v11  ;;  %v8945_v17 = vperm.slane %v8937_v6, %v21052_v13  ;;  %v8957_v41 = vperm.slane %v8949_v37, %v21052_v13  ;;  %v10980_v45 = vpack.i.bf16 %v8011_v59, %v7899_v48 }
 0x997   : > { %v8982_v39 = vrot.slane %v8953_v40, 4  ;;  %v7891_v35 = vsel %vm366_vm0, %v18598_v47, %v7890_v42  ;;  %v8003_v15 = vsel %vm366_vm0, %v18565_v51, %v8002_v14  ;;  %v10784_v29 = vunpack.i.h.bf16 %v18920_v38  ;;  %v19058_v51 = vpop.permute.xlu1 %10821 }
 0x998   : > { %v9177_v53 = vsel %vm366_vm0, %v9176_v55, %v21309_v16  ;;  %v8970_v12 = vrot.slane %v10769_v28, 4  ;;  %v8984_v18 = vrot.slane %v8941_v52, 4  ;;  %10981 = vrot.lane.b32.xlu0 %v10980_v45, %s11104_s8  ;;  %v10960_v26 = vpack.i.bf16 %v8003_v15, %v7891_v35  ;;  %v19063_v16 = vpop.permute.xlu0 %10806 }
 0x999   : > { %v10783_v55 = vunpack.i.l.bf16 %v18920_v38  ;;  %v19052_v6 = vperm.slane %v9177_v53, %v21052_v13  ;;  %v9361_v47 = vsel %vm366_vm0, %v9360_v10, %v18957_v27  ;;  %v9363_v48 = vsel %vm366_vm0, %v9323_v24, %v9362_v34  ;;  %v21314_v53 = vld [vmem:[#allocation60_spill] sm:$0xff] }
 0x99a   : > { %v20351_v59 = vunpack.i.l.bf16 %v18852_v50  ;;  %v8996_v42 = vrot.slane %v8945_v17, 4  ;;  %10961 = vrot.lane.b32.xlu2 %v10960_v26, %s11105_s9  ;;  %v8972_v14 = vrot.slane %v10784_v29, 4  ;;  %v8971_v38 = vsel %vm366_vm0, %v8970_v12, %v10784_v29 }
 0x99b   : > { %v21310_v45 = vrot.slane %v18943_v31, 4  ;;  %v8983_v24 = vsel %vm366_vm0, %v8982_v39, %v8941_v52  ;;  %v8994_v34 = vrot.slane %v8957_v41, 4  ;;  %v8985_v10 = vsel %vm366_vm0, %v8953_v40, %v8984_v18  ;;  %v19085_v52 = vpop.permute.xlu2 %8709 }
 0x99c   : > { %v8959_v26 = vsel %vm366_vm0, %v18895_v49, %v10783_v55  ;;  %v8960_v35 = vrot.slane %v10783_v55, 4  ;;  %v10779_v15 = vunpack.i.h.bf16 %v18929_v61  ;;  %v19079_v12 = vperm.slane %v9361_v47, %v21053_v46 }
 0x99d   : > { %v19070_v27 = vsel %vm366_vm0, %v19034_v57, %v21310_v45  ;;  %v19082_v37 = vperm.slane %v9363_v48, %v21053_v46  ;;  %v8977_v45 = vperm.slane %v8971_v38, %v21052_v13  ;;  %v8834_v40 = vrot.slane %v20351_v59, 4 }
 0x99e   : > { %v19090_v49 = vperm.slane %v8983_v24, %v21053_v46  ;;  %v8997_v39 = vsel %vm366_vm0, %v8957_v41, %v8996_v42  ;;  %v8973_v18 = vsel %vm366_vm0, %v10769_v28, %v8972_v14  ;;  %v19095_v55 = vperm.slane %v8985_v10, %v21053_v46 }
 0x99f   : > { %v8995_v47 = vsel %vm366_vm0, %v8994_v34, %v8945_v17  ;;  %v8965_v48 = vperm.slane %v8959_v26, %v21052_v13  ;;  %v21312_v38 = vrot.slane %v18611_v0, 4  ;;  %v21313_v59 = vunpack.i.h.bf16 %v18688_v54 }
 0x9a0   : > { %21311 = vst [vmem:[#allocation38_spill] sm:$0xff] %v19090_v49  ;;  %v9189_v41 = vsel %vm366_vm0, %v21314_v53, %v10779_v15  ;;  %v9190_v28 = vrot.slane %v10779_v15, 4  ;;  %v8981_v17 = vperm.slane %v8973_v18, %v21052_v13  ;;  %v9006_v14 = vrot.slane %v8977_v45, 4 }
 0x9a1   : > { %v8191_v29 = vsel %vm366_vm0, %v21312_v38, %v18678_v63  ;;  %v8961_v24 = vsel %vm366_vm0, %v21313_v59, %v8960_v35  ;;  %v21315_v34 = vrot.slane %v18837_v5, 4  ;;  %v21316_v54 = vrot.slane %v18651_v56, 4 }
 0x9a2   : > { %v19109_v42 = vperm.slane %v8191_v29, %v21053_v46  ;;  %v21318_v15 = vrot.slane %v18796_v9, 4  ;;  %v9008_v18 = vrot.slane %v8965_v48, 4  ;;  %v7896_v56 = vrot.slane %v19005_v43, 4 }
 0x9a3   : > { %v8215_v10 = vsel %vm366_vm0, %v21315_v34, %v18720_v8  ;;  %v8179_v59 = vsel %vm366_vm0, %v21316_v54, %v18686_v22  ;;  %v8008_v22 = vrot.slane %v19014_v7, 4  ;;  %v19136_v34 = vpop.permute.xlu1 %10836  ;;  %v10778_v43 = vunpack.i.l.bf16 %v18929_v61 }
 0x9a4   : > { %v19121_v26 = vperm.slane %v8215_v10, %v21053_v46  ;;  %v8236_v53 = vrot.slane %v19109_v42, 4  ;;  %v19125_v35 = vperm.slane %v8179_v59, %v21053_v46  ;;  %v8203_v29 = vsel %vm366_vm0, %v21318_v15, %v18730_v60  ;;  %21320 = vst [vmem:[#allocation8_spill] sm:$0xff] %v19136_v34  ;;  %v21321_v10 = vld [vmem:[#allocation25_spill] sm:$0xff]  ;;  %v19145_v15 = vpop.permute.xlu0 %10816 }
 0x9a5   : > { %v19132_v38 = vperm.slane %v8203_v29, %v21053_v46  ;;  %v21322_v54 = vunpack.i.l.bf16 %v21321_v10  ;;  %v10798_v60 = vunpack.i.l.bf16 %v18988_v23  ;;  %v8969_v29 = vperm.slane %v8961_v24, %v21052_v13 }
 0x9a6   : > { %21317 = vst [vmem:[#allocation47_spill] sm:$0xff] %v19125_v35  ;;  %v8237_v58 = vsel %vm366_vm0, %v19121_v26, %v8236_v53  ;;  %v8228_v9 = vrot.slane %v19125_v35, 4  ;;  %v7897_v7 = vsel %vm366_vm0, %v7896_v56, %v18543_v21  ;;  %v9007_v53 = vsel %vm366_vm0, %v9006_v14, %v8965_v48  ;;  %v21326_v35 = vld [vmem:[#allocation48_spill] sm:$0xff] }
 0x9a7   : > { %21319 = vst [vmem:[#allocation59_spill] sm:$0xff] %v19132_v38  ;;  %v9191_v59 = vsel %vm366_vm0, %v21322_v54, %v9190_v28  ;;  %8371 = vrot.lane.b32.xlu1 %v8237_v58, %s11103_s30  ;;  %v8009_v28 = vsel %vm366_vm0, %v8008_v22, %v21306_v25  ;;  %v19156_v10 = vperm.slane %v9189_v41, %v21052_v13  ;;  %v9018_v61 = vrot.slane %v8981_v17, 4  ;;  %v19166_v25 = vpop.permute.xlu2 %8713 }
 0x9a8   : > { %v8229_v54 = vsel %vm366_vm0, %v19132_v38, %v8228_v9  ;;  %v10975_v34 = vpack.i.bf16 %v8009_v28, %v7897_v7  ;;  %v9009_v24 = vsel %vm366_vm0, %v8977_v45, %v9008_v18  ;;  %v19162_v58 = vperm.slane %v9191_v59, %v21052_v13 }
 0x9a9   : > { %8355 = vrot.lane.b32.xlu0 %v8229_v54, %s11109_s13  ;;  %v10794_v21 = vunpack.i.h.bf16 %v18995_v1  ;;  %v19169_v48 = vperm.slane %v8995_v47, %v21053_v46  ;;  %v19172_v41 = vperm.slane %v8997_v39, %v21053_v46  ;;  %v8836_v45 = vrot.slane %v10798_v60, 4 }
 0x9aa   : > { %10976 = vrot.lane.b32.xlu2 %v10975_v34, %s11106_s10  ;;  %v9020_v18 = vrot.slane %v8969_v29, 4  ;;  %v9200_v22 = vrot.slane %v10778_v43, 4  ;;  %v10793_v59 = vunpack.i.l.bf16 %v18995_v1  ;;  %v19179_v9 = vperm.slane %v9007_v53, %v21053_v46 }
 0x9ab   : > { %v19182_v47 = vperm.slane %v9009_v24, %v21053_v46  ;;  %v9238_v39 = vrot.slane %v19156_v10, 4  ;;  %v9166_v7 = vrot.slane %v10794_v21, 4  ;;  %v9019_v28 = vsel %vm366_vm0, %v9018_v61, %v8969_v29  ;;  %v19192_v56 = vpop.permute.xlu1 %10851 }
 0x9ac   : > { %21323 = vst [vmem:[#allocation61_spill] sm:$0xff] %v19179_v9  ;;  %v8835_v54 = vsel %vm366_vm0, %v8834_v40, %v10798_v60  ;;  %v21324_v14 = vrot.slane %v19034_v57, 4  ;;  %v21325_v53 = vunpack.i.l.bf16 %v18852_v50  ;;  %v9165_v38 = vsel %vm366_vm0, %v21326_v35, %v10794_v21  ;;  %v19204_v60 = vpop.permute.xlu0 %10831 }
 0x9ad   : > { %v19201_v29 = vperm.slane %v18970_v20, %v21053_v46  ;;  %v8234_v40 = vrot.slane %v19121_v26, 4  ;;  %21328 = vst [vmem:[#allocation15_spill] sm:$0xff] %v19204_v60  ;;  %v19207_v57 = vsel %vm366_vm0, %v8981_v17, %v9020_v18  ;;  %v9201_v50 = vsel %vm366_vm0, %v9200_v22, %v10793_v59 }
 0x9ae   : > { %v9349_v1 = vsel %vm366_vm0, %v21324_v14, %v18943_v31  ;;  %v8837_v24 = vsel %vm366_vm0, %v21325_v53, %v8836_v45  ;;  %v20356_v31 = vunpack.i.h.bf16 %v18988_v23  ;;  %v9032_v61 = vrot.slane %v19090_v49, 4  ;;  %v21337_v49 = vld [vmem:[#allocation49_spill] sm:$0xff] }
 0x9af   : > { %21327 = vst [vmem:[#allocation7_spill] sm:$0xff] %v19201_v29  ;;  %v19213_v14 = vperm.slane %v8835_v54, %v21052_v13  ;;  %v21329_v35 = vunpack.i.h.bf16 %v18486_v11  ;;  %v9202_v21 = vrot.slane %v10793_v59, 4  ;;  %v19219_v26 = vperm.slane %v9349_v1, %v21053_v46 }
 0x9b0   : > { %v19222_v17 = vperm.slane %v9019_v28, %v21053_v46  ;;  %v19225_v45 = vperm.slane %v8837_v24, %v21052_v13  ;;  %v9171_v18 = vperm.slane %v9165_v38, %v21052_v13  ;;  %v9033_v22 = vsel %vm366_vm0, %v19179_v9, %v9032_v61  ;;  %v19243_v24 = vpop.permute.xlu2 %8717 }
 0x9b1   : > { %v9167_v20 = vsel %vm366_vm0, %v21329_v35, %v9166_v7  ;;  %21330 = vst [vmem:[#allocation36_spill] sm:$0xff] %v19219_v26  ;;  %v9207_v54 = vperm.slane %v9201_v50, %v21052_v13  ;;  %v9374_v11 = vrot.slane %v19201_v29, 4  ;;  %v8235_v59 = vsel %vm366_vm0, %v8234_v40, %v19109_v42 }
 0x9b2   : > { %v8232_v7 = vrot.slane %v19009_v30, 4  ;;  %v8822_v28 = vrot.slane %v20356_v31, 4  ;;  %v19238_v1 = vperm.slane %v9167_v20, %v21052_v13  ;;  %8367 = vrot.lane.b32.xlu0 %v8235_v59, %s11107_s11  ;;  %v10809_v38 = vunpack.i.h.bf16 %v19063_v16 }
 0x9b3   : > { %v20357_v53 = vunpack.i.l.bf16 %v19063_v16  ;;  %v8870_v50 = vrot.slane %v19213_v14, 4  ;;  %v9203_v42 = vsel %vm366_vm0, %v10778_v43, %v9202_v21  ;;  %v9375_v30 = vsel %vm366_vm0, %v19219_v26, %v9374_v11  ;;  %v19257_v34 = vpop.permute.xlu1 %10866 }
 0x9b4   : > { %v8233_v40 = vsel %vm366_vm0, %v18993_v2, %v8232_v7  ;;  %v9214_v61 = vrot.slane %v9171_v18, 4  ;;  %v10985_v35 = vpack.i.bf16 %v9033_v22, %v9375_v30  ;;  %v8823_v20 = vsel %vm366_vm0, %v8822_v28, %v10809_v38  ;;  %21331 = vst [vmem:[#allocation42_spill] sm:$0xff] %v19257_v34  ;;  %v19264_v7 = vpop.permute.xlu0 %10846 }
 0x9b5   : > { %8363 = vrot.lane.b32.xlu2 %v8233_v40, %s11105_s9  ;;  %v8859_v59 = vsel %vm366_vm0, %v18787_v19, %v20357_v53  ;;  %v21332_v21 = vrot.slane %v19052_v6, 4  ;;  %v9236_v2 = vrot.slane %v9207_v54, 4  ;;  %v9239_v22 = vsel %vm366_vm0, %v9207_v54, %v9238_v39  ;;  %v21334_v54 = vld [vmem:[#allocation46_spill] sm:$0xff] }
 0x9b6   : > { %v19267_v28 = vperm.slane %v9203_v42, %v21052_v13  ;;  %v21333_v30 = vrot.slane %v18998_v32, 4  ;;  %10986 = vrot.lane.b32.xlu1 %v10985_v35, %s11109_s13  ;;  %v8829_v40 = vperm.slane %v8823_v20, %v21052_v13  ;;  %v9036_v43 = vrot.slane %v19095_v55, 4 }
 0x9b7   : > { %v9213_v11 = vsel %vm366_vm0, %v21332_v21, %v9171_v18  ;;  %v8865_v18 = vperm.slane %v8859_v59, %v21052_v13  ;;  %v19279_v39 = vperm.slane %v19070_v27, %v21053_v46  ;;  %v19283_v42 = vperm.slane %v21334_v54, %v21052_v13  ;;  %v21335_v21 = vld [vmem:[#allocation14_spill] sm:$0xff] }
 0x9b8   : > { %v9225_v19 = vsel %vm366_vm0, %v21333_v30, %v19238_v1  ;;  %v8640_v31 = vrot.slane %v21335_v21, 4  ;;  %v19289_v35 = vsel %vm366_vm0, %v19052_v6, %v9214_v61  ;;  %v19292_v20 = vperm.slane %v9213_v11, %v21053_v46 }
 0x9b9   : > { %v19295_v59 = vperm.slane %v9239_v22, %v21053_v46  ;;  %v19298_v27 = vperm.slane %v9225_v19, %v21053_v46  ;;  %v9237_v54 = vsel %vm366_vm0, %v9236_v2, %v19156_v10  ;;  %v9037_v53 = vsel %vm366_vm0, %v19182_v47, %v9036_v43 }
 0x9ba   : > { %21336 = vst [vmem:[#allocation12_spill] sm:$0xff] %v19292_v20  ;;  %v9378_v30 = vrot.slane %v18954_v36, 4  ;;  %v10824_v6 = vunpack.i.h.bf16 %v19058_v51  ;;  %v10823_v61 = vunpack.i.l.bf16 %v19058_v51  ;;  %v8824_v11 = vrot.slane %v10809_v38, 4  ;;  %v19320_v38 = vpop.permute.xlu2 %10881 }
 0x9bb   : > { %v8871_v29 = vsel %vm366_vm0, %v8870_v50, %v8829_v40  ;;  %v8894_v22 = vrot.slane %v8865_v18, 4  ;;  %v8641_v34 = vsel %vm366_vm0, %v8640_v31, %v21337_v49  ;;  %v8664_v10 = vrot.slane %v19283_v42, 4  ;;  %v19322_v50 = vpop.permute.xlu1 %8705 }
 0x9bc   : > { %v9379_v19 = vsel %vm366_vm0, %v19279_v39, %v9378_v30  ;;  %v19314_v43 = vperm.slane %v8641_v34, %v21053_v46  ;;  %v19317_v60 = vperm.slane %v9237_v54, %v21053_v46  ;;  %v9262_v51 = vrot.slane %v19292_v20, 4  ;;  %v21339_v30 = vld [vmem:[#allocation50_spill] sm:$0xff] }
 0x9bd   : > { %v11000_v2 = vpack.i.bf16 %v9037_v53, %v9379_v19  ;;  %v8872_v26 = vrot.slane %v8829_v40, 4  ;;  %v8665_v9 = vsel %vm366_vm0, %v8664_v10, %v21339_v30  ;;  %v21340_v31 = vrot.slane %v18678_v63, 4  ;;  %v19334_v19 = vpop.permute.xlu0 %10861  ;;  %v21343_v10 = vld [vmem:[#allocation16_spill] sm:$0xff] }
 0x9be   : > { %21338 = vst [vmem:[#allocation10_spill] sm:$0xff] %v19314_v43  ;;  %v21341_v34 = vrot.slane %v18720_v8, 4  ;;  %v19337_v20 = vperm.slane %v8871_v29, %v21053_v46  ;;  %v19341_v40 = vperm.slane %v8665_v9, %v21053_v46  ;;  %v8690_v63 = vrot.slane %v19314_v43, 4 }
 0x9bf   : > { %v8193_v53 = vsel %vm366_vm0, %v18611_v0, %v21340_v31  ;;  %11001 = vrot.lane.b32.xlu1 %v11000_v2, %s11105_s9  ;;  %v9263_v0 = vsel %vm366_vm0, %v19317_v60, %v9262_v51  ;;  %v8895_v8 = vsel %vm366_vm0, %v8894_v22, %v21343_v10  ;;  %v10819_v31 = vunpack.i.h.bf16 %v19145_v15 }
 0x9c0   : > { %v8217_v54 = vsel %vm366_vm0, %v18837_v5, %v21341_v34  ;;  %21342 = vst [vmem:[#allocation60_spill] sm:$0xff] %v19337_v20  ;;  %v10818_v29 = vunpack.i.l.bf16 %v19145_v15  ;;  %v21344_v2 = vrot.slane %v21343_v10, 4  ;;  %v8691_v34 = vsel %vm366_vm0, %v19341_v40, %v8690_v63 }
 0x9c1   : > { %v19349_v5 = vperm.slane %v8217_v54, %v21053_v46  ;;  %v19359_v43 = vperm.slane %v8193_v53, %v21053_v46  ;;  %v19363_v22 = vperm.slane %v18845_v62, %v21053_v46  ;;  %v10995_v51 = vpack.i.bf16 %v8691_v34, %v9263_v0  ;;  %v21347_v0 = vld [vmem:[#allocation32_spill] sm:$0xff] }
 0x9c2   : > { %v8897_v9 = vsel %vm366_vm0, %v8865_v18, %v21344_v2  ;;  %v6676_v15 = vsel %vm740_vm7, %v18923_v44, %v10819_v31  ;;  %v6669_v10 = vsel %vm740_vm7, %v18916_v33, %v10818_v29  ;;  %v21345_v18 = vunpack.i.l.bf16 %v19063_v16 }
 0x9c3   : > { %v8238_v54 = vrot.slane %v19349_v5, 4  ;;  %v19373_v63 = vsel %vm742_vm8, %v6676_v15, %v10824_v6  ;;  %v19376_v53 = vsel %vm742_vm8, %v6669_v10, %v10823_v61  ;;  %v19379_v62 = vperm.slane %v8895_v8, %v21053_v46  ;;  %10996 = vrot.lane.b32.xlu0 %v10995_v51, %s11109_s13  ;;  %v19395_v34 = vpop.permute.xlu1 %8721  ;;  %v21351_v15 = vld [vmem:[#allocation43_spill] sm:$0xff] }
 0x9c4   : > { %v8860_v2 = vrot.slane %v21345_v18, 4  ;;  %v8340_v31 = vrot.slane %v21347_v0, 4  ;;  %v8920_v33 = vrot.slane %v19337_v20, 4  ;;  %v9038_v16 = vrot.slane %v19222_v17, 4 }
 0x9c5   : > { %21346 = vst [vmem:[#allocation25_spill] sm:$0xff] %v19379_v62  ;;  %v8239_v44 = vsel %vm366_vm0, %v8238_v54, %v19359_v43  ;;  %v8873_v6 = vsel %vm366_vm0, %v19213_v14, %v8872_v26  ;;  %v19390_v61 = vperm.slane %v8897_v9, %v21053_v46  ;;  %v9380_v8 = vrot.slane %v19079_v12, 4  ;;  %v19404_v9 = vpop.permute.xlu0 %10876 }
 0x9c6   : > { %8375 = vrot.lane.b32.xlu2 %v8239_v44, %s11106_s10  ;;  %v9034_v29 = vrot.slane %v19182_v47, 4  ;;  %v8341_v51 = vsel %vm366_vm0, %v19363_v22, %v8340_v31  ;;  %v8921_v54 = vsel %vm366_vm0, %v19379_v62, %v8920_v33  ;;  %v9343_v14 = vperm.slane %v18939_v3, %v21053_v46  ;;  %v19412_v31 = vpop.permute.xlu2 %10896  ;;  %v21349_v33 = vld [vmem:[#allocation53_spill] sm:$0xff] }
 0x9c7   : > { %v9376_v26 = vrot.slane %v19279_v39, 4  ;;  %v21348_v10 = vunpack.i.h.bf16 %v18988_v23  ;;  %v11015_v18 = vpack.i.bf16 %v8341_v51, %v8921_v54  ;;  %v9039_v44 = vsel %vm366_vm0, %v9038_v16, %v19169_v48  ;;  %v21353_v23 = vld [vmem:[#allocation24_spill] sm:$0xff]  ;;  %v21354_v51 = vld [vmem:[#allocation41_spill] sm:$0xff] }
 0x9c8   : > { %v21350_v20 = vunpack.i.l.bf16 %v21349_v33  ;;  %v9381_v39 = vsel %vm366_vm0, %v9380_v8, %v9343_v14  ;;  %v9035_v0 = vsel %vm366_vm0, %v9034_v29, %v19095_v55  ;;  %v21352_v62 = vrot.slane %v21351_v15, 4 }
 0x9c9   : > { %v8825_v47 = vsel %vm366_vm0, %v21348_v10, %v8824_v11  ;;  %11016 = vrot.lane.b32.xlu1 %v11015_v18, %s11109_s13  ;;  %v8342_v54 = vrot.slane %v21354_v51, 4  ;;  %v19430_v10 = vperm.slane %v8873_v6, %v21053_v46  ;;  %v9377_v55 = vsel %vm366_vm0, %v9376_v26, %v18954_v36 }
 0x9ca   : > { %v8861_v3 = vsel %vm366_vm0, %v21350_v20, %v8860_v2  ;;  %v8293_v11 = vsel %vm366_vm0, %v21353_v23, %v21352_v62  ;;  %v8922_v20 = vrot.slane %v19390_v61, 4  ;;  %v11010_v2 = vpack.i.bf16 %v9039_v44, %v9381_v39 }
 0x9cb   : > { %v19426_v16 = vperm.slane %v8293_v11, %v21053_v46  ;;  %v8642_v8 = vrot.slane %v21337_v49, 4  ;;  %v21355_v62 = vrot.slane %v21339_v30, 4  ;;  %v10990_v15 = vpack.i.bf16 %v9035_v0, %v9377_v55  ;;  %v21356_v11 = vld [vmem:[#allocation27_spill] sm:$0xff]  ;;  %v19460_v55 = vpop.permute.xlu1 %10891 }
 0x9cc   : > { %v8923_v6 = vsel %vm366_vm0, %v8922_v20, %v19430_v10  ;;  %v19446_v44 = vperm.slane %v8861_v3, %v21052_v13  ;;  %11011 = vrot.lane.b32.xlu0 %v11010_v2, %s11107_s11  ;;  %v10854_v36 = vunpack.i.h.bf16 %v19192_v56  ;;  %v9040_v30 = vrot.slane %v19169_v48, 4  ;;  %v21357_v20 = vld [vmem:[#allocation11_spill] sm:$0xff] }
 0x9cd   : > { %v8667_v29 = vsel %vm366_vm0, %v19283_v42, %v21355_v62  ;;  %v8343_v18 = vsel %vm366_vm0, %v8342_v54, %v19426_v16  ;;  %v8643_v49 = vsel %vm366_vm0, %v21335_v21, %v8642_v8  ;;  %v9223_v42 = vperm.slane %v19289_v35, %v21053_v46  ;;  %v19467_v62 = vpop.permute.xlu0 %10886 }
 0x9ce   : > { %v8675_v33 = vperm.slane %v8667_v29, %v21053_v46  ;;  %10991 = vrot.lane.b32.xlu2 %v10990_v15, %s11108_s12  ;;  %v8651_v0 = vperm.slane %v8643_v49, %v21053_v46  ;;  %v9264_v3 = vrot.slane %v19295_v59, 4  ;;  %v11030_v39 = vpack.i.bf16 %v8343_v18, %v8923_v6  ;;  %v21358_v15 = vld [vmem:[#allocation31_spill] sm:$0xff]  ;;  %v21359_v6 = vld [vmem:[#allocation22_spill] sm:$0xff] }
 0x9cf   : > { %v9382_v23 = vrot.slane %v9343_v14, 4  ;;  %v7542_v54 = vrot.slane %v21356_v11, 4  ;;  %v7654_v2 = vrot.slane %v21357_v20, 4  ;;  %v9041_v21 = vsel %vm366_vm0, %v19222_v17, %v9040_v30 }
 0x9d0   : > { %v8692_v26 = vrot.slane %v8675_v33, 4  ;;  %v10849_v48 = vunpack.i.h.bf16 %v19264_v7  ;;  %v10848_v8 = vunpack.i.l.bf16 %v19264_v7  ;;  %v10853_v29 = vunpack.i.l.bf16 %v19192_v56 }
 0x9d1   : > { %v9265_v14 = vsel %vm366_vm0, %v9264_v3, %v9223_v42  ;;  %v7543_v18 = vsel %vm366_vm0, %v7542_v54, %v21358_v15  ;;  %v7655_v49 = vsel %vm366_vm0, %v7654_v2, %v21359_v6  ;;  %v21360_v17 = vrot.slane %v19162_v58, 4  ;;  %11031 = vrot.lane.b32.xlu1 %v11030_v39, %s11108_s12  ;;  %v19484_v3 = vpop.permute.xlu2 %10911 }
 0x9d2   : > { %v8693_v35 = vsel %vm366_vm0, %v8692_v26, %v8651_v0  ;;  %v9383_v7 = vsel %vm366_vm0, %v19079_v12, %v9382_v23  ;;  %v7733_v56 = vsel %vm738_vm6, %v7655_v49, %v10849_v48  ;;  %v7726_v26 = vsel %vm738_vm6, %v7543_v18, %v10848_v8  ;;  %v21361_v23 = vld [vmem:[#allocation44_spill] sm:$0xff] }
 0x9d3   : > { %v9251_v30 = vsel %vm366_vm0, %v19267_v28, %v21360_v17  ;;  %v19487_v11 = vperm.slane %v8825_v47, %v21052_v13  ;;  %v11025_v54 = vpack.i.bf16 %v9041_v21, %v9383_v7  ;;  %v7734_v20 = vsel %vm740_vm7, %v7733_v56, %v10854_v36 }
 0x9d4   : > { %v7727_v2 = vsel %vm740_vm7, %v7726_v26, %v10853_v29  ;;  %v11005_v15 = vpack.i.bf16 %v8693_v35, %v9265_v14  ;;  %v9029_v39 = vperm.slane %v19207_v57, %v21053_v46  ;;  %v9044_v12 = vrot.slane %v19172_v41, 4  ;;  %v21364_v26 = vld [vmem:[#allocation33_spill] sm:$0xff] }
 0x9d5   : > { %v9386_v48 = vrot.slane %v21361_v23, 4  ;;  %v19496_v8 = vperm.slane %v9251_v30, %v21053_v46  ;;  %v8906_v18 = vrot.slane %v19446_v44, 4  ;;  %11026 = vrot.lane.b32.xlu0 %v11025_v54, %s11103_s30  ;;  %v9384_v47 = vrot.slane %v19082_v37, 4  ;;  %v21363_v30 = vld [vmem:[#allocation56_spill] sm:$0xff] }
 0x9d6   : > { %v8694_v36 = vrot.slane %v8651_v0, 4  ;;  %11006 = vrot.lane.b32.xlu2 %v11005_v15, %s11108_s12  ;;  %v9045_v21 = vsel %vm366_vm0, %v9029_v39, %v9044_v12  ;;  %v9042_v35 = vrot.slane %v9029_v39, 4  ;;  %v9266_v29 = vrot.slane %v9223_v42, 4 }
 0x9d7   : > { %v9387_v57 = vsel %vm366_vm0, %v19082_v37, %v9386_v48  ;;  %v21362_v14 = vrot.slane %v19225_v45, 4  ;;  %v8576_v0 = vrot.slane %v21363_v30, 4  ;;  %v10864_v37 = vunpack.i.h.bf16 %v19334_v19  ;;  %v19530_v48 = vpop.permute.xlu1 %10906  ;;  %v21371_v30 = vld [vmem:[#allocation37_spill] sm:$0xff] }
 0x9d8   : > { %v11055_v49 = vpack.i.bf16 %v9045_v21, %v9387_v57  ;;  %v8695_v17 = vsel %vm366_vm0, %v8675_v33, %v8694_v36  ;;  %v9043_v7 = vsel %vm366_vm0, %v9042_v35, %v19172_v41  ;;  %v9267_v56 = vsel %vm366_vm0, %v19295_v59, %v9266_v29  ;;  %v21365_v33 = vld [vmem:[#allocation54_spill] sm:$0xff]  ;;  %v19541_v36 = vpop.permute.xlu0 %10901  ;;  %v21368_v35 = vld [vmem:[#allocation45_spill] sm:$0xff] }
 0x9d9   : > { %v19509_v6 = vsel %vm366_vm0, %v21362_v14, %v19487_v11  ;;  %v10863_v42 = vunpack.i.l.bf16 %v19334_v19  ;;  %v19521_v54 = vsel %vm366_vm0, %v8906_v18, %v21364_v26  ;;  %v9385_v15 = vsel %vm366_vm0, %v9384_v47, %v21361_v23 }
 0x9da   : > { %v8577_v39 = vsel %vm366_vm0, %v8576_v0, %v21365_v33  ;;  %v21366_v12 = vunpack.i.l.bf16 %v18949_v4  ;;  %11056 = vrot.lane.b32.xlu1 %v11055_v49, %s11104_s8  ;;  %v11040_v59 = vpack.i.bf16 %v9043_v7, %v9385_v15  ;;  %v21367_v23 = vunpack.i.h.bf16 %v18949_v4  ;;  %v19557_v0 = vpop.permute.xlu2 %10916 }
 0x9db   : > { %v8760_v19 = vsel %vm738_vm6, %v8577_v39, %v19322_v50  ;;  %v11020_v21 = vpack.i.bf16 %v8695_v17, %v9267_v56  ;;  %v8603_v29 = vperm.slane %v21368_v35, %v21052_v13  ;;  %v21369_v50 = vld [vmem:[#allocation51_spill] sm:$0xff]  ;;  %v21370_v49 = vrot.slane %v19238_v1, 4 }
 0x9dc   : > { %v7728_v41 = vsel %vm742_vm8, %v7727_v2, %v21366_v12  ;;  %v7735_v47 = vsel %vm742_vm8, %v7734_v20, %v21367_v23  ;;  %v8761_v2 = vsel %vm740_vm7, %v8760_v19, %v19085_v52  ;;  %v8678_v14 = vrot.slane %v21369_v50, 4  ;;  %v21372_v56 = vld [vmem:[#allocation35_spill] sm:$0xff]  ;;  %v21375_v12 = vld [vmem:[#allocation18_spill] sm:$0xff] }
 0x9dd   : > { %v19536_v18 = vsel %vm744_vm9, %v7728_v41, %v10863_v42  ;;  %v19546_v57 = vsel %vm744_vm9, %v7735_v47, %v10864_v37  ;;  %v9227_v4 = vsel %vm366_vm0, %v18998_v32, %v21370_v49  ;;  %v9272_v20 = vrot.slane %v19496_v8, 4  ;;  %11041 = vrot.lane.b32.xlu0 %v11040_v59, %s11106_s10 }
 0x9de   : > { %v8676_v17 = vrot.slane %v21371_v30, 4  ;;  %v8654_v52 = vrot.slane %v8603_v29, 4  ;;  %v9235_v7 = vperm.slane %v9227_v4, %v21053_v46  ;;  %v21373_v13 = vrot.slane %v21372_v56, 4  ;;  %11021 = vrot.lane.b32.xlu2 %v11020_v21, %s11105_s9 }
 0x9df   : > { %v21374_v1 = vrot.slane %v19267_v28, 4  ;;  %v8679_v42 = vsel %vm366_vm0, %v21371_v30, %v8678_v14  ;;  %v6954_v41 = vrot.slane %v21375_v12, 4  ;;  %v9270_v47 = vrot.slane %v19298_v27, 4 }
 0x9e0   : > { %v8653_v37 = vsel %vm366_vm0, %v21373_v13, %v8603_v29  ;;  %v8677_v33 = vsel %vm366_vm0, %v8676_v17, %v21369_v50  ;;  %v8655_v59 = vsel %vm366_vm0, %v21372_v56, %v8654_v52  ;;  %v8687_v28 = vperm.slane %v8679_v42, %v21053_v46  ;;  %v19601_v42 = vpop.permute.xlu0 %10921 }
 0x9e1   : > { %v9249_v32 = vsel %vm366_vm0, %v21374_v1, %v19162_v58  ;;  %v8659_v15 = vperm.slane %v8653_v37, %v21053_v46  ;;  %v8683_v58 = vperm.slane %v8677_v33, %v21053_v46  ;;  %v9273_v19 = vsel %vm366_vm0, %v9272_v20, %v9235_v7  ;;  %v21376_v37 = vld [vmem:[#allocation55_spill] sm:$0xff] }
 0x9e2   : > { %v9255_v39 = vperm.slane %v9249_v32, %v21053_v46  ;;  %v8663_v35 = vperm.slane %v8655_v59, %v21053_v46  ;;  %v8700_v29 = vrot.slane %v8687_v28, 4  ;;  %v8762_v14 = vsel %vm742_vm8, %v8761_v2, %v19166_v25  ;;  %v19597_v25 = vpop.permute.xlu1 %10926 }
 0x9e3   : > { %v8698_v23 = vrot.slane %v8659_v15, 4  ;;  %v8696_v50 = vrot.slane %v8683_v58, 4  ;;  %v8763_v20 = vsel %vm744_vm9, %v8762_v14, %v19243_v24  ;;  %v8884_v2 = vrot.slane %v19487_v11, 4 }
 0x9e4   : > { %v9268_v21 = vrot.slane %v9255_v39, 4  ;;  %v9271_v4 = vsel %vm366_vm0, %v9255_v39, %v9270_v47  ;;  %v8701_v17 = vsel %vm366_vm0, %v8700_v29, %v8663_v35  ;;  %v19595_v13 = vsel %vm746_vm10, %v8763_v20, %v19395_v34  ;;  %v21377_v39 = vld [vmem:[#allocation13_spill] sm:$0xff] }
 0x9e5   : > { %v8699_v49 = vsel %vm366_vm0, %v8683_v58, %v8698_v23  ;;  %v8697_v56 = vsel %vm366_vm0, %v8696_v50, %v8659_v15  ;;  %v6842_v1 = vrot.slane %v21376_v37, 4  ;;  %v11065_v32 = vpack.i.bf16 %v8701_v17, %v9273_v19  ;;  %v19614_v19 = vpop.permute.xlu2 %10931  ;;  %v21378_v23 = vld [vmem:[#allocation5_spill] sm:$0xff] }
 0x9e6   : > { %v9269_v30 = vsel %vm366_vm0, %v9268_v21, %v19298_v27  ;;  %v11050_v52 = vpack.i.bf16 %v8699_v49, %v9271_v4  ;;  %v10884_v24 = vunpack.i.h.bf16 %v19320_v38  ;;  %v8702_v33 = vrot.slane %v8663_v35, 4  ;;  %v21380_v49 = vld [vmem:[#allocation17_spill] sm:$0xff] }
 0x9e7   : > { %v11035_v27 = vpack.i.bf16 %v8697_v56, %v9269_v30  ;;  %v9274_v15 = vrot.slane %v9235_v7, 4  ;;  %v8333_v34 = vperm.slane %v21377_v39, %v21053_v46  ;;  %v10883_v12 = vunpack.i.l.bf16 %v19320_v38  ;;  %11066 = vrot.lane.b32.xlu1 %v11065_v32, %s11106_s10  ;;  %v21382_v32 = vld [vmem:[#allocation39_spill] sm:$0xff]  ;;  %v21385_v39 = vld [vmem:[#allocation29_spill] sm:$0xff] }
 0x9e8   : > { %11051 = vrot.lane.b32.xlu0 %v11050_v52, %s11103_s30  ;;  %v8913_v11 = vperm.slane %v19521_v54, %v21053_v46  ;;  %v8344_v59 = vrot.slane %v19426_v16, 4  ;;  %v8924_v58 = vrot.slane %v19430_v10, 4  ;;  %v6955_v7 = vsel %vm366_vm0, %v6954_v41, %v21378_v23  ;;  %v21379_v54 = vld [vmem:[#allocation19_spill] sm:$0xff] }
 0x9e9   : > { %11036 = vrot.lane.b32.xlu2 %v11035_v27, %s11107_s11  ;;  %v8703_v47 = vsel %vm366_vm0, %v8687_v28, %v8702_v33  ;;  %v8346_v21 = vrot.slane %v8333_v34, 4  ;;  %v8889_v38 = vperm.slane %v19509_v6, %v21053_v46  ;;  %v9275_v35 = vsel %vm366_vm0, %v19496_v8, %v9274_v15  ;;  %v21383_v33 = vld [vmem:[#allocation6_spill] sm:$0xff] }
 0x9ea   : > { %v8926_v29 = vrot.slane %v8913_v11, 4  ;;  %v8345_v16 = vsel %vm366_vm0, %v21354_v51, %v8344_v59  ;;  %v10894_v10 = vunpack.i.h.bf16 %v19460_v55  ;;  %v8925_v41 = vsel %vm366_vm0, %v19390_v61, %v8924_v58 }
 0x9eb   : > { %v8347_v50 = vsel %vm366_vm0, %v8346_v21, %v21379_v54  ;;  %v10893_v28 = vunpack.i.l.bf16 %v19460_v55  ;;  %v10889_v14 = vunpack.i.h.bf16 %v19467_v62  ;;  %v7033_v6 = vsel %vm738_vm6, %v6955_v7, %v10884_v24  ;;  %v19655_v24 = vpop.permute.xlu1 %10941  ;;  %v19668_v7 = vpop.permute.xlu0 %10936 }
 0x9ec   : > { %v6843_v8 = vsel %vm366_vm0, %v6842_v1, %v21380_v49  ;;  %v8927_v4 = vsel %vm366_vm0, %v8926_v29, %v8889_v38  ;;  %v10888_v51 = vunpack.i.l.bf16 %v19467_v62  ;;  %v21381_v30 = vrot.slane %v21364_v26, 4 }
 0x9ed   : > { %v7026_v61 = vsel %vm738_vm6, %v6843_v8, %v10883_v12  ;;  %v11060_v17 = vpack.i.bf16 %v8347_v50, %v8927_v4  ;;  %v7034_v55 = vsel %vm740_vm7, %v7033_v6, %v10889_v14  ;;  %v11075_v52 = vpack.i.bf16 %v8703_v47, %v9275_v35  ;;  %v21388_v12 = vld [vmem:[#allocation4_spill] sm:$0xff]  ;;  %v21389_v35 = vld [vmem:[#allocation23_spill] sm:$0xff] }
 0x9ee   : > { %v8909_v20 = vsel %vm366_vm0, %v19446_v44, %v21381_v30  ;;  %v11045_v56 = vpack.i.bf16 %v8345_v16, %v8925_v41  ;;  %v7027_v37 = vsel %vm740_vm7, %v7026_v61, %v10888_v51  ;;  %v19645_v1 = vsel %vm742_vm8, %v7034_v55, %v10894_v10  ;;  %v21390_v16 = vld [vmem:[#allocation57_spill] sm:$0xff]  ;;  %v21391_v8 = vld [vmem:[#allocation28_spill] sm:$0xff] }
 0x9ef   : > { %v8885_v62 = vsel %vm366_vm0, %v19225_v45, %v8884_v2  ;;  %v8240_v26 = vrot.slane %v19359_v43, 4  ;;  %v19652_v44 = vsel %vm742_vm8, %v7027_v37, %v10893_v28  ;;  %v7296_v27 = vrot.slane %v21382_v32, 4  ;;  %11076 = vrot.lane.b32.xlu1 %v11075_v52, %s11104_s8  ;;  %v21386_v2 = vld [vmem:[#allocation3_spill] sm:$0xff]  ;;  %v21393_v32 = vld [vmem:[#allocation30_spill] sm:$0xff] }
 0x9f0   : > { %11061 = vrot.lane.b32.xlu0 %v11060_v17, %s11107_s11  ;;  %v21384_v15 = vrot.slane %v21383_v33, 4  ;;  %v21387_v43 = vrot.slane %v21386_v2, 4  ;;  %v8348_v58 = vrot.slane %v21379_v54, 4  ;;  %v8928_v23 = vrot.slane %v8889_v38, 4  ;;  %v19679_v38 = vpop.permute.xlu2 %10946  ;;  %s298_s11 = scalar_lea.vmem %s20007_s7, %s11165_s26 }
 0x9f1   : > { %11046 = vrot.lane.b32.xlu2 %v11045_v56, %s11105_s9  ;;  %v8337_v29 = vperm.slane %v21389_v35, %v21053_v46  ;;  %v8352_v10 = vrot.slane %v21390_v16, 4  ;;  %v8893_v28 = vperm.slane %v8885_v62, %v21053_v46  ;;  %v8917_v54 = vperm.slane %v8909_v20, %v21053_v46 }
 0x9f2   : > { %v8543_v45 = vsel %vm366_vm0, %v21385_v39, %v21384_v15  ;;  %v8567_v59 = vsel %vm366_vm0, %v21388_v12, %v21387_v43  ;;  %v8349_v50 = vsel %vm366_vm0, %v8333_v34, %v8348_v58  ;;  %v8929_v41 = vsel %vm366_vm0, %v8913_v11, %v8928_v23  ;;  %v21392_v11 = vld [vmem:[#allocation58_spill] sm:$0xff] }
 0x9f3   : > { %v8551_v47 = vperm.slane %v8543_v45, %v21053_v46  ;;  %v8575_v21 = vperm.slane %v8567_v59, %v21053_v46  ;;  %v8241_v14 = vsel %vm366_vm0, %v19349_v5, %v8240_v26  ;;  %v8353_v49 = vsel %vm366_vm0, %v8337_v29, %v8352_v10  ;;  %v10957_v43 = vpop.permute.xlu1 %10956  ;;  %v10952_v58 = vpop.permute.xlu0 %10951 }
 0x9f4   : > { %v7184_v4 = vrot.slane %v21391_v8, 4  ;;  %v10919_v51 = vunpack.i.h.bf16 %v19557_v0  ;;  %v10918_v34 = vunpack.i.l.bf16 %v19557_v0  ;;  %v8932_v30 = vrot.slane %v8893_v28, 4 }
 0x9f5   : > { %v8590_v6 = vrot.slane %v8551_v47, 4  ;;  %v7297_v61 = vsel %vm366_vm0, %v7296_v27, %v21392_v11  ;;  %v11070_v20 = vpack.i.bf16 %v8349_v50, %v8929_v41  ;;  %v8350_v17 = vrot.slane %v8337_v29, 4  ;;  %v21394_v50 = vld [vmem:[#allocation20_spill] sm:$0xff] }
 0x9f6   : > { %v8933_v5 = vsel %vm366_vm0, %v8917_v54, %v8932_v30  ;;  %v8930_v52 = vrot.slane %v8917_v54, 4  ;;  %v10929_v56 = vunpack.i.h.bf16 %v19597_v25  ;;  %v10928_v62 = vunpack.i.l.bf16 %v19597_v25  ;;  %v21398_v30 = vld [vmem:[#allocation10_spill] sm:$0xff] }
 0x9f7   : > { %v8591_v46 = vsel %vm366_vm0, %v8575_v21, %v8590_v6  ;;  %v11085_v37 = vpack.i.bf16 %v8353_v49, %v8933_v5  ;;  %v8351_v0 = vsel %vm366_vm0, %v8350_v17, %v21390_v16  ;;  %v10924_v26 = vunpack.i.h.bf16 %v19601_v42  ;;  %v21396_v49 = vld [vmem:[#allocation52_spill] sm:$0xff] }
 0x9f8   : > { %v11090_v55 = vpack.i.bf16 %v8241_v14, %v8591_v46  ;;  %11071 = vrot.lane.b32.xlu0 %v11070_v20, %s11103_s30  ;;  %v7185_v27 = vsel %vm366_vm0, %v7184_v4, %v21393_v32  ;;  %v7375_v33 = vsel %vm738_vm6, %v7297_v61, %v10919_v51  ;;  %v10923_v15 = vunpack.i.l.bf16 %v19601_v42  ;;  %v10962_v29 = vpop.permute.xlu2 %10961  ;;  %v21397_v51 = vld [vmem:[#allocation21_spill] sm:$0xff] }
 0x9f9   : > { %v7368_v39 = vsel %vm738_vm6, %v7185_v27, %v10918_v34  ;;  %11086 = vrot.lane.b32.xlu2 %v11085_v37, %s11104_s8  ;;  %v8931_v45 = vsel %vm366_vm0, %v8930_v52, %v8893_v28  ;;  %v7376_v2 = vsel %vm740_vm7, %v7375_v33, %v10924_v26  ;;  %v8588_v25 = vrot.slane %v8575_v21, 4  ;;  %v21395_v28 = vld [vmem:[#allocation26_spill] sm:$0xff]  ;;  %v21399_v33 = vld [vmem:[#allocation59_spill] sm:$0xff] }
 0x9fa   : > { %11091 = vrot.lane.b32.xlu1 %v11090_v55, %s11104_s8  ;;  %v7369_v12 = vsel %vm740_vm7, %v7368_v39, %v10923_v15  ;;  %v19708_v59 = vsel %vm742_vm8, %v7376_v2, %v10929_v56  ;;  %v11080_v35 = vpack.i.bf16 %v8351_v0, %v8931_v45  ;;  %v10959_v16 = vunpack.i.h.bf16 %v10957_v43  ;;  %v21400_v39 = vld [vmem:[#allocation47_spill] sm:$0xff] }
 0x9fb   : > { %v19711_v23 = vsel %vm742_vm8, %v7369_v12, %v10928_v62  ;;  %v8589_v42 = vsel %vm366_vm0, %v8588_v25, %v8551_v47  ;;  %v10958_v10 = vunpack.i.l.bf16 %v10957_v43  ;;  %v7884_v41 = vrot.slane %v21394_v50, 4 }
 0x9fc   : > { %v7996_v21 = vrot.slane %v21395_v28, 4  ;;  %v10954_v54 = vunpack.i.h.bf16 %v10952_v58  ;;  %v10953_v14 = vunpack.i.l.bf16 %v10952_v58  ;;  %v8688_v6 = vrot.slane %v19341_v40, 4 }
 0x9fd   : > { %v7885_v8 = vsel %vm366_vm0, %v7884_v41, %v21396_v49  ;;  %v10963_v4 = vunpack.i.l.bf16 %v10962_v29  ;;  %v10964_v61 = vunpack.i.h.bf16 %v10962_v29  ;;  %v19739_v62 = vpop.permute.xlu1 %10971  ;;  %v8226_v15 = vrot.slane %v21399_v33, 4 }
 0x9fe   : > { %v7997_v47 = vsel %vm366_vm0, %v7996_v21, %v21397_v51  ;;  %v8068_v34 = vsel %vm738_vm6, %v7885_v8, %v10953_v14  ;;  %v19725_v11 = vsel %vm366_vm0, %v8688_v6, %v21398_v30  ;;  %v21401_v8 = vld [vmem:[#allocation34_spill] sm:$0xff]  ;;  %v21403_v30 = vld [vmem:[#allocation61_spill] sm:$0xff] }
 0x9ff   : > { %v8075_v46 = vsel %vm738_vm6, %v7997_v47, %v10954_v54  ;;  %v8069_v40 = vsel %vm740_vm7, %v8068_v34, %v10958_v10  ;;  %v8227_v45 = vsel %vm366_vm0, %v8226_v15, %v21400_v39  ;;  %v21402_v47 = vld [vmem:[#allocation40_spill] sm:$0xff]  ;;  %v21410_v15 = vld [vmem:[#allocation7_spill] sm:$0xff] }
 0xa00   : > { %11081 = vrot.lane.b32.xlu0 %v11080_v35, %s11106_s10  ;;  %v8076_v20 = vsel %vm740_vm7, %v8075_v46, %v10959_v16  ;;  %v8070_v17 = vsel %vm742_vm8, %v8069_v40, %v10963_v4  ;;  %v10967_v5 = vpop.permute.xlu0 %10966  ;;  %v21404_v46 = vld [vmem:[#allocation9_spill] sm:$0xff] }
 0xa01   : > { %v8077_v55 = vsel %vm742_vm8, %v8076_v20, %v10964_v61  ;;  %v10969_v52 = vunpack.i.h.bf16 %v10967_v5  ;;  %v10968_v56 = vunpack.i.l.bf16 %v10967_v5  ;;  %v9030_v61 = vrot.slane %v21403_v30, 4  ;;  %v21409_v30 = vld [vmem:[#allocation38_spill] sm:$0xff] }
 0xa02   : > { %v10874_v40 = vunpack.i.h.bf16 %v21404_v46 }
 0xa03   : > { %v19734_v37 = vsel %vm744_vm9, %v8070_v17, %v10968_v56  ;;  %v19737_v0 = vsel %vm744_vm9, %v8077_v55, %v10969_v52  ;;  %v21405_v17 = vld [vmem:[#allocation36_spill] sm:$0xff] }
 0xa04   : > { %v19743_v32 = vpop.permute.xlu2 %10976  ;;  %v9372_v55 = vrot.slane %v21405_v17, 4  ;;  %v21406_v52 = vld [vmem:[#allocation8_spill] sm:$0xff]  ;;  %v9031_v17 = vsel %vm366_vm0, %v9030_v61, %v21409_v30 }
 0xa06   : > { %v9373_v51 = vsel %vm366_vm0, %v9372_v55, %v21410_v15 }
 0xa08   : > { %8725 = vrot.lane.b32.xlu0 %v8589_v42, %s11106_s10  ;;  %v8360_v27 = vpop.permute.xlu1 %8359 }
 0xa0a   : > { %v19741_v26 = vpop.permute.xlu0 %10981 }
 0xa0f   : > { %v8364_v43 = vpop.permute.xlu2 %8363 }
 0xa19   : > { %v8372_v42 = vpop.permute.xlu1 %8371 }
 0xa1b   : > { %v8356_v2 = vpop.permute.xlu0 %8355 }
 0xa1c   : > { %v8410_v25 = vsel %vm738_vm6, %v8227_v45, %v8356_v2  ;;  %v21408_v2 = vld [vmem:[#allocation42_spill] sm:$0xff] }
 0xa1d   : > { %v8411_v12 = vsel %vm740_vm7, %v8410_v25, %v8360_v27  ;;  %v21407_v27 = vld [vmem:[#allocation15_spill] sm:$0xff]  ;;  %v10869_v25 = vunpack.i.h.bf16 %v21408_v2 }
 0xa1e   : > { %v8412_v58 = vsel %vm742_vm8, %v8411_v12, %v8364_v43 }
 0xa20   : > { %v19755_v50 = vpop.permute.xlu2 %8375 }
 0xa24   : > { %v8368_v35 = vpop.permute.xlu0 %8367 }
 0xa25   : > { %v8413_v29 = vsel %vm744_vm9, %v8412_v58, %v8368_v35 }
 0xa26   : > { %v19753_v16 = vsel %vm746_vm10, %v8413_v29, %v8372_v42 }
 0xa28   : > { %v10987_v10 = vpop.permute.xlu1 %10986  ;;  %v10992_v28 = vpop.permute.xlu2 %10991 }
 0xa29   : > { %v10989_v5 = vunpack.i.h.bf16 %v10987_v10  ;;  %v10988_v39 = vunpack.i.l.bf16 %v10987_v10  ;;  %v10994_v43 = vunpack.i.h.bf16 %v10992_v28  ;;  %v10993_v4 = vunpack.i.l.bf16 %v10992_v28 }
 0xa2b   : > { %v9109_v34 = vsel %vm738_vm6, %v9031_v17, %v10989_v5  ;;  %v9451_v35 = vsel %vm738_vm6, %v9373_v51, %v10988_v39  ;;  %v10974_v17 = vunpack.i.h.bf16 %v19739_v62 }
 0xa2c   : > { %v9110_v55 = vsel %vm740_vm7, %v9109_v34, %v10994_v43  ;;  %v9452_v42 = vsel %vm740_vm7, %v9451_v35, %v10993_v4 }
 0xa30   : > { %v19761_v6 = vpop.permute.xlu2 %11006 }
 0xa31   : > { %v11002_v41 = vpop.permute.xlu1 %11001 }
 0xa32   : > { %v11004_v20 = vunpack.i.h.bf16 %v11002_v41  ;;  %v11003_v33 = vunpack.i.l.bf16 %v11002_v41  ;;  %v9260_v41 = vrot.slane %v19317_v60, 4 }
 0xa34   : > { %v9111_v58 = vsel %vm742_vm8, %v9110_v55, %v11004_v20  ;;  %v9453_v51 = vsel %vm742_vm8, %v9452_v42, %v11003_v33  ;;  %v10903_v20 = vunpack.i.l.bf16 %v19541_v36  ;;  %v10934_v33 = vunpack.i.h.bf16 %v19614_v19 }
 0xa35   : > { %v19757_v21 = vpop.permute.xlu0 %10996  ;;  %v10984_v42 = vunpack.i.h.bf16 %v19741_v26 }
 0xa36   : > { %v10999_v28 = vunpack.i.h.bf16 %v19757_v21 }
 0xa38   : > { %v19788_v56 = vpop.permute.xlu2 %11021 }
 0xa3b   : > { %v19759_v54 = vpop.permute.xlu1 %11016 }
 0xa3e   : > { %v11012_v14 = vpop.permute.xlu0 %11011 }
 0xa3f   : > { %v11014_v61 = vunpack.i.h.bf16 %v11012_v14  ;;  %v11013_v30 = vunpack.i.l.bf16 %v11012_v14  ;;  %v10998_v14 = vunpack.i.l.bf16 %v19757_v21 }
 0xa41   : > { %v9112_v34 = vsel %vm744_vm9, %v9111_v58, %v11014_v61  ;;  %v10979_v58 = vunpack.i.h.bf16 %v19743_v32  ;;  %v21411_v61 = vld [vmem:[#allocation12_spill] sm:$0xff] }
 0xa43   : > { %v19763_v49 = vpop.permute.xlu1 %11031 }
 0xa47   : > { %v11027_v45 = vpop.permute.xlu0 %11026 }
 0xa48   : > { %v11029_v5 = vunpack.i.h.bf16 %v11027_v45  ;;  %v11028_v15 = vunpack.i.l.bf16 %v11027_v45  ;;  %v9454_v45 = vsel %vm744_vm9, %v9453_v51, %v11013_v30 }
 0xa4a   : > { %v9455_v4 = vsel %vm746_vm10, %v9454_v45, %v11028_v15  ;;  %v9113_v60 = vsel %vm746_vm10, %v9112_v34, %v11029_v5  ;;  %v10933_v5 = vunpack.i.l.bf16 %v19614_v19  ;;  %v11009_v15 = vunpack.i.h.bf16 %v19761_v6  ;;  %v11037_v34 = vpop.permute.xlu2 %11036 }
 0xa4b   : > { %v10949_v45 = vunpack.i.h.bf16 %v19679_v38  ;;  %v10838_v19 = vunpack.i.l.bf16 %v21406_v52 }
 0xa4c   : > { %v11057_v10 = vpop.permute.xlu1 %11056 }
 0xa4d   : > { %v11058_v39 = vunpack.i.l.bf16 %v11057_v10  ;;  %v11059_v55 = vunpack.i.h.bf16 %v11057_v10  ;;  %v8767_v10 = vsel %vm738_vm6, %v19725_v11, %v10999_v28  ;;  %v10944_v28 = vunpack.i.h.bf16 %v19655_v24 }
 0xa4f   : > { %v11042_v29 = vpop.permute.xlu0 %11041 }
 0xa50   : > { %v11044_v43 = vunpack.i.h.bf16 %v11042_v29  ;;  %v11043_v12 = vunpack.i.l.bf16 %v11042_v29  ;;  %v9261_v29 = vsel %vm366_vm0, %v9260_v41, %v21411_v61  ;;  %v11008_v41 = vunpack.i.l.bf16 %v19761_v6 }
 0xa51   : > { %v9444_v51 = vsel %vm738_vm6, %v9261_v29, %v10998_v14  ;;  %v11038_v6 = vunpack.i.l.bf16 %v11037_v34  ;;  %v10978_v29 = vunpack.i.l.bf16 %v19743_v32 }
 0xa52   : > { %v9456_v21 = vsel %vm748_vm11, %v9455_v4, %v11043_v12  ;;  %v9114_v35 = vsel %vm748_vm11, %v9113_v60, %v11044_v43  ;;  %v8079_v12 = vsel %vm746_vm10, %v19737_v0, %v10974_v17  ;;  %v8768_v4 = vsel %vm740_vm7, %v8767_v10, %v11009_v15 }
 0xa53   : > { %v9457_v30 = vsel %vm750_vm12, %v9456_v21, %v11058_v39  ;;  %v9115_v43 = vsel %vm750_vm12, %v9114_v35, %v11059_v55  ;;  %v8080_v11 = vsel %vm748_vm11, %v8079_v12, %v10979_v58  ;;  %v10939_v39 = vunpack.i.h.bf16 %v19668_v7 }
 0xa54   : > { %9489 = vmatpush.msrb.mxu1 %v9457_v30  ;;  %v19830_v14 = vsel %vm750_vm12, %v8080_v11, %v10984_v42  ;;  %v11024_v0 = vunpack.i.h.bf16 %v19788_v56  ;;  %v9445_v17 = vsel %vm740_vm7, %v9444_v51, %v11008_v41  ;;  %v11039_v60 = vunpack.i.h.bf16 %v11037_v34 }
 0xa55   : > { %v10938_v55 = vunpack.i.l.bf16 %v19668_v7  ;;  %v10973_v35 = vunpack.i.l.bf16 %v19739_v62  ;;  %v11023_v58 = vunpack.i.l.bf16 %v19788_v56  ;;  %v7737_v42 = vsel %vm746_vm10, %v19546_v57, %v10869_v25 }
 0xa56   : > { %9490 = vmatpush.msrb.mxu1 %v9115_v43  ;;  %v10983_v10 = vunpack.i.l.bf16 %v19741_v26  ;;  %v8769_v30 = vsel %vm742_vm8, %v8768_v4, %v11024_v0  ;;  %v7738_v7 = vsel %vm748_vm11, %v7737_v42, %v10874_v40  ;;  %v21412_v56 = vunpack.i.h.bf16 %v19404_v9 }
 0xa57   : > { %v9446_v62 = vsel %vm742_vm8, %v9445_v17, %v11023_v58  ;;  %v7378_v57 = vsel %vm744_vm9, %v19708_v59, %v10934_v33  ;;  %v8770_v32 = vsel %vm744_vm9, %v8769_v30, %v11039_v60  ;;  %v21413_v41 = vunpack.i.h.bf16 %v19412_v31 }
 0xa58   : > { %v19851_v51 = vsel %vm750_vm12, %v7738_v7, %v21412_v56  ;;  %v9447_v26 = vsel %vm744_vm9, %v9446_v62, %v11038_v6  ;;  %v7379_v34 = vsel %vm746_vm10, %v7378_v57, %v10939_v39  ;;  %v8072_v11 = vsel %vm746_vm10, %v19734_v37, %v10973_v35 }
 0xa59   : > { %v11067_v61 = vpop.permute.xlu1 %11066  ;;  %v7380_v40 = vsel %vm748_vm11, %v7379_v34, %v10944_v28  ;;  %v7036_v43 = vsel %vm744_vm9, %v19645_v1, %v21413_v41  ;;  %v21414_v33 = vunpack.i.h.bf16 %v19541_v36  ;;  %v8073_v39 = vsel %vm748_vm11, %v8072_v11, %v10978_v29 }
 0xa5a   : > { %v11052_v21 = vpop.permute.xlu0 %11051  ;;  %v11069_v12 = vunpack.i.h.bf16 %v11067_v61  ;;  %v11068_v4 = vunpack.i.l.bf16 %v11067_v61  ;;  %v19866_v59 = vsel %vm750_vm12, %v7380_v40, %v10949_v45  ;;  %v21415_v17 = vunpack.i.h.bf16 %v19530_v48 }
 0xa5b   : > { %v11053_v15 = vunpack.i.l.bf16 %v11052_v21  ;;  %v11054_v25 = vunpack.i.h.bf16 %v11052_v21  ;;  %v7037_v0 = vsel %vm746_vm10, %v7036_v43, %v21414_v33  ;;  %v19877_v1 = vsel %vm750_vm12, %v8073_v39, %v10983_v10 }
 0xa5c   : > { %v7038_v60 = vsel %vm748_vm11, %v7037_v0, %v21415_v17  ;;  %v21416_v37 = vunpack.i.h.bf16 %v21401_v8  ;;  %v21417_v35 = vunpack.i.h.bf16 %v19484_v3  ;;  %v21418_v61 = vunpack.i.h.bf16 %v21407_v27 }
 0xa5d   : > { %v9448_v28 = vsel %vm746_vm10, %v9447_v26, %v11053_v15  ;;  %v8771_v21 = vsel %vm746_vm10, %v8770_v32, %v11054_v25  ;;  %v21419_v29 = vunpack.i.l.bf16 %v21408_v2  ;;  %v10948_v30 = vunpack.i.l.bf16 %v19679_v38 }
 0xa5e   : > { %v6678_v45 = vsel %vm744_vm9, %v19373_v63, %v21416_v37  ;;  %v19887_v58 = vsel %vm750_vm12, %v7038_v60, %v21417_v35  ;;  %v10943_v63 = vunpack.i.l.bf16 %v19655_v24  ;;  %v21420_v62 = vunpack.i.h.bf16 %v21406_v52  ;;  %v21431_v35 = vld [vmem:[#allocation60_spill] sm:$0xff] }
 0xa5f   : > { %v6679_v42 = vsel %vm746_vm10, %v6678_v45, %v21418_v61  ;;  %v7730_v10 = vsel %vm746_vm10, %v19536_v18, %v21419_v29  ;;  %v21421_v56 = vunpack.i.l.bf16 %v21404_v46  ;;  %v21422_v2 = vunpack.i.h.bf16 %v21402_v47 }
 0xa60   : > { %v6680_v15 = vsel %vm748_vm11, %v6679_v42, %v21420_v62  ;;  %v21423_v18 = vunpack.i.l.bf16 %v19404_v9  ;;  %v9449_v38 = vsel %vm748_vm11, %v9448_v28, %v11068_v4  ;;  %v8772_v34 = vsel %vm748_vm11, %v8771_v21, %v11069_v12  ;;  %v11047_v4 = vpop.permute.xlu2 %11046  ;;  %v21429_v28 = vld [vmem:[#allocation25_spill] sm:$0xff] }
 0xa61   : > { %v11077_v7 = vpop.permute.xlu1 %11076  ;;  %v7731_v57 = vsel %vm748_vm11, %v7730_v10, %v21421_v56  ;;  %v19907_v25 = vsel %vm750_vm12, %v6680_v15, %v21422_v2  ;;  %v7371_v46 = vsel %vm744_vm9, %v19711_v23, %v10933_v5  ;;  %v21424_v40 = vunpack.i.l.bf16 %v19412_v31 }
 0xa62   : > { %v11062_v6 = vpop.permute.xlu0 %11061  ;;  %v11079_v32 = vunpack.i.h.bf16 %v11077_v7  ;;  %v11078_v26 = vunpack.i.l.bf16 %v11077_v7  ;;  %v19912_v24 = vsel %vm750_vm12, %v7731_v57, %v21423_v18  ;;  %v7372_v11 = vsel %vm746_vm10, %v7371_v46, %v10938_v55 }
 0xa63   : > { %v7029_v41 = vsel %vm744_vm9, %v19652_v44, %v21424_v40  ;;  %v7373_v31 = vsel %vm748_vm11, %v7372_v11, %v10943_v63  ;;  %v21425_v23 = vunpack.i.l.bf16 %v19530_v48  ;;  %v21426_v5 = vunpack.i.l.bf16 %v21401_v8 }
 0xa64   : > { %v9450_v43 = vsel %vm750_vm12, %v9449_v38, %v11078_v26  ;;  %v8773_v9 = vsel %vm750_vm12, %v8772_v34, %v11079_v32  ;;  %v7030_v12 = vsel %vm746_vm10, %v7029_v41, %v10903_v20  ;;  %v10843_v36 = vunpack.i.l.bf16 %v21402_v47 }
 0xa65   : > { %9469 = vmatpush.msrb.mxu0 %v9450_v43  ;;  %9491 = vmatpush.msrb.mxu1 %v8773_v9  ;;  %v7031_v44 = vsel %vm748_vm11, %v7030_v12, %v21425_v23  ;;  %v6671_v55 = vsel %vm744_vm9, %v19376_v53, %v21426_v5  ;;  %v7374_v20 = vsel %vm750_vm12, %v7373_v31, %v10948_v30  ;;  %v21427_v52 = vunpack.i.l.bf16 %v19484_v3 }
 0xa66   : > { %v21428_v0 = vunpack.i.l.bf16 %v21407_v27  ;;  %v8338_v48 = vrot.slane %v19363_v22, 4  ;;  %v8918_v17 = vrot.slane %v21429_v28, 4  ;;  %v11019_v53 = vunpack.i.h.bf16 %v19759_v54  ;;  %v21430_v27 = vld [vmem:[#allocation32_spill] sm:$0xff] }
 0xa67   : > { %v7032_v33 = vsel %vm750_vm12, %v7031_v44, %v21427_v52  ;;  %v11018_v47 = vunpack.i.l.bf16 %v19759_v54  ;;  %v11034_v3 = vunpack.i.h.bf16 %v19763_v49  ;;  %v11033_v45 = vunpack.i.l.bf16 %v19763_v49 }
 0xa68   : > { %v6672_v39 = vsel %vm746_vm10, %v6671_v55, %v21428_v0  ;;  %v8339_v21 = vsel %vm366_vm0, %v8338_v48, %v21430_v27  ;;  %v8919_v22 = vsel %vm366_vm0, %v8918_v17, %v21431_v35  ;;  %v11049_v29 = vunpack.i.h.bf16 %v11047_v4  ;;  %v11087_v15 = vpop.permute.xlu2 %11086 }
 0xa69   : > { %v6673_v8 = vsel %vm748_vm11, %v6672_v39, %v10838_v19  ;;  %v8417_v61 = vsel %vm738_vm6, %v8339_v21, %v11019_v53  ;;  %v9102_v42 = vsel %vm738_vm6, %v8919_v22, %v11018_v47  ;;  %v11048_v10 = vunpack.i.l.bf16 %v11047_v4 }
 0xa6a   : > { %v11072_v60 = vpop.permute.xlu0 %11071  ;;  %v6674_v37 = vsel %vm750_vm12, %v6673_v8, %v10843_v36  ;;  %v8418_v54 = vsel %vm740_vm7, %v8417_v61, %v11034_v3  ;;  %v9103_v30 = vsel %vm740_vm7, %v9102_v42, %v11033_v45  ;;  %v11064_v63 = vunpack.i.h.bf16 %v11062_v6 }
 0xa6b   : > { %v11063_v7 = vunpack.i.l.bf16 %v11062_v6  ;;  %v11074_v62 = vunpack.i.h.bf16 %v11072_v60  ;;  %v11073_v49 = vunpack.i.l.bf16 %v11072_v60  ;;  %v8419_v56 = vsel %vm742_vm8, %v8418_v54, %v11049_v29 }
 0xa6c   : > { %v9104_v57 = vsel %vm742_vm8, %v9103_v30, %v11048_v10  ;;  %v8420_v26 = vsel %vm744_vm9, %v8419_v56, %v11064_v63  ;;  %v11089_v34 = vunpack.i.h.bf16 %v11087_v15  ;;  %v11088_v46 = vunpack.i.l.bf16 %v11087_v15  ;;  %v11092_v12 = vpop.permute.xlu1 %11091 }
 0xa6d   : > { %v9105_v2 = vsel %vm744_vm9, %v9104_v57, %v11063_v7  ;;  %v8421_v6 = vsel %vm746_vm10, %v8420_v26, %v11074_v62  ;;  %v11094_v19 = vunpack.i.h.bf16 %v11092_v12  ;;  %v11093_v4 = vunpack.i.l.bf16 %v11092_v12 }
 0xa6e   : > { %v9106_v40 = vsel %vm746_vm10, %v9105_v2, %v11073_v49  ;;  %v8415_v5 = vsel %vm748_vm11, %v19753_v16, %v19755_v50  ;;  %v9505_v50 = vld.sshfl [vmem:[#allocation1 + $0x8] sm:$0xff pattern:$0x75316420] }
 0xa6f   : > { %v8416_v55 = vsel %vm750_vm12, %v8415_v5, %v11094_v19 }
 0xa72   : > { %v11082_v32 = vpop.permute.xlu0 %11081 }
 0xa73   : > { %v11084_v18 = vunpack.i.h.bf16 %v11082_v32  ;;  %v11083_v38 = vunpack.i.l.bf16 %v11082_v32 }
 0xa75   : > { %v9107_v41 = vsel %vm748_vm11, %v9106_v40, %v11083_v38  ;;  %v8422_v43 = vsel %vm748_vm11, %v8421_v6, %v11084_v18 }
 0xa76   : > { %v9108_v9 = vsel %vm750_vm12, %v9107_v41, %v11088_v46  ;;  %v8423_v11 = vsel %vm750_vm12, %v8422_v43, %v11089_v34 }
 0xa77   : > { %9470 = vmatpush.msrb.mxu0 %v9108_v9  ;;  %9492 = vmatpush.msrb.mxu1 %v8423_v11 }
 0xa79   : > { %9493 = vmatpush.msrb.mxu1 %v19830_v14 }
 0xa7a   : > { %v8726_v31 = vpop.permute.xlu0 %8725 }
 0xa7b   : > { %v8765_v23 = vsel %vm748_vm11, %v19595_v13, %v8726_v31  ;;  %9494 = vmatpush.msrb.mxu1 %v19851_v51  ;;  %v9458_v13 = vld [vmem:[%s20004_s4] sm:$0xf] }
 0xa7c   : > { %v8766_v44 = vsel %vm750_vm12, %v8765_v23, %v11093_v4 }
 0xa7d   : > { %9471 = vmatpush.msrb.mxu0 %v8766_v44  ;;  %9495 = vmatpush.msrb.mxu1 %v19866_v59  ;;  %v9504_v59 = vld.sshfl [vmem:[#allocation1] sm:$0xff pattern:$0x75316420] }
 0xa7f   : > { %9472 = vmatpush.msrb.mxu0 %v8416_v55  ;;  %9496 = vmatpush.msrb.mxu1 %v19887_v58 }
 0xa81   : > { %9473 = vmatpush.msrb.mxu0 %v19877_v1  ;;  %9497 = vmatpush.msrb.mxu1 %v19907_v25 }
 0xa82   : > { %9605 = vmatmul.msk.f32.vlgmr.msrb.gmra.mxu1 %vm5969_vm15, %v9458_v13 }
 0xa83   : > { %9474 = vmatpush.msrb.mxu0 %v19912_v24 }
 0xa85   : > { %9475 = vmatpush.msrb.mxu0 %v7374_v20 }
 0xa87   : > { %9476 = vmatpush.msrb.mxu0 %v7032_v33 }
 0xa89   : > { %9477 = vmatpush.msrb.mxu0 %v6674_v37 }
 0xa8a   : > { %9604 = vmatmul.msk.f32.vlgmr.msrb.gmra.mxu0 %vm5969_vm15, %v9458_v13 }
 0xaff   : > { %v9499_v16 = vpop.f32.mrf.mxu1 }
 0xb00   : > { %v9509_v14 = vmul.f32 %v9505_v50, %v9499_v16 }
 0xb02   : > { %v9512_v58 = vrot.slane %v9509_v14, 4 }
 0xb07   : > { %v9479_v51 = vpop.f32.mrf.mxu0 }
 0xb08   : > { %v9508_v1 = vmul.f32 %v9504_v59, %v9479_v51 }
 0xb0a   : > { %v9513_v25 = vsel %vm2453_vm13, %v9508_v1, %v9512_v58 }
 0xb0b   : > { %9515 = vst [vmem:[%s298_s11] sm:$0xff] %v9513_v25 }
 0xb0c PF: > { %s17_s24 = sadd.s32 1, %s11101_s24  }
 0xb0d   : > { %p14_p4 = scmp.ge.s32.totalorder %s17_s24, 4  }
 0xb0f   :  { %16 = sbr.rel (!%p14_p4) target bundleno = 1 (0x1), region = 88 }

</bundles_post_ra>
